<compile_context>
chip_gen: v5e
topology: v5e:2x2
jax: 0.10.0
libtpu: 0.0.40
codegen_flags: <defaults>
</compile_context>

<pallas_src>
import functools

import jax
import jax.numpy as jnp
from jax.experimental import pallas as pl
from jax.experimental.pallas import tpu as pltpu


_TN_CAP = 32          # max merged-batch rows per grid step; Npad is rounded up to this
_HOUT_ALIGN = 8       # conv output rows padded to a sublane multiple (free (tn,Hout) merge)


def _round_up(x, m):
    return ((x + m - 1) // m) * m


def _vmem_budgets():
    # Generation-aware VMEM budget: ~96 MiB scoped limit on 128 MiB parts (v5e/v6e),
    # ~48 MiB on 64 MiB parts (v7x).  Tile budget = limit/3 leaves headroom for
    # double-buffering plus the f32 accumulator / slab temporaries.
    cap = 64 * 1024 * 1024
    try:
        info = pltpu.get_tpu_info()
        cap = int(getattr(info, "vmem_capacity_bytes", cap))
    except Exception:
        pass
    limit = min((cap * 3) // 4, 96 * 1024 * 1024)
    return limit, max(limit // 3, 8 * 1024 * 1024)


_VMEM_LIMIT, _TILE_BUDGET = _vmem_budgets()


def _pick_tn(per_row_bytes, npad):
    tn = _TN_CAP
    while tn > 8 and tn * per_row_bytes > _TILE_BUDGET:
        tn //= 2
    tn = min(tn, npad)
    if npad // tn < 2 and tn > 8:      # keep the grid >= 2 so v7x megacore can shard it
        tn //= 2
    assert npad % tn == 0, (npad, tn)
    return tn


# ----------------------------------------------------------------------------------
# Generic channel-last conv kernel (conv1..conv4): one MXU dot per (folded) tap group.
#   x_ref : (tn, Hin, Cf)      bf16, zero-padded; stride already folded into Cf when >1
#   w_ref : (K*Cin, Cout)      bf16, row index = k*Cin + ci
#   b_ref : (1, Cout)          f32
#   o_ref : (tn, Hout8, Cout)  bf16 post-activation; rows >= true Hout are junk (sliced off
#                              by the consumer, which re-pads from the true height anyway)
# ----------------------------------------------------------------------------------
def _conv_kernel(x_ref, w_ref, b_ref, o_ref, *, groups, Hout8, apply_act):
    tn = x_ref.shape[0]
    Cout = o_ref.shape[2]
    M = tn * Hout8

    acc = None
    for row_off, w_lo, depth in groups:
        slab = x_ref[:, row_off:row_off + Hout8, 0:depth]      # contiguous bf16 slice
        slab = slab.reshape(M, depth)                          # Hout8 % 8 == 0 -> cheap merge
        part = jnp.dot(slab, w_ref[w_lo:w_lo + depth, :],
                       preferred_element_type=jnp.float32)     # (M, Cout) f32
        acc = part if acc is None else acc + part

    y = acc + b_ref[...]                                       # (1, Cout) broadcast
    if apply_act:
        y = jnp.maximum(y, 0.1 * y)                            # leaky_relu(0.1)
    o_ref[...] = y.reshape(tn, Hout8, Cout).astype(o_ref.dtype)


def conv_channels_last(x_nhc, h_true, w_oihw, bias, *, stride, pad, apply_act):
    """Conv2d with (K,1) kernel / (stride,1) / (pad,0) on the merged (N, H, C) layout.

    x_nhc: (Npad, Hphys, Cin); only the first h_true rows are valid.
    Returns (y, hout_true) with y: (Npad, round_up(hout_true, 8), Cout) bf16 post-act.
    """
    Cout, Cin, K, _ = w_oihw.shape
    N = x_nhc.shape[0]

    Hpad = h_true + 2 * pad
    Hout = (Hpad - K) // stride + 1
    Hout8 = _round_up(Hout, _HOUT_ALIGN)

    xv = x_nhc[:, :h_true, :].astype(jnp.bfloat16)
    if stride > 1:
        # Space-to-depth fold: every tap group becomes a contiguous, stride*Cin-deep slice.
        G = -(-K // stride)                                   # folded tap groups
        Hfold = max(-(-Hpad // stride), Hout8 + G - 1)
        Hphys = Hfold * stride
        xp = jnp.pad(xv, ((0, 0), (pad, Hphys - h_true - pad), (0, 0)))
        xp = xp.reshape(N, Hfold, stride * Cin)
        groups = tuple((g, g * stride * Cin, min(stride, K - g * stride) * Cin)
                       for g in range(G))
        Hin_k, Cf = Hfold, stride * Cin
    else:
        Hin_k = max(Hpad, Hout8 + K - 1)
        xp = jnp.pad(xv, ((0, 0), (pad, Hin_k - h_true - pad), (0, 0)))
        groups = tuple((k, k * Cin, Cin) for k in range(K))
        Cf = Cin

    # flat weight: row = k*Cin + ci (matches folded / per-tap slab order); bf16 for the MXU
    w_flat = jnp.transpose(w_oihw[:, :, :, 0], (2, 1, 0)).reshape(K * Cin, Cout)
    w_flat = w_flat.astype(jnp.bfloat16)
    b2 = bias.reshape(1, Cout).astype(jnp.float32)

    cf_l = _round_up(Cf, 128)
    co_l = _round_up(Cout, 128)
    per_row = (2 * (Hin_k * cf_l * 2 + Hout8 * co_l * 2)      # double-buffered in/out blocks
               + Hout8 * co_l * 4 + Hout8 * cf_l * 2)         # f32 accumulator + live slab
    tn = _pick_tn(per_row, N)

    kernel = functools.partial(_conv_kernel, groups=groups, Hout8=Hout8, apply_act=apply_act)
    cost = pl.CostEstimate(
        flops=int(2 * N * Hout * K * Cin * Cout),
        transcendentals=0,
        bytes_accessed=int(N * Hin_k * Cf * 2 + N * Hout8 * Cout * 2
                           + K * Cin * Cout * 2 + Cout * 4))

    out = pl.pallas_call(
        kernel,
        grid=(N // tn,),
        in_specs=[
            pl.BlockSpec((tn, Hin_k, Cf), lambda i: (i, 0, 0)),
            pl.BlockSpec((K * Cin, Cout), lambda i: (0, 0)),
            pl.BlockSpec((1, Cout), lambda i: (0, 0)),
        ],
        out_specs=pl.BlockSpec((tn, Hout8, Cout), lambda i: (i, 0, 0)),
        out_shape=jax.ShapeDtypeStruct((N, Hout8, Cout), jnp.bfloat16),
        compiler_params=pltpu.CompilerParams(
            dimension_semantics=("parallel",),
            vmem_limit_bytes=_VMEM_LIMIT),
        cost_estimate=cost,
    )(xp, w_flat, b2)
    return out, Hout


# ----------------------------------------------------------------------------------
# Layer-0 kernel (Cin=1, Cout=4): lane-dense along H, pure VPU multiply-adds.
#   xc_ref : (tn, K, Hout)    f32, xc[n, k, ho] = x_pad[n, 3*ho + k]  (de-strided in XLA)
#   w_ref  : (Cout, K)        f32 in SMEM (scalar reads)
#   b_ref  : (1, Cout)        f32 in SMEM
#   o_ref  : (tn, Cout, Hout) bf16 post-activation, H lane-dense
# ----------------------------------------------------------------------------------
def _conv0_kernel(xc_ref, w_ref, b_ref, o_ref, *, K, Cout):
    taps = [xc_ref[:, k:k + 1, :] for k in range(K)]          # load each tap once, reuse
    for co in range(Cout):
        acc = taps[0] * w_ref[co, 0]
        for k in range(1, K):
            acc = acc + taps[k] * w_ref[co, k]
        acc = acc + b_ref[0, co]
        o_ref[:, co:co + 1, :] = jnp.maximum(acc, 0.1 * acc).astype(o_ref.dtype)


def conv0_lane_dense(x_nh, w_oihw, bias, *, stride=3, pad=2):
    Cout, _, K, _ = w_oihw.shape
    N, H = x_nh.shape

    xp = jnp.pad(x_nh.astype(jnp.float32), ((0, 0), (pad, pad)))
    Hpad = H + 2 * pad
    Hout = (Hpad - K) // stride + 1
    # TODO(synk): this de-stride costs one extra pass over the raw audio; fold it into a
    #             fused conv0+conv1 kernel to remove it.
    xcols = jnp.stack([xp[:, k:k + stride * (Hout - 1) + 1:stride] for k in range(K)], axis=1)

    w2 = w_oihw[:, 0, :, 0].astype(jnp.float32)               # (Cout, K) -> SMEM scalars
    b2 = bias.reshape(1, Cout).astype(jnp.float32)

    per_row = 2 * (_round_up(K, 8) * _round_up(Hout, 128) * 4
                   + _round_up(Cout, 8) * _round_up(Hout, 128) * 2)
    tn = _pick_tn(per_row, N)

    kernel = functools.partial(_conv0_kernel, K=K, Cout=Cout)
    cost = pl.CostEstimate(
        flops=int(2 * N * Hout * K * Cout),
        transcendentals=0,
        bytes_accessed=int(N * K * Hout * 4 + N * Cout * Hout * 2 + K * Cout * 4))

    out = pl.pallas_call(
        kernel,
        grid=(N // tn,),
        in_specs=[
            pl.BlockSpec((tn, K, Hout), lambda i: (i, 0, 0)),
            pl.BlockSpec(memory_space=pltpu.MemorySpace.SMEM),
            pl.BlockSpec(memory_space=pltpu.MemorySpace.SMEM),
        ],
        out_specs=pl.BlockSpec((tn, Cout, Hout), lambda i: (i, 0, 0)),
        out_shape=jax.ShapeDtypeStruct((N, Cout, Hout), jnp.bfloat16),
        compiler_params=pltpu.CompilerParams(
            dimension_semantics=("parallel",),
            vmem_limit_bytes=_VMEM_LIMIT),
        cost_estimate=cost,
    )(xcols, w2, b2)
    return out, Hout


# ----------------------------------------------------------------------------------
# conv_post kernel (Cout=1): VPU multiply + lane reduction, lane-dense (tn, Hout) store.
#   x_ref : (tn, Hpad, Cin) f32 ; w_ref : (K, Cin) f32 ; o_ref : (tn, Hout) f32
# ----------------------------------------------------------------------------------
def _conv_post_kernel(x_ref, w_ref, o_ref, *, K, Hout):
    acc = None
    for k in range(K):
        term = jnp.sum(x_ref[:, k:k + Hout, :] * w_ref[k:k + 1, :], axis=-1)   # (tn, Hout)
        acc = term if acc is None else acc + term
    o_ref[...] = acc


def conv_post_lane_dense(x_nhc, h_true, w_eff, *, pad):
    _, Cin, K, _ = w_eff.shape
    N = x_nhc.shape[0]
    Hpad = h_true + 2 * pad
    Hout = Hpad - K + 1

    xp = jnp.pad(x_nhc[:, :h_true, :].astype(jnp.float32), ((0, 0), (pad, pad), (0, 0)))
    w2 = jnp.transpose(w_eff[0, :, :, 0], (1, 0)).astype(jnp.float32)         # (K, Cin)

    per_row = 2 * (Hpad * _round_up(Cin, 128) * 4 + 8 * _round_up(Hout, 128) * 4)
    tn = _pick_tn(per_row, N)

    kernel = functools.partial(_conv_post_kernel, K=K, Hout=Hout)
    cost = pl.CostEstimate(
        flops=int(2 * N * Hout * K * Cin),
        transcendentals=0,
        bytes_accessed=int(N * Hpad * Cin * 4 + N * Hout * 4 + K * Cin * 4))

    out = pl.pallas_call(
        kernel,
        grid=(N // tn,),
        in_specs=[
            pl.BlockSpec((tn, Hpad, Cin), lambda i: (i, 0, 0)),
            pl.BlockSpec((K, Cin), lambda i: (0, 0)),
        ],
        out_specs=pl.BlockSpec((tn, Hout), lambda i: (i, 0)),
        out_shape=jax.ShapeDtypeStruct((N, Hout), jnp.float32),
        compiler_params=pltpu.CompilerParams(
            dimension_semantics=("parallel",),
            vmem_limit_bytes=_VMEM_LIMIT),
        cost_estimate=cost,
    )(xp, w2)
    return out, Hout


# ----------------------------------------------------------------------------------
# Layout glue (plain XLA): merged (Npad, ...) <-> PyTorch NCHW (b, C, H, period)
# ----------------------------------------------------------------------------------
def _nhc_to_nchw(y, b, period, n_valid, h_true):
    """(Npad, Hphys, C) -> (b, C, h_true, period)."""
    yv = y[:n_valid, :h_true, :]
    C = yv.shape[-1]
    return jnp.transpose(yv.reshape(b, period, h_true, C), (0, 3, 2, 1))


def _nch_to_nchw(y, b, period, n_valid):
    """(Npad, C, H) -> (b, C, H, period)."""
    _, C, H = y.shape
    return jnp.transpose(y[:n_valid].reshape(b, period, C, H), (0, 2, 3, 1))


# ----------------------------------------------------------------------------------
# Parameters (deterministic, synthetic).  weight_norm at init is an identity
# re-parameterization, so plain weights suffice.
# ----------------------------------------------------------------------------------
def init_params(key, kernel_size=5):
    d = 1
    chans = [(1, 4 * d), (4 * d, 32 * d), (32 * d, 128 * d),
             (128 * d, 128 * d), (128 * d, 128 * d)]
    params = {}
    keys = jax.random.split(key, len(chans) * 2 + 3)
    ki = 0
    for li, (cin, cout) in enumerate(chans):
        w = 0.05 * jax.random.normal(keys[ki], (cout, cin, kernel_size, 1), jnp.float32); ki += 1
        bq = 0.05 * jax.random.normal(keys[ki], (cout,), jnp.float32); ki += 1
        params[f"conv{li}"] = (w, bq)
    # SANConv2d(128, 1, (3,1), stride=1, padding=(1,0))
    w_post = 0.05 * jax.random.normal(keys[ki], (1, 128 * d, 3, 1), jnp.float32); ki += 1
    scale_post = 1.0 + 0.1 * jax.random.normal(keys[ki], (1,), jnp.float32); ki += 1
    b_post_in = 0.05 * jax.random.normal(keys[ki], (128 * d,), jnp.float32); ki += 1
    params["post"] = (w_post, b_post_in, scale_post)
    return params


# ----------------------------------------------------------------------------------
# DiscriminatorP.forward (flg_train=False path)
# ----------------------------------------------------------------------------------
def discriminator_p_forward(x, params, period):
    """x: (b, 1, t) float32.  Returns (flattened_out, fmap) like the PyTorch module."""
    b, c, t = x.shape
    if t % period != 0:
        n_pad = period - t % period
        x = jnp.pad(x, ((0, 0), (0, 0), (0, n_pad)), mode="reflect")
        t = t + n_pad
    H = t // period

    # NCHW (b, 1, H, period) -> merged (N = b*period, H); pad N up to the tile cap
    x4 = x.reshape(b, c, H, period)
    xm = jnp.transpose(x4[:, 0, :, :], (0, 2, 1)).reshape(b * period, H)
    N = b * period
    Npad = _round_up(N, _TN_CAP)
    if Npad != N:
        xm = jnp.pad(xm, ((0, Npad - N), (0, 0)))

    fmap = []

    # conv0: lane-dense VPU kernel.  fmap holds post-activation (the reference's inplace
    # leaky_relu mutates the tensor already appended to fmap).
    w0, b0 = params["conv0"]
    act0, h_true = conv0_lane_dense(xm, w0, b0, stride=3, pad=2)     # (Npad, 4, h0) bf16
    fmap.append(_nch_to_nchw(act0, b, period, N))
    xk = jnp.transpose(act0, (0, 2, 1))                              # (Npad, h0, 4) bf16

    # conv1..conv4: channel-last MXU kernels (stride-3 layers use the space-to-depth fold)
    strides = [3, 3, 3, 1]
    for li in range(1, 5):
        w, bias = params[f"conv{li}"]
        xk, h_true = conv_channels_last(xk, h_true, w, bias,
                                        stride=strides[li - 1], pad=2, apply_act=True)
        fmap.append(_nhc_to_nchw(xk, b, period, N, h_true))          # post-activation

    # conv_post: SANConv2d inference path (BigVSAN-style, see module-level TODO):
    #   out = conv(input + per-in-channel bias, L2-normalized weight) * per-out-channel scale
    w_post, b_post_in, scale_post = params["post"]
    norm = jnp.sqrt(jnp.sum(w_post * w_post, axis=(1, 2, 3), keepdims=True))
    w_eff = (w_post / jnp.maximum(norm, 1e-12)) * scale_post.reshape(-1, 1, 1, 1)
    x_in = xk[:, :h_true, :].astype(jnp.float32) + b_post_in.reshape(1, 1, -1)
    y_post, hp = conv_post_lane_dense(x_in, h_true, w_eff, pad=1)    # (Npad, hp) f32

    yp = jnp.transpose(y_post[:N].reshape(b, period, hp), (0, 2, 1)) # (b, hp, period)
    out_nchw = yp[:, None, :, :]                                     # (b, 1, hp, period)
    fmap.append(out_nchw)
    out = out_nchw.reshape(b, -1)                                    # torch.flatten(x, 1, -1)
    return out, fmap


if __name__ == "__main__":
    key = jax.random.PRNGKey(0)
    k_in, k_par = jax.random.split(key)

    period = 3
    b, c, t = 2, 1, 43                     # t not divisible by period -> exercises reflect pad
    x = jax.random.normal(k_in, (b, c, t), jnp.float32)
    params = init_params(k_par)

    fwd = jax.jit(functools.partial(discriminator_p_forward, period=period))
    out, fmap = fwd(x, params)
    out = jax.block_until_ready(out)
    for f in fmap:
        jax.block_until_ready(f)

    assert out.ndim == 2 and out.shape[0] == b
    assert len(fmap) == 6
    assert fmap[0].shape == (b, 4, 5, period)       # conv0 post-activation, NCHW
    assert fmap[-1].shape[1] == 1                   # conv_post has 1 output channel
    print("KERNEL_OK")
</pallas_src>

<mosaic_0001>
module attributes {stable_mosaic.version = 11 : i64} {
  func.func @_conv0_kernel(%arg0: i32, %arg1: memref<16x5x5xf32, #tpu.memory_space<vmem>>, %arg2: memref<4x5xf32, #tpu.memory_space<smem>>, %arg3: memref<1x4xf32, #tpu.memory_space<smem>>, %arg4: memref<16x4x5xbf16, #tpu.memory_space<vmem>>) attributes {dimension_semantics = [#tpu.dimension_semantics<parallel>], iteration_bounds = array<i64: 2>, scalar_prefetch = 0 : i64, scratch_operands = 0 : i64, tpu.core_type = #tpu.core_type<tc>, window_params = [{transform_indices = @transform_0, window_bounds = array<i64: 16, 5, 5>}, {transform_indices = @transform_1, window_bounds = array<i64: 4, 5>}, {transform_indices = @transform_2, window_bounds = array<i64: 1, 4>}, {transform_indices = @transform_3, window_bounds = array<i64: 16, 4, 5>}]} {
    %c0 = arith.constant 0 : index
    %c0_0 = arith.constant 0 : index
    %c0_1 = arith.constant 0 : index
    %0 = vector.load %arg1[%c0, %c0_0, %c0_1] : memref<16x5x5xf32, #tpu.memory_space<vmem>>, vector<16x1x5xf32>
    %c0_2 = arith.constant 0 : index
    %c1 = arith.constant 1 : index
    %c0_3 = arith.constant 0 : index
    %1 = vector.load %arg1[%c0_2, %c1, %c0_3] : memref<16x5x5xf32, #tpu.memory_space<vmem>>, vector<16x1x5xf32>
    %c0_4 = arith.constant 0 : index
    %c2 = arith.constant 2 : index
    %c0_5 = arith.constant 0 : index
    %2 = vector.load %arg1[%c0_4, %c2, %c0_5] : memref<16x5x5xf32, #tpu.memory_space<vmem>>, vector<16x1x5xf32>
    %c0_6 = arith.constant 0 : index
    %c3 = arith.constant 3 : index
    %c0_7 = arith.constant 0 : index
    %3 = vector.load %arg1[%c0_6, %c3, %c0_7] : memref<16x5x5xf32, #tpu.memory_space<vmem>>, vector<16x1x5xf32>
    %c0_8 = arith.constant 0 : index
    %c4 = arith.constant 4 : index
    %c0_9 = arith.constant 0 : index
    %4 = vector.load %arg1[%c0_8, %c4, %c0_9] : memref<16x5x5xf32, #tpu.memory_space<vmem>>, vector<16x1x5xf32>
    %c0_10 = arith.constant 0 : index
    %c0_11 = arith.constant 0 : index
    %5 = memref.load %arg2[%c0_10, %c0_11] : memref<4x5xf32, #tpu.memory_space<smem>>
    %6 = vector.broadcast %5 : f32 to vector<16x1x5xf32>
    %7 = arith.mulf %0, %6 : vector<16x1x5xf32>
    %c0_12 = arith.constant 0 : index
    %c1_13 = arith.constant 1 : index
    %8 = memref.load %arg2[%c0_12, %c1_13] : memref<4x5xf32, #tpu.memory_space<smem>>
    %9 = vector.broadcast %8 : f32 to vector<16x1x5xf32>
    %10 = arith.mulf %1, %9 : vector<16x1x5xf32>
    %11 = arith.addf %7, %10 : vector<16x1x5xf32>
    %c0_14 = arith.constant 0 : index
    %c2_15 = arith.constant 2 : index
    %12 = memref.load %arg2[%c0_14, %c2_15] : memref<4x5xf32, #tpu.memory_space<smem>>
    %13 = vector.broadcast %12 : f32 to vector<16x1x5xf32>
    %14 = arith.mulf %2, %13 : vector<16x1x5xf32>
    %15 = arith.addf %11, %14 : vector<16x1x5xf32>
    %c0_16 = arith.constant 0 : index
    %c3_17 = arith.constant 3 : index
    %16 = memref.load %arg2[%c0_16, %c3_17] : memref<4x5xf32, #tpu.memory_space<smem>>
    %17 = vector.broadcast %16 : f32 to vector<16x1x5xf32>
    %18 = arith.mulf %3, %17 : vector<16x1x5xf32>
    %19 = arith.addf %15, %18 : vector<16x1x5xf32>
    %c0_18 = arith.constant 0 : index
    %c4_19 = arith.constant 4 : index
    %20 = memref.load %arg2[%c0_18, %c4_19] : memref<4x5xf32, #tpu.memory_space<smem>>
    %21 = vector.broadcast %20 : f32 to vector<16x1x5xf32>
    %22 = arith.mulf %4, %21 : vector<16x1x5xf32>
    %23 = arith.addf %19, %22 : vector<16x1x5xf32>
    %c0_20 = arith.constant 0 : index
    %c0_21 = arith.constant 0 : index
    %24 = memref.load %arg3[%c0_20, %c0_21] : memref<1x4xf32, #tpu.memory_space<smem>>
    %25 = vector.broadcast %24 : f32 to vector<16x1x5xf32>
    %26 = arith.addf %23, %25 : vector<16x1x5xf32>
    %cst = arith.constant 1.000000e-01 : f32
    %27 = vector.broadcast %cst : f32 to vector<16x1x5xf32>
    %28 = arith.mulf %27, %26 : vector<16x1x5xf32>
    %29 = arith.maximumf %26, %28 : vector<16x1x5xf32>
    %30 = arith.truncf %29 : vector<16x1x5xf32> to vector<16x1x5xbf16>
    %c0_22 = arith.constant 0 : index
    %c0_23 = arith.constant 0 : index
    %c0_24 = arith.constant 0 : index
    %31 = vector.load %arg4[%c0_22, %c0_23, %c0_24] : memref<16x4x5xbf16, #tpu.memory_space<vmem>>, vector<16x1x5xbf16>
    tpu.vector_store %arg4[%c0_22, %c0_23, %c0_24], %30 {strides = array<i32>} : memref<16x4x5xbf16, #tpu.memory_space<vmem>>, vector<16x1x5xbf16>,
    %c1_25 = arith.constant 1 : index
    %c0_26 = arith.constant 0 : index
    %32 = memref.load %arg2[%c1_25, %c0_26] : memref<4x5xf32, #tpu.memory_space<smem>>
    %33 = vector.broadcast %32 : f32 to vector<16x1x5xf32>
    %34 = arith.mulf %0, %33 : vector<16x1x5xf32>
    %c1_27 = arith.constant 1 : index
    %c1_28 = arith.constant 1 : index
    %35 = memref.load %arg2[%c1_27, %c1_28] : memref<4x5xf32, #tpu.memory_space<smem>>
    %36 = vector.broadcast %35 : f32 to vector<16x1x5xf32>
    %37 = arith.mulf %1, %36 : vector<16x1x5xf32>
    %38 = arith.addf %34, %37 : vector<16x1x5xf32>
    %c1_29 = arith.constant 1 : index
    %c2_30 = arith.constant 2 : index
    %39 = memref.load %arg2[%c1_29, %c2_30] : memref<4x5xf32, #tpu.memory_space<smem>>
    %40 = vector.broadcast %39 : f32 to vector<16x1x5xf32>
    %41 = arith.mulf %2, %40 : vector<16x1x5xf32>
    %42 = arith.addf %38, %41 : vector<16x1x5xf32>
    %c1_31 = arith.constant 1 : index
    %c3_32 = arith.constant 3 : index
    %43 = memref.load %arg2[%c1_31, %c3_32] : memref<4x5xf32, #tpu.memory_space<smem>>
    %44 = vector.broadcast %43 : f32 to vector<16x1x5xf32>
    %45 = arith.mulf %3, %44 : vector<16x1x5xf32>
    %46 = arith.addf %42, %45 : vector<16x1x5xf32>
    %c1_33 = arith.constant 1 : index
    %c4_34 = arith.constant 4 : index
    %47 = memref.load %arg2[%c1_33, %c4_34] : memref<4x5xf32, #tpu.memory_space<smem>>
    %48 = vector.broadcast %47 : f32 to vector<16x1x5xf32>
    %49 = arith.mulf %4, %48 : vector<16x1x5xf32>
    %50 = arith.addf %46, %49 : vector<16x1x5xf32>
    %c0_35 = arith.constant 0 : index
    %c1_36 = arith.constant 1 : index
    %51 = memref.load %arg3[%c0_35, %c1_36] : memref<1x4xf32, #tpu.memory_space<smem>>
    %52 = vector.broadcast %51 : f32 to vector<16x1x5xf32>
    %53 = arith.addf %50, %52 : vector<16x1x5xf32>
    %cst_37 = arith.constant 1.000000e-01 : f32
    %54 = vector.broadcast %cst_37 : f32 to vector<16x1x5xf32>
    %55 = arith.mulf %54, %53 : vector<16x1x5xf32>
    %56 = arith.maximumf %53, %55 : vector<16x1x5xf32>
    %57 = arith.truncf %56 : vector<16x1x5xf32> to vector<16x1x5xbf16>
    %c0_38 = arith.constant 0 : index
    %c1_39 = arith.constant 1 : index
    %c0_40 = arith.constant 0 : index
    %58 = vector.load %arg4[%c0_38, %c1_39, %c0_40] : memref<16x4x5xbf16, #tpu.memory_space<vmem>>, vector<16x1x5xbf16>
    tpu.vector_store %arg4[%c0_38, %c1_39, %c0_40], %57 {strides = array<i32>} : memref<16x4x5xbf16, #tpu.memory_space<vmem>>, vector<16x1x5xbf16>,
    %c2_41 = arith.constant 2 : index
    %c0_42 = arith.constant 0 : index
    %59 = memref.load %arg2[%c2_41, %c0_42] : memref<4x5xf32, #tpu.memory_space<smem>>
    %60 = vector.broadcast %59 : f32 to vector<16x1x5xf32>
    %61 = arith.mulf %0, %60 : vector<16x1x5xf32>
    %c2_43 = arith.constant 2 : index
    %c1_44 = arith.constant 1 : index
    %62 = memref.load %arg2[%c2_43, %c1_44] : memref<4x5xf32, #tpu.memory_space<smem>>
    %63 = vector.broadcast %62 : f32 to vector<16x1x5xf32>
    %64 = arith.mulf %1, %63 : vector<16x1x5xf32>
    %65 = arith.addf %61, %64 : vector<16x1x5xf32>
    %c2_45 = arith.constant 2 : index
    %c2_46 = arith.constant 2 : index
    %66 = memref.load %arg2[%c2_45, %c2_46] : memref<4x5xf32, #tpu.memory_space<smem>>
    %67 = vector.broadcast %66 : f32 to vector<16x1x5xf32>
    %68 = arith.mulf %2, %67 : vector<16x1x5xf32>
    %69 = arith.addf %65, %68 : vector<16x1x5xf32>
    %c2_47 = arith.constant 2 : index
    %c3_48 = arith.constant 3 : index
    %70 = memref.load %arg2[%c2_47, %c3_48] : memref<4x5xf32, #tpu.memory_space<smem>>
    %71 = vector.broadcast %70 : f32 to vector<16x1x5xf32>
    %72 = arith.mulf %3, %71 : vector<16x1x5xf32>
    %73 = arith.addf %69, %72 : vector<16x1x5xf32>
    %c2_49 = arith.constant 2 : index
    %c4_50 = arith.constant 4 : index
    %74 = memref.load %arg2[%c2_49, %c4_50] : memref<4x5xf32, #tpu.memory_space<smem>>
    %75 = vector.broadcast %74 : f32 to vector<16x1x5xf32>
    %76 = arith.mulf %4, %75 : vector<16x1x5xf32>
    %77 = arith.addf %73, %76 : vector<16x1x5xf32>
    %c0_51 = arith.constant 0 : index
    %c2_52 = arith.constant 2 : index
    %78 = memref.load %arg3[%c0_51, %c2_52] : memref<1x4xf32, #tpu.memory_space<smem>>
    %79 = vector.broadcast %78 : f32 to vector<16x1x5xf32>
    %80 = arith.addf %77, %79 : vector<16x1x5xf32>
    %cst_53 = arith.constant 1.000000e-01 : f32
    %81 = vector.broadcast %cst_53 : f32 to vector<16x1x5xf32>
    %82 = arith.mulf %81, %80 : vector<16x1x5xf32>
    %83 = arith.maximumf %80, %82 : vector<16x1x5xf32>
    %84 = arith.truncf %83 : vector<16x1x5xf32> to vector<16x1x5xbf16>
    %c0_54 = arith.constant 0 : index
    %c2_55 = arith.constant 2 : index
    %c0_56 = arith.constant 0 : index
    %85 = vector.load %arg4[%c0_54, %c2_55, %c0_56] : memref<16x4x5xbf16, #tpu.memory_space<vmem>>, vector<16x1x5xbf16>
    tpu.vector_store %arg4[%c0_54, %c2_55, %c0_56], %84 {strides = array<i32>} : memref<16x4x5xbf16, #tpu.memory_space<vmem>>, vector<16x1x5xbf16>,
    %c3_57 = arith.constant 3 : index
    %c0_58 = arith.constant 0 : index
    %86 = memref.load %arg2[%c3_57, %c0_58] : memref<4x5xf32, #tpu.memory_space<smem>>
    %87 = vector.broadcast %86 : f32 to vector<16x1x5xf32>
    %88 = arith.mulf %0, %87 : vector<16x1x5xf32>
    %c3_59 = arith.constant 3 : index
    %c1_60 = arith.constant 1 : index
    %89 = memref.load %arg2[%c3_59, %c1_60] : memref<4x5xf32, #tpu.memory_space<smem>>
    %90 = vector.broadcast %89 : f32 to vector<16x1x5xf32>
    %91 = arith.mulf %1, %90 : vector<16x1x5xf32>
    %92 = arith.addf %88, %91 : vector<16x1x5xf32>
    %c3_61 = arith.constant 3 : index
    %c2_62 = arith.constant 2 : index
    %93 = memref.load %arg2[%c3_61, %c2_62] : memref<4x5xf32, #tpu.memory_space<smem>>
    %94 = vector.broadcast %93 : f32 to vector<16x1x5xf32>
    %95 = arith.mulf %2, %94 : vector<16x1x5xf32>
    %96 = arith.addf %92, %95 : vector<16x1x5xf32>
    %c3_63 = arith.constant 3 : index
    %c3_64 = arith.constant 3 : index
    %97 = memref.load %arg2[%c3_63, %c3_64] : memref<4x5xf32, #tpu.memory_space<smem>>
    %98 = vector.broadcast %97 : f32 to vector<16x1x5xf32>
    %99 = arith.mulf %3, %98 : vector<16x1x5xf32>
    %100 = arith.addf %96, %99 : vector<16x1x5xf32>
    %c3_65 = arith.constant 3 : index
    %c4_66 = arith.constant 4 : index
    %101 = memref.load %arg2[%c3_65, %c4_66] : memref<4x5xf32, #tpu.memory_space<smem>>
    %102 = vector.broadcast %101 : f32 to vector<16x1x5xf32>
    %103 = arith.mulf %4, %102 : vector<16x1x5xf32>
    %104 = arith.addf %100, %103 : vector<16x1x5xf32>
    %c0_67 = arith.constant 0 : index
    %c3_68 = arith.constant 3 : index
    %105 = memref.load %arg3[%c0_67, %c3_68] : memref<1x4xf32, #tpu.memory_space<smem>>
    %106 = vector.broadcast %105 : f32 to vector<16x1x5xf32>
    %107 = arith.addf %104, %106 : vector<16x1x5xf32>
    %cst_69 = arith.constant 1.000000e-01 : f32
    %108 = vector.broadcast %cst_69 : f32 to vector<16x1x5xf32>
    %109 = arith.mulf %108, %107 : vector<16x1x5xf32>
    %110 = arith.maximumf %107, %109 : vector<16x1x5xf32>
    %111 = arith.truncf %110 : vector<16x1x5xf32> to vector<16x1x5xbf16>
    %c0_70 = arith.constant 0 : index
    %c3_71 = arith.constant 3 : index
    %c0_72 = arith.constant 0 : index
    %112 = vector.load %arg4[%c0_70, %c3_71, %c0_72] : memref<16x4x5xbf16, #tpu.memory_space<vmem>>, vector<16x1x5xbf16>
    tpu.vector_store %arg4[%c0_70, %c3_71, %c0_72], %111 {strides = array<i32>} : memref<16x4x5xbf16, #tpu.memory_space<vmem>>, vector<16x1x5xbf16>,
    return
  }
  func.func @transform_0(%arg0: i32) -> (i32, i32, i32) {
    %c0_i32 = arith.constant 0 : i32
    %c0_i32_0 = arith.constant 0 : i32
    %c0_i32_1 = arith.constant 0 : i32
    return %arg0, %c0_i32, %c0_i32_0 : i32, i32, i32
  }
  func.func @transform_1(%arg0: i32) -> (i32, i32) {
    %c0_i32 = arith.constant 0 : i32
    %c0_i32_0 = arith.constant 0 : i32
    %c0_i32_1 = arith.constant 0 : i32
    return %c0_i32, %c0_i32_0 : i32, i32
  }
  func.func @transform_2(%arg0: i32) -> (i32, i32) {
    %c0_i32 = arith.constant 0 : i32
    %c0_i32_0 = arith.constant 0 : i32
    %c0_i32_1 = arith.constant 0 : i32
    return %c0_i32, %c0_i32_0 : i32, i32
  }
  func.func @transform_3(%arg0: i32) -> (i32, i32, i32) {
    %c0_i32 = arith.constant 0 : i32
    %c0_i32_0 = arith.constant 0 : i32
    %c0_i32_1 = arith.constant 0 : i32
    return %arg0, %c0_i32, %c0_i32_0 : i32, i32, i32
  }
}

module attributes {stable_mosaic.version = 11 : i64} {
  func.func @_conv_kernel(%arg0: i32, %arg1: memref<16x9x12xbf16, #tpu.memory_space<vmem>>, %arg2: memref<20x32xbf16, #tpu.memory_space<vmem>>, %arg3: memref<1x32xf32, #tpu.memory_space<vmem>>, %arg4: memref<16x8x32xbf16, #tpu.memory_space<vmem>>) attributes {dimension_semantics = [#tpu.dimension_semantics<parallel>], iteration_bounds = array<i64: 2>, scalar_prefetch = 0 : i64, scratch_operands = 0 : i64, tpu.core_type = #tpu.core_type<tc>, window_params = [{transform_indices = @transform_0, window_bounds = array<i64: 16, 9, 12>}, {pipeline_mode = #tpu.pipeline_mode<synchronous>, transform_indices = @transform_1, window_bounds = array<i64: 20, 32>}, {pipeline_mode = #tpu.pipeline_mode<synchronous>, transform_indices = @transform_2, window_bounds = array<i64: 1, 32>}, {transform_indices = @transform_3, window_bounds = array<i64: 16, 8, 32>}]} {
    %c0 = arith.constant 0 : index
    %c0_0 = arith.constant 0 : index
    %c0_1 = arith.constant 0 : index
    %0 = vector.load %arg1[%c0, %c0_0, %c0_1] : memref<16x9x12xbf16, #tpu.memory_space<vmem>>, vector<16x8x12xbf16>
    %1 = vector.shape_cast %0 : vector<16x8x12xbf16> to vector<128x12xbf16>
    %c0_2 = arith.constant 0 : index
    %c0_3 = arith.constant 0 : index
    %2 = vector.load %arg2[%c0_2, %c0_3] : memref<20x32xbf16, #tpu.memory_space<vmem>>, vector<12x32xbf16>
    %cst = arith.constant dense<0.000000e+00> : vector<128x32xf32>
    %3 = tpu.matmul %1, %2, %cst {dimension_numbers = #tpu.dot_dimension_numbers<[1], [0], [0], [1], [0, 0, 1, 1], [], []>} : vector<128x12xbf16>, vector<12x32xbf16>, vector<128x32xf32> -> vector<128x32xf32>
    %c0_4 = arith.constant 0 : index
    %c1 = arith.constant 1 : index
    %c0_5 = arith.constant 0 : index
    %4 = vector.load %arg1[%c0_4, %c1, %c0_5] : memref<16x9x12xbf16, #tpu.memory_space<vmem>>, vector<16x8x8xbf16>
    %5 = vector.shape_cast %4 : vector<16x8x8xbf16> to vector<128x8xbf16>
    %c12 = arith.constant 12 : index
    %c0_6 = arith.constant 0 : index
    %6 = vector.load %arg2[%c12, %c0_6] : memref<20x32xbf16, #tpu.memory_space<vmem>>, vector<8x32xbf16>
    %cst_7 = arith.constant dense<0.000000e+00> : vector<128x32xf32>
    %7 = tpu.matmul %5, %6, %cst_7 {dimension_numbers = #tpu.dot_dimension_numbers<[1], [0], [0], [1], [0, 0, 1, 1], [], []>} : vector<128x8xbf16>, vector<8x32xbf16>, vector<128x32xf32> -> vector<128x32xf32>
    %8 = arith.addf %3, %7 : vector<128x32xf32>
    %c0_8 = arith.constant 0 : index
    %c0_9 = arith.constant 0 : index
    %9 = vector.load %arg3[%c0_8, %c0_9] : memref<1x32xf32, #tpu.memory_space<vmem>>, vector<1x32xf32>
    %10 = vector.broadcast %9 : vector<1x32xf32> to vector<128x32xf32>
    %11 = arith.addf %8, %10 : vector<128x32xf32>
    %cst_10 = arith.constant 1.000000e-01 : f32
    %12 = vector.broadcast %cst_10 : f32 to vector<128x32xf32>
    %13 = arith.mulf %12, %11 : vector<128x32xf32>
    %14 = arith.maximumf %11, %13 : vector<128x32xf32>
    %15 = vector.shape_cast %14 : vector<128x32xf32> to vector<16x8x32xf32>
    %16 = arith.truncf %15 : vector<16x8x32xf32> to vector<16x8x32xbf16>
    %c0_11 = arith.constant 0 : index
    %c0_12 = arith.constant 0 : index
    %c0_13 = arith.constant 0 : index
    %17 = vector.load %arg4[%c0_11, %c0_12, %c0_13] : memref<16x8x32xbf16, #tpu.memory_space<vmem>>, vector<16x8x32xbf16>
    tpu.vector_store %arg4[%c0_11, %c0_12, %c0_13], %16 {strides = array<i32>} : memref<16x8x32xbf16, #tpu.memory_space<vmem>>, vector<16x8x32xbf16>,
    return
  }
  func.func @transform_0(%arg0: i32) -> (i32, i32, i32) {
    %c0_i32 = arith.constant 0 : i32
    %c0_i32_0 = arith.constant 0 : i32
    %c0_i32_1 = arith.constant 0 : i32
    return %arg0, %c0_i32, %c0_i32_0 : i32, i32, i32
  }
  func.func @transform_1(%arg0: i32) -> (i32, i32) {
    %c0_i32 = arith.constant 0 : i32
    %c0_i32_0 = arith.constant 0 : i32
    %c0_i32_1 = arith.constant 0 : i32
    return %c0_i32, %c0_i32_0 : i32, i32
  }
  func.func @transform_2(%arg0: i32) -> (i32, i32) {
    %c0_i32 = arith.constant 0 : i32
    %c0_i32_0 = arith.constant 0 : i32
    %c0_i32_1 = arith.constant 0 : i32
    return %c0_i32, %c0_i32_0 : i32, i32
  }
  func.func @transform_3(%arg0: i32) -> (i32, i32, i32) {
    %c0_i32 = arith.constant 0 : i32
    %c0_i32_0 = arith.constant 0 : i32
    %c0_i32_1 = arith.constant 0 : i32
    return %arg0, %c0_i32, %c0_i32_0 : i32, i32, i32
  }
}

module attributes {stable_mosaic.version = 11 : i64} {
  func.func @_conv_kernel(%arg0: i32, %arg1: memref<16x9x96xbf16, #tpu.memory_space<vmem>>, %arg2: memref<160x128xbf16, #tpu.memory_space<vmem>>, %arg3: memref<1x128xf32, #tpu.memory_space<vmem>>, %arg4: memref<16x8x128xbf16, #tpu.memory_space<vmem>>) attributes {dimension_semantics = [#tpu.dimension_semantics<parallel>], iteration_bounds = array<i64: 2>, scalar_prefetch = 0 : i64, scratch_operands = 0 : i64, tpu.core_type = #tpu.core_type<tc>, window_params = [{transform_indices = @transform_0, window_bounds = array<i64: 16, 9, 96>}, {pipeline_mode = #tpu.pipeline_mode<synchronous>, transform_indices = @transform_1, window_bounds = array<i64: 160, 128>}, {pipeline_mode = #tpu.pipeline_mode<synchronous>, transform_indices = @transform_2, window_bounds = array<i64: 1, 128>}, {transform_indices = @transform_3, window_bounds = array<i64: 16, 8, 128>}]} {
    %c0 = arith.constant 0 : index
    %c0_0 = arith.constant 0 : index
    %c0_1 = arith.constant 0 : index
    %0 = vector.load %arg1[%c0, %c0_0, %c0_1] : memref<16x9x96xbf16, #tpu.memory_space<vmem>>, vector<16x8x96xbf16>
    %1 = vector.shape_cast %0 : vector<16x8x96xbf16> to vector<128x96xbf16>
    %c0_2 = arith.constant 0 : index
    %c0_3 = arith.constant 0 : index
    %2 = vector.load %arg2[%c0_2, %c0_3] : memref<160x128xbf16, #tpu.memory_space<vmem>>, vector<96x128xbf16>
    %cst = arith.constant dense<0.000000e+00> : vector<128x128xf32>
    %3 = tpu.matmul %1, %2, %cst {dimension_numbers = #tpu.dot_dimension_numbers<[1], [0], [0], [1], [0, 0, 1, 1], [], []>} : vector<128x96xbf16>, vector<96x128xbf16>, vector<128x128xf32> -> vector<128x128xf32>
    %c0_4 = arith.constant 0 : index
    %c1 = arith.constant 1 : index
    %c0_5 = arith.constant 0 : index
    %4 = vector.load %arg1[%c0_4, %c1, %c0_5] : memref<16x9x96xbf16, #tpu.memory_space<vmem>>, vector<16x8x64xbf16>
    %5 = vector.shape_cast %4 : vector<16x8x64xbf16> to vector<128x64xbf16>
    %c96 = arith.constant 96 : index
    %c0_6 = arith.constant 0 : index
    %6 = vector.load %arg2[%c96, %c0_6] : memref<160x128xbf16, #tpu.memory_space<vmem>>, vector<64x128xbf16>
    %cst_7 = arith.constant dense<0.000000e+00> : vector<128x128xf32>
    %7 = tpu.matmul %5, %6, %cst_7 {dimension_numbers = #tpu.dot_dimension_numbers<[1], [0], [0], [1], [0, 0, 1, 1], [], []>} : vector<128x64xbf16>, vector<64x128xbf16>, vector<128x128xf32> -> vector<128x128xf32>
    %8 = arith.addf %3, %7 : vector<128x128xf32>
    %c0_8 = arith.constant 0 : index
    %c0_9 = arith.constant 0 : index
    %9 = vector.load %arg3[%c0_8, %c0_9] : memref<1x128xf32, #tpu.memory_space<vmem>>, vector<1x128xf32>
    %10 = vector.broadcast %9 : vector<1x128xf32> to vector<128x128xf32>
    %11 = arith.addf %8, %10 : vector<128x128xf32>
    %cst_10 = arith.constant 1.000000e-01 : f32
    %12 = vector.broadcast %cst_10 : f32 to vector<128x128xf32>
    %13 = arith.mulf %12, %11 : vector<128x128xf32>
    %14 = arith.maximumf %11, %13 : vector<128x128xf32>
    %15 = vector.shape_cast %14 : vector<128x128xf32> to vector<16x8x128xf32>
    %16 = arith.truncf %15 : vector<16x8x128xf32> to vector<16x8x128xbf16>
    %c0_11 = arith.constant 0 : index
    %c0_12 = arith.constant 0 : index
    %c0_13 = arith.constant 0 : index
    %17 = vector.load %arg4[%c0_11, %c0_12, %c0_13] : memref<16x8x128xbf16, #tpu.memory_space<vmem>>, vector<16x8x128xbf16>
    tpu.vector_store %arg4[%c0_11, %c0_12, %c0_13], %16 {strides = array<i32>} : memref<16x8x128xbf16, #tpu.memory_space<vmem>>, vector<16x8x128xbf16>,
    return
  }
  func.func @transform_0(%arg0: i32) -> (i32, i32, i32) {
    %c0_i32 = arith.constant 0 : i32
    %c0_i32_0 = arith.constant 0 : i32
    %c0_i32_1 = arith.constant 0 : i32
    return %arg0, %c0_i32, %c0_i32_0 : i32, i32, i32
  }
  func.func @transform_1(%arg0: i32) -> (i32, i32) {
    %c0_i32 = arith.constant 0 : i32
    %c0_i32_0 = arith.constant 0 : i32
    %c0_i32_1 = arith.constant 0 : i32
    return %c0_i32, %c0_i32_0 : i32, i32
  }
  func.func @transform_2(%arg0: i32) -> (i32, i32) {
    %c0_i32 = arith.constant 0 : i32
    %c0_i32_0 = arith.constant 0 : i32
    %c0_i32_1 = arith.constant 0 : i32
    return %c0_i32, %c0_i32_0 : i32, i32
  }
  func.func @transform_3(%arg0: i32) -> (i32, i32, i32) {
    %c0_i32 = arith.constant 0 : i32
    %c0_i32_0 = arith.constant 0 : i32
    %c0_i32_1 = arith.constant 0 : i32
    return %arg0, %c0_i32, %c0_i32_0 : i32, i32, i32
  }
}

module attributes {stable_mosaic.version = 11 : i64} {
  func.func @_conv_kernel(%arg0: i32, %arg1: memref<16x9x384xbf16, #tpu.memory_space<vmem>>, %arg2: memref<640x128xbf16, #tpu.memory_space<vmem>>, %arg3: memref<1x128xf32, #tpu.memory_space<vmem>>, %arg4: memref<16x8x128xbf16, #tpu.memory_space<vmem>>) attributes {dimension_semantics = [#tpu.dimension_semantics<parallel>], iteration_bounds = array<i64: 2>, scalar_prefetch = 0 : i64, scratch_operands = 0 : i64, tpu.core_type = #tpu.core_type<tc>, window_params = [{transform_indices = @transform_0, window_bounds = array<i64: 16, 9, 384>}, {pipeline_mode = #tpu.pipeline_mode<synchronous>, transform_indices = @transform_1, window_bounds = array<i64: 640, 128>}, {pipeline_mode = #tpu.pipeline_mode<synchronous>, transform_indices = @transform_2, window_bounds = array<i64: 1, 128>}, {transform_indices = @transform_3, window_bounds = array<i64: 16, 8, 128>}]} {
    %c0 = arith.constant 0 : index
    %c0_0 = arith.constant 0 : index
    %c0_1 = arith.constant 0 : index
    %0 = vector.load %arg1[%c0, %c0_0, %c0_1] : memref<16x9x384xbf16, #tpu.memory_space<vmem>>, vector<16x8x384xbf16>
    %1 = vector.shape_cast %0 : vector<16x8x384xbf16> to vector<128x384xbf16>
    %c0_2 = arith.constant 0 : index
    %c0_3 = arith.constant 0 : index
    %2 = vector.load %arg2[%c0_2, %c0_3] : memref<640x128xbf16, #tpu.memory_space<vmem>>, vector<384x128xbf16>
    %cst = arith.constant dense<0.000000e+00> : vector<128x128xf32>
    %3 = tpu.matmul %1, %2, %cst {dimension_numbers = #tpu.dot_dimension_numbers<[1], [0], [0], [1], [0, 0, 1, 1], [], []>} : vector<128x384xbf16>, vector<384x128xbf16>, vector<128x128xf32> -> vector<128x128xf32>
    %c0_4 = arith.constant 0 : index
    %c1 = arith.constant 1 : index
    %c0_5 = arith.constant 0 : index
    %4 = vector.load %arg1[%c0_4, %c1, %c0_5] : memref<16x9x384xbf16, #tpu.memory_space<vmem>>, vector<16x8x256xbf16>
    %5 = vector.shape_cast %4 : vector<16x8x256xbf16> to vector<128x256xbf16>
    %c384 = arith.constant 384 : index
    %c0_6 = arith.constant 0 : index
    %6 = vector.load %arg2[%c384, %c0_6] : memref<640x128xbf16, #tpu.memory_space<vmem>>, vector<256x128xbf16>
    %cst_7 = arith.constant dense<0.000000e+00> : vector<128x128xf32>
    %7 = tpu.matmul %5, %6, %cst_7 {dimension_numbers = #tpu.dot_dimension_numbers<[1], [0], [0], [1], [0, 0, 1, 1], [], []>} : vector<128x256xbf16>, vector<256x128xbf16>, vector<128x128xf32> -> vector<128x128xf32>
    %8 = arith.addf %3, %7 : vector<128x128xf32>
    %c0_8 = arith.constant 0 : index
    %c0_9 = arith.constant 0 : index
    %9 = vector.load %arg3[%c0_8, %c0_9] : memref<1x128xf32, #tpu.memory_space<vmem>>, vector<1x128xf32>
    %10 = vector.broadcast %9 : vector<1x128xf32> to vector<128x128xf32>
    %11 = arith.addf %8, %10 : vector<128x128xf32>
    %cst_10 = arith.constant 1.000000e-01 : f32
    %12 = vector.broadcast %cst_10 : f32 to vector<128x128xf32>
    %13 = arith.mulf %12, %11 : vector<128x128xf32>
    %14 = arith.maximumf %11, %13 : vector<128x128xf32>
    %15 = vector.shape_cast %14 : vector<128x128xf32> to vector<16x8x128xf32>
    %16 = arith.truncf %15 : vector<16x8x128xf32> to vector<16x8x128xbf16>
    %c0_11 = arith.constant 0 : index
    %c0_12 = arith.constant 0 : index
    %c0_13 = arith.constant 0 : index
    %17 = vector.load %arg4[%c0_11, %c0_12, %c0_13] : memref<16x8x128xbf16, #tpu.memory_space<vmem>>, vector<16x8x128xbf16>
    tpu.vector_store %arg4[%c0_11, %c0_12, %c0_13], %16 {strides = array<i32>} : memref<16x8x128xbf16, #tpu.memory_space<vmem>>, vector<16x8x128xbf16>,
    return
  }
  func.func @transform_0(%arg0: i32) -> (i32, i32, i32) {
    %c0_i32 = arith.constant 0 : i32
    %c0_i32_0 = arith.constant 0 : i32
    %c0_i32_1 = arith.constant 0 : i32
    return %arg0, %c0_i32, %c0_i32_0 : i32, i32, i32
  }
  func.func @transform_1(%arg0: i32) -> (i32, i32) {
    %c0_i32 = arith.constant 0 : i32
    %c0_i32_0 = arith.constant 0 : i32
    %c0_i32_1 = arith.constant 0 : i32
    return %c0_i32, %c0_i32_0 : i32, i32
  }
  func.func @transform_2(%arg0: i32) -> (i32, i32) {
    %c0_i32 = arith.constant 0 : i32
    %c0_i32_0 = arith.constant 0 : i32
    %c0_i32_1 = arith.constant 0 : i32
    return %c0_i32, %c0_i32_0 : i32, i32
  }
  func.func @transform_3(%arg0: i32) -> (i32, i32, i32) {
    %c0_i32 = arith.constant 0 : i32
    %c0_i32_0 = arith.constant 0 : i32
    %c0_i32_1 = arith.constant 0 : i32
    return %arg0, %c0_i32, %c0_i32_0 : i32, i32, i32
  }
}

module attributes {stable_mosaic.version = 11 : i64} {
  func.func @_conv_kernel(%arg0: i32, %arg1: memref<16x12x128xbf16, #tpu.memory_space<vmem>>, %arg2: memref<640x128xbf16, #tpu.memory_space<vmem>>, %arg3: memref<1x128xf32, #tpu.memory_space<vmem>>, %arg4: memref<16x8x128xbf16, #tpu.memory_space<vmem>>) attributes {dimension_semantics = [#tpu.dimension_semantics<parallel>], iteration_bounds = array<i64: 2>, scalar_prefetch = 0 : i64, scratch_operands = 0 : i64, tpu.core_type = #tpu.core_type<tc>, window_params = [{transform_indices = @transform_0, window_bounds = array<i64: 16, 12, 128>}, {pipeline_mode = #tpu.pipeline_mode<synchronous>, transform_indices = @transform_1, window_bounds = array<i64: 640, 128>}, {pipeline_mode = #tpu.pipeline_mode<synchronous>, transform_indices = @transform_2, window_bounds = array<i64: 1, 128>}, {transform_indices = @transform_3, window_bounds = array<i64: 16, 8, 128>}]} {
    %c0 = arith.constant 0 : index
    %c0_0 = arith.constant 0 : index
    %c0_1 = arith.constant 0 : index
    %0 = vector.load %arg1[%c0, %c0_0, %c0_1] : memref<16x12x128xbf16, #tpu.memory_space<vmem>>, vector<16x8x128xbf16>
    %1 = vector.shape_cast %0 : vector<16x8x128xbf16> to vector<128x128xbf16>
    %c0_2 = arith.constant 0 : index
    %c0_3 = arith.constant 0 : index
    %2 = vector.load %arg2[%c0_2, %c0_3] : memref<640x128xbf16, #tpu.memory_space<vmem>>, vector<128x128xbf16>
    %cst = arith.constant dense<0.000000e+00> : vector<128x128xf32>
    %3 = tpu.matmul %1, %2, %cst {dimension_numbers = #tpu.dot_dimension_numbers<[1], [0], [0], [1], [0, 0, 1, 1], [], []>} : vector<128x128xbf16>, vector<128x128xbf16>, vector<128x128xf32> -> vector<128x128xf32>
    %c0_4 = arith.constant 0 : index
    %c1 = arith.constant 1 : index
    %c0_5 = arith.constant 0 : index
    %4 = vector.load %arg1[%c0_4, %c1, %c0_5] : memref<16x12x128xbf16, #tpu.memory_space<vmem>>, vector<16x8x128xbf16>
    %5 = vector.shape_cast %4 : vector<16x8x128xbf16> to vector<128x128xbf16>
    %c128 = arith.constant 128 : index
    %c0_6 = arith.constant 0 : index
    %6 = vector.load %arg2[%c128, %c0_6] : memref<640x128xbf16, #tpu.memory_space<vmem>>, vector<128x128xbf16>
    %cst_7 = arith.constant dense<0.000000e+00> : vector<128x128xf32>
    %7 = tpu.matmul %5, %6, %cst_7 {dimension_numbers = #tpu.dot_dimension_numbers<[1], [0], [0], [1], [0, 0, 1, 1], [], []>} : vector<128x128xbf16>, vector<128x128xbf16>, vector<128x128xf32> -> vector<128x128xf32>
    %8 = arith.addf %3, %7 : vector<128x128xf32>
    %c0_8 = arith.constant 0 : index
    %c2 = arith.constant 2 : index
    %c0_9 = arith.constant 0 : index
    %9 = vector.load %arg1[%c0_8, %c2, %c0_9] : memref<16x12x128xbf16, #tpu.memory_space<vmem>>, vector<16x8x128xbf16>
    %10 = vector.shape_cast %9 : vector<16x8x128xbf16> to vector<128x128xbf16>
    %c256 = arith.constant 256 : index
    %c0_10 = arith.constant 0 : index
    %11 = vector.load %arg2[%c256, %c0_10] : memref<640x128xbf16, #tpu.memory_space<vmem>>, vector<128x128xbf16>
    %cst_11 = arith.constant dense<0.000000e+00> : vector<128x128xf32>
    %12 = tpu.matmul %10, %11, %cst_11 {dimension_numbers = #tpu.dot_dimension_numbers<[1], [0], [0], [1], [0, 0, 1, 1], [], []>} : vector<128x128xbf16>, vector<128x128xbf16>, vector<128x128xf32> -> vector<128x128xf32>
    %13 = arith.addf %8, %12 : vector<128x128xf32>
    %c0_12 = arith.constant 0 : index
    %c3 = arith.constant 3 : index
    %c0_13 = arith.constant 0 : index
    %14 = vector.load %arg1[%c0_12, %c3, %c0_13] : memref<16x12x128xbf16, #tpu.memory_space<vmem>>, vector<16x8x128xbf16>
    %15 = vector.shape_cast %14 : vector<16x8x128xbf16> to vector<128x128xbf16>
    %c384 = arith.constant 384 : index
    %c0_14 = arith.constant 0 : index
    %16 = vector.load %arg2[%c384, %c0_14] : memref<640x128xbf16, #tpu.memory_space<vmem>>, vector<128x128xbf16>
    %cst_15 = arith.constant dense<0.000000e+00> : vector<128x128xf32>
    %17 = tpu.matmul %15, %16, %cst_15 {dimension_numbers = #tpu.dot_dimension_numbers<[1], [0], [0], [1], [0, 0, 1, 1], [], []>} : vector<128x128xbf16>, vector<128x128xbf16>, vector<128x128xf32> -> vector<128x128xf32>
    %18 = arith.addf %13, %17 : vector<128x128xf32>
    %c0_16 = arith.constant 0 : index
    %c4 = arith.constant 4 : index
    %c0_17 = arith.constant 0 : index
    %19 = vector.load %arg1[%c0_16, %c4, %c0_17] : memref<16x12x128xbf16, #tpu.memory_space<vmem>>, vector<16x8x128xbf16>
    %20 = vector.shape_cast %19 : vector<16x8x128xbf16> to vector<128x128xbf16>
    %c512 = arith.constant 512 : index
    %c0_18 = arith.constant 0 : index
    %21 = vector.load %arg2[%c512, %c0_18] : memref<640x128xbf16, #tpu.memory_space<vmem>>, vector<128x128xbf16>
    %cst_19 = arith.constant dense<0.000000e+00> : vector<128x128xf32>
    %22 = tpu.matmul %20, %21, %cst_19 {dimension_numbers = #tpu.dot_dimension_numbers<[1], [0], [0], [1], [0, 0, 1, 1], [], []>} : vector<128x128xbf16>, vector<128x128xbf16>, vector<128x128xf32> -> vector<128x128xf32>
    %23 = arith.addf %18, %22 : vector<128x128xf32>
    %c0_20 = arith.constant 0 : index
    %c0_21 = arith.constant 0 : index
    %24 = vector.load %arg3[%c0_20, %c0_21] : memref<1x128xf32, #tpu.memory_space<vmem>>, vector<1x128xf32>
    %25 = vector.broadcast %24 : vector<1x128xf32> to vector<128x128xf32>
    %26 = arith.addf %23, %25 : vector<128x128xf32>
    %cst_22 = arith.constant 1.000000e-01 : f32
    %27 = vector.broadcast %cst_22 : f32 to vector<128x128xf32>
    %28 = arith.mulf %27, %26 : vector<128x128xf32>
    %29 = arith.maximumf %26, %28 : vector<128x128xf32>
    %30 = vector.shape_cast %29 : vector<128x128xf32> to vector<16x8x128xf32>
    %31 = arith.truncf %30 : vector<16x8x128xf32> to vector<16x8x128xbf16>
    %c0_23 = arith.constant 0 : index
    %c0_24 = arith.constant 0 : index
    %c0_25 = arith.constant 0 : index
    %32 = vector.load %arg4[%c0_23, %c0_24, %c0_25] : memref<16x8x128xbf16, #tpu.memory_space<vmem>>, vector<16x8x128xbf16>
    tpu.vector_store %arg4[%c0_23, %c0_24, %c0_25], %31 {strides = array<i32>} : memref<16x8x128xbf16, #tpu.memory_space<vmem>>, vector<16x8x128xbf16>,
    return
  }
  func.func @transform_0(%arg0: i32) -> (i32, i32, i32) {
    %c0_i32 = arith.constant 0 : i32
    %c0_i32_0 = arith.constant 0 : i32
    %c0_i32_1 = arith.constant 0 : i32
    return %arg0, %c0_i32, %c0_i32_0 : i32, i32, i32
  }
  func.func @transform_1(%arg0: i32) -> (i32, i32) {
    %c0_i32 = arith.constant 0 : i32
    %c0_i32_0 = arith.constant 0 : i32
    %c0_i32_1 = arith.constant 0 : i32
    return %c0_i32, %c0_i32_0 : i32, i32
  }
  func.func @transform_2(%arg0: i32) -> (i32, i32) {
    %c0_i32 = arith.constant 0 : i32
    %c0_i32_0 = arith.constant 0 : i32
    %c0_i32_1 = arith.constant 0 : i32
    return %c0_i32, %c0_i32_0 : i32, i32
  }
  func.func @transform_3(%arg0: i32) -> (i32, i32, i32) {
    %c0_i32 = arith.constant 0 : i32
    %c0_i32_0 = arith.constant 0 : i32
    %c0_i32_1 = arith.constant 0 : i32
    return %arg0, %c0_i32, %c0_i32_0 : i32, i32, i32
  }
}

module attributes {stable_mosaic.version = 11 : i64} {
  func.func @_conv_post_kernel(%arg0: i32, %arg1: memref<16x3x128xf32, #tpu.memory_space<vmem>>, %arg2: memref<3x128xf32, #tpu.memory_space<vmem>>, %arg3: memref<16x1xf32, #tpu.memory_space<vmem>>) attributes {dimension_semantics = [#tpu.dimension_semantics<parallel>], iteration_bounds = array<i64: 2>, scalar_prefetch = 0 : i64, scratch_operands = 0 : i64, tpu.core_type = #tpu.core_type<tc>, window_params = [{transform_indices = @transform_0, window_bounds = array<i64: 16, 3, 128>}, {pipeline_mode = #tpu.pipeline_mode<synchronous>, transform_indices = @transform_1, window_bounds = array<i64: 3, 128>}, {transform_indices = @transform_2, window_bounds = array<i64: 16, 1>}]} {
    %c0 = arith.constant 0 : index
    %c0_0 = arith.constant 0 : index
    %c0_1 = arith.constant 0 : index
    %0 = vector.load %arg1[%c0, %c0_0, %c0_1] : memref<16x3x128xf32, #tpu.memory_space<vmem>>, vector<16x1x128xf32>
    %c0_2 = arith.constant 0 : index
    %c0_3 = arith.constant 0 : index
    %1 = vector.load %arg2[%c0_2, %c0_3] : memref<3x128xf32, #tpu.memory_space<vmem>>, vector<1x128xf32>
    %2 = vector.shape_cast %1 : vector<1x128xf32> to vector<1x1x128xf32>
    %3 = vector.broadcast %2 : vector<1x1x128xf32> to vector<16x1x128xf32>
    %4 = arith.mulf %0, %3 : vector<16x1x128xf32>
    %cst = arith.constant dense<0.000000e+00> : vector<16x1xf32>
    %5 = vector.multi_reduction <add>, %4, %cst [2] : vector<16x1x128xf32> to vector<16x1xf32>
    %c0_4 = arith.constant 0 : index
    %c1 = arith.constant 1 : index
    %c0_5 = arith.constant 0 : index
    %6 = vector.load %arg1[%c0_4, %c1, %c0_5] : memref<16x3x128xf32, #tpu.memory_space<vmem>>, vector<16x1x128xf32>
    %c1_6 = arith.constant 1 : index
    %c0_7 = arith.constant 0 : index
    %7 = vector.load %arg2[%c1_6, %c0_7] : memref<3x128xf32, #tpu.memory_space<vmem>>, vector<1x128xf32>
    %8 = vector.shape_cast %7 : vector<1x128xf32> to vector<1x1x128xf32>
    %9 = vector.broadcast %8 : vector<1x1x128xf32> to vector<16x1x128xf32>
    %10 = arith.mulf %6, %9 : vector<16x1x128xf32>
    %cst_8 = arith.constant dense<0.000000e+00> : vector<16x1xf32>
    %11 = vector.multi_reduction <add>, %10, %cst_8 [2] : vector<16x1x128xf32> to vector<16x1xf32>
    %12 = arith.addf %5, %11 : vector<16x1xf32>
    %c0_9 = arith.constant 0 : index
    %c2 = arith.constant 2 : index
    %c0_10 = arith.constant 0 : index
    %13 = vector.load %arg1[%c0_9, %c2, %c0_10] : memref<16x3x128xf32, #tpu.memory_space<vmem>>, vector<16x1x128xf32>
    %c2_11 = arith.constant 2 : index
    %c0_12 = arith.constant 0 : index
    %14 = vector.load %arg2[%c2_11, %c0_12] : memref<3x128xf32, #tpu.memory_space<vmem>>, vector<1x128xf32>
    %15 = vector.shape_cast %14 : vector<1x128xf32> to vector<1x1x128xf32>
    %16 = vector.broadcast %15 : vector<1x1x128xf32> to vector<16x1x128xf32>
    %17 = arith.mulf %13, %16 : vector<16x1x128xf32>
    %cst_13 = arith.constant dense<0.000000e+00> : vector<16x1xf32>
    %18 = vector.multi_reduction <add>, %17, %cst_13 [2] : vector<16x1x128xf32> to vector<16x1xf32>
    %19 = arith.addf %12, %18 : vector<16x1xf32>
    %c0_14 = arith.constant 0 : index
    %c0_15 = arith.constant 0 : index
    %20 = vector.load %arg3[%c0_14, %c0_15] : memref<16x1xf32, #tpu.memory_space<vmem>>, vector<16x1xf32>
    tpu.vector_store %arg3[%c0_14, %c0_15], %19 {strides = array<i32>} : memref<16x1xf32, #tpu.memory_space<vmem>>, vector<16x1xf32>,
    return
  }
  func.func @transform_0(%arg0: i32) -> (i32, i32, i32) {
    %c0_i32 = arith.constant 0 : i32
    %c0_i32_0 = arith.constant 0 : i32
    %c0_i32_1 = arith.constant 0 : i32
    return %arg0, %c0_i32, %c0_i32_0 : i32, i32, i32
  }
  func.func @transform_1(%arg0: i32) -> (i32, i32) {
    %c0_i32 = arith.constant 0 : i32
    %c0_i32_0 = arith.constant 0 : i32
    %c0_i32_1 = arith.constant 0 : i32
    return %c0_i32, %c0_i32_0 : i32, i32
  }
  func.func @transform_2(%arg0: i32) -> (i32, i32) {
    %c0_i32 = arith.constant 0 : i32
    %c0_i32_0 = arith.constant 0 : i32
    return %arg0, %c0_i32 : i32, i32
  }
}

</mosaic_0001>

<bundles_post_ra>
// kernel: discriminator_p_forward.6
= control target key start
LH: loop header
LB: loop body
LE: loop exit
PB: predicated region body
PF: predicated region fallthrough
CT: control target
= control target key end

     0   :  { %8 = vsyncpa [#allocation3], 0  ;;  %s3880_s0 = inlined_call_operand.vmem [shape: f32[32,5,5], index: 0, kind: input, shape index: {}]   ;;  %s3881_s1 = inlined_call_operand.vmem [shape: f32[4,5], index: 1, kind: input, shape index: {}]   ;;  %s3882_s2 = inlined_call_operand.vmem [shape: f32[1,4], index: 2, kind: input, shape index: {}]   ;;  %s3883_s3 = inlined_call_operand.vmem [shape: bf16[32,4,5], index: 3, kind: output, shape index: {}]  }
   0x1   :  { %9 = vsyncpa [#allocation5], 0  ;;  %s1987_s12 = smov 0  }
   0x2 LB: > { %s1842_s13 = sadd.s32 4294967295, %s1963_s12   ;;  %p1844_p0 = scmp.ge.s32.totalorder %s1963_s12, 1  ;;  %s1963_s12 = sphi %s1987_s12, %s15_s12  }
   0x3   : > { %p114_p1 = scmp.lt.s32.totalorder %s1963_s12, 3  ;;  %s126_s16 = sshll.u32 %s3881_s1, 4  ;;  %s127_s16 = int_to_ptr.vmem [resolvable:$true] %s126_s16 }
   0x4   : > { %p1998_p3 = scmp.eq.s32.totalorder %s1842_s13, 0  ;;  %s136_s20 = sshll.u32 %s3882_s2, 4  ;;  %s137_s20 = int_to_ptr.vmem [resolvable:$true] %s136_s20 }
   0x5   : > { %p115_p2 = pnand %p1844_p0, %p114_p1  ;;  %s1965_s21 = smov [#allocation2]  }
   0x6   : > { %s1966_s22 = smov [#allocation4]  }
   0x7   : > { %p1887_p4 = pneg %p115_p2 }
   0x8   : > { %158 = sbr.rel (%p115_p2) target bundleno = 420 (0x1a4), region = 32 }
   0x9   : > { %p1888_p5 = pnand %p1998_p3, %p1887_p4 }
   0xb   : > { %1890 = dma.vmem_to_smem (!%p1888_p5), %s127_s16, 64, %s1965_s21, [#allocation3]  }
   0xc   : > { %1893 = dma.vmem_to_smem (!%p1888_p5), %s137_s20, 16, %s1966_s22, [#allocation5]  }
   0xd   : > { %1954 = dma.done.wait (%p1998_p3), [#allocation3], 64  }
   0xe   : > { %1956 = vsyncadd (%p1998_p3), [#allocation3], 4294967232 }
   0xf   : > { %1958 = dma.done.wait (%p1998_p3), [#allocation5], 16  }
  0x10   : > { %1960 = vsyncadd (%p1998_p3), [#allocation5], 4294967280 }
  0x11   : > { %170 = sfence }
  0x12   : > { %s1851_s23 = sshll.u32 %s1842_s13, 4  ;;  %s281_s24 = sld [smem:[#allocation2]]  ;;  %vm501_vm0 = vcmask 32768   ;;  %vm502_vm1 = vsmask.f32 256  ;;  %vm804_vm3 = vcmask 1041408  }
  0x13   : > { %p190_p6 = scmp.lt.s32.totalorder %s1851_s23, 31  ;;  %s1855_s25 = sld [smem:[#allocation2 + $0x1]]  ;;  %vm2194_vm2 = vmand %vm501_vm0, %vm502_vm1  ;;  %vm1299_vm4 = vcmask 33793   ;;  %vm1300_vm5 = vsmask.f32 1280 }
  0x14   : > { %s1856_s26 = sld [smem:[#allocation2 + $0x2]]  ;;  %vm3313_vm6 = vmand %vm1299_vm4, %vm1300_vm5  ;;  %vm901_vm7 = vsmask.f32 7938  ;;  %vm1714_vm9 = vsmask.f32 7942 }
  0x15   : > { %s4314_s23 = smov (!%p190_p6, %s1851_s23), 31  ;;  %s1857_s27 = sld [smem:[#allocation2 + $0x3]]  ;;  %vm3542_vm8 = vmand %vm501_vm0, %vm901_vm7 }
  0x16   : > { %s1852_s28 = sshll.u32 %s4314_s23, 3  ;;  %s1858_s5 = sld [smem:[#allocation2 + $0x4]]  ;;  %vm3729_vm10 = vmand %vm1299_vm4, %vm1714_vm9 }
  0x17   : > { %s2021_s4 = scalar_lea.vmem %s3880_s0, %s1852_s28  ;;  %s2047_s6 = sld [smem:[#allocation4]] }
  0x18   : > { %v2023_v0 = vstv %s281_s24  ;;  %v2026_v1 = vld [vmem:[%s2021_s4] sm:$0x1]  ;;  %v2029_v2 = vld [vmem:[%s2021_s4 + $0x1] sm:$0x1]  ;;  %v2034_v4 = vld [vmem:[%s2021_s4 + $0x2] sm:$0x1] }
  0x19   : > { %v2031_v3 = vstv %s1855_s25  ;;  %v283_v5 = vmul.f32 %v2023_v0, %v2026_v1  ;;  %v2043_v8 = vld [vmem:[%s2021_s4 + $0x3] sm:$0x1]  ;;  %v2050_v10 = vld [vmem:[%s2021_s4 + $0x8] sm:$0x1]  ;;  %s2054_s7 = sld [smem:[#allocation2 + $0x80]]  ;;  %s1854_s16 = sshll.u32 %s4314_s23, 1 }
  0x1a   : > { %v301_v6 = vmul.f32 %v2031_v3, %v2029_v2  ;;  %v2040_v7 = vstv %s1856_s26  ;;  %v2057_v13 = vld [vmem:[%s2021_s4 + $0x9] sm:$0x1]  ;;  %v2060_v14 = vld [vmem:[%s2021_s4 + $0xa] sm:$0x1]  ;;  %v284_v15 = vmul.f32 %v2023_v0, %v2050_v10  ;;  %s1860_s8 = sld [smem:[#allocation2 + $0x81]]  ;;  %s2161_s21 = scalar_lea.vmem %s3883_s3, %s1854_s16 }
  0x1b   : > { %v335_v9 = vmul.f32 %v2040_v7, %v2034_v4  ;;  %v2052_v12 = vstv %s1857_s27  ;;  %v302_v17 = vmul.f32 %v2031_v3, %v2057_v13  ;;  %v336_v18 = vmul.f32 %v2040_v7, %v2060_v14  ;;  %s2070_s9 = sld [smem:[#allocation2 + $0x82]]  ;;  %v2073_v20 = vld [vmem:[%s2021_s4 + $0xb] sm:$0x1]  ;;  %v2080_v23 = vld [vmem:[%s2021_s4 + $0x10] sm:$0x1] }
  0x1c   : > { %v317_v11 = vadd.f32 %v301_v6, %v283_v5  ;;  %v369_v16 = vmul.f32 %v2052_v12, %v2043_v8  ;;  %s2075_s10 = sld [smem:[#allocation2 + $0x83]]  ;;  %v370_v22 = vmul.f32 %v2052_v12, %v2073_v20  ;;  %v2083_v24 = vld [vmem:[%s2021_s4 + $0x11] sm:$0x1]  ;;  %v2086_v25 = vld [vmem:[%s2021_s4 + $0x4] sm:$0x1]  ;;  %v2088_v27 = vstv %s1858_s5 }
  0x1d   : > { %v318_v21 = vadd.f32 %v302_v17, %v284_v15  ;;  %s2090_s11 = sld [smem:[#allocation2 + $0x84]]  ;;  %v2093_v28 = vld [vmem:[%s2021_s4 + $0xc] sm:$0x1]  ;;  %v285_v29 = vmul.f32 %v2023_v0, %v2080_v23  ;;  %v303_v30 = vmul.f32 %v2031_v3, %v2083_v24  ;;  %v403_v31 = vmul.f32 %v2088_v27, %v2086_v25  ;;  %v2111_v35 = vld [vmem:[%s2021_s4 + $0x12] sm:$0x1] }
  0x1e   : > { %v351_v19 = vadd.f32 %v335_v9, %v317_v11  ;;  %s2101_s13 = sld [smem:[#allocation2 + $0x180]]  ;;  %v404_v33 = vmul.f32 %v2088_v27, %v2093_v28  ;;  %v2106_v34 = vstv %s2047_s6  ;;  %v2121_v40 = vld [vmem:[%s2021_s4 + $0x13] sm:$0x1]  ;;  %v2124_v41 = vld [vmem:[%s2021_s4 + $0x14] sm:$0x1]  ;;  %v337_v43 = vmul.f32 %v2040_v7, %v2111_v35 }
  0x1f   : > { %v352_v32 = vadd.f32 %v336_v18, %v318_v21  ;;  %s2108_s14 = sld [smem:[#allocation2 + $0x181]]  ;;  %v2114_v37 = vstv %s2054_s7  ;;  %v319_v42 = vadd.f32 %v303_v30, %v285_v29  ;;  %v371_v44 = vmul.f32 %v2052_v12, %v2121_v40  ;;  %v504_v11 = vld [vmem:[%s2161_s21] sm:$0x1]  ;;  %v507_v30 = vld [vmem:[%s2161_s21 + $0x2] sm:$0x1] }
  0x20   : > { %v385_v26 = vadd.f32 %v369_v16, %v351_v19  ;;  %v2116_v38 = vstv %s1860_s8  ;;  %s2118_s15 = sld [smem:[#allocation2 + $0x182]]  ;;  %v405_v45 = vmul.f32 %v2088_v27, %v2124_v41  ;;  %v2144_v50 = vmul.f32 %v2114_v37, %v2026_v1 }
  0x21   : > { %v386_v39 = vadd.f32 %v370_v22, %v352_v32  ;;  %s2127_s17 = sld [smem:[#allocation2 + $0x183]]  ;;  %v2137_v47 = vstv %s2070_s9  ;;  %v2148_v51 = vmul.f32 %v2116_v38, %v2029_v2  ;;  %v2152_v52 = vmul.f32 %v2114_v37, %v2050_v10 }
  0x22   : > { %v419_v36 = vadd.f32 %v403_v31, %v385_v26  ;;  %v2140_v48 = vstv %s2075_s10  ;;  %s1875_s18 = sld [smem:[#allocation2 + $0x184]]  ;;  %3919 = vst [vmem:[#allocation8_spill] sm:$0xff] %v2144_v50  ;;  %v2156_v53 = vmul.f32 %v2116_v38, %v2057_v13  ;;  %v2172_v58 = vmul.f32 %v2137_v47, %v2034_v4 }
  0x23   : > { %v420_v49 = vadd.f32 %v404_v33, %v386_v39  ;;  %3920 = vst [vmem:[#allocation9_spill] sm:$0xff] %v2148_v51  ;;  %v2164_v55 = vstv %s2090_s11  ;;  %v2176_v59 = vmul.f32 %v2140_v48, %v2043_v8  ;;  %v2180_v60 = vmul.f32 %v2137_v47, %v2060_v14  ;;  %s3076_s22 = sld [smem:[#allocation2 + $0x100]] }
  0x24   : > { %v437_v46 = vadd.f32 %v2106_v34, %v419_v36  ;;  %3921 = vst [vmem:[#allocation10_spill] sm:$0xff] %v2152_v52  ;;  %v2167_v56 = vstv %s2101_s13  ;;  %v2184_v61 = vmul.f32 %v2140_v48, %v2073_v20  ;;  %v2201_v15 = vmul.f32 %v2164_v55, %v2086_v25  ;;  %s3093_s23 = sld [smem:[#allocation2 + $0x101]] }
  0x25   : > { %3922 = vst [vmem:[#allocation11_spill] sm:$0xff] %v2156_v53  ;;  %v438_v57 = vadd.f32 %v2106_v34, %v420_v49  ;;  %v2187_v63 = vstv %s2108_s14  ;;  %v2205_v16 = vmul.f32 %v2167_v56, %v2026_v1  ;;  %v2212_v18 = vmul.f32 %v2164_v55, %v2093_v28  ;;  %s3100_s24 = sld [smem:[#allocation2 + $0x102]] }
  0x26   : > { %v453_v54 = vmul.f32 0.1, %v437_v46  ;;  %3923 = vst [vmem:[#allocation12_spill] sm:$0xff] %v2172_v58  ;;  %v2190_v5 = vstv %s2118_s15  ;;  %v2218_v26 = vmul.f32 %v2167_v56, %v2050_v10  ;;  %v2222_v29 = vmul.f32 %v2187_v63, %v2029_v2  ;;  %s3121_s25 = sld [smem:[#allocation2 + $0x103]] }
  0x27   : > { %3924 = vst [vmem:[#allocation13_spill] sm:$0xff] %v2176_v59  ;;  %v454_v6 = vmul.f32 0.1, %v438_v57  ;;  %v2208_v17 = vstv %s2127_s17  ;;  %v2226_v1 = vmul.f32 %v2190_v5, %v2034_v4  ;;  %v2231_v31 = vmul.f32 %v2187_v63, %v2057_v13  ;;  %s3146_s26 = sld [smem:[#allocation2 + $0x104]] }
  0x28   : > { %3925 = vst [vmem:[#allocation14_spill] sm:$0xff] %v2180_v60  ;;  %v469_v62 = vmax.f32 %v437_v46, %v453_v54  ;;  %v2214_v21 = vstv %s1875_s18  ;;  %v353_v32 = vadd.f32 %v337_v43, %v319_v42  ;;  %v2237_v33 = vmul.f32 %v2208_v17, %v2043_v8  ;;  %v2271_v46 = vld [vmem:[%s2021_s4 + $0x18] sm:$0x1]  ;;  %s3171_s27 = sld [smem:[#allocation4 + $0x2]] }
  0x29   : > { %3926 = vst [vmem:[#allocation15_spill] sm:$0xff] %v2184_v61  ;;  %v470_v22 = vmax.f32 %v438_v57, %v454_v6  ;;  %v2241_v4 = vmul.f32 %v2190_v5, %v2060_v14  ;;  %v2246_v13 = vmul.f32 %v2214_v21, %v2086_v25  ;;  %v2250_v36 = vmul.f32 %v2208_v17, %v2073_v20  ;;  %v2283_v57 = vld [vmem:[%s2021_s4 + $0x19] sm:$0x1]  ;;  %s3450_s28 = sld [smem:[#allocation4 + $0x1]] }
  0x2a   : > { %3929 = vst [vmem:[#allocation16_spill] sm:$0xff] %v2201_v15  ;;  %v485_v19 = vpack.c.bf16 %v469_v62, %v469_v62  ;;  %v2254_v8 = vmul.f32 %v2214_v21, %v2093_v28  ;;  %v387_v39 = vadd.f32 %v371_v44, %v353_v32  ;;  %v2260_v14 = vmul.f32 %v2114_v37, %v2080_v23  ;;  %v2286_v62 = vld [vmem:[%s2021_s4 + $0x1a] sm:$0x1]  ;;  %s3628_s29 = sld [smem:[#allocation4 + $0x3]] }
  0x2b   : > { %3930 = vst [vmem:[#allocation17_spill] sm:$0xff] %v2205_v16  ;;  %v486_v2 = vpack.c.bf16 %v470_v22, %v470_v22  ;;  %v2264_v43 = vmul.f32 %v2116_v38, %v2083_v24  ;;  %v2268_v20 = vmul.f32 %v2137_v47, %v2111_v35  ;;  %v2276_v49 = vmul.f32 %v2140_v48, %v2121_v40 }
  0x2c   : > { %3931 = vst [vmem:[#allocation18_spill] sm:$0xff] %v2212_v18  ;;  %v505_v10 = vsel %vm2194_vm2, %v485_v19, %v504_v11  ;;  %v421_v44 = vadd.f32 %v405_v45, %v387_v39  ;;  %v2280_v54 = vmul.f32 %v2164_v55, %v2124_v41  ;;  %v286_v6 = vmul.f32 %v2023_v0, %v2271_v46 }
  0x2d   : > { %3932 = vst [vmem:[#allocation19_spill] sm:$0xff] %v2214_v21  ;;  %v508_v42 = vsel %vm2194_vm2, %v486_v2, %v507_v30  ;;  %v2292_v11 = vmul.f32 %v2167_v56, %v2080_v23  ;;  %v2296_v45 = vmul.f32 %v2187_v63, %v2083_v24  ;;  %v304_v19 = vmul.f32 %v2031_v3, %v2283_v57  ;;  %v2319_v2 = vld [vmem:[%s2021_s4 + $0x1c] sm:$0x1] }
  0x2e   : > { %3933 = vst [vmem:[#allocation20_spill] sm:$0xff] %v2218_v26  ;;  %v338_v22 = vmul.f32 %v2040_v7, %v2286_v62  ;;  %v439_v30 = vadd.f32 %v2106_v34, %v421_v44  ;;  %v2305_v32 = vmul.f32 %v2190_v5, %v2111_v35  ;;  %v2309_v23 = vmul.f32 %v2208_v17, %v2121_v40 }
  0x2f   : > { %3934 = vst [vmem:[#allocation21_spill] sm:$0xff] %v2222_v29  ;;  %v2313_v24 = vmul.f32 %v2214_v21, %v2124_v41  ;;  %v320_v39 = vadd.f32 %v304_v19, %v286_v6  ;;  %v406_v44 = vmul.f32 %v2088_v27, %v2319_v2  ;;  %v2335_v6 = vmul.f32 %v2137_v47, %v2286_v62  ;;  %v510_v29 = vld [vmem:[%s2161_s21 + $0x4] sm:$0x1] }
  0x30   : > { %3935 = vst [vmem:[#allocation22_spill] sm:$0xff] %v2226_v1  ;;  %v2360_v26 = vmul.f32 %v2167_v56, %v2271_v46 }
  0x31   : > { %3936 = vst [vmem:[#allocation23_spill] sm:$0xff] %v2231_v31 }
  0x32   : > { %3937 = vst [vmem:[#allocation24_spill] sm:$0xff] %v2237_v33  ;;  %v2352_v33 = vld [vmem:[%s2021_s4 + $0x22] sm:$0x1] }
  0x33   : > { %3938 = vst [vmem:[#allocation25_spill] sm:$0xff] %v2241_v4  ;;  %v2349_v4 = vmul.f32 %v2164_v55, %v2319_v2  ;;  %v339_v1 = vmul.f32 %v2040_v7, %v2352_v33 }
  0x34   : > { %506 = vst [vmem:[%s2161_s21] sm:$0x1] %v505_v10  ;;  %v2316_v10 = vld [vmem:[%s2021_s4 + $0x1b] sm:$0x1] }
  0x35   : > { %3939 = vst [vmem:[#allocation26_spill] sm:$0xff] %v2246_v13  ;;  %v2339_v19 = vmul.f32 %v2140_v48, %v2316_v10  ;;  %v2345_v13 = vld [vmem:[%s2021_s4 + $0x21] sm:$0x1] }
  0x36   : > { %3940 = vst [vmem:[#allocation27_spill] sm:$0xff] %v2250_v36  ;;  %v2342_v36 = vld [vmem:[%s2021_s4 + $0x20] sm:$0x1] }
  0x37   : > { %3941 = vst [vmem:[#allocation28_spill] sm:$0xff] %v2254_v8  ;;  %v2327_v8 = vmul.f32 %v2114_v37, %v2271_v46 }
  0x38   : > { %3942 = vst [vmem:[#allocation29_spill] sm:$0xff] %v2260_v14 }
  0x39   : > { %3943 = vst [vmem:[#allocation30_spill] sm:$0xff] %v2264_v43  ;;  %v2513_v43 = vld [vmem:[%s2021_s4 + $0x34] sm:$0x1] }
  0x3a   : > { %3944 = vst [vmem:[#allocation31_spill] sm:$0xff] %v2268_v20  ;;  %v2595_v58 = vmul.f32 %v2214_v21, %v2513_v43 }
  0x3b   : > { %509 = vst [vmem:[%s2161_s21 + $0x2] sm:$0x1] %v508_v42  ;;  %v372_v42 = vmul.f32 %v2052_v12, %v2316_v10 }
  0x3c   : > { %3945 = vst [vmem:[#allocation32_spill] sm:$0xff] %v2276_v49  ;;  %v2434_v49 = vmul.f32 %v2187_v63, %v2345_v13 }
  0x3d   : > { %3946 = vst [vmem:[#allocation33_spill] sm:$0xff] %v2280_v54  ;;  %v2383_v54 = vmul.f32 %v2208_v17, %v2316_v10 }
  0x3e   : > { %3947 = vst [vmem:[#allocation34_spill] sm:$0xff] %v2292_v11  ;;  %v305_v11 = vmul.f32 %v2031_v3, %v2345_v13 }
  0x3f   : > { %3948 = vst [vmem:[#allocation35_spill] sm:$0xff] %v2296_v45  ;;  %v287_v45 = vmul.f32 %v2023_v0, %v2342_v36 }
  0x40   : > { %3949 = vst [vmem:[#allocation36_spill] sm:$0xff] %v2305_v32  ;;  %v354_v32 = vadd.f32 %v338_v22, %v320_v39  ;;  %v2364_v22 = vmul.f32 %v2187_v63, %v2283_v57  ;;  %v2367_v39 = vld [vmem:[%s2021_s4 + $0x23] sm:$0x1] }
  0x41   : > { %3950 = vst [vmem:[#allocation37_spill] sm:$0xff] %v2309_v23  ;;  %v455_v23 = vmul.f32 0.1, %v439_v30 }
  0x42   : > { %3951 = vst [vmem:[#allocation38_spill] sm:$0xff] %v2313_v24  ;;  %v2331_v24 = vmul.f32 %v2116_v38, %v2283_v57  ;;  %v388_v16 = vadd.f32 %v372_v42, %v354_v32  ;;  %v2387_v32 = vmul.f32 %v2214_v21, %v2319_v2 }
  0x43   : > { %3952 = vst [vmem:[#allocation39_spill] sm:$0xff] %v2327_v8  ;;  %v471_v31 = vmax.f32 %v439_v30, %v455_v23  ;;  %v2377_v30 = vld [vmem:[%s2021_s4 + $0x24] sm:$0x1]  ;;  %v321_v23 = vadd.f32 %v305_v11, %v287_v45  ;;  %v2393_v11 = vmul.f32 %v2114_v37, %v2342_v36 }
  0x44   : > { %3953 = vst [vmem:[#allocation40_spill] sm:$0xff] %v2331_v24  ;;  %v407_v42 = vmul.f32 %v2088_v27, %v2377_v30 }
  0x45   : > { %3954 = vst [vmem:[#allocation41_spill] sm:$0xff] %v2335_v6  ;;  %v2470_v6 = vld [vmem:[%s2021_s4 + $0x30] sm:$0x1] }
  0x46   : > { %3955 = vst [vmem:[#allocation42_spill] sm:$0xff] %v2339_v19  ;;  %v355_v19 = vadd.f32 %v339_v1, %v321_v23  ;;  %v2411_v1 = vmul.f32 %v2164_v55, %v2377_v30  ;;  %v2417_v23 = vld [vmem:[%s2021_s4 + $0x29] sm:$0x1] }
  0x47   : > { %3956 = vst [vmem:[#allocation43_spill] sm:$0xff] %v2349_v4  ;;  %v2374_v4 = vmul.f32 %v2190_v5, %v2286_v62  ;;  %v2504_v59 = vmul.f32 %v2187_v63, %v2417_v23 }
  0x48   : > { %3957 = vst [vmem:[#allocation44_spill] sm:$0xff] %v2360_v26  ;;  %v487_v26 = vpack.c.bf16 %v471_v31, %v471_v31  ;;  %v2397_v31 = vmul.f32 %v2116_v38, %v2345_v13 }
  0x49   : > { %3958 = vst [vmem:[#allocation45_spill] sm:$0xff] %v2364_v22  ;;  %v373_v22 = vmul.f32 %v2052_v12, %v2367_v39 }
  0x4a   : > { %3959 = vst [vmem:[#allocation46_spill] sm:$0xff] %v2374_v4  ;;  %v422_v4 = vadd.f32 %v406_v44, %v388_v16  ;;  %v511_v45 = vsel %vm2194_vm2, %v487_v26, %v510_v29  ;;  %v2407_v16 = vmul.f32 %v2140_v48, %v2367_v39  ;;  %v2414_v44 = vld [vmem:[%s2021_s4 + $0x28] sm:$0x1] }
  0x4b   : > { %3960 = vst [vmem:[#allocation47_spill] sm:$0xff] %v2383_v54  ;;  %v389_v29 = vadd.f32 %v373_v22, %v355_v19  ;;  %v2422_v54 = vld [vmem:[%s2021_s4 + $0x2a] sm:$0x1]  ;;  %v2441_v19 = vld [vmem:[%s2021_s4 + $0x2b] sm:$0x1] }
  0x4c   : > { %3961 = vst [vmem:[#allocation48_spill] sm:$0xff] %v2387_v32  ;;  %v2403_v32 = vmul.f32 %v2137_v47, %v2352_v33  ;;  %v440_v26 = vadd.f32 %v2106_v34, %v422_v4  ;;  %v2438_v4 = vmul.f32 %v2190_v5, %v2352_v33  ;;  %v340_v22 = vmul.f32 %v2040_v7, %v2422_v54 }
  0x4d   : > { %3962 = vst [vmem:[#allocation49_spill] sm:$0xff] %v2393_v11  ;;  %v423_v18 = vadd.f32 %v407_v42, %v389_v29  ;;  %v2452_v11 = vmul.f32 %v2208_v17, %v2367_v39  ;;  %v2462_v42 = vmul.f32 %v2114_v37, %v2414_v44  ;;  %v2475_v20 = vmul.f32 %v2137_v47, %v2422_v54 }
  0x4e   : > { %3963 = vst [vmem:[#allocation50_spill] sm:$0xff] %v2397_v31  ;;  %v2446_v31 = vld [vmem:[%s2021_s4 + $0x2c] sm:$0x1]  ;;  %v2479_v61 = vmul.f32 %v2140_v48, %v2441_v19  ;;  %v2523_v60 = vmul.f32 %v2208_v17, %v2441_v19 }
  0x4f   : > { %3964 = vst [vmem:[#allocation51_spill] sm:$0xff] %v2403_v32  ;;  %v288_v32 = vmul.f32 %v2023_v0, %v2414_v44  ;;  %v408_v15 = vmul.f32 %v2088_v27, %v2446_v31 }
  0x50   : > { %3965 = vst [vmem:[#allocation52_spill] sm:$0xff] %v2407_v16  ;;  %v306_v16 = vmul.f32 %v2031_v3, %v2417_v23 }
  0x51   : > { %3966 = vst [vmem:[#allocation53_spill] sm:$0xff] %v2411_v1  ;;  %v2430_v1 = vmul.f32 %v2167_v56, %v2342_v36 }
  0x52   : > { %512 = vst [vmem:[%s2161_s21 + $0x4] sm:$0x1] %v511_v45  ;;  %v456_v45 = vmul.f32 0.1, %v440_v26 }
  0x53   : > { %3967 = vst [vmem:[#allocation54_spill] sm:$0xff] %v2430_v1  ;;  %v322_v1 = vadd.f32 %v306_v16, %v288_v32  ;;  %v441_v16 = vadd.f32 %v2106_v34, %v423_v18  ;;  %v2486_v18 = vld [vmem:[%s2021_s4 + $0x31] sm:$0x1] }
  0x54   : > { %3968 = vst [vmem:[#allocation55_spill] sm:$0xff] %v2434_v49  ;;  %v374_v49 = vmul.f32 %v2052_v12, %v2441_v19  ;;  %v472_v32 = vmax.f32 %v440_v26, %v456_v45  ;;  %v2483_v26 = vmul.f32 %v2164_v55, %v2446_v31 }
  0x55   : > { %3969 = vst [vmem:[#allocation56_spill] sm:$0xff] %v2438_v4  ;;  %v2456_v4 = vmul.f32 %v2214_v21, %v2377_v30  ;;  %v356_v29 = vadd.f32 %v340_v22, %v322_v1  ;;  %v289_v1 = vmul.f32 %v2023_v0, %v2470_v6  ;;  %v457_v45 = vmul.f32 0.1, %v441_v16 }
  0x56   : > { %3970 = vst [vmem:[#allocation57_spill] sm:$0xff] %v2452_v11  ;;  %v2467_v11 = vmul.f32 %v2116_v38, %v2417_v23  ;;  %v488_v22 = vpack.c.bf16 %v472_v32, %v472_v32 }
  0x57   : > { %3971 = vst [vmem:[#allocation58_spill] sm:$0xff] %v2456_v4  ;;  %v513_v4 = vld [vmem:[%s2161_s21 + $0x6] sm:$0x1]  ;;  %v473_v24 = vmax.f32 %v441_v16, %v457_v45 }
  0x58   : > { %3972 = vst [vmem:[#allocation59_spill] sm:$0xff] %v2462_v42  ;;  %v2494_v42 = vld [vmem:[%s2021_s4 + $0x33] sm:$0x1] }
  0x59   : > { %3973 = vst [vmem:[#allocation60_spill] sm:$0xff] %v2467_v11  ;;  %v390_v11 = vadd.f32 %v374_v49, %v356_v29  ;;  %v375_v49 = vmul.f32 %v2052_v12, %v2494_v42  ;;  %v514_v29 = vsel %vm2194_vm2, %v488_v22, %v513_v4  ;;  %v2527_v4 = vmul.f32 %v2214_v21, %v2446_v31 }
  0x5a   : > { %3974 = vst [vmem:[#allocation61_spill] sm:$0xff] %v2475_v20  ;;  %v2491_v20 = vld [vmem:[%s2021_s4 + $0x32] sm:$0x1]  ;;  %v2538_v22 = vmul.f32 %v2116_v38, %v2486_v18 }
  0x5b   : > { %3975 = vst [vmem:[#allocation62_spill] sm:$0xff] %v2479_v61  ;;  %v307_v61 = vmul.f32 %v2031_v3, %v2486_v18  ;;  %v341_v32 = vmul.f32 %v2040_v7, %v2491_v20  ;;  %v424_v8 = vadd.f32 %v408_v15, %v390_v11  ;;  %v409_v15 = vmul.f32 %v2088_v27, %v2513_v43 }
  0x5c   : > { %3976 = vst [vmem:[#allocation63_spill] sm:$0xff] %v2483_v26  ;;  %v2500_v26 = vmul.f32 %v2167_v56, %v2414_v44  ;;  %v2542_v45 = vmul.f32 %v2137_v47, %v2491_v20 }
  0x5d   : > { %3977 = vst [vmem:[#allocation64_spill] sm:$0xff] %v2491_v20  ;;  %v323_v14 = vadd.f32 %v307_v61, %v289_v1  ;;  %v489_v61 = vpack.c.bf16 %v473_v24, %v473_v24  ;;  %v442_v11 = vadd.f32 %v2106_v34, %v424_v8  ;;  %v2534_v1 = vmul.f32 %v2114_v37, %v2470_v6 }
  0x5e   : > { %3978 = vst [vmem:[#allocation65_spill] sm:$0xff] %v2494_v42  ;;  %v2550_v8 = vmul.f32 %v2164_v55, %v2513_v43 }
  0x5f   : > { %3979 = vst [vmem:[#allocation66_spill] sm:$0xff] %v2500_v26  ;;  %v516_v26 = vld [vmem:[%s2161_s21 + $0x8] sm:$0x1]  ;;  %v357_v16 = vadd.f32 %v341_v32, %v323_v14  ;;  %v2553_v14 = vld [vmem:[%s2021_s4 + $0x38] sm:$0x1] }
  0x60   : > { %3980 = vst [vmem:[#allocation67_spill] sm:$0xff] %v2504_v59  ;;  %v2519_v59 = vmul.f32 %v2190_v5, %v2422_v54  ;;  %v517_v24 = vsel %vm2194_vm2, %v489_v61, %v516_v26  ;;  %v458_v32 = vmul.f32 0.1, %v442_v11  ;;  %v2640_v52 = vmul.f32 %v2167_v56, %v2553_v14 }
  0x61   : > { %3981 = vst [vmem:[#allocation68_spill] sm:$0xff] %v2513_v43 }
  0x62   : > { %515 = vst [vmem:[%s2161_s21 + $0x6] sm:$0x1] %v514_v29  ;;  %v2546_v29 = vmul.f32 %v2140_v48, %v2494_v42  ;;  %v474_v61 = vmax.f32 %v442_v11, %v458_v32 }
  0x63   : > { %3982 = vst [vmem:[#allocation69_spill] sm:$0xff] %v2519_v59  ;;  %v2561_v59 = vld [vmem:[%s2021_s4 + $0x3a] sm:$0x1] }
  0x64   : > { %3983 = vst [vmem:[#allocation70_spill] sm:$0xff] %v2523_v60  ;;  %v2558_v60 = vld [vmem:[%s2021_s4 + $0x39] sm:$0x1]  ;;  %v490_v32 = vpack.c.bf16 %v474_v61, %v474_v61  ;;  %v2653_v43 = vmul.f32 %v2190_v5, %v2561_v59 }
  0x65   : > { %3984 = vst [vmem:[#allocation71_spill] sm:$0xff] %v2527_v4  ;;  %v391_v4 = vadd.f32 %v375_v49, %v357_v16  ;;  %v308_v26 = vmul.f32 %v2031_v3, %v2558_v60  ;;  %v342_v49 = vmul.f32 %v2040_v7, %v2561_v59  ;;  %v2608_v53 = vmul.f32 %v2116_v38, %v2558_v60 }
  0x66   : > { %3985 = vst [vmem:[#allocation72_spill] sm:$0xff] %v2534_v1  ;;  %v519_v1 = vld [vmem:[%s2161_s21 + $0xa] sm:$0x1]  ;;  %v2644_v51 = vmul.f32 %v2187_v63, %v2558_v60 }
  0x67   : > { %3986 = vst [vmem:[#allocation73_spill] sm:$0xff] %v2538_v22  ;;  %v425_v16 = vadd.f32 %v409_v15, %v391_v4  ;;  %v2580_v22 = vmul.f32 %v2190_v5, %v2491_v20 }
  0x68   : > { %3987 = vst [vmem:[#allocation74_spill] sm:$0xff] %v2542_v45  ;;  %v2572_v45 = vmul.f32 %v2187_v63, %v2486_v18 }
  0x69   : > { %3988 = vst [vmem:[#allocation75_spill] sm:$0xff] %v2546_v29  ;;  %v290_v29 = vmul.f32 %v2023_v0, %v2553_v14 }
  0x6a   : > { %3989 = vst [vmem:[#allocation76_spill] sm:$0xff] %v2550_v8  ;;  %v2568_v8 = vmul.f32 %v2167_v56, %v2470_v6 }
  0x6b   : > { %3990 = vst [vmem:[#allocation77_spill] sm:$0xff] %v2553_v14  ;;  %v324_v4 = vadd.f32 %v308_v26, %v290_v29  ;;  %v2612_v26 = vmul.f32 %v2137_v47, %v2561_v59 }
  0x6c   : > { %3991 = vst [vmem:[#allocation78_spill] sm:$0xff] %v2558_v60 }
  0x6d   : > { %3992 = vst [vmem:[#allocation79_spill] sm:$0xff] %v2561_v59  ;;  %v358_v29 = vadd.f32 %v342_v49, %v324_v4  ;;  %v520_v49 = vsel %vm2194_vm2, %v490_v32, %v519_v1  ;;  %v2647_v1 = vld [vmem:[%s2021_s4 + $0x43] sm:$0x1] }
  0x6e   : > { %518 = vst [vmem:[%s2161_s21 + $0x8] sm:$0x1] %v517_v24  ;;  %v2584_v24 = vmul.f32 %v2208_v17, %v2494_v42  ;;  %v2792_v42 = vld [vmem:[%s2021_s4 + $0x54] sm:$0x1] }
  0x6f   : > { %3993 = vst [vmem:[#allocation80_spill] sm:$0xff] %v2568_v8  ;;  %v2587_v8 = vld [vmem:[%s2021_s4 + $0x3b] sm:$0x1] }
  0x70   : > { %3994 = vst [vmem:[#allocation81_spill] sm:$0xff] %v2572_v45  ;;  %v2590_v45 = vld [vmem:[%s2021_s4 + $0x3c] sm:$0x1]  ;;  %v376_v15 = vmul.f32 %v2052_v12, %v2587_v8  ;;  %v2663_v60 = vmul.f32 %v2208_v17, %v2587_v8 }
  0x71   : > { %3995 = vst [vmem:[#allocation82_spill] sm:$0xff] %v2580_v22  ;;  %v410_v11 = vmul.f32 %v2088_v27, %v2590_v45  ;;  %v2604_v22 = vmul.f32 %v2114_v37, %v2553_v14  ;;  %v2620_v61 = vmul.f32 %v2164_v55, %v2590_v45 }
  0x72   : > { %3996 = vst [vmem:[#allocation83_spill] sm:$0xff] %v2584_v24  ;;  %v443_v24 = vadd.f32 %v2106_v34, %v425_v16  ;;  %v2623_v16 = vld [vmem:[%s2021_s4 + $0x40] sm:$0x1] }
  0x73   : > { %3997 = vst [vmem:[#allocation84_spill] sm:$0xff] %v2587_v8 }
  0x74   : > { %3998 = vst [vmem:[#allocation85_spill] sm:$0xff] %v2590_v45  ;;  %v459_v4 = vmul.f32 0.1, %v443_v24 }
  0x75   : > { %3999 = vst [vmem:[#allocation86_spill] sm:$0xff] %v2595_v58  ;;  %v2616_v58 = vmul.f32 %v2140_v48, %v2587_v8 }
  0x76   : > { %4000 = vst [vmem:[#allocation87_spill] sm:$0xff] %v2604_v22  ;;  %v2626_v22 = vld [vmem:[%s2021_s4 + $0x41] sm:$0x1]  ;;  %v475_v50 = vmax.f32 %v443_v24, %v459_v4  ;;  %v2667_v24 = vmul.f32 %v2214_v21, %v2590_v45  ;;  %v2710_v45 = vmul.f32 %v2167_v56, %v2623_v16 }
  0x77   : > { %4001 = vst [vmem:[#allocation88_spill] sm:$0xff] %v2608_v53  ;;  %v2631_v53 = vld [vmem:[%s2021_s4 + $0x42] sm:$0x1]  ;;  %v2714_v8 = vmul.f32 %v2187_v63, %v2626_v22 }
  0x78   : > { %4002 = vst [vmem:[#allocation89_spill] sm:$0xff] %v2612_v26  ;;  %v291_v26 = vmul.f32 %v2023_v0, %v2623_v16  ;;  %v343_v32 = vmul.f32 %v2040_v7, %v2631_v53 }
  0x79   : > { %4003 = vst [vmem:[#allocation90_spill] sm:$0xff] %v2616_v58  ;;  %v309_v58 = vmul.f32 %v2031_v3, %v2626_v22 }
  0x7a   : > { %4004 = vst [vmem:[#allocation91_spill] sm:$0xff] %v2620_v61  ;;  %v392_v61 = vadd.f32 %v376_v15, %v358_v29  ;;  %v377_v29 = vmul.f32 %v2052_v12, %v2647_v1 }
  0x7b   : > { %4005 = vst [vmem:[#allocation92_spill] sm:$0xff] %v2623_v16  ;;  %v325_v15 = vadd.f32 %v309_v58, %v291_v26  ;;  %v491_v58 = vpack.c.bf16 %v475_v50, %v475_v50 }
  0x7c   : > { %4006 = vst [vmem:[#allocation93_spill] sm:$0xff] %v2626_v22 }
  0x7d   : > { %4007 = vst [vmem:[#allocation94_spill] sm:$0xff] %v2631_v53  ;;  %v359_v26 = vadd.f32 %v343_v32, %v325_v15  ;;  %v2693_v32 = vld [vmem:[%s2021_s4 + $0x48] sm:$0x1]  ;;  %v2696_v15 = vld [vmem:[%s2021_s4 + $0x49] sm:$0x1] }
  0x7e   : > { %521 = vst [vmem:[%s2161_s21 + $0xa] sm:$0x1] %v520_v49  ;;  %v2656_v49 = vld [vmem:[%s2021_s4 + $0x44] sm:$0x1] }
  0x7f   : > { %4008 = vst [vmem:[#allocation95_spill] sm:$0xff] %v2640_v52  ;;  %v522_v52 = vld [vmem:[%s2161_s21 + $0xc] sm:$0x1]  ;;  %v411_v4 = vmul.f32 %v2088_v27, %v2656_v49  ;;  %v2690_v50 = vmul.f32 %v2164_v55, %v2656_v49 }
  0x80   : > { %4009 = vst [vmem:[#allocation96_spill] sm:$0xff] %v2644_v51  ;;  %v426_v51 = vadd.f32 %v410_v11, %v392_v61  ;;  %v2677_v11 = vmul.f32 %v2116_v38, %v2626_v22 }
  0x81   : > { %4010 = vst [vmem:[#allocation97_spill] sm:$0xff] %v2647_v1 }
  0x82   : > { %4011 = vst [vmem:[#allocation98_spill] sm:$0xff] %v2653_v43  ;;  %v2673_v43 = vmul.f32 %v2114_v37, %v2623_v16  ;;  %v444_v61 = vadd.f32 %v2106_v34, %v426_v51  ;;  %v523_v51 = vsel %vm2194_vm2, %v491_v58, %v522_v52  ;;  %v2717_v52 = vld [vmem:[%s2021_s4 + $0x4b] sm:$0x1] }
  0x83   : > { %4012 = vst [vmem:[#allocation99_spill] sm:$0xff] %v2656_v49 }
  0x84   : > { %4013 = vst [vmem:[#allocation100_spill] sm:$0xff] %v2663_v60  ;;  %v2686_v60 = vmul.f32 %v2140_v48, %v2647_v1 }
  0x85   : > { %4014 = vst [vmem:[#allocation101_spill] sm:$0xff] %v2667_v24  ;;  %v2682_v24 = vmul.f32 %v2137_v47, %v2631_v53 }
  0x86   : > { %4015 = vst [vmem:[#allocation102_spill] sm:$0xff] %v2673_v43  ;;  %v2701_v43 = vld [vmem:[%s2021_s4 + $0x4a] sm:$0x1] }
  0x87   : > { %4016 = vst [vmem:[#allocation103_spill] sm:$0xff] %v2677_v11  ;;  %v393_v11 = vadd.f32 %v377_v29, %v359_v26  ;;  %v344_v29 = vmul.f32 %v2040_v7, %v2701_v43  ;;  %v2723_v26 = vmul.f32 %v2190_v5, %v2631_v53  ;;  %v2744_v53 = vmul.f32 %v2114_v37, %v2693_v32 }
  0x88   : > { %4017 = vst [vmem:[#allocation104_spill] sm:$0xff] %v2682_v24  ;;  %v292_v24 = vmul.f32 %v2023_v0, %v2693_v32 }
  0x89   : > { %4018 = vst [vmem:[#allocation105_spill] sm:$0xff] %v2686_v60  ;;  %v310_v60 = vmul.f32 %v2031_v3, %v2696_v15  ;;  %v427_v58 = vadd.f32 %v411_v4, %v393_v11  ;;  %v2736_v4 = vmul.f32 %v2214_v21, %v2656_v49 }
  0x8a   : > { %4019 = vst [vmem:[#allocation106_spill] sm:$0xff] %v2690_v50  ;;  %v460_v50 = vmul.f32 0.1, %v444_v61 }
  0x8b   : > { %4020 = vst [vmem:[#allocation107_spill] sm:$0xff] %v2693_v32  ;;  %v326_v59 = vadd.f32 %v310_v60, %v292_v24  ;;  %v445_v60 = vadd.f32 %v2106_v34, %v427_v58  ;;  %v2766_v58 = vld [vmem:[%s2021_s4 + $0x51] sm:$0x1] }
  0x8c   : > { %4021 = vst [vmem:[#allocation108_spill] sm:$0xff] %v2696_v15  ;;  %v476_v22 = vmax.f32 %v444_v61, %v460_v50  ;;  %v2748_v61 = vmul.f32 %v2116_v38, %v2696_v15 }
  0x8d   : > { %4022 = vst [vmem:[#allocation109_spill] sm:$0xff] %v2701_v43  ;;  %v360_v24 = vadd.f32 %v344_v29, %v326_v59  ;;  %v2763_v29 = vld [vmem:[%s2021_s4 + $0x50] sm:$0x1] }
  0x8e   : > { %524 = vst [vmem:[%s2161_s21 + $0xc] sm:$0x1] %v523_v51  ;;  %v2726_v51 = vld [vmem:[%s2021_s4 + $0x4c] sm:$0x1]  ;;  %v492_v50 = vpack.c.bf16 %v476_v22, %v476_v22 }
  0x8f   : > { %4023 = vst [vmem:[#allocation110_spill] sm:$0xff] %v2710_v45  ;;  %v378_v45 = vmul.f32 %v2052_v12, %v2717_v52  ;;  %v412_v11 = vmul.f32 %v2088_v27, %v2726_v51  ;;  %v2760_v59 = vmul.f32 %v2164_v55, %v2726_v51 }
  0x90   : > { %4024 = vst [vmem:[#allocation111_spill] sm:$0xff] %v2714_v8  ;;  %v2732_v8 = vmul.f32 %v2208_v17, %v2647_v1  ;;  %v2783_v1 = vmul.f32 %v2187_v63, %v2696_v15  ;;  %v2799_v15 = vmul.f32 %v2190_v5, %v2701_v43 }
  0x91   : > { %4025 = vst [vmem:[#allocation112_spill] sm:$0xff] %v2717_v52  ;;  %v394_v22 = vadd.f32 %v378_v45, %v360_v24  ;;  %v2786_v45 = vld [vmem:[%s2021_s4 + $0x53] sm:$0x1] }
  0x92   : > { %4026 = vst [vmem:[#allocation113_spill] sm:$0xff] %v2723_v26  ;;  %v525_v26 = vld [vmem:[%s2161_s21 + $0xe] sm:$0x1] }
  0x93   : > { %4027 = vst [vmem:[#allocation114_spill] sm:$0xff] %v2726_v51  ;;  %v526_v49 = vsel %vm2194_vm2, %v492_v50, %v525_v26  ;;  %v428_v14 = vadd.f32 %v412_v11, %v394_v22  ;;  %v379_v50 = vmul.f32 %v2052_v12, %v2786_v45  ;;  %v2818_v22 = vmul.f32 %v2116_v38, %v2766_v58 }
  0x94   : > { %4028 = vst [vmem:[#allocation115_spill] sm:$0xff] %v2732_v8  ;;  %v2756_v8 = vmul.f32 %v2140_v48, %v2717_v52 }
  0x95   : > { %4029 = vst [vmem:[#allocation116_spill] sm:$0xff] %v2736_v4  ;;  %v2752_v4 = vmul.f32 %v2137_v47, %v2701_v43  ;;  %v446_v11 = vadd.f32 %v2106_v34, %v428_v14  ;;  %v2830_v14 = vmul.f32 %v2164_v55, %v2792_v42 }
  0x96   : > { %4030 = vst [vmem:[#allocation117_spill] sm:$0xff] %v2744_v53  ;;  %v2769_v53 = vld [vmem:[%s2021_s4 + $0x52] sm:$0x1] }
  0x97   : > { %4031 = vst [vmem:[#allocation118_spill] sm:$0xff] %v2748_v61  ;;  %v461_v61 = vmul.f32 0.1, %v445_v60  ;;  %v345_v24 = vmul.f32 %v2040_v7, %v2769_v53 }
  0x98   : > { %4032 = vst [vmem:[#allocation119_spill] sm:$0xff] %v2752_v4  ;;  %v293_v4 = vmul.f32 %v2023_v0, %v2763_v29 }
  0x99   : > { %4033 = vst [vmem:[#allocation120_spill] sm:$0xff] %v2756_v8  ;;  %v311_v8 = vmul.f32 %v2031_v3, %v2766_v58  ;;  %v477_v16 = vmax.f32 %v445_v60, %v461_v61  ;;  %v2814_v61 = vmul.f32 %v2114_v37, %v2763_v29 }
  0x9a   : > { %4034 = vst [vmem:[#allocation121_spill] sm:$0xff] %v2760_v59  ;;  %v2779_v59 = vmul.f32 %v2167_v56, %v2693_v32  ;;  %v3072_v32 = vld [vmem:[%s2021_s4 + $0x74] sm:$0x1] }
  0x9b   : > { %4035 = vst [vmem:[#allocation122_spill] sm:$0xff] %v2763_v29  ;;  %v327_v26 = vadd.f32 %v311_v8, %v293_v4  ;;  %v413_v8 = vmul.f32 %v2088_v27, %v2792_v42  ;;  %v493_v4 = vpack.c.bf16 %v477_v16, %v477_v16  ;;  %v2833_v16 = vld [vmem:[%s2021_s4 + $0x58] sm:$0x1] }
  0x9c   : > { %4036 = vst [vmem:[#allocation123_spill] sm:$0xff] %v2766_v58 }
  0x9d   : > { %4037 = vst [vmem:[#allocation124_spill] sm:$0xff] %v2769_v53  ;;  %v361_v60 = vadd.f32 %v345_v24, %v327_v26  ;;  %v462_v26 = vmul.f32 0.1, %v446_v11 }
  0x9e   : > { %4038 = vst [vmem:[#allocation125_spill] sm:$0xff] %v2779_v59  ;;  %v528_v59 = vld [vmem:[%s2161_s21 + $0x10] sm:$0x1] }
  0x9f   : > { %4039 = vst [vmem:[#allocation126_spill] sm:$0xff] %v2783_v1  ;;  %v2803_v1 = vmul.f32 %v2208_v17, %v2717_v52  ;;  %v529_v24 = vsel %vm2194_vm2, %v493_v4, %v528_v59  ;;  %v478_v4 = vmax.f32 %v446_v11, %v462_v26 }
  0xa0   : > { %4040 = vst [vmem:[#allocation127_spill] sm:$0xff] %v2786_v45 }
  0xa1   : > { %527 = vst [vmem:[%s2161_s21 + $0xe] sm:$0x1] %v526_v49  ;;  %v2807_v49 = vmul.f32 %v2214_v21, %v2726_v51  ;;  %v2860_v51 = vmul.f32 %v2190_v5, %v2769_v53  ;;  %v494_v26 = vpack.c.bf16 %v478_v4, %v478_v4 }
  0xa2   : > { %4041 = vst [vmem:[#allocation128_spill] sm:$0xff] %v2792_v42 }
  0xa3   : > { %4042 = vst [vmem:[#allocation129_spill] sm:$0xff] %v2799_v15  ;;  %v395_v15 = vadd.f32 %v379_v50, %v361_v60 }
  0xa4   : > { %4043 = vst [vmem:[#allocation130_spill] sm:$0xff] %v2803_v1  ;;  %v2822_v1 = vmul.f32 %v2137_v47, %v2769_v53 }
  0xa5   : > { %4044 = vst [vmem:[#allocation131_spill] sm:$0xff] %v2807_v49  ;;  %v2826_v49 = vmul.f32 %v2140_v48, %v2786_v45  ;;  %v429_v60 = vadd.f32 %v413_v8, %v395_v15 }
  0xa6   : > { %4045 = vst [vmem:[#allocation132_spill] sm:$0xff] %v2814_v61  ;;  %v2852_v61 = vmul.f32 %v2187_v63, %v2766_v58  ;;  %v531_v58 = vld [vmem:[%s2161_s21 + $0x12] sm:$0x1] }
  0xa7   : > { %4046 = vst [vmem:[#allocation133_spill] sm:$0xff] %v2818_v22  ;;  %v2838_v22 = vld [vmem:[%s2021_s4 + $0x59] sm:$0x1] }
  0xa8   : > { %4047 = vst [vmem:[#allocation134_spill] sm:$0xff] %v2822_v1  ;;  %v2841_v1 = vld [vmem:[%s2021_s4 + $0x5a] sm:$0x1]  ;;  %v312_v59 = vmul.f32 %v2031_v3, %v2838_v22  ;;  %v2924_v53 = vmul.f32 %v2187_v63, %v2838_v22 }
  0xa9   : > { %4048 = vst [vmem:[#allocation135_spill] sm:$0xff] %v2826_v49  ;;  %v294_v49 = vmul.f32 %v2023_v0, %v2833_v16  ;;  %v346_v50 = vmul.f32 %v2040_v7, %v2841_v1  ;;  %v2933_v43 = vmul.f32 %v2190_v5, %v2841_v1 }
  0xaa   : > { %4049 = vst [vmem:[#allocation136_spill] sm:$0xff] %v2830_v14  ;;  %v2848_v14 = vmul.f32 %v2167_v56, %v2763_v29  ;;  %v2875_v29 = vmul.f32 %v2214_v21, %v2792_v42  ;;  %v2888_v42 = vmul.f32 %v2116_v38, %v2838_v22 }
  0xab   : > { %4050 = vst [vmem:[#allocation137_spill] sm:$0xff] %v2833_v16  ;;  %v328_v15 = vadd.f32 %v312_v59, %v294_v49  ;;  %v2892_v59 = vmul.f32 %v2137_v47, %v2841_v1 }
  0xac   : > { %4051 = vst [vmem:[#allocation138_spill] sm:$0xff] %v2838_v22 }
  0xad   : > { %4052 = vst [vmem:[#allocation139_spill] sm:$0xff] %v2841_v1  ;;  %v362_v49 = vadd.f32 %v346_v50, %v328_v15  ;;  %v532_v50 = vsel %vm2194_vm2, %v494_v26, %v531_v58  ;;  %v2927_v58 = vld [vmem:[%s2021_s4 + $0x63] sm:$0x1] }
  0xae   : > { %530 = vst [vmem:[%s2161_s21 + $0x10] sm:$0x1] %v529_v24  ;;  %v2864_v24 = vmul.f32 %v2208_v17, %v2786_v45  ;;  %v2920_v45 = vmul.f32 %v2167_v56, %v2833_v16 }
  0xaf   : > { %4053 = vst [vmem:[#allocation140_spill] sm:$0xff] %v2848_v14  ;;  %v2867_v14 = vld [vmem:[%s2021_s4 + $0x5b] sm:$0x1] }
  0xb0   : > { %4054 = vst [vmem:[#allocation141_spill] sm:$0xff] %v2852_v61  ;;  %v2870_v61 = vld [vmem:[%s2021_s4 + $0x5c] sm:$0x1]  ;;  %v380_v8 = vmul.f32 %v2052_v12, %v2867_v14  ;;  %v2943_v22 = vmul.f32 %v2208_v17, %v2867_v14 }
  0xb1   : > { %4055 = vst [vmem:[#allocation142_spill] sm:$0xff] %v2860_v51  ;;  %v414_v11 = vmul.f32 %v2088_v27, %v2870_v61  ;;  %v2884_v51 = vmul.f32 %v2114_v37, %v2833_v16  ;;  %v2900_v4 = vmul.f32 %v2164_v55, %v2870_v61 }
  0xb2   : > { %4056 = vst [vmem:[#allocation143_spill] sm:$0xff] %v2864_v24  ;;  %v447_v24 = vadd.f32 %v2106_v34, %v429_v60  ;;  %v2903_v60 = vld [vmem:[%s2021_s4 + $0x60] sm:$0x1] }
  0xb3   : > { %4057 = vst [vmem:[#allocation144_spill] sm:$0xff] %v2867_v14 }
  0xb4   : > { %4058 = vst [vmem:[#allocation145_spill] sm:$0xff] %v2870_v61  ;;  %v463_v15 = vmul.f32 0.1, %v447_v24 }
  0xb5   : > { %4059 = vst [vmem:[#allocation146_spill] sm:$0xff] %v2875_v29  ;;  %v2896_v29 = vmul.f32 %v2140_v48, %v2867_v14 }
  0xb6   : > { %4060 = vst [vmem:[#allocation147_spill] sm:$0xff] %v2884_v51  ;;  %v2906_v51 = vld [vmem:[%s2021_s4 + $0x61] sm:$0x1]  ;;  %v479_v52 = vmax.f32 %v447_v24, %v463_v15  ;;  %v2947_v24 = vmul.f32 %v2214_v21, %v2870_v61  ;;  %v2990_v61 = vmul.f32 %v2167_v56, %v2903_v60 }
  0xb7   : > { %4061 = vst [vmem:[#allocation148_spill] sm:$0xff] %v2888_v42  ;;  %v2911_v42 = vld [vmem:[%s2021_s4 + $0x62] sm:$0x1]  ;;  %v2994_v14 = vmul.f32 %v2187_v63, %v2906_v51 }
  0xb8   : > { %4062 = vst [vmem:[#allocation149_spill] sm:$0xff] %v2892_v59  ;;  %v295_v59 = vmul.f32 %v2023_v0, %v2903_v60  ;;  %v347_v26 = vmul.f32 %v2040_v7, %v2911_v42 }
  0xb9   : > { %4063 = vst [vmem:[#allocation150_spill] sm:$0xff] %v2896_v29  ;;  %v313_v29 = vmul.f32 %v2031_v3, %v2906_v51 }
  0xba   : > { %4064 = vst [vmem:[#allocation151_spill] sm:$0xff] %v2900_v4  ;;  %v396_v4 = vadd.f32 %v380_v8, %v362_v49  ;;  %v381_v49 = vmul.f32 %v2052_v12, %v2927_v58 }
  0xbb   : > { %4065 = vst [vmem:[#allocation152_spill] sm:$0xff] %v2903_v60  ;;  %v329_v8 = vadd.f32 %v313_v29, %v295_v59  ;;  %v495_v29 = vpack.c.bf16 %v479_v52, %v479_v52 }
  0xbc   : > { %4066 = vst [vmem:[#allocation153_spill] sm:$0xff] %v2906_v51 }
  0xbd   : > { %4067 = vst [vmem:[#allocation154_spill] sm:$0xff] %v2911_v42  ;;  %v363_v59 = vadd.f32 %v347_v26, %v329_v8  ;;  %v2973_v26 = vld [vmem:[%s2021_s4 + $0x68] sm:$0x1]  ;;  %v2976_v8 = vld [vmem:[%s2021_s4 + $0x69] sm:$0x1] }
  0xbe   : > { %533 = vst [vmem:[%s2161_s21 + $0x12] sm:$0x1] %v532_v50  ;;  %v2936_v50 = vld [vmem:[%s2021_s4 + $0x64] sm:$0x1] }
  0xbf   : > { %4068 = vst [vmem:[#allocation155_spill] sm:$0xff] %v2920_v45  ;;  %v534_v45 = vld [vmem:[%s2161_s21 + $0x14] sm:$0x1]  ;;  %v415_v15 = vmul.f32 %v2088_v27, %v2936_v50  ;;  %v2970_v52 = vmul.f32 %v2164_v55, %v2936_v50 }
  0xc0   : > { %4069 = vst [vmem:[#allocation156_spill] sm:$0xff] %v2924_v53  ;;  %v430_v53 = vadd.f32 %v414_v11, %v396_v4  ;;  %v2957_v11 = vmul.f32 %v2116_v38, %v2906_v51 }
  0xc1   : > { %4070 = vst [vmem:[#allocation157_spill] sm:$0xff] %v2927_v58 }
  0xc2   : > { %4071 = vst [vmem:[#allocation158_spill] sm:$0xff] %v2933_v43  ;;  %v2953_v43 = vmul.f32 %v2114_v37, %v2903_v60  ;;  %v448_v4 = vadd.f32 %v2106_v34, %v430_v53  ;;  %v535_v53 = vsel %vm2194_vm2, %v495_v29, %v534_v45  ;;  %v2997_v45 = vld [vmem:[%s2021_s4 + $0x6b] sm:$0x1] }
  0xc3   : > { %4072 = vst [vmem:[#allocation159_spill] sm:$0xff] %v2936_v50 }
  0xc4   : > { %4073 = vst [vmem:[#allocation160_spill] sm:$0xff] %v2943_v22  ;;  %v2966_v22 = vmul.f32 %v2140_v48, %v2927_v58 }
  0xc5   : > { %4074 = vst [vmem:[#allocation161_spill] sm:$0xff] %v2947_v24  ;;  %v2962_v24 = vmul.f32 %v2137_v47, %v2911_v42 }
  0xc6   : > { %4075 = vst [vmem:[#allocation162_spill] sm:$0xff] %v2953_v43  ;;  %v2981_v43 = vld [vmem:[%s2021_s4 + $0x6a] sm:$0x1] }
  0xc7   : > { %4076 = vst [vmem:[#allocation163_spill] sm:$0xff] %v2957_v11  ;;  %v397_v11 = vadd.f32 %v381_v49, %v363_v59  ;;  %v348_v49 = vmul.f32 %v2040_v7, %v2981_v43  ;;  %v3003_v59 = vmul.f32 %v2190_v5, %v2911_v42  ;;  %v3024_v42 = vmul.f32 %v2114_v37, %v2973_v26 }
  0xc8   : > { %4077 = vst [vmem:[#allocation164_spill] sm:$0xff] %v2962_v24  ;;  %v296_v24 = vmul.f32 %v2023_v0, %v2973_v26 }
  0xc9   : > { %4078 = vst [vmem:[#allocation165_spill] sm:$0xff] %v2966_v22  ;;  %v314_v22 = vmul.f32 %v2031_v3, %v2976_v8  ;;  %v431_v29 = vadd.f32 %v415_v15, %v397_v11  ;;  %v3016_v15 = vmul.f32 %v2214_v21, %v2936_v50 }
  0xca   : > { %4079 = vst [vmem:[#allocation166_spill] sm:$0xff] %v2970_v52  ;;  %v464_v52 = vmul.f32 0.1, %v448_v4 }
  0xcb   : > { %536 = vst [vmem:[%s2161_s21 + $0x14] sm:$0x1] %v535_v53  ;;  %v3006_v53 = vld [vmem:[%s2021_s4 + $0x6c] sm:$0x1]  ;;  %v330_v1 = vadd.f32 %v314_v22, %v296_v24  ;;  %v449_v22 = vadd.f32 %v2106_v34, %v431_v29  ;;  %v3046_v29 = vld [vmem:[%s2021_s4 + $0x71] sm:$0x1] }
  0xcc   : > { %4080 = vst [vmem:[#allocation167_spill] sm:$0xff] %v2990_v61  ;;  %v382_v61 = vmul.f32 %v2052_v12, %v2997_v45  ;;  %v480_v51 = vmax.f32 %v448_v4, %v464_v52  ;;  %v416_v11 = vmul.f32 %v2088_v27, %v3006_v53  ;;  %v3028_v4 = vmul.f32 %v2116_v38, %v2976_v8 }
  0xcd   : > { %4081 = vst [vmem:[#allocation168_spill] sm:$0xff] %v2994_v14  ;;  %v3012_v14 = vmul.f32 %v2208_v17, %v2927_v58  ;;  %v364_v24 = vadd.f32 %v348_v49, %v330_v1  ;;  %v3040_v1 = vmul.f32 %v2164_v55, %v3006_v53  ;;  %v3043_v49 = vld [vmem:[%s2021_s4 + $0x70] sm:$0x1]  ;;  %v3063_v58 = vmul.f32 %v2187_v63, %v2976_v8 }
  0xce   : > { %4082 = vst [vmem:[#allocation169_spill] sm:$0xff] %v3003_v59  ;;  %v537_v59 = vld [vmem:[%s2161_s21 + $0x16] sm:$0x1]  ;;  %v496_v52 = vpack.c.bf16 %v480_v51, %v480_v51 }
  0xcf   : > { %4083 = vst [vmem:[#allocation170_spill] sm:$0xff] %v3012_v14  ;;  %v3036_v14 = vmul.f32 %v2140_v48, %v2997_v45  ;;  %v398_v51 = vadd.f32 %v382_v61, %v364_v24  ;;  %v3066_v61 = vld [vmem:[%s2021_s4 + $0x73] sm:$0x1] }
  0xd0   : > { %4084 = vst [vmem:[#allocation171_spill] sm:$0xff] %v3016_v15  ;;  %v3032_v15 = vmul.f32 %v2137_v47, %v2981_v43  ;;  %v538_v50 = vsel %vm2194_vm2, %v496_v52, %v537_v59  ;;  %v383_v59 = vmul.f32 %v2052_v12, %v3066_v61  ;;  %v540_v52 = vld [vmem:[%s2161_s21 + $0x18] sm:$0x1] }
  0xd1   : > { %4085 = vst [vmem:[#allocation172_spill] sm:$0xff] %v3024_v42  ;;  %v3049_v42 = vld [vmem:[%s2021_s4 + $0x72] sm:$0x1]  ;;  %v432_v16 = vadd.f32 %v416_v11, %v398_v51  ;;  %v3104_v51 = vmul.f32 %v2116_v38, %v3046_v29 }
  0xd2   : > { %4086 = vst [vmem:[#allocation173_spill] sm:$0xff] %v3028_v4  ;;  %v465_v4 = vmul.f32 0.1, %v449_v22  ;;  %v349_v24 = vmul.f32 %v2040_v7, %v3049_v42 }
  0xd3   : > { %4087 = vst [vmem:[#allocation174_spill] sm:$0xff] %v3032_v15  ;;  %v297_v15 = vmul.f32 %v2023_v0, %v3043_v49  ;;  %v450_v11 = vadd.f32 %v2106_v34, %v432_v16  ;;  %v3119_v16 = vld [vmem:[%s2021_s4 + $0x78] sm:$0x1] }
  0xd4   : > { %4088 = vst [vmem:[#allocation175_spill] sm:$0xff] %v3036_v14  ;;  %v315_v14 = vmul.f32 %v2031_v3, %v3046_v29  ;;  %v481_v60 = vmax.f32 %v449_v22, %v465_v4  ;;  %v3098_v4 = vmul.f32 %v2114_v37, %v3043_v49 }
  0xd5   : > { %4089 = vst [vmem:[#allocation176_spill] sm:$0xff] %v3040_v1  ;;  %v3059_v1 = vmul.f32 %v2167_v56, %v2973_v26 }
  0xd6   : > { %4091 = vst [vmem:[#allocation178_spill] sm:$0xff] %v3063_v58  ;;  %v331_v20 = vadd.f32 %v315_v14, %v297_v15  ;;  %v3081_v58 = vmul.f32 %v2190_v5, %v2981_v43  ;;  %v417_v14 = vmul.f32 %v2088_v27, %v3072_v32  ;;  %v497_v15 = vpack.c.bf16 %v481_v60, %v481_v60 }
  0xd7   : > { %4090 = vst [vmem:[#allocation177_spill] sm:$0xff] %v3059_v1  ;;  %v3085_v1 = vmul.f32 %v2208_v17, %v2997_v45  ;;  %v3112_v60 = vmul.f32 %v2140_v48, %v3066_v61 }
  0xd8   : > { %539 = vst [vmem:[%s2161_s21 + $0x16] sm:$0x1] %v538_v50  ;;  %v3089_v50 = vmul.f32 %v2214_v21, %v3006_v53  ;;  %v365_v22 = vadd.f32 %v349_v24, %v331_v20  ;;  %v3116_v20 = vmul.f32 %v2164_v55, %v3072_v32  ;;  %v541_v24 = vsel %vm2194_vm2, %v497_v15, %v540_v52 }
  0xd9   : > { %4092 = vst [vmem:[#allocation179_spill] sm:$0xff] %v3081_v58  ;;  %v3140_v52 = vmul.f32 %v2187_v63, %v3046_v29 }
  0xda   : > { %4093 = vst [vmem:[#allocation180_spill] sm:$0xff] %v3085_v1  ;;  %v466_v1 = vmul.f32 0.1, %v450_v11  ;;  %v399_v58 = vadd.f32 %v383_v59, %v365_v22 }
  0xdb   : > { %4094 = vst [vmem:[#allocation181_spill] sm:$0xff] %v3089_v50  ;;  %v3108_v50 = vmul.f32 %v2137_v47, %v3049_v42 }
  0xdc   : > { %4095 = vst [vmem:[#allocation182_spill] sm:$0xff] %v3098_v4  ;;  %v482_v22 = vmax.f32 %v450_v11, %v466_v1  ;;  %v433_v4 = vadd.f32 %v417_v14, %v399_v58 }
  0xdd   : > { %4096 = vst [vmem:[#allocation183_spill] sm:$0xff] %v3104_v51  ;;  %v3129_v51 = vld [vmem:[%s2021_s4 + $0x7a] sm:$0x1] }
  0xde   : > { %4097 = vst [vmem:[#allocation184_spill] sm:$0xff] %v3108_v50  ;;  %v3126_v50 = vld [vmem:[%s2021_s4 + $0x79] sm:$0x1]  ;;  %v350_v15 = vmul.f32 %v2040_v7, %v3129_v51  ;;  %v3165_v7 = vmul.f32 %v2214_v21, %v3072_v32  ;;  %v498_v11 = vpack.c.bf16 %v482_v22, %v482_v22  ;;  %v1908_v22 = vld [vmem:[%s2021_s4] sm:$0x1]  ;;  %v3210_v21 = vstv %s3100_s24 }
  0xdf   : > { %4098 = vst [vmem:[#allocation185_spill] sm:$0xff] %v3112_v60  ;;  %v298_v60 = vmul.f32 %v2023_v0, %v3119_v16  ;;  %v316_v59 = vmul.f32 %v2031_v3, %v3126_v50  ;;  %v3150_v0 = vmul.f32 %v2190_v5, %v3049_v42  ;;  %v543_v3 = vld [vmem:[%s2161_s21 + $0x1a] sm:$0x1] }
  0xe0   : > { %4099 = vst [vmem:[#allocation186_spill] sm:$0xff] %v3116_v20  ;;  %v3136_v20 = vmul.f32 %v2167_v56, %v3043_v49 }
  0xe1   : > { %542 = vst [vmem:[%s2161_s21 + $0x18] sm:$0x1] %v541_v24  ;;  %v3154_v24 = vmul.f32 %v2208_v17, %v3066_v61  ;;  %v332_v1 = vadd.f32 %v316_v59, %v298_v60  ;;  %v3180_v60 = vmul.f32 %v2116_v38, %v3126_v50 }
  0xe2   : > { %4100 = vst [vmem:[#allocation187_spill] sm:$0xff] %v3136_v20  ;;  %v3157_v20 = vld [vmem:[%s2021_s4 + $0x7b] sm:$0x1] }
  0xe3   : > { %4101 = vst [vmem:[#allocation188_spill] sm:$0xff] %v3140_v52  ;;  %v3160_v52 = vld [vmem:[%s2021_s4 + $0x7c] sm:$0x1]  ;;  %v384_v58 = vmul.f32 %v2052_v12, %v3157_v20  ;;  %v366_v12 = vadd.f32 %v350_v15, %v332_v1  ;;  %v3188_v59 = vmul.f32 %v2140_v48, %v3157_v20  ;;  %v3198_v15 = vmul.f32 %v2167_v56, %v3119_v16  ;;  %v1910_v56 = vld [vmem:[%s2021_s4 + $0x2] sm:$0x1] }
  0xe4   : > { %4102 = vst [vmem:[#allocation189_spill] sm:$0xff] %v3150_v0  ;;  %v418_v14 = vmul.f32 %v2088_v27, %v3160_v52  ;;  %v3184_v27 = vmul.f32 %v2137_v47, %v3129_v51  ;;  %v3201_v47 = vstv %s3076_s22 }
  0xe5   : > { %4103 = vst [vmem:[#allocation190_spill] sm:$0xff] %v3154_v24  ;;  %v451_v24 = vadd.f32 %v2106_v34, %v433_v4  ;;  %v3192_v4 = vmul.f32 %v2164_v55, %v3160_v52  ;;  %v400_v48 = vadd.f32 %v384_v58, %v366_v12  ;;  %v953_v1 = vmul.f32 %v1908_v22, %v3201_v47  ;;  %v546_v58 = vld [vmem:[%s2161_s21 + $0x1c] sm:$0x1] }
  0xe6   : > { %4104 = vst [vmem:[#allocation191_spill] sm:$0xff] %v3165_v7  ;;  %v3176_v7 = vmul.f32 %v2114_v37, %v3119_v16  ;;  %v544_v37 = vsel %vm2194_vm2, %v498_v11, %v543_v3  ;;  %v3207_v55 = vstv %s3093_s23  ;;  %v1909_v11 = vld [vmem:[%s2021_s4 + $0x1] sm:$0x1]  ;;  %v3222_v22 = vmul.f32 %v2187_v63, %v3126_v50 }
  0xe7   : > { %4106 = vst [vmem:[#allocation193_spill] sm:$0xff] %v3180_v60  ;;  %v467_v38 = vmul.f32 0.1, %v451_v24  ;;  %v971_v0 = vmul.f32 %v1909_v11, %v3207_v55  ;;  %v434_v12 = vadd.f32 %v418_v14, %v400_v48  ;;  %v1911_v14 = vld [vmem:[%s2021_s4 + $0x3] sm:$0x1] }
  0xe8   : > { %4105 = vst [vmem:[#allocation192_spill] sm:$0xff] %v3176_v7  ;;  %v549_v7 = vld [vmem:[%s2161_s21 + $0x1e] sm:$0x1] }
  0xe9   : > { %4107 = vst [vmem:[#allocation194_spill] sm:$0xff] %v3184_v27  ;;  %v483_v3 = vmax.f32 %v451_v24, %v467_v38  ;;  %v3226_v24 = vmul.f32 %v2190_v5, %v3129_v51  ;;  %v3229_v38 = vstv %s3146_s26  ;;  %v452_v63 = vadd.f32 %v2106_v34, %v434_v12  ;;  %v1916_v27 = vld [vmem:[%s2021_s4 + $0x10] sm:$0x1] }
  0xea   : > { %4108 = vst [vmem:[#allocation195_spill] sm:$0xff] %v3188_v59  ;;  %v1073_v5 = vmul.f32 %v3229_v38, %v2086_v25  ;;  %v1915_v25 = vld [vmem:[%s2021_s4 + $0xb] sm:$0x1]  ;;  %v955_v60 = vmul.f32 %v1916_v27, %v3201_v47  ;;  %v1077_v9 = vmul.f32 %v3229_v38, %v2377_v30 }
  0xeb   : > { %4109 = vst [vmem:[#allocation196_spill] sm:$0xff] %v3192_v4  ;;  %v499_v11 = vpack.c.bf16 %v483_v3, %v483_v3  ;;  %v987_v4 = vadd.f32 %v971_v0, %v953_v1  ;;  %v1913_v1 = vld [vmem:[%s2021_s4 + $0x9] sm:$0x1]  ;;  %v468_v12 = vmul.f32 0.1, %v452_v63 }
  0xec   : > { %4110 = vst [vmem:[#allocation197_spill] sm:$0xff] %v3198_v15  ;;  %v1005_v15 = vmul.f32 %v1910_v56, %v3210_v21  ;;  %v3233_v56 = vmul.f32 %v2208_v17, %v3157_v20 }
  0xed   : > { %545 = vst [vmem:[%s2161_s21 + $0x1a] sm:$0x1] %v544_v37  ;;  %v3217_v37 = vstv %s3121_s25  ;;  %v547_v17 = vsel %vm2194_vm2, %v499_v11, %v546_v58 }
  0xee   : > { %4111 = vst [vmem:[#allocation198_spill] sm:$0xff] %v3222_v22  ;;  %v1039_v48 = vmul.f32 %v1911_v14, %v3217_v37  ;;  %v1912_v22 = vld [vmem:[%s2021_s4 + $0x8] sm:$0x1]  ;;  %v1021_v0 = vadd.f32 %v1005_v15, %v987_v4  ;;  %v1914_v14 = vld [vmem:[%s2021_s4 + $0xa] sm:$0x1]  ;;  %v1040_v59 = vmul.f32 %v1915_v25, %v3217_v37  ;;  %v1075_v25 = vmul.f32 %v3229_v38, %v2124_v41 }
  0xef   : > { %4112 = vst [vmem:[#allocation199_spill] sm:$0xff] %v3226_v24  ;;  %v3241_v24 = vstv %s3171_s27  ;;  %v954_v3 = vmul.f32 %v1912_v22, %v3201_v47  ;;  %v1006_v34 = vmul.f32 %v1914_v14, %v3210_v21  ;;  %v1074_v22 = vmul.f32 %v3229_v38, %v2093_v28  ;;  %v1917_v15 = vld [vmem:[%s2021_s4 + $0x11] sm:$0x1] }
  0xf0   : > { %4113 = vst [vmem:[#allocation200_spill] sm:$0xff] %v3233_v56  ;;  %v972_v56 = vmul.f32 %v1913_v1, %v3207_v55  ;;  %v1055_v58 = vadd.f32 %v1039_v48, %v1021_v0  ;;  %v973_v11 = vmul.f32 %v1917_v15, %v3207_v55  ;;  %v1007_v1 = vmul.f32 %v3210_v21, %v2111_v35 }
  0xf1   : > { %548 = vst [vmem:[%s2161_s21 + $0x1c] sm:$0x1] %v547_v17  ;;  %v484_v17 = vmax.f32 %v452_v63, %v468_v12  ;;  %v1041_v14 = vmul.f32 %v3217_v37, %v2121_v40  ;;  %v956_v28 = vmul.f32 %v3201_v47, %v2271_v46  ;;  %v1008_v35 = vmul.f32 %v3210_v21, %v2286_v62 }
  0xf2   : > { %v988_v4 = vadd.f32 %v972_v56, %v954_v3  ;;  %v1089_v27 = vadd.f32 %v1073_v5, %v1055_v58  ;;  %v989_v56 = vadd.f32 %v973_v11, %v955_v60  ;;  %v974_v3 = vmul.f32 %v3207_v55, %v2283_v57 }
  0xf3   : > { %v500_v0 = vpack.c.bf16 %v484_v17, %v484_v17  ;;  %v1042_v40 = vmul.f32 %v3217_v37, %v2316_v10  ;;  %v1076_v41 = vmul.f32 %v3229_v38, %v2319_v2  ;;  %v975_v62 = vmul.f32 %v3207_v55, %v2345_v13 }
  0xf4   : > { %v1022_v48 = vadd.f32 %v1006_v34, %v988_v4  ;;  %v1107_v46 = vadd.f32 %v3241_v24, %v1089_v27  ;;  %v1023_v63 = vadd.f32 %v1007_v1, %v989_v56  ;;  %v990_v5 = vadd.f32 %v974_v3, %v956_v28 }
  0xf5   : > { %v550_v57 = vsel %vm2194_vm2, %v500_v0, %v549_v7  ;;  %v957_v34 = vmul.f32 %v3201_v47, %v2342_v36  ;;  %v1009_v10 = vmul.f32 %v3210_v21, %v2352_v33  ;;  %v1043_v15 = vmul.f32 %v3217_v37, %v2367_v39 }
  0xf6   : > { %v1056_v60 = vadd.f32 %v1040_v59, %v1022_v48  ;;  %551 = vst [vmem:[%s2161_s21 + $0x1e] sm:$0x1] %v550_v57  ;;  %v1123_v12 = vmul.f32 0.1, %v1107_v46  ;;  %v1057_v58 = vadd.f32 %v1041_v14, %v1023_v63  ;;  %v1024_v4 = vadd.f32 %v1008_v35, %v990_v5 }
  0xf7   : > { %v991_v59 = vadd.f32 %v975_v62, %v957_v34  ;;  %v958_v36 = vmul.f32 %v3201_v47, %v2414_v44  ;;  %v1010_v17 = vmul.f32 %v3210_v21, %v2422_v54  ;;  %v1044_v39 = vmul.f32 %v3217_v37, %v2441_v19 }
  0xf8   : > { %v1090_v2 = vadd.f32 %v1074_v22, %v1056_v60  ;;  %v1139_v7 = vmax.f32 %v1107_v46, %v1123_v12  ;;  %v1091_v11 = vadd.f32 %v1075_v25, %v1057_v58  ;;  %v1058_v33 = vadd.f32 %v1042_v40, %v1024_v4  ;;  %v4114_v46 = vld [vmem:[#allocation64_spill] sm:$0xff]  ;;  %v4117_v4 = vld [vmem:[#allocation65_spill] sm:$0xff] }
  0xf9   : > { %v1025_v1 = vadd.f32 %v1009_v10, %v991_v59  ;;  %v976_v22 = vmul.f32 %v3207_v55, %v2417_v23  ;;  %v1078_v25 = vmul.f32 %v3229_v38, %v2446_v31  ;;  %v959_v23 = vmul.f32 %v3201_v47, %v2470_v6  ;;  %v1302_v6 = vld [vmem:[%s2161_s21] sm:$0x2] }
  0xfa   : > { %v1108_v13 = vadd.f32 %v3241_v24, %v1090_v2  ;;  %v1155_v14 = vpack.c.bf16 %v1139_v7, %v1139_v7  ;;  %v1109_v28 = vadd.f32 %v3241_v24, %v1091_v11  ;;  %v1092_v44 = vadd.f32 %v1076_v41, %v1058_v33  ;;  %v1305_v11 = vld [vmem:[%s2161_s21 + $0x2] sm:$0x2] }
  0xfb   : > { %v1059_v27 = vadd.f32 %v1043_v15, %v1025_v1  ;;  %v992_v48 = vadd.f32 %v976_v22, %v958_v36  ;;  %v977_v40 = vmul.f32 %v3207_v55, %v2486_v18  ;;  %v1011_v41 = vmul.f32 %v3210_v21, %v4114_v46  ;;  %v4118_v22 = vld [vmem:[#allocation68_spill] sm:$0xff] }
  0xfc   : > { %v1124_v30 = vmul.f32 0.1, %v1108_v13  ;;  %v1187_v56 = vrot.slane %v1155_v14, 2  ;;  %v1125_v54 = vmul.f32 0.1, %v1109_v28  ;;  %v1110_v0 = vadd.f32 %v3241_v24, %v1092_v44 }
  0xfd   : > { %v1093_v19 = vadd.f32 %v1077_v9, %v1059_v27  ;;  %v1026_v35 = vadd.f32 %v1010_v17, %v992_v48  ;;  %v993_v10 = vadd.f32 %v977_v40, %v959_v23  ;;  %v1045_v59 = vmul.f32 %v3217_v37, %v4117_v4  ;;  %v1308_v27 = vld [vmem:[%s2161_s21 + $0x4] sm:$0x2]  ;;  %v1311_v46 = vld [vmem:[%s2161_s21 + $0x6] sm:$0x2] }
  0xfe   : > { %v1140_v3 = vmax.f32 %v1108_v13, %v1124_v30  ;;  %v1205_v60 = vsel %vm804_vm3, %v1155_v14, %v1187_v56  ;;  %v1141_v5 = vmax.f32 %v1109_v28, %v1125_v54  ;;  %v1126_v57 = vmul.f32 0.1, %v1110_v0  ;;  %v4120_v56 = vld [vmem:[#allocation78_spill] sm:$0xff] }
  0xff   : > { %v1267_v34 = vrot.slane %v1205_v60, 7  ;;  %v1111_v18 = vadd.f32 %v3241_v24, %v1093_v19  ;;  %v1060_v62 = vadd.f32 %v1044_v39, %v1026_v35  ;;  %v1027_v7 = vadd.f32 %v1011_v41, %v993_v10 }
 0x100   : > { %v1156_v63 = vpack.c.bf16 %v1140_v3, %v1140_v3  ;;  %v1157_v2 = vpack.c.bf16 %v1141_v5, %v1141_v5  ;;  %v1142_v58 = vmax.f32 %v1110_v0, %v1126_v57  ;;  %v1079_v17 = vmul.f32 %v3229_v38, %v4118_v22  ;;  %v4125_v22 = vld [vmem:[#allocation93_spill] sm:$0xff] }
 0x101   : > { %v1303_v15 = vsel %vm3313_vm6, %v1267_v34, %v1302_v6  ;;  %v1127_v9 = vmul.f32 0.1, %v1111_v18  ;;  %v1094_v36 = vadd.f32 %v1078_v25, %v1060_v62  ;;  %v1061_v28 = vadd.f32 %v1045_v59, %v1027_v7  ;;  %v4119_v25 = vld [vmem:[#allocation77_spill] sm:$0xff]  ;;  %v4121_v6 = vld [vmem:[#allocation79_spill] sm:$0xff]  ;;  %v4124_v7 = vld [vmem:[#allocation92_spill] sm:$0xff] }
 0x102   : > { %v1188_v12 = vrot.slane %v1156_v63, 2  ;;  %1304 = vst [vmem:[%s2161_s21] sm:$0x2] %v1303_v15  ;;  %v1189_v33 = vrot.slane %v1157_v2, 2  ;;  %v1158_v1 = vpack.c.bf16 %v1142_v58, %v1142_v58  ;;  %v960_v23 = vmul.f32 %v3201_v47, %v4119_v25  ;;  %v4123_v58 = vld [vmem:[#allocation85_spill] sm:$0xff] }
 0x103   : > { %v1143_v14 = vmax.f32 %v1111_v18, %v1127_v9  ;;  %v1112_v30 = vadd.f32 %v3241_v24, %v1094_v36  ;;  %v978_v3 = vmul.f32 %v3207_v55, %v4120_v56  ;;  %v1095_v41 = vadd.f32 %v1079_v17, %v1061_v28  ;;  %v1314_v9 = vld [vmem:[%s2161_s21 + $0x8] sm:$0x2] }
 0x104   : > { %v1209_v13 = vsel %vm804_vm3, %v1156_v63, %v1188_v12  ;;  %v1213_v44 = vsel %vm804_vm3, %v1157_v2, %v1189_v33  ;;  %v1190_v48 = vrot.slane %v1158_v1, 2  ;;  %v1012_v63 = vmul.f32 %v3210_v21, %v4121_v6  ;;  %v4122_v12 = vld [vmem:[#allocation84_spill] sm:$0xff]  ;;  %v4127_v28 = vld [vmem:[#allocation97_spill] sm:$0xff] }
 0x105   : > { %v1268_v39 = vrot.slane %v1209_v13, 7  ;;  %v1269_v0 = vrot.slane %v1213_v44, 7  ;;  %v1159_v19 = vpack.c.bf16 %v1143_v14, %v1143_v14  ;;  %v1128_v35 = vmul.f32 0.1, %v1112_v30  ;;  %v4126_v14 = vld [vmem:[#allocation94_spill] sm:$0xff] }
 0x106   : > { %v1217_v40 = vsel %vm804_vm3, %v1158_v1, %v1190_v48  ;;  %v994_v60 = vadd.f32 %v978_v3, %v960_v23  ;;  %v1113_v62 = vadd.f32 %v3241_v24, %v1095_v41  ;;  %v1046_v2 = vmul.f32 %v3217_v37, %v4122_v12  ;;  %v4131_v41 = vld [vmem:[#allocation109_spill] sm:$0xff] }
 0x107   : > { %v1306_v54 = vsel %vm3313_vm6, %v1268_v39, %v1305_v11  ;;  %v1309_v5 = vsel %vm3313_vm6, %v1269_v0, %v1308_v27  ;;  %v1270_v57 = vrot.slane %v1217_v40, 7  ;;  %v1191_v34 = vrot.slane %v1159_v19, 2  ;;  %v4128_v27 = vld [vmem:[#allocation99_spill] sm:$0xff]  ;;  %v1317_v0 = vld [vmem:[%s2161_s21 + $0xa] sm:$0x2]  ;;  %v4130_v40 = vld [vmem:[#allocation108_spill] sm:$0xff] }
 0x108   : > { %1307 = vst [vmem:[%s2161_s21 + $0x2] sm:$0x2] %v1306_v54  ;;  %v1144_v18 = vmax.f32 %v1112_v30, %v1128_v35  ;;  %v1028_v10 = vadd.f32 %v1012_v63, %v994_v60  ;;  %v1080_v4 = vmul.f32 %v3229_v38, %v4123_v58  ;;  %v961_v13 = vmul.f32 %v3201_v47, %v4124_v7  ;;  %v4135_v7 = vld [vmem:[#allocation123_spill] sm:$0xff] }
 0x109   : > { %1310 = vst [vmem:[%s2161_s21 + $0x4] sm:$0x2] %v1309_v5  ;;  %v1312_v59 = vsel %vm3313_vm6, %v1270_v57, %v1311_v46  ;;  %v1221_v15 = vsel %vm804_vm3, %v1159_v19, %v1191_v34  ;;  %v1129_v33 = vmul.f32 0.1, %v1113_v62  ;;  %v979_v17 = vmul.f32 %v3207_v55, %v4125_v22  ;;  %v4129_v19 = vld [vmem:[#allocation107_spill] sm:$0xff] }
 0x10a   : > { %v1160_v36 = vpack.c.bf16 %v1144_v18, %v1144_v18  ;;  %1313 = vst [vmem:[%s2161_s21 + $0x6] sm:$0x2] %v1312_v59  ;;  %v1271_v11 = vrot.slane %v1221_v15, 7  ;;  %v1062_v1 = vadd.f32 %v1046_v2, %v1028_v10  ;;  %v1013_v30 = vmul.f32 %v3210_v21, %v4126_v14  ;;  %v4132_v18 = vld [vmem:[#allocation112_spill] sm:$0xff]  ;;  %v4133_v10 = vld [vmem:[#allocation114_spill] sm:$0xff] }
 0x10b   : > { %v1047_v44 = vmul.f32 %v3217_v37, %v4127_v28  ;;  %v1081_v48 = vmul.f32 %v3229_v38, %v4128_v27  ;;  %v1145_v23 = vmax.f32 %v1113_v62, %v1129_v33  ;;  %v995_v3 = vadd.f32 %v979_v17, %v961_v13  ;;  %v4134_v2 = vld [vmem:[#allocation122_spill] sm:$0xff]  ;;  %v4138_v28 = vld [vmem:[#allocation128_spill] sm:$0xff] }
 0x10c   : > { %v1192_v39 = vrot.slane %v1160_v36, 2  ;;  %v1315_v25 = vsel %vm3313_vm6, %v1271_v11, %v1314_v9  ;;  %v1096_v56 = vadd.f32 %v1080_v4, %v1062_v1  ;;  %v962_v35 = vmul.f32 %v3201_v47, %v4129_v19  ;;  %v4136_v11 = vld [vmem:[#allocation124_spill] sm:$0xff]  ;;  %v4137_v1 = vld [vmem:[#allocation127_spill] sm:$0xff]  ;;  %v4140_v19 = vld [vmem:[#allocation138_spill] sm:$0xff] }
 0x10d   : > { %1316 = vst [vmem:[%s2161_s21 + $0x8] sm:$0x2] %v1315_v25  ;;  %v980_v46 = vmul.f32 %v3207_v55, %v4130_v40  ;;  %v1014_v60 = vmul.f32 %v3210_v21, %v4131_v41  ;;  %v1161_v63 = vpack.c.bf16 %v1145_v23, %v1145_v23  ;;  %v1029_v57 = vadd.f32 %v1013_v30, %v995_v3  ;;  %v4141_v40 = vld [vmem:[#allocation139_spill] sm:$0xff] }
 0x10e   : > { %v1225_v54 = vsel %vm804_vm3, %v1160_v36, %v1192_v39  ;;  %v1114_v5 = vadd.f32 %v3241_v24, %v1096_v56  ;;  %v1048_v62 = vmul.f32 %v3217_v37, %v4132_v18  ;;  %v1082_v12 = vmul.f32 %v3229_v38, %v4133_v10  ;;  %v1320_v39 = vld [vmem:[%s2161_s21 + $0xc] sm:$0x2] }
 0x10f   : > { %v1272_v6 = vrot.slane %v1225_v54, 7  ;;  %v996_v34 = vadd.f32 %v980_v46, %v962_v35  ;;  %v963_v58 = vmul.f32 %v3201_v47, %v4134_v2  ;;  %v1193_v59 = vrot.slane %v1161_v63, 2  ;;  %v4139_v56 = vld [vmem:[#allocation137_spill] sm:$0xff] }
 0x110   : > { %v1130_v15 = vmul.f32 0.1, %v1114_v5  ;;  %v1063_v9 = vadd.f32 %v1047_v44, %v1029_v57  ;;  %v981_v13 = vmul.f32 %v3207_v55, %v4135_v7  ;;  %v1015_v33 = vmul.f32 %v3210_v21, %v4136_v11  ;;  %v4143_v18 = vld [vmem:[#allocation145_spill] sm:$0xff] }
 0x111   : > { %v1318_v4 = vsel %vm3313_vm6, %v1272_v6, %v1317_v0  ;;  %v1030_v36 = vadd.f32 %v1014_v60, %v996_v34  ;;  %v1049_v22 = vmul.f32 %v3217_v37, %v4137_v1  ;;  %v1229_v17 = vsel %vm804_vm3, %v1161_v63, %v1193_v59  ;;  %v4142_v6 = vld [vmem:[#allocation144_spill] sm:$0xff]  ;;  %v4145_v59 = vld [vmem:[#allocation153_spill] sm:$0xff] }
 0x112   : > { %1319 = vst [vmem:[%s2161_s21 + $0xa] sm:$0x2] %v1318_v4  ;;  %v1146_v14 = vmax.f32 %v1114_v5, %v1130_v15  ;;  %v1097_v30 = vadd.f32 %v1081_v48, %v1063_v9  ;;  %v1083_v44 = vmul.f32 %v3229_v38, %v4138_v28  ;;  %v1273_v27 = vrot.slane %v1229_v17, 7  ;;  %v1323_v9 = vld [vmem:[%s2161_s21 + $0xe] sm:$0x2] }
 0x113   : > { %v1064_v25 = vadd.f32 %v1048_v62, %v1030_v36  ;;  %v997_v23 = vadd.f32 %v981_v13, %v963_v58  ;;  %v964_v3 = vmul.f32 %v3201_v47, %v4139_v56  ;;  %v982_v35 = vmul.f32 %v3207_v55, %v4140_v19  ;;  %v4144_v58 = vld [vmem:[#allocation152_spill] sm:$0xff]  ;;  %v4146_v13 = vld [vmem:[#allocation154_spill] sm:$0xff] }
 0x114   : > { %v1162_v54 = vpack.c.bf16 %v1146_v14, %v1146_v14  ;;  %v1115_v0 = vadd.f32 %v3241_v24, %v1097_v30  ;;  %v1016_v46 = vmul.f32 %v3210_v21, %v4141_v40  ;;  %v1321_v48 = vsel %vm3313_vm6, %v1273_v27, %v1320_v39  ;;  %v4147_v30 = vld [vmem:[#allocation157_spill] sm:$0xff]  ;;  %v4148_v27 = vld [vmem:[#allocation159_spill] sm:$0xff] }
 0x115   : > { %v1098_v41 = vadd.f32 %v1082_v12, %v1064_v25  ;;  %v1031_v60 = vadd.f32 %v1015_v33, %v997_v23  ;;  %v1050_v63 = vmul.f32 %v3217_v37, %v4142_v6  ;;  %1322 = vst [vmem:[%s2161_s21 + $0xc] sm:$0x2] %v1321_v48  ;;  %v998_v34 = vadd.f32 %v982_v35, %v964_v3  ;;  %v1326_v6 = vld [vmem:[%s2161_s21 + $0x10] sm:$0x2] }
 0x116   : > { %v1194_v5 = vrot.slane %v1162_v54, 2  ;;  %v1131_v57 = vmul.f32 0.1, %v1115_v0  ;;  %v1084_v62 = vmul.f32 %v3229_v38, %v4143_v18  ;;  %v965_v4 = vmul.f32 %v3201_v47, %v4144_v58 }
 0x117   : > { %v1116_v10 = vadd.f32 %v3241_v24, %v1098_v41  ;;  %v1065_v2 = vadd.f32 %v1049_v22, %v1031_v60  ;;  %v983_v12 = vmul.f32 %v3207_v55, %v4145_v59  ;;  %v1032_v7 = vadd.f32 %v1016_v46, %v998_v34  ;;  %v1329_v59 = vld [vmem:[%s2161_s21 + $0x12] sm:$0x2] }
 0x118   : > { %v1233_v15 = vsel %vm804_vm3, %v1162_v54, %v1194_v5  ;;  %v1147_v36 = vmax.f32 %v1115_v0, %v1131_v57  ;;  %v1017_v11 = vmul.f32 %v3210_v21, %v4146_v13  ;;  %v1051_v28 = vmul.f32 %v3217_v37, %v4147_v30 }
 0x119   : > { %v1274_v33 = vrot.slane %v1233_v15, 7  ;;  %v1132_v1 = vmul.f32 0.1, %v1116_v10  ;;  %v1099_v17 = vadd.f32 %v1083_v44, %v1065_v2  ;;  %v999_v39 = vadd.f32 %v983_v12, %v965_v4 }
 0x11a   : > { %v1163_v22 = vpack.c.bf16 %v1147_v36, %v1147_v36  ;;  %v1066_v14 = vadd.f32 %v1050_v63, %v1032_v7  ;;  %v1085_v25 = vmul.f32 %v3229_v38, %v4148_v27  ;;  %v966_v19 = vmul.f32 %v3201_v47, %v2973_v26 }
 0x11b   : > { %v1324_v23 = vsel %vm3313_vm6, %v1274_v33, %v1323_v9  ;;  %v1148_v56 = vmax.f32 %v1116_v10, %v1132_v1  ;;  %v1117_v3 = vadd.f32 %v3241_v24, %v1099_v17  ;;  %v1033_v54 = vadd.f32 %v1017_v11, %v999_v39 }
 0x11c   : > { %1325 = vst [vmem:[%s2161_s21 + $0xe] sm:$0x2] %v1324_v23  ;;  %v1195_v0 = vrot.slane %v1163_v22, 2  ;;  %v1100_v44 = vadd.f32 %v1084_v62, %v1066_v14  ;;  %v984_v35 = vmul.f32 %v3207_v55, %v2976_v8  ;;  %v1018_v41 = vmul.f32 %v3210_v21, %v2981_v43 }
 0x11d   : > { %v1164_v40 = vpack.c.bf16 %v1148_v56, %v1148_v56  ;;  %v1133_v46 = vmul.f32 0.1, %v1117_v3  ;;  %v1067_v48 = vadd.f32 %v1051_v28, %v1033_v54  ;;  %v1052_v26 = vmul.f32 %v3217_v37, %v2997_v45 }
 0x11e   : > { %v1237_v60 = vsel %vm804_vm3, %v1163_v22, %v1195_v0  ;;  %v1118_v63 = vadd.f32 %v3241_v24, %v1100_v44  ;;  %v1000_v5 = vadd.f32 %v984_v35, %v966_v19  ;;  %v1086_v43 = vmul.f32 %v3229_v38, %v3006_v53  ;;  %v1332_v22 = vld [vmem:[%s2161_s21 + $0x14] sm:$0x2] }
 0x11f   : > { %v1275_v57 = vrot.slane %v1237_v60, 7  ;;  %v1196_v34 = vrot.slane %v1164_v40, 2  ;;  %v1149_v8 = vmax.f32 %v1117_v3, %v1133_v46  ;;  %v1101_v18 = vadd.f32 %v1085_v25, %v1067_v48  ;;  %v1338_v60 = vld [vmem:[%s2161_s21 + $0x18] sm:$0x2] }
 0x120   : > { %v1134_v62 = vmul.f32 0.1, %v1118_v63  ;;  %v1034_v10 = vadd.f32 %v1018_v41, %v1000_v5  ;;  %v967_v2 = vmul.f32 %v3201_v47, %v3043_v49  ;;  %v985_v53 = vmul.f32 %v3207_v55, %v3046_v29  ;;  %v4152_v5 = vld [vmem:[#allocation11_spill] sm:$0xff] }
 0x121   : > { %v1327_v58 = vsel %vm3313_vm6, %v1275_v57, %v1326_v6  ;;  %v1241_v4 = vsel %vm804_vm3, %v1164_v40, %v1196_v34  ;;  %v1165_v12 = vpack.c.bf16 %v1149_v8, %v1149_v8  ;;  %v1119_v45 = vadd.f32 %v3241_v24, %v1101_v18  ;;  %v4153_v34 = vld [vmem:[#allocation12_spill] sm:$0xff] }
 0x122   : > { %1328 = vst [vmem:[%s2161_s21 + $0x10] sm:$0x2] %v1327_v58  ;;  %v1276_v15 = vrot.slane %v1241_v4, 7  ;;  %v1150_v9 = vmax.f32 %v1118_v63, %v1134_v62  ;;  %v1068_v36 = vadd.f32 %v1052_v26, %v1034_v10  ;;  %v1019_v13 = vmul.f32 %v3210_v21, %v3049_v42  ;;  %v4151_v63 = vld [vmem:[#allocation10_spill] sm:$0xff]  ;;  %v4157_v4 = vld [vmem:[#allocation39_spill] sm:$0xff] }
 0x123   : > { %v1197_v49 = vrot.slane %v1165_v12, 2  ;;  %v1135_v7 = vmul.f32 0.1, %v1119_v45  ;;  %v1053_v11 = vmul.f32 %v3217_v37, %v3066_v61  ;;  %v1001_v39 = vadd.f32 %v985_v53, %v967_v2  ;;  %v4154_v62 = vld [vmem:[#allocation14_spill] sm:$0xff] }
 0x124   : > { %v1330_v33 = vsel %vm3313_vm6, %v1276_v15, %v1329_v59  ;;  %v1166_v1 = vpack.c.bf16 %v1150_v9, %v1150_v9  ;;  %v1102_v17 = vadd.f32 %v1086_v43, %v1068_v36  ;;  %v1087_v30 = vmul.f32 %v3229_v38, %v3072_v32  ;;  %v4155_v43 = vld [vmem:[#allocation29_spill] sm:$0xff]  ;;  %v4156_v2 = vld [vmem:[#allocation30_spill] sm:$0xff]  ;;  %v4158_v59 = vld [vmem:[#allocation40_spill] sm:$0xff] }
 0x125   : > { %1331 = vst [vmem:[%s2161_s21 + $0x12] sm:$0x2] %v1330_v33  ;;  %v1245_v29 = vsel %vm804_vm3, %v1165_v12, %v1197_v49  ;;  %v1151_v14 = vmax.f32 %v1119_v45, %v1135_v7  ;;  %v968_v42 = vmul.f32 %v3201_v47, %v3119_v16  ;;  %v1035_v25 = vadd.f32 %v1019_v13, %v1001_v39  ;;  %v1335_v47 = vld [vmem:[%s2161_s21 + $0x16] sm:$0x2]  ;;  %v4159_v36 = vld [vmem:[#allocation13_spill] sm:$0xff]  ;;  %v4160_v7 = vld [vmem:[#allocation15_spill] sm:$0xff] }
 0x126   : > { %v1277_v61 = vrot.slane %v1245_v29, 7  ;;  %v1198_v28 = vrot.slane %v1166_v1, 2  ;;  %v1120_v27 = vadd.f32 %v3241_v24, %v1102_v17  ;;  %v986_v56 = vmul.f32 %v3207_v55, %v3126_v50  ;;  %v1341_v29 = vld [vmem:[%s2161_s21 + $0x1a] sm:$0x2] }
 0x127   : > { %v1167_v23 = vpack.c.bf16 %v1151_v14, %v1151_v14  ;;  %v1020_v3 = vmul.f32 %v3210_v21, %v3129_v51  ;;  %v1054_v54 = vmul.f32 %v3217_v37, %v3157_v20  ;;  %v1069_v44 = vadd.f32 %v1053_v11, %v1035_v25  ;;  %v4149_v20 = vld [vmem:[#allocation8_spill] sm:$0xff]  ;;  %v4150_v37 = vld [vmem:[#allocation9_spill] sm:$0xff]  ;;  %v4161_v11 = vld [vmem:[#allocation31_spill] sm:$0xff] }
 0x128   : > { %v1333_v32 = vsel %vm3313_vm6, %v1277_v61, %v1332_v22  ;;  %v1249_v16 = vsel %vm804_vm3, %v1166_v1, %v1198_v28  ;;  %v1136_v0 = vmul.f32 0.1, %v1120_v27  ;;  %v1002_v55 = vadd.f32 %v986_v56, %v968_v42  ;;  %v4162_v1 = vld [vmem:[#allocation41_spill] sm:$0xff]  ;;  %v4163_v14 = vld [vmem:[#allocation16_spill] sm:$0xff]  ;;  %v4165_v61 = vld [vmem:[#allocation50_spill] sm:$0xff] }
 0x129   : > { %1334 = vst [vmem:[%s2161_s21 + $0x14] sm:$0x2] %v1333_v32  ;;  %v1278_v19 = vrot.slane %v1249_v16, 7  ;;  %v1199_v50 = vrot.slane %v1167_v23, 2  ;;  %v1088_v21 = vmul.f32 %v3229_v38, %v3160_v52  ;;  %v1103_v35 = vadd.f32 %v1087_v30, %v1069_v44  ;;  %v4164_v42 = vld [vmem:[#allocation49_spill] sm:$0xff]  ;;  %v4169_v44 = vld [vmem:[#allocation51_spill] sm:$0xff] }
 0x12a   : > { %v1152_v51 = vmax.f32 %v1120_v27, %v1136_v0  ;;  %v588_v40 = vadd.f32 %v4150_v37, %v4149_v20  ;;  %v3482_v46 = vstv %s3450_s28  ;;  %v1036_v6 = vadd.f32 %v1020_v3, %v1002_v55  ;;  %v4167_v3 = vld [vmem:[#allocation32_spill] sm:$0xff]  ;;  %v4171_v37 = vld [vmem:[#allocation43_spill] sm:$0xff] }
 0x12b   : > { %v1336_v48 = vsel %vm3313_vm6, %v1278_v19, %v1335_v47  ;;  %v1253_v41 = vsel %vm804_vm3, %v1167_v23, %v1199_v50  ;;  %v589_v26 = vadd.f32 %v4152_v5, %v4151_v63  ;;  %v1121_v57 = vadd.f32 %v3241_v24, %v1103_v35  ;;  %v4166_v23 = vld [vmem:[#allocation18_spill] sm:$0xff]  ;;  %v4173_v5 = vld [vmem:[#allocation59_spill] sm:$0xff] }
 0x12c   : > { %1337 = vst [vmem:[%s2161_s21 + $0x16] sm:$0x2] %v1336_v48  ;;  %v1279_v52 = vrot.slane %v1253_v41, 7  ;;  %v1168_v38 = vpack.c.bf16 %v1152_v51, %v1152_v51  ;;  %v622_v8 = vadd.f32 %v4153_v34, %v588_v40  ;;  %v1070_v18 = vadd.f32 %v1054_v54, %v1036_v6  ;;  %v4168_v47 = vld [vmem:[#allocation42_spill] sm:$0xff]  ;;  %v4170_v51 = vld [vmem:[#allocation33_spill] sm:$0xff]  ;;  %v4172_v48 = vld [vmem:[#allocation52_spill] sm:$0xff] }
 0x12d   : > { %v623_v10 = vadd.f32 %v4154_v62, %v589_v26  ;;  %v590_v58 = vadd.f32 %v4156_v2, %v4155_v43  ;;  %v591_v12 = vadd.f32 %v4158_v59, %v4157_v4  ;;  %v1137_v9 = vmul.f32 0.1, %v1121_v57  ;;  %v4174_v26 = vld [vmem:[#allocation60_spill] sm:$0xff] }
 0x12e   : > { %v1339_v45 = vsel %vm3313_vm6, %v1279_v52, %v1338_v60  ;;  %v1200_v15 = vrot.slane %v1168_v38, 2  ;;  %v656_v53 = vadd.f32 %v4159_v36, %v622_v8  ;;  %v1104_v49 = vadd.f32 %v1088_v21, %v1070_v18  ;;  %v4175_v18 = vld [vmem:[#allocation53_spill] sm:$0xff] }
 0x12f   : > { %1340 = vst [vmem:[%s2161_s21 + $0x18] sm:$0x2] %v1339_v45  ;;  %v657_v13 = vadd.f32 %v4160_v7, %v623_v10  ;;  %v624_v33 = vadd.f32 %v4161_v11, %v590_v58  ;;  %v625_v17 = vadd.f32 %v4162_v1, %v591_v12  ;;  %v1153_v22 = vmax.f32 %v1121_v57, %v1137_v9  ;;  %v1344_v57 = vld [vmem:[%s2161_s21 + $0x1c] sm:$0x2]  ;;  %v4176_v45 = vld [vmem:[#allocation61_spill] sm:$0xff] }
 0x130   : > { %v1257_v39 = vsel %vm804_vm3, %v1168_v38, %v1200_v15  ;;  %v690_v30 = vadd.f32 %v4163_v14, %v656_v53  ;;  %v592_v28 = vadd.f32 %v4165_v61, %v4164_v42  ;;  %v1122_v25 = vadd.f32 %v3241_v24, %v1104_v49  ;;  %v4178_v14 = vld [vmem:[#allocation72_spill] sm:$0xff] }
 0x131   : > { %v1280_v27 = vrot.slane %v1257_v39, 7  ;;  %v691_v56 = vadd.f32 %v4166_v23, %v657_v13  ;;  %v658_v54 = vadd.f32 %v4167_v3, %v624_v33  ;;  %v1169_v32 = vpack.c.bf16 %v1153_v22, %v1153_v22  ;;  %v4177_v33 = vld [vmem:[#allocation62_spill] sm:$0xff]  ;;  %v1347_v39 = vld [vmem:[%s2161_s21 + $0x1e] sm:$0x2] }
 0x132   : > { %v708_v16 = vadd.f32 %v3482_v46, %v690_v30  ;;  %v659_v0 = vadd.f32 %v4168_v47, %v625_v17  ;;  %v626_v19 = vadd.f32 %v4169_v44, %v592_v28  ;;  %v1138_v55 = vmul.f32 0.1, %v1122_v25  ;;  %v4179_v30 = vld [vmem:[#allocation73_spill] sm:$0xff]  ;;  %v4182_v47 = vld [vmem:[#allocation63_spill] sm:$0xff] }
 0x133   : > { %v1342_v50 = vsel %vm3313_vm6, %v1280_v27, %v1341_v29  ;;  %v709_v21 = vadd.f32 %v3482_v46, %v691_v56  ;;  %v692_v24 = vadd.f32 %v4170_v51, %v658_v54  ;;  %v1201_v35 = vrot.slane %v1169_v32, 2 }
 0x134   : > { %1343 = vst [vmem:[%s2161_s21 + $0x1a] sm:$0x2] %v1342_v50  ;;  %v724_v20 = vmul.f32 0.1, %v708_v16  ;;  %v693_v40 = vadd.f32 %v4171_v37, %v659_v0  ;;  %v660_v41 = vadd.f32 %v4172_v48, %v626_v19  ;;  %v1154_v60 = vmax.f32 %v1122_v25, %v1138_v55  ;;  %v903_v25 = vld [vmem:[%s2161_s21] sm:$0x1] }
 0x135   : > { %v725_v6 = vmul.f32 0.1, %v709_v21  ;;  %v710_v63 = vadd.f32 %v3482_v46, %v692_v24  ;;  %v593_v52 = vadd.f32 %v4174_v26, %v4173_v5  ;;  %v1261_v38 = vsel %vm804_vm3, %v1169_v32, %v1201_v35  ;;  %v906_v32 = vld [vmem:[%s2161_s21 + $0x2] sm:$0x1]  ;;  %v909_v24 = vld [vmem:[%s2161_s21 + $0x4] sm:$0x1] }
 0x136   : > { %v740_v34 = vmax.f32 %v708_v16, %v724_v20  ;;  %v711_v8 = vadd.f32 %v3482_v46, %v693_v40  ;;  %v694_v62 = vadd.f32 %v4175_v18, %v660_v41  ;;  %v1281_v10 = vrot.slane %v1261_v38, 7  ;;  %v4183_v20 = vld [vmem:[#allocation74_spill] sm:$0xff]  ;;  %v912_v41 = vld [vmem:[%s2161_s21 + $0x6] sm:$0x1]  ;;  %v4184_v5 = vld [vmem:[#allocation75_spill] sm:$0xff] }
 0x137   : > { %v1170_v43 = vpack.c.bf16 %v1154_v60, %v1154_v60  ;;  %v741_v2 = vmax.f32 %v709_v21, %v725_v6  ;;  %v726_v58 = vmul.f32 0.1, %v710_v63  ;;  %v627_v15 = vadd.f32 %v4176_v45, %v593_v52  ;;  %v4185_v52 = vld [vmem:[#allocation87_spill] sm:$0xff]  ;;  %v4186_v38 = vld [vmem:[#allocation88_spill] sm:$0xff]  ;;  %v915_v18 = vld [vmem:[%s2161_s21 + $0x8] sm:$0x1] }
 0x138   : > { %v756_v4 = vpack.c.bf16 %v740_v34, %v740_v34  ;;  %v727_v59 = vmul.f32 0.1, %v711_v8  ;;  %v712_v12 = vadd.f32 %v3482_v46, %v694_v62  ;;  %v1345_v9 = vsel %vm3313_vm6, %v1281_v10, %v1344_v57  ;;  %v4187_v62 = vld [vmem:[#allocation102_spill] sm:$0xff]  ;;  %v4188_v10 = vld [vmem:[#allocation103_spill] sm:$0xff] }
 0x139   : > { %v1202_v36 = vrot.slane %v1170_v43, 2  ;;  %v757_v53 = vpack.c.bf16 %v741_v2, %v741_v2  ;;  %v742_v49 = vmax.f32 %v710_v63, %v726_v58  ;;  %1346 = vst [vmem:[%s2161_s21 + $0x1c] sm:$0x2] %v1345_v9  ;;  %v661_v1 = vadd.f32 %v4177_v33, %v627_v15  ;;  %v4189_v2 = vld [vmem:[#allocation117_spill] sm:$0xff]  ;;  %v4190_v58 = vld [vmem:[#allocation118_spill] sm:$0xff]  ;;  %v4191_v15 = vld [vmem:[#allocation76_spill] sm:$0xff] }
 0x13a   : > { %v788_v7 = vrot.slane %v756_v4, 2  ;;  %v743_v13 = vmax.f32 %v711_v8, %v727_v59  ;;  %v728_v11 = vmul.f32 0.1, %v712_v12  ;;  %v594_v42 = vadd.f32 %v4179_v30, %v4178_v14  ;;  %v4195_v33 = vld [vmem:[#allocation132_spill] sm:$0xff]  ;;  %v4197_v14 = vld [vmem:[#allocation147_spill] sm:$0xff] }
 0x13b   : > { %v1265_v17 = vsel %vm804_vm3, %v1170_v43, %v1202_v36  ;;  %v789_v29 = vrot.slane %v757_v53, 2  ;;  %v758_v22 = vpack.c.bf16 %v742_v49, %v742_v49  ;;  %v695_v0 = vadd.f32 %v4182_v47, %v661_v1  ;;  %v4192_v36 = vld [vmem:[#allocation89_spill] sm:$0xff]  ;;  %v4193_v49 = vld [vmem:[#allocation104_spill] sm:$0xff] }
 0x13c   : > { %v1282_v28 = vrot.slane %v1265_v17, 7  ;;  %v807_v27 = vsel %vm804_vm3, %v756_v4, %v788_v7  ;;  %v759_v23 = vpack.c.bf16 %v743_v13, %v743_v13  ;;  %v744_v56 = vmax.f32 %v712_v12, %v728_v11  ;;  %v4194_v13 = vld [vmem:[#allocation119_spill] sm:$0xff]  ;;  %v4196_v1 = vld [vmem:[#allocation133_spill] sm:$0xff]  ;;  %v4198_v30 = vld [vmem:[#allocation148_spill] sm:$0xff] }
 0x13d   : > { %v853_v3 = vshll.u32 %v807_v27, 16  ;;  %v810_v54 = vsel %vm804_vm3, %v757_v53, %v789_v29  ;;  %v790_v16 = vrot.slane %v758_v22, 2  ;;  %v713_v35 = vadd.f32 %v3482_v46, %v695_v0  ;;  %v4203_v0 = vld [vmem:[#allocation149_spill] sm:$0xff] }
 0x13e   : > { %v1348_v44 = vsel %vm3313_vm6, %v1282_v28, %v1347_v39  ;;  %v855_v19 = vshll.u32 %v810_v54, 16  ;;  %v791_v50 = vrot.slane %v759_v23, 2  ;;  %v760_v55 = vpack.c.bf16 %v744_v56, %v744_v56  ;;  %v4199_v28 = vld [vmem:[#allocation90_spill] sm:$0xff]  ;;  %v4201_v56 = vld [vmem:[#allocation120_spill] sm:$0xff] }
 0x13f   : > { %1349 = vst [vmem:[%s2161_s21 + $0x1e] sm:$0x2] %v1348_v44  ;;  %v904_v21 = vsel %vm3542_vm8, %v853_v3, %v903_v25  ;;  %v813_v51 = vsel %vm804_vm3, %v758_v22, %v790_v16  ;;  %v628_v37 = vadd.f32 %v4183_v20, %v594_v42  ;;  %v729_v63 = vmul.f32 0.1, %v713_v35  ;;  %v4200_v25 = vld [vmem:[#allocation105_spill] sm:$0xff]  ;;  %v4202_v54 = vld [vmem:[#allocation134_spill] sm:$0xff] }
 0x140   : > { %905 = vst [vmem:[%s2161_s21] sm:$0x1] %v904_v21  ;;  %v907_v31 = vsel %vm3542_vm8, %v855_v19, %v906_v32  ;;  %v857_v40 = vshll.u32 %v813_v51, 16  ;;  %v816_v48 = vsel %vm804_vm3, %v759_v23, %v791_v50  ;;  %v792_v60 = vrot.slane %v760_v55, 2  ;;  %v4204_v19 = vld [vmem:[#allocation162_spill] sm:$0xff]  ;;  %v4205_v50 = vld [vmem:[#allocation163_spill] sm:$0xff]  ;;  %v4208_v20 = vld [vmem:[#allocation121_spill] sm:$0xff] }
 0x141   : > { %908 = vst [vmem:[%s2161_s21 + $0x2] sm:$0x1] %v907_v31  ;;  %v859_v6 = vshll.u32 %v816_v48, 16  ;;  %v662_v26 = vadd.f32 %v4184_v5, %v628_v37  ;;  %v595_v57 = vadd.f32 %v4186_v38, %v4185_v52  ;;  %v596_v43 = vadd.f32 %v4188_v10, %v4187_v62  ;;  %v4206_v21 = vld [vmem:[#allocation91_spill] sm:$0xff]  ;;  %v4211_v5 = vld [vmem:[#allocation164_spill] sm:$0xff] }
 0x142   : > { %v910_v34 = vsel %vm3542_vm8, %v857_v40, %v909_v24  ;;  %v819_v8 = vsel %vm804_vm3, %v760_v55, %v792_v60  ;;  %v597_v4 = vadd.f32 %v4190_v58, %v4189_v2  ;;  %v745_v45 = vmax.f32 %v713_v35, %v729_v63  ;;  %v4207_v24 = vld [vmem:[#allocation106_spill] sm:$0xff]  ;;  %v4209_v31 = vld [vmem:[#allocation135_spill] sm:$0xff]  ;;  %v4214_v2 = vld [vmem:[#allocation165_spill] sm:$0xff] }
 0x143   : > { %911 = vst [vmem:[%s2161_s21 + $0x4] sm:$0x1] %v910_v34  ;;  %v913_v59 = vsel %vm3542_vm8, %v859_v6, %v912_v41  ;;  %v861_v12 = vshll.u32 %v819_v8, 16  ;;  %v696_v9 = vadd.f32 %v4191_v15, %v662_v26  ;;  %v629_v53 = vadd.f32 %v4192_v36, %v595_v57  ;;  %v918_v41 = vld [vmem:[%s2161_s21 + $0xa] sm:$0x1]  ;;  %v4210_v6 = vld [vmem:[#allocation150_spill] sm:$0xff] }
 0x144   : > { %914 = vst [vmem:[%s2161_s21 + $0x6] sm:$0x1] %v913_v59  ;;  %v630_v7 = vadd.f32 %v4193_v49, %v596_v43  ;;  %v631_v11 = vadd.f32 %v4194_v13, %v597_v4  ;;  %v598_v17 = vadd.f32 %v4196_v1, %v4195_v33  ;;  %v761_v29 = vpack.c.bf16 %v745_v45, %v745_v45  ;;  %v4213_v10 = vld [vmem:[#allocation151_spill] sm:$0xff]  ;;  %v4216_v33 = vld [vmem:[#allocation172_spill] sm:$0xff]  ;;  %v4217_v1 = vld [vmem:[#allocation173_spill] sm:$0xff] }
 0x145   : > { %v916_v39 = vsel %vm3542_vm8, %v861_v12, %v915_v18  ;;  %v714_v22 = vadd.f32 %v3482_v46, %v696_v9  ;;  %v599_v42 = vadd.f32 %v4198_v30, %v4197_v14  ;;  %v663_v27 = vadd.f32 %v4199_v28, %v629_v53  ;;  %v4212_v18 = vld [vmem:[#allocation136_spill] sm:$0xff]  ;;  %v4215_v53 = vld [vmem:[#allocation166_spill] sm:$0xff] }
 0x146   : > { %917 = vst [vmem:[%s2161_s21 + $0x8] sm:$0x1] %v916_v39  ;;  %v664_v23 = vadd.f32 %v4200_v25, %v630_v7  ;;  %v665_v3 = vadd.f32 %v4201_v56, %v631_v11  ;;  %v632_v32 = vadd.f32 %v4202_v54, %v598_v17  ;;  %v793_v16 = vrot.slane %v761_v29, 2  ;;  %v4218_v54 = vld [vmem:[#allocation174_spill] sm:$0xff] }
 0x147   : > { %v730_v47 = vmul.f32 0.1, %v714_v22  ;;  %v633_v44 = vadd.f32 %v4203_v0, %v599_v42  ;;  %v600_v55 = vadd.f32 %v4205_v50, %v4204_v19  ;;  %v697_v51 = vadd.f32 %v4206_v21, %v663_v27  ;;  %v4219_v21 = vld [vmem:[#allocation175_spill] sm:$0xff] }
 0x148   : > { %v698_v35 = vadd.f32 %v4207_v24, %v664_v23  ;;  %v699_v37 = vadd.f32 %v4208_v20, %v665_v3  ;;  %v666_v40 = vadd.f32 %v4209_v31, %v632_v32  ;;  %v822_v48 = vsel %vm804_vm3, %v761_v29, %v793_v16  ;;  %v921_v29 = vld [vmem:[%s2161_s21 + $0xc] sm:$0x1] }
 0x149   : > { %v746_v60 = vmax.f32 %v714_v22, %v730_v47  ;;  %v667_v63 = vadd.f32 %v4210_v6, %v633_v44  ;;  %v634_v26 = vadd.f32 %v4211_v5, %v600_v55  ;;  %v863_v52 = vshll.u32 %v822_v48, 16  ;;  %v4220_v48 = vld [vmem:[#allocation182_spill] sm:$0xff] }
 0x14a   : > { %v715_v38 = vadd.f32 %v3482_v46, %v697_v51  ;;  %v716_v57 = vadd.f32 %v3482_v46, %v698_v35  ;;  %v717_v34 = vadd.f32 %v3482_v46, %v699_v37  ;;  %v700_v62 = vadd.f32 %v4212_v18, %v666_v40  ;;  %v924_v35 = vld [vmem:[%s2161_s21 + $0xe] sm:$0x1]  ;;  %v927_v37 = vld [vmem:[%s2161_s21 + $0x10] sm:$0x1]  ;;  %v930_v40 = vld [vmem:[%s2161_s21 + $0x12] sm:$0x1] }
 0x14b   : > { %v762_v8 = vpack.c.bf16 %v746_v60, %v746_v60  ;;  %v701_v43 = vadd.f32 %v4213_v10, %v667_v63  ;;  %v668_v58 = vadd.f32 %v4214_v2, %v634_v26  ;;  %v919_v4 = vsel %vm3542_vm8, %v863_v52, %v918_v41  ;;  %v4221_v41 = vld [vmem:[#allocation183_spill] sm:$0xff] }
 0x14c   : > { %v731_v59 = vmul.f32 0.1, %v715_v38  ;;  %v732_v12 = vmul.f32 0.1, %v716_v57  ;;  %v733_v45 = vmul.f32 0.1, %v717_v34  ;;  %v718_v9 = vadd.f32 %v3482_v46, %v700_v62 }
 0x14d   : > { %920 = vst [vmem:[%s2161_s21 + $0xa] sm:$0x1] %v919_v4  ;;  %v794_v15 = vrot.slane %v762_v8, 2  ;;  %v719_v36 = vadd.f32 %v3482_v46, %v701_v43  ;;  %v702_v49 = vadd.f32 %v4215_v53, %v668_v58  ;;  %v601_v17 = vadd.f32 %v4217_v1, %v4216_v33  ;;  %v933_v58 = vld [vmem:[%s2161_s21 + $0x14] sm:$0x1]  ;;  %v4228_v33 = vld [vmem:[#allocation21_spill] sm:$0xff] }
 0x14e   : > { %v747_v7 = vmax.f32 %v715_v38, %v731_v59  ;;  %v748_v13 = vmax.f32 %v716_v57, %v732_v12  ;;  %v749_v11 = vmax.f32 %v717_v34, %v733_v45  ;;  %v734_v22 = vmul.f32 0.1, %v718_v9  ;;  %v4222_v57 = vld [vmem:[#allocation176_spill] sm:$0xff]  ;;  %v936_v12 = vld [vmem:[%s2161_s21 + $0x16] sm:$0x1] }
 0x14f   : > { %v825_v39 = vsel %vm804_vm3, %v762_v8, %v794_v15  ;;  %v735_v14 = vmul.f32 0.1, %v719_v36  ;;  %v720_v30 = vadd.f32 %v3482_v46, %v702_v49  ;;  %v635_v32 = vadd.f32 %v4218_v54, %v601_v17  ;;  %v4223_v8 = vld [vmem:[#allocation184_spill] sm:$0xff] }
 0x150   : > { %v865_v42 = vshll.u32 %v825_v39, 16  ;;  %v763_v28 = vpack.c.bf16 %v747_v7, %v747_v7  ;;  %v764_v27 = vpack.c.bf16 %v748_v13, %v748_v13  ;;  %v765_v25 = vpack.c.bf16 %v749_v11, %v749_v11  ;;  %v4225_v49 = vld [vmem:[#allocation192_spill] sm:$0xff]  ;;  %v4226_v7 = vld [vmem:[#allocation193_spill] sm:$0xff] }
 0x151   : > { %v750_v23 = vmax.f32 %v718_v9, %v734_v22  ;;  %v751_v56 = vmax.f32 %v719_v36, %v735_v14  ;;  %v736_v3 = vmul.f32 0.1, %v720_v30  ;;  %v669_v51 = vadd.f32 %v4219_v21, %v635_v32  ;;  %v4224_v36 = vld [vmem:[#allocation185_spill] sm:$0xff]  ;;  %v4232_v32 = vld [vmem:[#allocation20_spill] sm:$0xff]  ;;  %v4236_v21 = vld [vmem:[#allocation195_spill] sm:$0xff] }
 0x152   : > { %v922_v16 = vsel %vm3542_vm8, %v865_v42, %v921_v29  ;;  %v795_v47 = vrot.slane %v763_v28, 2  ;;  %v796_v0 = vrot.slane %v764_v27, 2  ;;  %v797_v44 = vrot.slane %v765_v25, 2  ;;  %v4227_v11 = vld [vmem:[#allocation17_spill] sm:$0xff]  ;;  %v939_v29 = vld [vmem:[%s2161_s21 + $0x18] sm:$0x1] }
 0x153   : > { %923 = vst [vmem:[%s2161_s21 + $0xc] sm:$0x1] %v922_v16  ;;  %v766_v19 = vpack.c.bf16 %v750_v23, %v750_v23  ;;  %v767_v50 = vpack.c.bf16 %v751_v56, %v751_v56  ;;  %v752_v55 = vmax.f32 %v720_v30, %v736_v3  ;;  %v602_v60 = vadd.f32 %v4221_v41, %v4220_v48  ;;  %v4231_v3 = vld [vmem:[#allocation22_spill] sm:$0xff]  ;;  %v4233_v16 = vld [vmem:[#allocation23_spill] sm:$0xff]  ;;  %v4240_v48 = vld [vmem:[#allocation25_spill] sm:$0xff] }
 0x154   : > { %v828_v24 = vsel %vm804_vm3, %v763_v28, %v795_v47  ;;  %v831_v20 = vsel %vm804_vm3, %v764_v27, %v796_v0  ;;  %v834_v31 = vsel %vm804_vm3, %v765_v25, %v797_v44  ;;  %v703_v34 = vadd.f32 %v4222_v57, %v669_v51  ;;  %v4229_v28 = vld [vmem:[#allocation186_spill] sm:$0xff]  ;;  %v4235_v44 = vld [vmem:[#allocation35_spill] sm:$0xff] }
 0x155   : > { %v867_v6 = vshll.u32 %v828_v24, 16  ;;  %v869_v63 = vshll.u32 %v831_v20, 16  ;;  %v871_v5 = vshll.u32 %v834_v31, 16  ;;  %v798_v26 = vrot.slane %v766_v19, 2  ;;  %v4230_v25 = vld [vmem:[#allocation194_spill] sm:$0xff]  ;;  %v4237_v24 = vld [vmem:[#allocation44_spill] sm:$0xff] }
 0x156   : > { %v799_v52 = vrot.slane %v767_v50, 2  ;;  %v768_v38 = vpack.c.bf16 %v752_v55, %v752_v55  ;;  %v636_v18 = vadd.f32 %v4223_v8, %v602_v60  ;;  %v721_v15 = vadd.f32 %v3482_v46, %v703_v34  ;;  %v4234_v0 = vld [vmem:[#allocation34_spill] sm:$0xff]  ;;  %v4239_v31 = vld [vmem:[#allocation24_spill] sm:$0xff]  ;;  %v4245_v34 = vld [vmem:[#allocation55_spill] sm:$0xff] }
 0x157   : > { %v925_v62 = vsel %vm3542_vm8, %v867_v6, %v924_v35  ;;  %v928_v10 = vsel %vm3542_vm8, %v869_v63, %v927_v37  ;;  %v931_v43 = vsel %vm3542_vm8, %v871_v5, %v930_v40  ;;  %v837_v2 = vsel %vm804_vm3, %v766_v19, %v798_v26  ;;  %v4238_v35 = vld [vmem:[#allocation45_spill] sm:$0xff]  ;;  %v4241_v60 = vld [vmem:[#allocation36_spill] sm:$0xff]  ;;  %v4244_v57 = vld [vmem:[#allocation54_spill] sm:$0xff] }
 0x158   : > { %926 = vst [vmem:[%s2161_s21 + $0xe] sm:$0x1] %v925_v62  ;;  %v873_v4 = vshll.u32 %v837_v2, 16  ;;  %v840_v59 = vsel %vm804_vm3, %v767_v50, %v799_v52  ;;  %v800_v45 = vrot.slane %v768_v38, 2  ;;  %v670_v53 = vadd.f32 %v4224_v36, %v636_v18  ;;  %v4242_v5 = vld [vmem:[#allocation196_spill] sm:$0xff]  ;;  %v4243_v52 = vld [vmem:[#allocation46_spill] sm:$0xff] }
 0x159   : > { %929 = vst [vmem:[%s2161_s21 + $0x10] sm:$0x1] %v928_v10  ;;  %v875_v9 = vshll.u32 %v840_v59, 16  ;;  %v603_v13 = vadd.f32 %v4226_v7, %v4225_v49  ;;  %v1386_v1 = vadd.f32 %v4228_v33, %v4227_v11  ;;  %v737_v22 = vmul.f32 0.1, %v721_v15  ;;  %v4246_v62 = vld [vmem:[#allocation26_spill] sm:$0xff] }
 0x15a   : > { %932 = vst [vmem:[%s2161_s21 + $0x12] sm:$0x1] %v931_v43  ;;  %v934_v17 = vsel %vm3542_vm8, %v873_v4, %v933_v58  ;;  %v843_v39 = vsel %vm804_vm3, %v768_v38, %v800_v45  ;;  %v3666_v14 = vstv %s3628_s29  ;;  %v704_v27 = vadd.f32 %v4229_v28, %v670_v53  ;;  %v4247_v43 = vld [vmem:[#allocation27_spill] sm:$0xff]  ;;  %v4248_v58 = vld [vmem:[#allocation37_spill] sm:$0xff]  ;;  %v4252_v33 = vld [vmem:[#allocation38_spill] sm:$0xff] }
 0x15b   : > { %935 = vst [vmem:[%s2161_s21 + $0x14] sm:$0x1] %v934_v17  ;;  %v937_v30 = vsel %vm3542_vm8, %v875_v9, %v936_v12  ;;  %v877_v42 = vshll.u32 %v843_v39, 16  ;;  %v637_v23 = vadd.f32 %v4230_v25, %v603_v13  ;;  %v753_v56 = vmax.f32 %v721_v15, %v737_v22  ;;  %v4249_v45 = vld [vmem:[#allocation47_spill] sm:$0xff]  ;;  %v4250_v9 = vld [vmem:[#allocation56_spill] sm:$0xff] }
 0x15c   : > { %938 = vst [vmem:[%s2161_s21 + $0x16] sm:$0x1] %v937_v30  ;;  %v1420_v54 = vadd.f32 %v4231_v3, %v1386_v1  ;;  %v1387_v47 = vadd.f32 %v4233_v16, %v4232_v32  ;;  %v1388_v19 = vadd.f32 %v4235_v44, %v4234_v0  ;;  %v722_v55 = vadd.f32 %v3482_v46, %v704_v27  ;;  %v942_v49 = vld [vmem:[%s2161_s21 + $0x1a] sm:$0x1]  ;;  %v4251_v13 = vld [vmem:[#allocation28_spill] sm:$0xff]  ;;  %v4254_v27 = vld [vmem:[#allocation57_spill] sm:$0xff] }
 0x15d   : > { %v940_v50 = vsel %vm3542_vm8, %v877_v42, %v939_v29  ;;  %v671_v51 = vadd.f32 %v4236_v21, %v637_v23  ;;  %v1389_v20 = vadd.f32 %v4238_v35, %v4237_v24  ;;  %v769_v37 = vpack.c.bf16 %v753_v56, %v753_v56  ;;  %v4253_v22 = vld [vmem:[#allocation48_spill] sm:$0xff]  ;;  %v4255_v0 = vld [vmem:[#allocation58_spill] sm:$0xff]  ;;  %v4257_v24 = vld [vmem:[#allocation67_spill] sm:$0xff] }
 0x15e   : > { %941 = vst [vmem:[%s2161_s21 + $0x18] sm:$0x1] %v940_v50  ;;  %v1454_v40 = vadd.f32 %v4239_v31, %v1420_v54  ;;  %v1421_v41 = vadd.f32 %v4240_v48, %v1387_v47  ;;  %v1422_v6 = vadd.f32 %v4241_v60, %v1388_v19  ;;  %v738_v63 = vmul.f32 0.1, %v722_v55  ;;  %v945_v50 = vld [vmem:[%s2161_s21 + $0x1c] sm:$0x1] }
 0x15f   : > { %v705_v26 = vadd.f32 %v4242_v5, %v671_v51  ;;  %v1423_v38 = vadd.f32 %v4243_v52, %v1389_v20  ;;  %v1390_v8 = vadd.f32 %v4245_v34, %v4244_v57  ;;  %v801_v18 = vrot.slane %v769_v37, 2  ;;  %v4256_v51 = vld [vmem:[#allocation66_spill] sm:$0xff]  ;;  %v948_v34 = vld [vmem:[%s2161_s21 + $0x1e] sm:$0x1] }
 0x160   : > { %v1488_v10 = vadd.f32 %v4246_v62, %v1454_v40  ;;  %v1455_v2 = vadd.f32 %v4247_v43, %v1421_v41  ;;  %v1456_v4 = vadd.f32 %v4248_v58, %v1422_v6  ;;  %v754_v59 = vmax.f32 %v722_v55, %v738_v63  ;;  %v4258_v6 = vld [vmem:[#allocation69_spill] sm:$0xff]  ;;  %v4259_v62 = vld [vmem:[#allocation70_spill] sm:$0xff] }
 0x161   : > { %v723_v12 = vadd.f32 %v3482_v46, %v705_v26  ;;  %v1457_v15 = vadd.f32 %v4249_v45, %v1423_v38  ;;  %v1424_v36 = vadd.f32 %v4250_v9, %v1390_v8  ;;  %v846_v53 = vsel %vm804_vm3, %v769_v37, %v801_v18 }
 0x162   : > { %v1506_v7 = vadd.f32 %v3666_v14, %v1488_v10  ;;  %v1489_v11 = vadd.f32 %v4251_v13, %v1455_v2  ;;  %v1490_v1 = vadd.f32 %v4252_v33, %v1456_v4  ;;  %v879_v17 = vshll.u32 %v846_v53, 16  ;;  %v4264_v33 = vld [vmem:[#allocation81_spill] sm:$0xff] }
 0x163   : > { %v770_v39 = vpack.c.bf16 %v754_v59, %v754_v59  ;;  %v739_v29 = vmul.f32 0.1, %v723_v12  ;;  %v1491_v46 = vadd.f32 %v4253_v22, %v1457_v15  ;;  %v1458_v25 = vadd.f32 %v4254_v27, %v1424_v36  ;;  %v4260_v15 = vld [vmem:[#allocation71_spill] sm:$0xff]  ;;  %v4265_v27 = vld [vmem:[#allocation82_spill] sm:$0xff] }
 0x164   : > { %v1522_v30 = vmul.f32 0.1, %v1506_v7  ;;  %v1507_v42 = vadd.f32 %v3666_v14, %v1489_v11  ;;  %v1508_v28 = vadd.f32 %v3666_v14, %v1490_v1  ;;  %v943_v23 = vsel %vm3542_vm8, %v879_v17, %v942_v49  ;;  %v1716_v49 = vld [vmem:[%s2161_s21] sm:$0x2] }
 0x165   : > { %v802_v56 = vrot.slane %v770_v39, 2  ;;  %v755_v3 = vmax.f32 %v723_v12, %v739_v29  ;;  %v1509_v54 = vadd.f32 %v3666_v14, %v1491_v46  ;;  %944 = vst [vmem:[%s2161_s21 + $0x1a] sm:$0x1] %v943_v23  ;;  %v1492_v44 = vadd.f32 %v4255_v0, %v1458_v25  ;;  %v4263_v11 = vld [vmem:[#allocation80_spill] sm:$0xff] }
 0x166   : > { %v1538_v32 = vmax.f32 %v1506_v7, %v1522_v30  ;;  %v1523_v16 = vmul.f32 0.1, %v1507_v42  ;;  %v1524_v47 = vmul.f32 0.1, %v1508_v28  ;;  %v1391_v35 = vadd.f32 %v4257_v24, %v4256_v51  ;;  %v1719_v46 = vld [vmem:[%s2161_s21 + $0x2] sm:$0x2] }
 0x167   : > { %v849_v19 = vsel %vm804_vm3, %v770_v39, %v802_v56  ;;  %v771_v55 = vpack.c.bf16 %v755_v3, %v755_v3  ;;  %v1525_v21 = vmul.f32 0.1, %v1509_v54  ;;  %v1510_v60 = vadd.f32 %v3666_v14, %v1492_v44  ;;  %v1722_v30 = vld [vmem:[%s2161_s21 + $0x4] sm:$0x2]  ;;  %v4269_v24 = vld [vmem:[#allocation98_spill] sm:$0xff] }
 0x168   : > { %v881_v20 = vshll.u32 %v849_v19, 16  ;;  %v1554_v37 = vpack.c.bf16 %v1538_v32, %v1538_v32  ;;  %v1539_v31 = vmax.f32 %v1507_v42, %v1523_v16  ;;  %v1540_v40 = vmax.f32 %v1508_v28, %v1524_v47  ;;  %v4266_v32 = vld [vmem:[#allocation95_spill] sm:$0xff]  ;;  %v4267_v16 = vld [vmem:[#allocation96_spill] sm:$0xff] }
 0x169   : > { %v803_v48 = vrot.slane %v771_v55, 2  ;;  %v1541_v41 = vmax.f32 %v1509_v54, %v1525_v21  ;;  %v1425_v63 = vadd.f32 %v4258_v6, %v1391_v35  ;;  %v1526_v18 = vmul.f32 0.1, %v1510_v60  ;;  %v1725_v54 = vld [vmem:[%s2161_s21 + $0x6] sm:$0x2] }
 0x16a   : > { %v946_v5 = vsel %vm3542_vm8, %v881_v20, %v945_v50  ;;  %v1586_v26 = vrot.slane %v1554_v37, 2  ;;  %v1555_v52 = vpack.c.bf16 %v1539_v31, %v1539_v31  ;;  %v1556_v38 = vpack.c.bf16 %v1540_v40, %v1540_v40  ;;  %v4268_v50 = vld [vmem:[#allocation83_spill] sm:$0xff]  ;;  %v4270_v20 = vld [vmem:[#allocation110_spill] sm:$0xff] }
 0x16b   : > { %947 = vst [vmem:[%s2161_s21 + $0x1c] sm:$0x1] %v946_v5  ;;  %v852_v57 = vsel %vm804_vm3, %v771_v55, %v803_v48  ;;  %v1557_v8 = vpack.c.bf16 %v1541_v41, %v1541_v41  ;;  %v1459_v10 = vadd.f32 %v4259_v62, %v1425_v63  ;;  %v1542_v45 = vmax.f32 %v1510_v60, %v1526_v18  ;;  %v4272_v60 = vld [vmem:[#allocation86_spill] sm:$0xff]  ;;  %v4273_v5 = vld [vmem:[#allocation100_spill] sm:$0xff]  ;;  %v1728_v18 = vld [vmem:[%s2161_s21 + $0x8] sm:$0x2] }
 0x16c   : > { %v883_v43 = vshll.u32 %v852_v57, 16  ;;  %v1604_v2 = vsel %vm804_vm3, %v1554_v37, %v1586_v26  ;;  %v1587_v58 = vrot.slane %v1555_v52, 2  ;;  %v1588_v4 = vrot.slane %v1556_v38, 2  ;;  %v4271_v37 = vld [vmem:[#allocation111_spill] sm:$0xff]  ;;  %v4275_v57 = vld [vmem:[#allocation125_spill] sm:$0xff] }
 0x16d   : > { %v1650_v59 = vshll.u32 %v1604_v2, 16  ;;  %v1589_v12 = vrot.slane %v1557_v8, 2  ;;  %v1493_v9 = vadd.f32 %v4260_v15, %v1459_v10  ;;  %v1392_v1 = vadd.f32 %v4264_v33, %v4263_v11  ;;  %v4278_v2 = vld [vmem:[#allocation141_spill] sm:$0xff] }
 0x16e   : > { %v949_v53 = vsel %vm3542_vm8, %v883_v43, %v948_v34  ;;  %v1607_v7 = vsel %vm804_vm3, %v1555_v52, %v1587_v58  ;;  %v1610_v13 = vsel %vm804_vm3, %v1556_v38, %v1588_v4  ;;  %v1558_v42 = vpack.c.bf16 %v1542_v45, %v1542_v45  ;;  %v4274_v52 = vld [vmem:[#allocation113_spill] sm:$0xff]  ;;  %v4276_v34 = vld [vmem:[#allocation126_spill] sm:$0xff]  ;;  %v4277_v43 = vld [vmem:[#allocation140_spill] sm:$0xff] }
 0x16f   : > { %950 = vst [vmem:[%s2161_s21 + $0x1e] sm:$0x1] %v949_v53  ;;  %v1652_v17 = vrot.slane %v1650_v59, 7  ;;  %v1653_v39 = vshll.u32 %v1607_v7, 16  ;;  %v1656_v29 = vshll.u32 %v1610_v13, 16  ;;  %v1613_v22 = vsel %vm804_vm3, %v1557_v8, %v1589_v12  ;;  %v4279_v4 = vld [vmem:[#allocation155_spill] sm:$0xff] }
 0x170   : > { %v1659_v61 = vshll.u32 %v1613_v22, 16  ;;  %v1511_v28 = vadd.f32 %v3666_v14, %v1493_v9  ;;  %v1426_v25 = vadd.f32 %v4265_v27, %v1392_v1  ;;  %v1393_v47 = vadd.f32 %v4267_v16, %v4266_v32  ;;  %v4280_v59 = vld [vmem:[#allocation156_spill] sm:$0xff]  ;;  %v4281_v15 = vld [vmem:[#allocation101_spill] sm:$0xff]  ;;  %v4282_v53 = vld [vmem:[#allocation115_spill] sm:$0xff] }
 0x171   : > { %v1717_v23 = vsel %vm3729_vm10, %v1652_v17, %v1716_v49  ;;  %v1655_v56 = vrot.slane %v1653_v39, 7  ;;  %v1658_v3 = vrot.slane %v1656_v29, 7  ;;  %v1590_v44 = vrot.slane %v1558_v42, 2  ;;  %v4283_v7 = vld [vmem:[#allocation129_spill] sm:$0xff]  ;;  %v4284_v1 = vld [vmem:[#allocation142_spill] sm:$0xff] }
 0x172   : > { %1718 = vst [vmem:[%s2161_s21] sm:$0x2] %v1717_v23  ;;  %v1661_v0 = vrot.slane %v1659_v61, 7  ;;  %v1527_v19 = vmul.f32 0.1, %v1511_v28  ;;  %v1460_v55 = vadd.f32 %v4268_v50, %v1426_v25  ;;  %v1427_v35 = vadd.f32 %v4269_v24, %v1393_v47  ;;  %v4285_v39 = vld [vmem:[#allocation158_spill] sm:$0xff]  ;;  %v4288_v23 = vld [vmem:[#allocation143_spill] sm:$0xff] }
 0x173   : > { %v1720_v21 = vsel %vm3729_vm10, %v1655_v56, %v1719_v46  ;;  %v1723_v51 = vsel %vm3729_vm10, %v1658_v3, %v1722_v30  ;;  %v1394_v31 = vadd.f32 %v4271_v37, %v4270_v20  ;;  %v1616_v48 = vsel %vm804_vm3, %v1558_v42, %v1590_v44  ;;  %v4286_v30 = vld [vmem:[#allocation116_spill] sm:$0xff]  ;;  %v4287_v42 = vld [vmem:[#allocation130_spill] sm:$0xff] }
 0x174   : > { %1721 = vst [vmem:[%s2161_s21 + $0x2] sm:$0x2] %v1720_v21  ;;  %v1726_v40 = vsel %vm3729_vm10, %v1661_v0, %v1725_v54  ;;  %v1543_v41 = vmax.f32 %v1511_v28, %v1527_v19  ;;  %v1494_v6 = vadd.f32 %v4272_v60, %v1460_v55  ;;  %v1662_v63 = vshll.u32 %v1616_v48, 16  ;;  %v4289_v3 = vld [vmem:[#allocation160_spill] sm:$0xff]  ;;  %v4290_v0 = vld [vmem:[#allocation131_spill] sm:$0xff]  ;;  %v4291_v55 = vld [vmem:[#allocation146_spill] sm:$0xff] }
 0x175   : > { %1724 = vst [vmem:[%s2161_s21 + $0x4] sm:$0x2] %v1723_v51  ;;  %v1461_v26 = vadd.f32 %v4273_v5, %v1427_v35  ;;  %v1428_v38 = vadd.f32 %v4274_v52, %v1394_v31  ;;  %v1395_v8 = vadd.f32 %v4276_v34, %v4275_v57  ;;  %v1396_v58 = vadd.f32 %v4278_v2, %v4277_v43  ;;  %v1731_v19 = vld [vmem:[%s2161_s21 + $0xa] sm:$0x2]  ;;  %v4293_v35 = vld [vmem:[#allocation167_spill] sm:$0xff]  ;;  %v4294_v20 = vld [vmem:[#allocation168_spill] sm:$0xff] }
 0x176   : > { %1727 = vst [vmem:[%s2161_s21 + $0x6] sm:$0x2] %v1726_v40  ;;  %v1559_v62 = vpack.c.bf16 %v1543_v41, %v1543_v41  ;;  %v1512_v10 = vadd.f32 %v3666_v14, %v1494_v6  ;;  %v1397_v12 = vadd.f32 %v4280_v59, %v4279_v4  ;;  %v1664_v45 = vrot.slane %v1662_v63, 7  ;;  %v4292_v51 = vld [vmem:[#allocation161_spill] sm:$0xff] }
 0x177   : > { %v1495_v9 = vadd.f32 %v4281_v15, %v1461_v26  ;;  %v1462_v49 = vadd.f32 %v4282_v53, %v1428_v38  ;;  %v1429_v13 = vadd.f32 %v4283_v7, %v1395_v8  ;;  %v1430_v17 = vadd.f32 %v4284_v1, %v1396_v58  ;;  %v4295_v5 = vld [vmem:[#allocation169_spill] sm:$0xff]  ;;  %v4299_v7 = vld [vmem:[#allocation178_spill] sm:$0xff] }
 0x178   : > { %v1591_v11 = vrot.slane %v1559_v62, 2  ;;  %v1528_v33 = vmul.f32 0.1, %v1512_v10  ;;  %v1431_v29 = vadd.f32 %v4285_v39, %v1397_v12  ;;  %v1729_v22 = vsel %vm3729_vm10, %v1664_v45, %v1728_v18  ;;  %v1734_v12 = vld [vmem:[%s2161_s21 + $0xc] sm:$0x2] }
 0x179   : > { %v1513_v46 = vadd.f32 %v3666_v14, %v1495_v9  ;;  %v1496_v61 = vadd.f32 %v4286_v30, %v1462_v49  ;;  %v1463_v28 = vadd.f32 %v4287_v42, %v1429_v13  ;;  %1730 = vst [vmem:[%s2161_s21 + $0x8] sm:$0x2] %v1729_v22  ;;  %v1464_v56 = vadd.f32 %v4288_v23, %v1430_v17  ;;  %v4297_v9 = vld [vmem:[#allocation171_spill] sm:$0xff]  ;;  %v4298_v49 = vld [vmem:[#allocation177_spill] sm:$0xff] }
 0x17a   : > { %v1619_v27 = vsel %vm804_vm3, %v1559_v62, %v1591_v11  ;;  %v1544_v25 = vmax.f32 %v1512_v10, %v1528_v33  ;;  %v1465_v54 = vadd.f32 %v4289_v3, %v1431_v29  ;;  %v1398_v37 = vadd.f32 %v4294_v20, %v4293_v35  ;;  %v4296_v10 = vld [vmem:[#allocation170_spill] sm:$0xff] }
 0x17b   : > { %v1665_v32 = vshll.u32 %v1619_v27, 16  ;;  %v1529_v16 = vmul.f32 0.1, %v1513_v46  ;;  %v1514_v47 = vadd.f32 %v3666_v14, %v1496_v61  ;;  %v1497_v44 = vadd.f32 %v4290_v0, %v1463_v28  ;;  %v1737_v61 = vld [vmem:[%s2161_s21 + $0xe] sm:$0x2]  ;;  %v4300_v27 = vld [vmem:[#allocation179_spill] sm:$0xff] }
 0x17c   : > { %v1560_v50 = vpack.c.bf16 %v1544_v25, %v1544_v25  ;;  %v1498_v21 = vadd.f32 %v4291_v55, %v1464_v56  ;;  %v1499_v24 = vadd.f32 %v4292_v51, %v1465_v54  ;;  %v1432_v26 = vadd.f32 %v4295_v5, %v1398_v37  ;;  %v4301_v0 = vld [vmem:[#allocation180_spill] sm:$0xff]  ;;  %v1743_v20 = vld [vmem:[%s2161_s21 + $0x12] sm:$0x2] }
 0x17d   : > { %v1667_v31 = vrot.slane %v1665_v32, 7  ;;  %v1545_v40 = vmax.f32 %v1513_v46, %v1529_v16  ;;  %v1530_v48 = vmul.f32 0.1, %v1514_v47  ;;  %v1515_v41 = vadd.f32 %v3666_v14, %v1497_v44  ;;  %v1740_v32 = vld [vmem:[%s2161_s21 + $0x10] sm:$0x2] }
 0x17e   : > { %v1592_v60 = vrot.slane %v1560_v50, 2  ;;  %v1516_v6 = vadd.f32 %v3666_v14, %v1498_v21  ;;  %v1517_v63 = vadd.f32 %v3666_v14, %v1499_v24  ;;  %v1466_v43 = vadd.f32 %v4296_v10, %v1432_v26  ;;  %v4305_v26 = vld [vmem:[#allocation189_spill] sm:$0xff] }
 0x17f   : > { %v1732_v52 = vsel %vm3729_vm10, %v1667_v31, %v1731_v19  ;;  %v1561_v38 = vpack.c.bf16 %v1545_v40, %v1545_v40  ;;  %v1546_v57 = vmax.f32 %v1514_v47, %v1530_v48  ;;  %v1531_v34 = vmul.f32 0.1, %v1515_v41  ;;  %v4302_v19 = vld [vmem:[#allocation187_spill] sm:$0xff]  ;;  %v4304_v48 = vld [vmem:[#allocation181_spill] sm:$0xff] }
 0x180   : > { %1733 = vst [vmem:[%s2161_s21 + $0xa] sm:$0x2] %v1732_v52  ;;  %v1622_v8 = vsel %vm804_vm3, %v1560_v50, %v1592_v60  ;;  %v1532_v18 = vmul.f32 0.1, %v1516_v6  ;;  %v1533_v62 = vmul.f32 0.1, %v1517_v63  ;;  %v1500_v53 = vadd.f32 %v4297_v9, %v1466_v43 }
 0x181   : > { %v1668_v2 = vshll.u32 %v1622_v8, 16  ;;  %v1593_v58 = vrot.slane %v1561_v38, 2  ;;  %v1562_v4 = vpack.c.bf16 %v1546_v57, %v1546_v57  ;;  %v1547_v59 = vmax.f32 %v1515_v41, %v1531_v34  ;;  %v4303_v50 = vld [vmem:[#allocation188_spill] sm:$0xff]  ;;  %v1749_v57 = vld [vmem:[%s2161_s21 + $0x16] sm:$0x2] }
 0x182   : > { %v1548_v45 = vmax.f32 %v1516_v6, %v1532_v18  ;;  %v1549_v15 = vmax.f32 %v1517_v63, %v1533_v62  ;;  %v1399_v13 = vadd.f32 %v4299_v7, %v4298_v49  ;;  %v1518_v46 = vadd.f32 %v3666_v14, %v1500_v53  ;;  %v1746_v63 = vld [vmem:[%s2161_s21 + $0x14] sm:$0x2]  ;;  %v4306_v18 = vld [vmem:[#allocation197_spill] sm:$0xff]  ;;  %v1918_v43 = vld [vmem:[%s2021_s4 + $0x7c] sm:$0x1] }
 0x183   : > { %v1670_v11 = vrot.slane %v1668_v2, 7  ;;  %v1625_v33 = vsel %vm804_vm3, %v1561_v38, %v1593_v58  ;;  %v1594_v1 = vrot.slane %v1562_v4, 2  ;;  %v1563_v17 = vpack.c.bf16 %v1547_v59, %v1547_v59  ;;  %v4307_v62 = vld [vmem:[#allocation198_spill] sm:$0xff]  ;;  %v4308_v2 = vld [vmem:[#allocation19_spill] sm:$0xff] }
 0x184   : > { %v1671_v39 = vshll.u32 %v1625_v33, 16  ;;  %v1564_v29 = vpack.c.bf16 %v1548_v45, %v1548_v45  ;;  %v1565_v22 = vpack.c.bf16 %v1549_v15, %v1549_v15  ;;  %v1433_v25 = vadd.f32 %v4300_v27, %v1399_v13  ;;  %v4310_v49 = vld [vmem:[#allocation199_spill] sm:$0xff] }
 0x185   : > { %v1735_v30 = vsel %vm3729_vm10, %v1670_v11, %v1734_v12  ;;  %v1628_v42 = vsel %vm804_vm3, %v1562_v4, %v1594_v1  ;;  %v1595_v28 = vrot.slane %v1563_v17, 2  ;;  %v1534_v47 = vmul.f32 0.1, %v1518_v46  ;;  %v4309_v12 = vld [vmem:[#allocation190_spill] sm:$0xff]  ;;  %v4311_v11 = vld [vmem:[#allocation191_spill] sm:$0xff] }
 0x186   : > { %1736 = vst [vmem:[%s2161_s21 + $0xc] sm:$0x2] %v1735_v30  ;;  %v1673_v23 = vrot.slane %v1671_v39, 7  ;;  %v1674_v56 = vshll.u32 %v1628_v42, 16  ;;  %v1596_v3 = vrot.slane %v1564_v29, 2  ;;  %v1597_v54 = vrot.slane %v1565_v22, 2 }
 0x187   : > { %v1631_v16 = vsel %vm804_vm3, %v1563_v17, %v1595_v28  ;;  %v1467_v44 = vadd.f32 %v4301_v0, %v1433_v25  ;;  %v1400_v55 = vadd.f32 %v4303_v50, %v4302_v19  ;;  %v1550_v40 = vmax.f32 %v1518_v46, %v1534_v47  ;;  %v4312_v39 = vld [vmem:[#allocation200_spill] sm:$0xff]  ;;  %v1752_v30 = vld [vmem:[%s2161_s21 + $0x18] sm:$0x2]  ;;  %v1755_v0 = vld [vmem:[%s2161_s21 + $0x1a] sm:$0x2] }
 0x188   : > { %v1738_v21 = vsel %vm3729_vm10, %v1673_v23, %v1737_v61  ;;  %v1676_v51 = vrot.slane %v1674_v56, 7  ;;  %v1677_v24 = vshll.u32 %v1631_v16, 16  ;;  %v1634_v35 = vsel %vm804_vm3, %v1564_v29, %v1596_v3 }
 0x189   : > { %1739 = vst [vmem:[%s2161_s21 + $0xe] sm:$0x2] %v1738_v21  ;;  %v1680_v37 = vshll.u32 %v1634_v35, 16  ;;  %v1637_v31 = vsel %vm804_vm3, %v1565_v22, %v1597_v54  ;;  %v1501_v41 = vadd.f32 %v4304_v48, %v1467_v44  ;;  %v1434_v52 = vadd.f32 %v4305_v26, %v1400_v55  ;;  %v1758_v35 = vld [vmem:[%s2161_s21 + $0x1c] sm:$0x2] }
 0x18a   : > { %v1741_v60 = vsel %vm3729_vm10, %v1676_v51, %v1740_v32  ;;  %v1679_v6 = vrot.slane %v1677_v24, 7  ;;  %v1683_v5 = vshll.u32 %v1637_v31, 16  ;;  %v1566_v34 = vpack.c.bf16 %v1550_v40, %v1550_v40  ;;  %v1761_v48 = vld [vmem:[%s2161_s21 + $0x1e] sm:$0x2] }
 0x18b   : > { %1742 = vst [vmem:[%s2161_s21 + $0x10] sm:$0x2] %v1741_v60  ;;  %v1682_v38 = vrot.slane %v1680_v37, 7  ;;  %v1519_v8 = vadd.f32 %v3666_v14, %v1501_v41  ;;  %v1401_v10 = vadd.f32 %v4307_v62, %v4306_v18  ;;  %v1487_v58 = vmul.f32 %v1918_v43, %v4308_v2 }
 0x18c   : > { %v1744_v4 = vsel %vm3729_vm10, %v1679_v6, %v1743_v20  ;;  %v1685_v59 = vrot.slane %v1683_v5, 7  ;;  %v1468_v45 = vadd.f32 %v4309_v12, %v1434_v52  ;;  %v1598_v9 = vrot.slane %v1566_v34, 2 }
 0x18d   : > { %1745 = vst [vmem:[%s2161_s21 + $0x12] sm:$0x2] %v1744_v4  ;;  %v1747_v15 = vsel %vm3729_vm10, %v1682_v38, %v1746_v63  ;;  %v1535_v53 = vmul.f32 0.1, %v1519_v8  ;;  %v1435_v7 = vadd.f32 %v4310_v49, %v1401_v10 }
 0x18e   : > { %1748 = vst [vmem:[%s2161_s21 + $0x14] sm:$0x2] %v1747_v15  ;;  %v1750_v13 = vsel %vm3729_vm10, %v1685_v59, %v1749_v57  ;;  %v1502_v33 = vadd.f32 %v4311_v11, %v1468_v45  ;;  %v1640_v1 = vsel %vm804_vm3, %v1566_v34, %v1598_v9 }
 0x18f   : > { %1751 = vst [vmem:[%s2161_s21 + $0x16] sm:$0x2] %v1750_v13  ;;  %v1551_v17 = vmax.f32 %v1519_v8, %v1535_v53  ;;  %v1469_v29 = vadd.f32 %v4312_v39, %v1435_v7  ;;  %v1686_v22 = vshll.u32 %v1640_v1, 16 }
 0x190   : > { %v1520_v46 = vadd.f32 %v3666_v14, %v1502_v33 }
 0x191   : > { %v1567_v61 = vpack.c.bf16 %v1551_v17, %v1551_v17  ;;  %v1503_v42 = vadd.f32 %v1487_v58, %v1469_v29  ;;  %v1688_v28 = vrot.slane %v1686_v22, 7 }
 0x192   : > { %v1536_v27 = vmul.f32 0.1, %v1520_v46 }
 0x193   : > { %v1599_v25 = vrot.slane %v1567_v61, 2  ;;  %v1521_v23 = vadd.f32 %v3666_v14, %v1503_v42  ;;  %v1753_v56 = vsel %vm3729_vm10, %v1688_v28, %v1752_v30 }
 0x194   : > { %v1552_v3 = vmax.f32 %v1520_v46, %v1536_v27  ;;  %1754 = vst [vmem:[%s2161_s21 + $0x18] sm:$0x2] %v1753_v56 }
 0x195   : > { %v1643_v54 = vsel %vm804_vm3, %v1567_v61, %v1599_v25  ;;  %v1537_v32 = vmul.f32 0.1, %v1521_v23 }
 0x196   : > { %v1689_v16 = vshll.u32 %v1643_v54, 16  ;;  %v1568_v47 = vpack.c.bf16 %v1552_v3, %v1552_v3 }
 0x197   : > { %v1553_v44 = vmax.f32 %v1521_v23, %v1537_v32 }
 0x198   : > { %v1691_v19 = vrot.slane %v1689_v16, 7  ;;  %v1600_v50 = vrot.slane %v1568_v47, 2 }
 0x199   : > { %v1569_v55 = vpack.c.bf16 %v1553_v44, %v1553_v44 }
 0x19a   : > { %v1756_v14 = vsel %vm3729_vm10, %v1691_v19, %v1755_v0  ;;  %v1646_v21 = vsel %vm804_vm3, %v1568_v47, %v1600_v50 }
 0x19b   : > { %1757 = vst [vmem:[%s2161_s21 + $0x1a] sm:$0x2] %v1756_v14  ;;  %v1692_v51 = vshll.u32 %v1646_v21, 16  ;;  %v1601_v24 = vrot.slane %v1569_v55, 2 }
 0x19d   : > { %v1694_v20 = vrot.slane %v1692_v51, 7  ;;  %v1649_v37 = vsel %vm804_vm3, %v1569_v55, %v1601_v24 }
 0x19e   : > { %v1695_v31 = vshll.u32 %v1649_v37, 16 }
 0x19f   : > { %v1759_v40 = vsel %vm3729_vm10, %v1694_v20, %v1758_v35 }
 0x1a0   : > { %1760 = vst [vmem:[%s2161_s21 + $0x1c] sm:$0x2] %v1759_v40  ;;  %v1697_v41 = vrot.slane %v1695_v31, 7 }
 0x1a2   : > { %v1762_v60 = vsel %vm3729_vm10, %v1697_v41, %v1761_v48 }
 0x1a3   : > { %1763 = vst [vmem:[%s2161_s21 + $0x1e] sm:$0x2] %v1762_v60 }
 0x1a4 PF: > { %s15_s12 = sadd.s32 1, %s1963_s12  }
 0x1a5   : > { %p12_p7 = scmp.ge.s32.totalorder %s15_s12, 4  }
 0x1a7   :  { %14 = sbr.rel (!%p12_p7) target bundleno = 2 (0x2), region = 71 }
 0x1ac   :  { %1786 = vsyncpa [#allocation3], 1 }
 0x1ad   :  { %1788 = vsyncpa [#allocation3 + $0x1], 1 }
 0x1ae   :  { %1789 = vsyncpa [#allocation5], 1 }

// kernel: discriminator_p_forward.7
= control target key start
LH: loop header
LB: loop body
LE: loop exit
PB: predicated region body
PF: predicated region fallthrough
CT: control target
= control target key end

     0   :  { %s931_s12 = smov 0   ;;  %s1126_s0 = inlined_call_operand.vmem [shape: bf16[32,9,12], index: 0, kind: input, shape index: {}]   ;;  %s1127_s1 = inlined_call_operand.vmem [shape: bf16[20,32], index: 1, kind: input, shape index: {}]   ;;  %s1128_s2 = inlined_call_operand.vmem [shape: f32[1,32], index: 2, kind: input, shape index: {}]   ;;  %s1129_s3 = inlined_call_operand.vmem [shape: bf16[32,8,32], index: 3, kind: output, shape index: {}]  }
   0x1 LB: > { %s813_s13 = sadd.s32 4294967295, %s909_s12   ;;  %p817_p0 = scmp.ge.s32.totalorder %s909_s12, 1  ;;  %s909_s12 = sphi %s931_s12, %s13_s12  }
   0x2   : > { %p139_p1 = scmp.lt.s32.totalorder %s909_s12, 3 }
   0x4   : > { %p140_p2 = pnand %p817_p0, %p139_p1 }
   0x5   : > { %s818_s18 = sshll.u32 (!%p140_p2), %s813_s13, 4 }
   0x6   : > { %143 = sbr.rel (%p140_p2) target bundleno = 234 (0xea), region = 32  ;;  %p165_p3 = scmp.lt.s32.totalorder (!%p140_p2), %s818_s18, 31 }
   0xb   : > { %v869_v0 = vld [vmem:[%s1127_s1] sm:$0xf]  ;;  %v890_v1 = vld [vmem:[%s1127_s1] sm:$0x30]  ;;  %vm619_vm0 = vcmask 1045504   ;;  %s1133_s18 = smov (!%p165_p3, %s818_s18), 31 }
   0xc   : > { %v870_v2 = vor.u32 %v890_v1, %v869_v0  ;;  %v825_v3 = vld [vmem:[%s1127_s1 + $0x4] sm:$0xc]  ;;  %v891_v4 = vld [vmem:[%s1127_s1 + $0x4] sm:$0x30]  ;;  %vm496_vm1 = vcmask 1043456   ;;  %s881_s23 = sshll.u32 %s1133_s18, 3 }
   0xd   : > { %v826_v5 = vor.u32 %v891_v4, %v825_v3  ;;  %s957_s26 = scalar_lea.vmem %s1126_s0, %s881_s23  ;;  %vm594_vm2 = vcmask 97280   ;;  %vm212_vm3 = vsmask.f32 3328  ;;  %vm213_vm4 = vsmask.f32 7440  ;;  %s822_s29 = sshll.u32 %s1133_s18, 2 }
   0xe   : > { %v621_v6 = vsel %vm619_vm0, %v870_v2, 0  ;;  %v853_v9 = vld [vmem:[%s957_s26 + $0x40] sm:$0xf]  ;;  %v886_v10 = vld [vmem:[%s957_s26 + $0x44] sm:$0xf0]  ;;  %vm471_vm5 = vcmask 64512   ;;  %vm978_vm6 = vmor %vm212_vm3, %vm213_vm4  ;;  %s1074_s5 = scalar_lea.vmem %s1129_s3, %s822_s29 }
   0xf   : > { %893 = vmatpush.bf16.msra.mxu3 %v621_v6  ;;  %630 = vmatpush.bf16.msra.mxu1 %v621_v6  ;;  %v470_v7 = vrot.slane %v826_v5, 2  ;;  %v837_v11 = vld [vmem:[%s957_s26] sm:$0xf]  ;;  %v854_v12 = vor.u32 %v886_v10, %v853_v9  ;;  %v882_v13 = vld [vmem:[%s957_s26 + $0x4] sm:$0xf0]  ;;  %vm740_vm7 = vcmask 257024  }
  0x10   : > { %v178_v14 = vld [vmem:[%s957_s26] sm:$0xf]  ;;  %v179_v15 = vld [vmem:[%s957_s26 + $0x8] sm:$0xf]  ;;  %v838_v16 = vor.u32 %v882_v13, %v837_v11  ;;  %v196_v17 = vld [vmem:[%s957_s26 + $0x4] sm:$0x1] }
  0x11   : > { %v498_v8 = vsel %vm496_vm1, %v470_v7, 0  ;;  %v197_v18 = vld [vmem:[%s957_s26 + $0xc] sm:$0x1]  ;;  %v216_v19 = vshrl.u32 %v178_v14, 16  ;;  %v219_v20 = vshll.u32 %v178_v14, 16  ;;  %v225_v21 = vshll.u32 %v196_v17, 16 }
  0x12   : > { %507 = vmatpush.bf16.msra.mxu0 %v498_v8  ;;  %892 = vmatpush.bf16.msra.mxu2 %v498_v8  ;;  %v230_v22 = vshrl.u32 %v179_v15, 16  ;;  %v233_v23 = vshll.u32 %v179_v15, 16  ;;  %v239_v24 = vshll.u32 %v197_v18, 16  ;;  %v186_v25 = vld [vmem:[%s957_s26 + $0x40] sm:$0xf] }
  0x13   : > { %875 = vmatmul.msk.bf16.vlgmr.msra.gmra.mxu3 %vm594_vm2, %v854_v12  ;;  %871 = vmatmul.msk.bf16.vlgmr.msra.gmra.mxu1 %vm594_vm2, %v838_v16  ;;  %v218_v26 = vrot.slane %v216_v19, 4  ;;  %v221_v27 = vrot.slane %v219_v20, 5  ;;  %v187_v28 = vld [vmem:[%s957_s26 + $0x48] sm:$0xf]  ;;  %v204_v29 = vld [vmem:[%s957_s26 + $0x44] sm:$0x1] }
  0x14   : > { %v227_v30 = vrot.slane %v225_v21, 5  ;;  %v232_v31 = vrot.slane %v230_v22, 4  ;;  %v235_v32 = vrot.slane %v233_v23, 5  ;;  %v241_v33 = vrot.slane %v239_v24, 5  ;;  %v205_v34 = vld [vmem:[%s957_s26 + $0x4c] sm:$0x1] }
  0x15   : > { %v222_v35 = vor.u32 %v221_v27, %v218_v26  ;;  %v328_v36 = vshrl.u32 %v186_v25, 16  ;;  %v331_v37 = vshll.u32 %v186_v25, 16  ;;  %v337_v38 = vshll.u32 %v204_v29, 16  ;;  %v974_v39 = vld [vmem:[%s957_s26 + $0x50] sm:$0xf] }
  0x16   : > { %v236_v41 = vor.u32 %v235_v32, %v232_v31  ;;  %v342_v42 = vshrl.u32 %v187_v28, 16  ;;  %v345_v43 = vshll.u32 %v187_v28, 16  ;;  %v351_v44 = vshll.u32 %v205_v34, 16  ;;  %v887_v45 = vld [vmem:[%s957_s26 + $0x54] sm:$0xf0] }
  0x17   : > { %v223_v46 = vrot.slane %v222_v35, 4  ;;  %v330_v47 = vrot.slane %v328_v36, 4  ;;  %v333_v48 = vrot.slane %v331_v37, 5  ;;  %v339_v49 = vrot.slane %v337_v38, 5  ;;  %v841_v50 = vld [vmem:[%s957_s26 + $0x10] sm:$0xf] }
  0x18   : > { %v237_v51 = vrot.slane %v236_v41, 4  ;;  %v344_v52 = vrot.slane %v342_v42, 4  ;;  %v347_v53 = vrot.slane %v345_v43, 5  ;;  %v353_v54 = vrot.slane %v351_v44, 5  ;;  %v883_v55 = vld [vmem:[%s957_s26 + $0x14] sm:$0xf0] }
  0x19   : > { %v228_v56 = vsel %vm978_vm6, %v223_v46, %v227_v30  ;;  %v334_v57 = vor.u32 %v333_v48, %v330_v47  ;;  %v858_v58 = vor.u32 %v887_v45, %v974_v39  ;;  %v842_v59 = vor.u32 %v883_v55, %v841_v50  ;;  %v180_v60 = vld [vmem:[%s957_s26 + $0x10] sm:$0xf]  ;;  %v181_v61 = vld [vmem:[%s957_s26 + $0x18] sm:$0xf]  ;;  %v198_v62 = vld [vmem:[%s957_s26 + $0x14] sm:$0x1] }
  0x1a   : > { %v242_v63 = vsel %vm978_vm6, %v237_v51, %v241_v33  ;;  %v441_v0 = vunpack.c.l.b16 %v228_v56  ;;  %v348_v1 = vor.u32 %v347_v53, %v344_v52  ;;  %v244_v2 = vshrl.u32 %v180_v60, 16  ;;  %v199_v5 = vld [vmem:[%s957_s26 + $0x1c] sm:$0x1]  ;;  %v188_v12 = vld [vmem:[%s957_s26 + $0x50] sm:$0xf] }
  0x1b   : > { %v442_v3 = vunpack.c.l.b16 %v242_v63  ;;  %v335_v4 = vrot.slane %v334_v57, 4  ;;  %v247_v6 = vshll.u32 %v180_v60, 16  ;;  %v253_v7 = vshll.u32 %v198_v62, 16  ;;  %v189_v17 = vld [vmem:[%s957_s26 + $0x58] sm:$0xf] }
  0x1c   : > { %v349_v8 = vrot.slane %v348_v1, 4  ;;  %v246_v9 = vrot.slane %v244_v2, 4  ;;  %v258_v10 = vshrl.u32 %v181_v61, 16  ;;  %v261_v11 = vshll.u32 %v181_v61, 16  ;;  %v206_v18 = vld [vmem:[%s957_s26 + $0x54] sm:$0x1] }
  0x1d   : > { %v457_v13 = vpack.c.b16 %v442_v3, %v441_v0  ;;  %v340_v14 = vsel %vm978_vm6, %v335_v4, %v339_v49  ;;  %v249_v15 = vrot.slane %v247_v6, 5  ;;  %v255_v16 = vrot.slane %v253_v7, 5  ;;  %v207_v28 = vld [vmem:[%s957_s26 + $0x5c] sm:$0x1]  ;;  %v182_v38 = vld [vmem:[%s957_s26 + $0x20] sm:$0xf] }
  0x1e   : > { %v354_v19 = vsel %vm978_vm6, %v349_v8, %v353_v54  ;;  %v449_v20 = vunpack.c.l.b16 %v340_v14  ;;  %v260_v21 = vrot.slane %v258_v10, 4  ;;  %v263_v22 = vrot.slane %v261_v11, 5  ;;  %v183_v44 = vld [vmem:[%s957_s26 + $0x28] sm:$0xf]  ;;  %v861_v48 = vld [vmem:[%s957_s26 + $0x60] sm:$0xf] }
  0x1f   : > { %827 = vmatmul.msk.bf16.vlgmr.msra.gmra.mxu0 %vm471_vm5, %v457_v13  ;;  %v450_v23 = vunpack.c.l.b16 %v354_v19  ;;  %v250_v24 = vor.u32 %v249_v15, %v246_v9  ;;  %v267_v25 = vshll.u32 %v199_v5, 16  ;;  %v356_v26 = vshrl.u32 %v188_v12, 16  ;;  %v888_v52 = vld [vmem:[%s957_s26 + $0x64] sm:$0xf0]  ;;  %v200_v53 = vld [vmem:[%s957_s26 + $0x24] sm:$0x1] }
  0x20   : > { %v264_v27 = vor.u32 %v263_v22, %v260_v21  ;;  %v359_v29 = vshll.u32 %v188_v12, 16  ;;  %v365_v30 = vshll.u32 %v206_v18, 16  ;;  %v370_v31 = vshrl.u32 %v189_v17, 16  ;;  %v201_v56 = vld [vmem:[%s957_s26 + $0x2c] sm:$0x1] }
  0x21   : > { %v461_v32 = vpack.c.b16 %v450_v23, %v449_v20  ;;  %v251_v33 = vrot.slane %v250_v24, 4  ;;  %v269_v34 = vrot.slane %v267_v25, 5  ;;  %v358_v35 = vrot.slane %v356_v26, 4  ;;  %v190_v63 = vld [vmem:[%s957_s26 + $0x60] sm:$0xf] }
  0x22   : > { %v265_v36 = vrot.slane %v264_v27, 4  ;;  %v361_v37 = vrot.slane %v359_v29, 5  ;;  %v372_v41 = vrot.slane %v370_v31, 4  ;;  %v373_v42 = vshll.u32 %v189_v17, 16  ;;  %v191_v4 = vld [vmem:[%s957_s26 + $0x68] sm:$0xf] }
  0x23   : > { %876 = vmatmul.msk.bf16.gmra.mxu3 %vm594_vm2, %v858_v58  ;;  %831 = vmatmul.msk.bf16.vlgmr.msra.gmra.mxu2 %vm471_vm5, %v461_v32  ;;  %v256_v39 = vsel %vm978_vm6, %v251_v33, %v255_v16  ;;  %v379_v43 = vshll.u32 %v207_v28, 16  ;;  %v367_v47 = vrot.slane %v365_v30, 5  ;;  %v272_v54 = vshrl.u32 %v182_v38, 16  ;;  %v208_v11 = vld [vmem:[%s957_s26 + $0x64] sm:$0x1] }
  0x24   : > { %872 = vmatmul.msk.bf16.gmra.mxu1 %vm594_vm2, %v842_v59  ;;  %v270_v45 = vsel %vm978_vm6, %v265_v36, %v269_v34  ;;  %v362_v46 = vor.u32 %v361_v37, %v358_v35  ;;  %v443_v49 = vunpack.c.l.b16 %v256_v39  ;;  %v375_v51 = vrot.slane %v373_v42, 5  ;;  %v845_v16 = vld [vmem:[%s957_s26 + $0x20] sm:$0xf]  ;;  %v209_v18 = vld [vmem:[%s957_s26 + $0x6c] sm:$0x1] }
  0x25   : > { %v444_v50 = vunpack.c.l.b16 %v270_v45  ;;  %v275_v57 = vshll.u32 %v182_v38, 16  ;;  %v286_v58 = vshrl.u32 %v183_v44, 16  ;;  %v381_v60 = vrot.slane %v379_v43, 5  ;;  %v884_v21 = vld [vmem:[%s957_s26 + $0x24] sm:$0xf0] }
  0x26   : > { %v363_v55 = vrot.slane %v362_v46, 4  ;;  %v376_v59 = vor.u32 %v375_v51, %v372_v41  ;;  %v274_v61 = vrot.slane %v272_v54, 4  ;;  %v289_v62 = vshll.u32 %v183_v44, 16  ;;  %v184_v36 = vld [vmem:[%s957_s26 + $0x30] sm:$0xf] }
  0x27   : > { %v277_v1 = vrot.slane %v275_v57, 5  ;;  %v281_v2 = vshll.u32 %v200_v53, 16  ;;  %v288_v3 = vrot.slane %v286_v58, 4  ;;  %v458_v5 = vpack.c.b16 %v444_v50, %v443_v49  ;;  %v185_v37 = vld [vmem:[%s957_s26 + $0x38] sm:$0xf] }
  0x28   : > { %v368_v0 = vsel %vm978_vm6, %v363_v55, %v367_v47  ;;  %v377_v6 = vrot.slane %v376_v59, 4  ;;  %v862_v7 = vor.u32 %v888_v52, %v861_v48  ;;  %v291_v8 = vrot.slane %v289_v62, 5  ;;  %v192_v50 = vld [vmem:[%s957_s26 + $0x70] sm:$0xf]  ;;  %v193_v51 = vld [vmem:[%s957_s26 + $0x78] sm:$0xf] }
  0x29   : > { %v278_v9 = vor.u32 %v277_v1, %v274_v61  ;;  %v295_v10 = vshll.u32 %v201_v56, 16  ;;  %v384_v12 = vshrl.u32 %v190_v63, 16  ;;  %v387_v13 = vshll.u32 %v190_v63, 16  ;;  %v202_v57 = vld [vmem:[%s957_s26 + $0x34] sm:$0x1] }
  0x2a   : > { %v382_v14 = vsel %vm978_vm6, %v377_v6, %v381_v60  ;;  %v451_v15 = vunpack.c.l.b16 %v368_v0  ;;  %v292_v17 = vor.u32 %v291_v8, %v288_v3  ;;  %v398_v19 = vshrl.u32 %v191_v4, 16  ;;  %v203_v61 = vld [vmem:[%s957_s26 + $0x3c] sm:$0x1]  ;;  %v849_v8 = vld [vmem:[%s957_s26 + $0x30] sm:$0xf] }
  0x2b   : > { %v452_v20 = vunpack.c.l.b16 %v382_v14  ;;  %v283_v22 = vrot.slane %v281_v2, 5  ;;  %v386_v23 = vrot.slane %v384_v12, 4  ;;  %v389_v24 = vrot.slane %v387_v13, 5  ;;  %v210_v13 = vld [vmem:[%s957_s26 + $0x74] sm:$0x1] }
  0x2c   : > { %v279_v25 = vrot.slane %v278_v9, 4  ;;  %v393_v26 = vshll.u32 %v208_v11, 16  ;;  %v400_v27 = vrot.slane %v398_v19, 4  ;;  %v401_v28 = vshll.u32 %v191_v4, 16  ;;  %v865_v4 = vld [vmem:[%s957_s26 + $0x70] sm:$0xf] }
  0x2d   : > { %v293_v29 = vrot.slane %v292_v17, 4  ;;  %v297_v30 = vrot.slane %v295_v10, 5  ;;  %v390_v31 = vor.u32 %v389_v24, %v386_v23  ;;  %v407_v32 = vshll.u32 %v209_v18, 16  ;;  %v885_v9 = vld [vmem:[%s957_s26 + $0x34] sm:$0xf0] }
  0x2e   : > { %v462_v33 = vpack.c.b16 %v452_v20, %v451_v15  ;;  %v846_v34 = vor.u32 %v884_v21, %v845_v16  ;;  %v403_v35 = vrot.slane %v401_v28, 5  ;;  %v284_v38 = vsel %vm978_vm6, %v279_v25, %v283_v22  ;;  %v211_v18 = vld [vmem:[%s957_s26 + $0x7c] sm:$0x1] }
  0x2f   : > { %828 = vmatmul.msk.bf16.gmra.mxu0 %vm471_vm5, %v458_v5  ;;  %v395_v39 = vrot.slane %v393_v26, 5  ;;  %v298_v42 = vsel %vm978_vm6, %v293_v29, %v297_v30  ;;  %v391_v43 = vrot.slane %v390_v31, 4  ;;  %v409_v44 = vrot.slane %v407_v32, 5  ;;  %v889_v5 = vld [vmem:[%s957_s26 + $0x74] sm:$0xf0] }
  0x30   : > { %v404_v41 = vor.u32 %v403_v35, %v400_v27  ;;  %v300_v45 = vshrl.u32 %v184_v36, 16  ;;  %v303_v47 = vshll.u32 %v184_v36, 16  ;;  %v314_v48 = vshrl.u32 %v185_v37, 16 }
  0x31   : > { %v317_v49 = vshll.u32 %v185_v37, 16  ;;  %v445_v52 = vunpack.c.l.b16 %v284_v38  ;;  %v446_v53 = vunpack.c.l.b16 %v298_v42  ;;  %v396_v54 = vsel %vm978_vm6, %v391_v43, %v395_v39 }
  0x32   : > { %v405_v46 = vrot.slane %v404_v41, 4  ;;  %v302_v55 = vrot.slane %v300_v45, 4  ;;  %v305_v58 = vrot.slane %v303_v47, 5  ;;  %v316_v59 = vrot.slane %v314_v48, 4  ;;  %v1067_v48 = vld [vmem:[%s1128_s2] ss:$0 sm:$0xff] }
  0x33   : > { %877 = vmatmul.msk.bf16.gmra.mxu3 %vm594_vm2, %v862_v7  ;;  %832 = vmatmul.msk.bf16.gmra.mxu2 %vm471_vm5, %v462_v33  ;;  %v319_v60 = vrot.slane %v317_v49, 5  ;;  %v412_v62 = vshrl.u32 %v192_v50, 16  ;;  %v415_v63 = vshll.u32 %v192_v50, 16  ;;  %v426_v0 = vshrl.u32 %v193_v51, 16 }
  0x34   : > { %873 = vmatmul.msk.bf16.gmra.mxu1 %vm594_vm2, %v846_v34  ;;  %v410_v56 = vsel %vm978_vm6, %v405_v46, %v409_v44  ;;  %v429_v1 = vshll.u32 %v193_v51, 16  ;;  %v459_v2 = vpack.c.b16 %v446_v53, %v445_v52  ;;  %v453_v3 = vunpack.c.l.b16 %v396_v54 }
  0x35   : > { %v309_v6 = vshll.u32 %v202_v57, 16  ;;  %v454_v7 = vunpack.c.l.b16 %v410_v56  ;;  %v306_v10 = vor.u32 %v305_v58, %v302_v55  ;;  %v320_v11 = vor.u32 %v319_v60, %v316_v59 }
  0x36   : > { %v323_v12 = vshll.u32 %v203_v61, 16  ;;  %v414_v14 = vrot.slane %v412_v62, 4  ;;  %v417_v15 = vrot.slane %v415_v63, 5  ;;  %v428_v16 = vrot.slane %v426_v0, 4 }
  0x37   : > { %v431_v17 = vrot.slane %v429_v1, 5  ;;  %v866_v19 = vor.u32 %v889_v5, %v865_v4  ;;  %v850_v20 = vor.u32 %v885_v9, %v849_v8  ;;  %v311_v21 = vrot.slane %v309_v6, 5 }
  0x38   : > { %v463_v22 = vpack.c.b16 %v454_v7, %v453_v3  ;;  %v307_v23 = vrot.slane %v306_v10, 4  ;;  %v325_v24 = vrot.slane %v323_v12, 5  ;;  %v421_v25 = vshll.u32 %v210_v13, 16 }
  0x39   : > { %v321_v26 = vrot.slane %v320_v11, 4  ;;  %v418_v27 = vor.u32 %v417_v15, %v414_v14  ;;  %v432_v28 = vor.u32 %v431_v17, %v428_v16  ;;  %v435_v29 = vshll.u32 %v211_v18, 16 }
  0x3a   : > { %v312_v30 = vsel %vm978_vm6, %v307_v23, %v311_v21  ;;  %v423_v31 = vrot.slane %v421_v25, 5 }
  0x3b   : > { %v326_v32 = vsel %vm978_vm6, %v321_v26, %v325_v24  ;;  %v419_v33 = vrot.slane %v418_v27, 4  ;;  %v433_v34 = vrot.slane %v432_v28, 4  ;;  %v437_v35 = vrot.slane %v435_v29, 5 }
  0x3c   : > { %v447_v36 = vunpack.c.l.b16 %v312_v30  ;;  %v448_v37 = vunpack.c.l.b16 %v326_v32 }
  0x3d   : > { %v424_v38 = vsel %vm978_vm6, %v419_v33, %v423_v31  ;;  %v438_v39 = vsel %vm978_vm6, %v433_v34, %v437_v35 }
  0x3e   : > { %v460_v41 = vpack.c.b16 %v448_v37, %v447_v36  ;;  %v455_v42 = vunpack.c.l.b16 %v424_v38  ;;  %v456_v43 = vunpack.c.l.b16 %v438_v39 }
  0x3f   : > { %829 = vmatmul.msk.bf16.gmra.mxu0 %vm471_vm5, %v459_v2 }
  0x40   : > { %v464_v44 = vpack.c.b16 %v456_v43, %v455_v42 }
  0x43   : > { %878 = vmatmul.msk.bf16.gmra.mxu3 %vm594_vm2, %v866_v19  ;;  %833 = vmatmul.msk.bf16.gmra.mxu2 %vm471_vm5, %v463_v22 }
  0x44   : > { %874 = vmatmul.msk.bf16.gmra.mxu1 %vm594_vm2, %v850_v20 }
  0x4f   : > { %830 = vmatmul.msk.bf16.gmra.mxu0 %vm471_vm5, %v460_v41 }
  0x53   : > { %834 = vmatmul.msk.bf16.gmra.mxu2 %vm471_vm5, %v464_v44 }
  0x90   : > { %v632_v45 = vpop.f32.mrf.mxu1 }
  0x96   : > { %v652_v46 = vpop.f32.mrf.mxu3 }
  0x98   : > { %v634_v47 = vpop.f32.mrf.mxu1 }
  0x9c   : > { %v509_v49 = vpop.f32.mrf.mxu0 }
  0x9d   : > { %v633_v50 = vadd.f32 %v632_v45, %v509_v49 }
  0x9e   : > { %v654_v52 = vpop.f32.mrf.mxu3 }
  0x9f   : > { %v676_v40 = vadd.f32 %v1067_v48, %v633_v50 }
  0xa1   : > { %v692_v51 = vmul.f32 0.1, %v676_v40  ;;  %v637_v53 = vpop.f32.mrf.mxu1 }
  0xa3   : > { %v708_v54 = vmax.f32 %v676_v40, %v692_v51 }
  0xa4   : > { %v511_v55 = vpop.f32.mrf.mxu0 }
  0xa5   : > { %v724_v56 = vpack.c.bf16 %v708_v54, %v708_v54  ;;  %v635_v57 = vadd.f32 %v634_v47, %v511_v55 }
  0xa6   : > { %v529_v58 = vpop.f32.mrf.mxu2  ;;  %v657_v1 = vpop.f32.mrf.mxu3 }
  0xa7   : > { %741 = vst.msk [vmem:[%s1074_s5] sm:$0xf] %vm740_vm7, %v724_v56  ;;  %v653_v59 = vadd.f32 %v652_v46, %v529_v58  ;;  %v677_v60 = vadd.f32 %v1067_v48, %v635_v57 }
  0xa9   : > { %v684_v61 = vadd.f32 %v1067_v48, %v653_v59  ;;  %v693_v62 = vmul.f32 0.1, %v677_v60  ;;  %v639_v3 = vpop.f32.mrf.mxu1 }
  0xab   : > { %v700_v63 = vmul.f32 0.1, %v684_v61  ;;  %v709_v0 = vmax.f32 %v677_v60, %v693_v62 }
  0xac   : > { %v514_v2 = vpop.f32.mrf.mxu0 }
  0xad   : > { %v716_v4 = vmax.f32 %v684_v61, %v700_v63  ;;  %v725_v5 = vpack.c.bf16 %v709_v0, %v709_v0  ;;  %v638_v6 = vadd.f32 %v637_v53, %v514_v2 }
  0xae   : > { %v531_v7 = vpop.f32.mrf.mxu2  ;;  %v659_v18 = vpop.f32.mrf.mxu3 }
  0xaf   : > { %v732_v8 = vpack.c.bf16 %v716_v4, %v716_v4  ;;  %742 = vst.msk [vmem:[%s1074_s5 + $0x4] sm:$0xf] %vm740_vm7, %v725_v5  ;;  %v655_v9 = vadd.f32 %v654_v52, %v531_v7  ;;  %v678_v10 = vadd.f32 %v1067_v48, %v638_v6 }
  0xb1   : > { %749 = vst.msk [vmem:[%s1074_s5 + $0x20] sm:$0xf] %vm740_vm7, %v732_v8  ;;  %v685_v11 = vadd.f32 %v1067_v48, %v655_v9  ;;  %v694_v12 = vmul.f32 0.1, %v678_v10  ;;  %v642_v21 = vpop.f32.mrf.mxu1 }
  0xb3   : > { %v701_v13 = vmul.f32 0.1, %v685_v11  ;;  %v710_v14 = vmax.f32 %v678_v10, %v694_v12 }
  0xb4   : > { %v516_v15 = vpop.f32.mrf.mxu0 }
  0xb5   : > { %v717_v16 = vmax.f32 %v685_v11, %v701_v13  ;;  %v726_v17 = vpack.c.bf16 %v710_v14, %v710_v14  ;;  %v640_v19 = vadd.f32 %v639_v3, %v516_v15 }
  0xb6   : > { %v534_v20 = vpop.f32.mrf.mxu2  ;;  %v662_v36 = vpop.f32.mrf.mxu3 }
  0xb7   : > { %v733_v22 = vpack.c.bf16 %v717_v16, %v717_v16  ;;  %743 = vst.msk [vmem:[%s1074_s5 + $0x8] sm:$0xf] %vm740_vm7, %v726_v17  ;;  %v658_v23 = vadd.f32 %v657_v1, %v534_v20  ;;  %v679_v24 = vadd.f32 %v1067_v48, %v640_v19 }
  0xb9   : > { %750 = vst.msk [vmem:[%s1074_s5 + $0x24] sm:$0xf] %vm740_vm7, %v733_v22  ;;  %v686_v25 = vadd.f32 %v1067_v48, %v658_v23  ;;  %v695_v26 = vmul.f32 0.1, %v679_v24  ;;  %v644_v38 = vpop.f32.mrf.mxu1 }
  0xbb   : > { %v702_v27 = vmul.f32 0.1, %v686_v25  ;;  %v711_v28 = vmax.f32 %v679_v24, %v695_v26 }
  0xbc   : > { %v519_v29 = vpop.f32.mrf.mxu0 }
  0xbd   : > { %v718_v30 = vmax.f32 %v686_v25, %v702_v27  ;;  %v727_v31 = vpack.c.bf16 %v711_v28, %v711_v28  ;;  %v643_v32 = vadd.f32 %v642_v21, %v519_v29 }
  0xbe   : > { %v536_v33 = vpop.f32.mrf.mxu2  ;;  %v664_v53 = vpop.f32.mrf.mxu3 }
  0xbf   : > { %v734_v34 = vpack.c.bf16 %v718_v30, %v718_v30  ;;  %744 = vst.msk [vmem:[%s1074_s5 + $0xc] sm:$0xf] %vm740_vm7, %v727_v31  ;;  %v660_v35 = vadd.f32 %v659_v18, %v536_v33  ;;  %v680_v37 = vadd.f32 %v1067_v48, %v643_v32 }
  0xc1   : > { %751 = vst.msk [vmem:[%s1074_s5 + $0x28] sm:$0xf] %vm740_vm7, %v734_v34  ;;  %v687_v39 = vadd.f32 %v1067_v48, %v660_v35  ;;  %v696_v41 = vmul.f32 0.1, %v680_v37  ;;  %v647_v55 = vpop.f32.mrf.mxu1 }
  0xc3   : > { %v703_v42 = vmul.f32 0.1, %v687_v39  ;;  %v712_v43 = vmax.f32 %v680_v37, %v696_v41 }
  0xc4   : > { %v521_v44 = vpop.f32.mrf.mxu0 }
  0xc5   : > { %v719_v45 = vmax.f32 %v687_v39, %v703_v42  ;;  %v728_v46 = vpack.c.bf16 %v712_v43, %v712_v43  ;;  %v645_v47 = vadd.f32 %v644_v38, %v521_v44 }
  0xc6   : > { %v539_v49 = vpop.f32.mrf.mxu2  ;;  %v667_v5 = vpop.f32.mrf.mxu3 }
  0xc7   : > { %v735_v50 = vpack.c.bf16 %v719_v45, %v719_v45  ;;  %745 = vst.msk [vmem:[%s1074_s5 + $0x10] sm:$0xf] %vm740_vm7, %v728_v46  ;;  %v663_v40 = vadd.f32 %v662_v36, %v539_v49  ;;  %v681_v51 = vadd.f32 %v1067_v48, %v645_v47 }
  0xc9   : > { %752 = vst.msk [vmem:[%s1074_s5 + $0x2c] sm:$0xf] %vm740_vm7, %v735_v50  ;;  %v688_v52 = vadd.f32 %v1067_v48, %v663_v40  ;;  %v697_v54 = vmul.f32 0.1, %v681_v51  ;;  %v649_v7 = vpop.f32.mrf.mxu1 }
  0xcb   : > { %v704_v56 = vmul.f32 0.1, %v688_v52  ;;  %v713_v57 = vmax.f32 %v681_v51, %v697_v54 }
  0xcc   : > { %v524_v58 = vpop.f32.mrf.mxu0 }
  0xcd   : > { %v720_v59 = vmax.f32 %v688_v52, %v704_v56  ;;  %v729_v60 = vpack.c.bf16 %v713_v57, %v713_v57  ;;  %v648_v61 = vadd.f32 %v647_v55, %v524_v58 }
  0xce   : > { %v541_v62 = vpop.f32.mrf.mxu2  ;;  %v669_v22 = vpop.f32.mrf.mxu3 }
  0xcf   : > { %v736_v63 = vpack.c.bf16 %v720_v59, %v720_v59  ;;  %746 = vst.msk [vmem:[%s1074_s5 + $0x14] sm:$0xf] %vm740_vm7, %v729_v60  ;;  %v665_v0 = vadd.f32 %v664_v53, %v541_v62  ;;  %v682_v1 = vadd.f32 %v1067_v48, %v648_v61 }
  0xd1   : > { %753 = vst.msk [vmem:[%s1074_s5 + $0x30] sm:$0xf] %vm740_vm7, %v736_v63  ;;  %v689_v2 = vadd.f32 %v1067_v48, %v665_v0  ;;  %v698_v3 = vmul.f32 0.1, %v682_v1 }
  0xd3   : > { %v705_v4 = vmul.f32 0.1, %v689_v2  ;;  %v714_v6 = vmax.f32 %v682_v1, %v698_v3 }
  0xd4   : > { %v526_v8 = vpop.f32.mrf.mxu0 }
  0xd5   : > { %v721_v9 = vmax.f32 %v689_v2, %v705_v4  ;;  %v730_v10 = vpack.c.bf16 %v714_v6, %v714_v6  ;;  %v650_v11 = vadd.f32 %v649_v7, %v526_v8 }
  0xd6   : > { %v544_v12 = vpop.f32.mrf.mxu2 }
  0xd7   : > { %v737_v13 = vpack.c.bf16 %v721_v9, %v721_v9  ;;  %747 = vst.msk [vmem:[%s1074_s5 + $0x18] sm:$0xf] %vm740_vm7, %v730_v10  ;;  %v668_v14 = vadd.f32 %v667_v5, %v544_v12  ;;  %v683_v15 = vadd.f32 %v1067_v48, %v650_v11 }
  0xd9   : > { %754 = vst.msk [vmem:[%s1074_s5 + $0x34] sm:$0xf] %vm740_vm7, %v737_v13  ;;  %v690_v16 = vadd.f32 %v1067_v48, %v668_v14  ;;  %v699_v17 = vmul.f32 0.1, %v683_v15 }
  0xdb   : > { %v706_v18 = vmul.f32 0.1, %v690_v16  ;;  %v715_v19 = vmax.f32 %v683_v15, %v699_v17 }
  0xdd   : > { %v722_v20 = vmax.f32 %v690_v16, %v706_v18  ;;  %v731_v21 = vpack.c.bf16 %v715_v19, %v715_v19 }
  0xde   : > { %v546_v23 = vpop.f32.mrf.mxu2 }
  0xdf   : > { %v738_v24 = vpack.c.bf16 %v722_v20, %v722_v20  ;;  %748 = vst.msk [vmem:[%s1074_s5 + $0x1c] sm:$0xf] %vm740_vm7, %v731_v21  ;;  %v670_v25 = vadd.f32 %v669_v22, %v546_v23 }
  0xe1   : > { %755 = vst.msk [vmem:[%s1074_s5 + $0x38] sm:$0xf] %vm740_vm7, %v738_v24  ;;  %v691_v26 = vadd.f32 %v1067_v48, %v670_v25 }
  0xe3   : > { %v707_v27 = vmul.f32 0.1, %v691_v26 }
  0xe5   : > { %v723_v28 = vmax.f32 %v691_v26, %v707_v27 }
  0xe7   : > { %v739_v29 = vpack.c.bf16 %v723_v28, %v723_v28 }
  0xe9   : > { %756 = vst.msk [vmem:[%s1074_s5 + $0x3c] sm:$0xf] %vm740_vm7, %v739_v29 }
  0xea PF: > { %s13_s12 = sadd.s32 1, %s909_s12  }
  0xeb   : > { %p10_p4 = scmp.ge.s32.totalorder %s13_s12, 4  }
  0xed   :  { %12 = sbr.rel (!%p10_p4) target bundleno = 1 (0x1), region = 62 }

// kernel: discriminator_p_forward.8
= control target key start
LH: loop header
LB: loop body
LE: loop exit
PB: predicated region body
PF: predicated region fallthrough
CT: control target
= control target key end

     0   :  { %s1082_s12 = smov 0   ;;  %s1274_s0 = inlined_call_operand.vmem [shape: bf16[32,9,96], index: 0, kind: input, shape index: {}]   ;;  %s1275_s1 = inlined_call_operand.vmem [shape: bf16[160,128], index: 1, kind: input, shape index: {}]   ;;  %s1276_s2 = inlined_call_operand.vmem [shape: f32[1,128], index: 2, kind: input, shape index: {}]   ;;  %s1277_s3 = inlined_call_operand.vmem [shape: bf16[32,8,128], index: 3, kind: output, shape index: {}]  }
   0x1 LB: > { %s869_s13 = sadd.s32 4294967295, %s1060_s12   ;;  %p873_p0 = scmp.ge.s32.totalorder %s1060_s12, 1  ;;  %s1060_s12 = sphi %s1082_s12, %s13_s12  }
   0x2   : > { %p139_p1 = scmp.lt.s32.totalorder %s1060_s12, 3 }
   0x4   : > { %p140_p2 = pnand %p873_p0, %p139_p1 }
   0x5   : > { %s874_s18 = sshll.u32 (!%p140_p2), %s869_s13, 4 }
   0x6   : > { %143 = sbr.rel (%p140_p2) target bundleno = 238 (0xee), region = 32  ;;  %p165_p3 = scmp.lt.s32.totalorder (!%p140_p2), %s874_s18, 31 }
   0xb   : > { %v983_v0 = vld [vmem:[%s1275_s1 + $0x28] sm:$0xff]  ;;  %v982_v2 = vld [vmem:[%s1275_s1 + $0x20] sm:$0xff]  ;;  %s1281_s18 = smov (!%p165_p3, %s874_s18), 31  ;;  %v981_v4 = vld [vmem:[%s1275_s1 + $0x18] sm:$0xff]  ;;  %vm222_vm0 = vsmask.f32 3328 }
   0xc   : > { %v987_v1 = vld [vmem:[%s1275_s1 + $0x48] sm:$0xff]  ;;  %682 = vmatpush.bf16.msra.mxu1 %v983_v0  ;;  %1039 = vmatpush.bf16.msra.mxu2 %v983_v0  ;;  %v986_v3 = vld [vmem:[%s1275_s1 + $0x40] sm:$0xff]  ;;  %s969_s23 = sshll.u32 %s1281_s18, 3  ;;  %v985_v5 = vld [vmem:[%s1275_s1 + $0x38] sm:$0xff]  ;;  %vm223_vm1 = vsmask.f32 7440 }
   0xd   : > { %534 = vmatpush.bf16.msra.mxu0 %v987_v1  ;;  %1035 = vmatpush.bf16.msra.mxu3 %v987_v1  ;;  %s1114_s30 = scalar_lea.vmem %s1274_s0, %s969_s23  ;;  %v980_v16 = vld [vmem:[%s1275_s1 + $0x10] sm:$0xff]  ;;  %vm505_vm2 = vcmask 523264   ;;  %v979_v27 = vld [vmem:[%s1275_s1 + $0x8] sm:$0xff]  ;;  %vm1134_vm3 = vmor %vm222_vm0, %vm223_vm1  ;;  %vm655_vm4 = vcmask 785408   ;;  %s878_s15 = sshll.u32 %s1281_s18, 2 }
   0xe   : > { %v178_v6 = vld [vmem:[%s1114_s30] sm:$0xf]  ;;  %v179_v7 = vld [vmem:[%s1114_s30 + $0x8] sm:$0xf]  ;;  %v206_v8 = vld [vmem:[%s1114_s30 + $0x4] sm:$0x1]  ;;  %s1245_s19 = scalar_lea.vmem %s1277_s3, %s878_s15 }
   0xf   : > { %v207_v9 = vld [vmem:[%s1114_s30 + $0xc] sm:$0x1]  ;;  %v226_v10 = vshrl.u32 %v178_v6, 16  ;;  %v229_v11 = vshll.u32 %v178_v6, 16  ;;  %v235_v12 = vshll.u32 %v206_v8, 16  ;;  %v240_v13 = vshrl.u32 %v179_v7, 16 }
  0x10   : > { %683 = vmatpush.bf16.msra.mxu1 %v982_v2  ;;  %1040 = vmatpush.bf16.msra.mxu2 %v982_v2  ;;  %v243_v14 = vshll.u32 %v179_v7, 16  ;;  %v249_v15 = vshll.u32 %v207_v9, 16  ;;  %v984_v20 = vld [vmem:[%s1275_s1 + $0x30] sm:$0xff]  ;;  %v181_v25 = vld [vmem:[%s1114_s30 + $0x18] sm:$0xf]  ;;  %v978_v57 = vld [vmem:[%s1275_s1] sm:$0xff] }
  0x11   : > { %535 = vmatpush.bf16.msra.mxu0 %v986_v3  ;;  %1036 = vmatpush.bf16.msra.mxu3 %v986_v3  ;;  %v228_v17 = vrot.slane %v226_v10, 4  ;;  %v231_v18 = vrot.slane %v229_v11, 5  ;;  %v242_v19 = vrot.slane %v240_v13, 4  ;;  %v180_v22 = vld [vmem:[%s1114_s30 + $0x10] sm:$0xf]  ;;  %v237_v24 = vrot.slane %v235_v12, 5 }
  0x12   : > { %v245_v21 = vrot.slane %v243_v14, 5  ;;  %v208_v26 = vld [vmem:[%s1114_s30 + $0x14] sm:$0x1]  ;;  %v251_v30 = vrot.slane %v249_v15, 5  ;;  %v209_v31 = vld [vmem:[%s1114_s30 + $0x1c] sm:$0x1] }
  0x13   : > { %v232_v23 = vor.u32 %v231_v18, %v228_v17  ;;  %v254_v32 = vshrl.u32 %v180_v22, 16  ;;  %v257_v33 = vshll.u32 %v180_v22, 16  ;;  %v905_v35 = vld [vmem:[%s1114_s30] sm:$0xf]  ;;  %v970_v36 = vld [vmem:[%s1114_s30 + $0x4] sm:$0xf0] }
  0x14   : > { %684 = vmatpush.bf16.msra.mxu1 %v981_v4  ;;  %1041 = vmatpush.bf16.msra.mxu2 %v981_v4  ;;  %v246_v29 = vor.u32 %v245_v21, %v242_v19  ;;  %v268_v37 = vshrl.u32 %v181_v25, 16  ;;  %v271_v38 = vshll.u32 %v181_v25, 16  ;;  %v188_v39 = vld [vmem:[%s1114_s30 + $0x50] sm:$0xf]  ;;  %v263_v43 = vshll.u32 %v208_v26, 16 }
  0x15   : > { %536 = vmatpush.bf16.msra.mxu0 %v985_v5  ;;  %1037 = vmatpush.bf16.msra.mxu3 %v985_v5  ;;  %v233_v34 = vrot.slane %v232_v23, 4  ;;  %v256_v41 = vrot.slane %v254_v32, 4  ;;  %v259_v42 = vrot.slane %v257_v33, 5  ;;  %v216_v44 = vld [vmem:[%s1114_s30 + $0x54] sm:$0x1]  ;;  %v277_v48 = vshll.u32 %v209_v31, 16 }
  0x16   : > { %v247_v40 = vrot.slane %v246_v29, 4  ;;  %v270_v46 = vrot.slane %v268_v37, 4  ;;  %v273_v47 = vrot.slane %v271_v38, 5  ;;  %v189_v49 = vld [vmem:[%s1114_s30 + $0x58] sm:$0xf]  ;;  %v366_v55 = vshrl.u32 %v188_v39, 16 }
  0x17   : > { %v238_v45 = vsel %vm1134_vm3, %v233_v34, %v237_v24  ;;  %v921_v52 = vld [vmem:[%s1114_s30 + $0x40] sm:$0xf]  ;;  %v974_v53 = vld [vmem:[%s1114_s30 + $0x44] sm:$0xf0]  ;;  %v260_v54 = vor.u32 %v259_v42, %v256_v41  ;;  %v217_v59 = vld [vmem:[%s1114_s30 + $0x5c] sm:$0x1]  ;;  %v906_v62 = vor.u32 %v970_v36, %v905_v35 }
  0x18   : > { %685 = vmatpush.bf16.msra.mxu1 %v980_v16  ;;  %1042 = vmatpush.bf16.msra.mxu2 %v980_v16  ;;  %v252_v50 = vsel %vm1134_vm3, %v247_v40, %v251_v30  ;;  %v457_v51 = vunpack.c.l.b16 %v238_v45  ;;  %v274_v58 = vor.u32 %v273_v47, %v270_v46  ;;  %v369_v60 = vshll.u32 %v188_v39, 16  ;;  %v182_v10 = vld [vmem:[%s1114_s30 + $0x20] sm:$0xf]  ;;  %v183_v15 = vld [vmem:[%s1114_s30 + $0x28] sm:$0xf] }
  0x19   : > { %537 = vmatpush.bf16.msra.mxu0 %v984_v20  ;;  %1038 = vmatpush.bf16.msra.mxu3 %v984_v20  ;;  %v458_v56 = vunpack.c.l.b16 %v252_v50  ;;  %v375_v61 = vshll.u32 %v216_v44, 16  ;;  %v368_v63 = vrot.slane %v366_v55, 4  ;;  %v380_v0 = vshrl.u32 %v189_v49, 16  ;;  %v190_v25 = vld [vmem:[%s1114_s30 + $0x60] sm:$0xf] }
  0x1a   : > { %v383_v1 = vshll.u32 %v189_v49, 16  ;;  %v922_v3 = vor.u32 %v974_v53, %v921_v52  ;;  %v265_v4 = vrot.slane %v263_v43, 5  ;;  %v371_v5 = vrot.slane %v369_v60, 5  ;;  %v191_v31 = vld [vmem:[%s1114_s30 + $0x68] sm:$0xf] }
  0x1b   : > { %v473_v2 = vpack.c.b16 %v458_v56, %v457_v51  ;;  %v261_v6 = vrot.slane %v260_v54, 4  ;;  %v382_v7 = vrot.slane %v380_v0, 4  ;;  %v389_v9 = vshll.u32 %v217_v59, 16  ;;  %v218_v32 = vld [vmem:[%s1114_s30 + $0x64] sm:$0x1] }
  0x1c   : > { %686 = vmatpush.bf16.msra.mxu1 %v979_v27  ;;  %1043 = vmatpush.bf16.msra.mxu2 %v979_v27  ;;  %v385_v8 = vrot.slane %v383_v1, 5  ;;  %v275_v11 = vrot.slane %v274_v58, 4  ;;  %v279_v12 = vrot.slane %v277_v48, 5  ;;  %v372_v13 = vor.u32 %v371_v5, %v368_v63  ;;  %v210_v35 = vld [vmem:[%s1114_s30 + $0x24] sm:$0x1] }
  0x1d   : > { %895 = vmatmul.msk.bf16.vlgmr.msra.gmra.mxu0 %vm505_vm2, %v473_v2  ;;  %v377_v14 = vrot.slane %v375_v61, 5  ;;  %v391_v17 = vrot.slane %v389_v9, 5  ;;  %v282_v19 = vshrl.u32 %v182_v10, 16  ;;  %v285_v20 = vshll.u32 %v182_v10, 16  ;;  %v211_v40 = vld [vmem:[%s1114_s30 + $0x2c] sm:$0x1] }
  0x1e   : > { %v386_v16 = vor.u32 %v385_v8, %v382_v7  ;;  %v373_v18 = vrot.slane %v372_v13, 4  ;;  %v266_v21 = vsel %vm1134_vm3, %v261_v6, %v265_v4  ;;  %v296_v23 = vshrl.u32 %v183_v15, 16  ;;  %v219_v43 = vld [vmem:[%s1114_s30 + $0x6c] sm:$0x1]  ;;  %v971_v58 = vld [vmem:[%s1114_s30 + $0x14] sm:$0xf0] }
  0x1f   : > { %v299_v24 = vshll.u32 %v183_v15, 16  ;;  %v280_v26 = vsel %vm1134_vm3, %v275_v11, %v279_v12  ;;  %v284_v29 = vrot.slane %v282_v19, 4  ;;  %v287_v30 = vrot.slane %v285_v20, 5  ;;  %v975_v2 = vld [vmem:[%s1114_s30 + $0x54] sm:$0xf0] }
  0x20   : > { %687 = vmatpush.bf16.msra.mxu1 %v978_v57  ;;  %1044 = vmatpush.bf16.msra.mxu2 %v978_v57  ;;  %v387_v22 = vrot.slane %v386_v16, 4  ;;  %v378_v27 = vsel %vm1134_vm3, %v373_v18, %v377_v14  ;;  %v298_v36 = vrot.slane %v296_v23, 4  ;;  %v459_v38 = vunpack.c.l.b16 %v266_v21  ;;  %v909_v57 = vld [vmem:[%s1114_s30 + $0x10] sm:$0xf]  ;;  %v193_v12 = vld [vmem:[%s1114_s30 + $0x78] sm:$0xf] }
  0x21   : > { %v467_v34 = vunpack.c.l.b16 %v378_v27  ;;  %v301_v37 = vrot.slane %v299_v24, 5  ;;  %v394_v41 = vshrl.u32 %v190_v25, 16  ;;  %v460_v42 = vunpack.c.l.b16 %v280_v26  ;;  %v184_v8 = vld [vmem:[%s1114_s30 + $0x30] sm:$0xf]  ;;  %v185_v16 = vld [vmem:[%s1114_s30 + $0x38] sm:$0xf] }
  0x22   : > { %v392_v33 = vsel %vm1134_vm3, %v387_v22, %v391_v17  ;;  %v397_v44 = vshll.u32 %v190_v25, 16  ;;  %v403_v45 = vshll.u32 %v218_v32, 16  ;;  %v408_v46 = vshrl.u32 %v191_v31, 16  ;;  %v192_v9 = vld [vmem:[%s1114_s30 + $0x70] sm:$0xf] }
  0x23   : > { %959 = vmatmul.msk.bf16.vlgmr.msra.gmra.mxu1 %vm655_vm4, %v906_v62  ;;  %963 = vmatmul.msk.bf16.vlgmr.msra.gmra.mxu2 %vm655_vm4, %v922_v3  ;;  %v468_v39 = vunpack.c.l.b16 %v392_v33  ;;  %v288_v48 = vor.u32 %v287_v30, %v284_v29  ;;  %v291_v49 = vshll.u32 %v210_v35, 16  ;;  %v396_v50 = vrot.slane %v394_v41, 4  ;;  %v925_v62 = vld [vmem:[%s1114_s30 + $0x50] sm:$0xf]  ;;  %v220_v24 = vld [vmem:[%s1114_s30 + $0x74] sm:$0x1] }
  0x24   : > { %v302_v51 = vor.u32 %v301_v37, %v298_v36  ;;  %v305_v52 = vshll.u32 %v211_v40, 16  ;;  %v399_v53 = vrot.slane %v397_v44, 5  ;;  %v410_v54 = vrot.slane %v408_v46, 4  ;;  %v221_v29 = vld [vmem:[%s1114_s30 + $0x7c] sm:$0x1] }
  0x25   : > { %v478_v47 = vpack.c.b16 %v468_v39, %v467_v34  ;;  %v411_v55 = vshll.u32 %v191_v31, 16  ;;  %v417_v56 = vshll.u32 %v219_v43, 16  ;;  %v405_v60 = vrot.slane %v403_v45, 5  ;;  %v212_v32 = vld [vmem:[%s1114_s30 + $0x34] sm:$0x1] }
  0x26   : > { %v400_v59 = vor.u32 %v399_v53, %v396_v50  ;;  %v474_v61 = vpack.c.b16 %v460_v42, %v459_v38  ;;  %v289_v63 = vrot.slane %v288_v48, 4  ;;  %v293_v0 = vrot.slane %v291_v49, 5  ;;  %v186_v39 = vld [vmem:[%s1114_s30 + $0x40] sm:$0xf]  ;;  %v214_v40 = vld [vmem:[%s1114_s30 + $0x44] sm:$0x1] }
  0x27   : > { %900 = vmatmul.msk.bf16.vlgmr.msra.gmra.mxu3 %vm505_vm2, %v478_v47  ;;  %v413_v1 = vrot.slane %v411_v55, 5  ;;  %v303_v3 = vrot.slane %v302_v51, 4  ;;  %v307_v4 = vrot.slane %v305_v52, 5  ;;  %v419_v7 = vrot.slane %v417_v56, 5  ;;  %v187_v45 = vld [vmem:[%s1114_s30 + $0x48] sm:$0xf] }
  0x28   : > { %v401_v5 = vrot.slane %v400_v59, 4  ;;  %v910_v10 = vor.u32 %v971_v58, %v909_v57  ;;  %v926_v13 = vor.u32 %v975_v2, %v925_v62  ;;  %v294_v14 = vsel %vm1134_vm3, %v289_v63, %v293_v0  ;;  %v215_v51 = vld [vmem:[%s1114_s30 + $0x4c] sm:$0x1]  ;;  %v213_v55 = vld [vmem:[%s1114_s30 + $0x3c] sm:$0x1] }
  0x29   : > { %v414_v6 = vor.u32 %v413_v1, %v410_v54  ;;  %v308_v17 = vsel %vm1134_vm3, %v303_v3, %v307_v4  ;;  %v310_v18 = vshrl.u32 %v184_v8, 16  ;;  %v422_v19 = vshrl.u32 %v192_v9, 16 }
  0x2a   : > { %v406_v11 = vsel %vm1134_vm3, %v401_v5, %v405_v60  ;;  %v425_v20 = vshll.u32 %v192_v9, 16  ;;  %v313_v23 = vshll.u32 %v184_v8, 16  ;;  %v436_v25 = vshrl.u32 %v193_v12, 16  ;;  %v913_v5 = vld [vmem:[%s1114_s30 + $0x20] sm:$0xf] }
  0x2b   : > { %v415_v15 = vrot.slane %v414_v6, 4  ;;  %v469_v22 = vunpack.c.l.b16 %v406_v11  ;;  %v324_v27 = vshrl.u32 %v185_v16, 16  ;;  %v424_v30 = vrot.slane %v422_v19, 4  ;;  %v972_v6 = vld [vmem:[%s1114_s30 + $0x24] sm:$0xf0] }
  0x2c   : > { %v427_v31 = vrot.slane %v425_v20, 5  ;;  %v438_v33 = vrot.slane %v436_v25, 4  ;;  %v439_v34 = vshll.u32 %v193_v12, 16  ;;  %v461_v35 = vunpack.c.l.b16 %v294_v14  ;;  %v976_v11 = vld [vmem:[%s1114_s30 + $0x64] sm:$0xf0] }
  0x2d   : > { %896 = vmatmul.msk.bf16.gmra.mxu0 %vm505_vm2, %v474_v61  ;;  %v420_v21 = vsel %vm1134_vm3, %v415_v15, %v419_v7  ;;  %v462_v36 = vunpack.c.l.b16 %v308_v17  ;;  %v327_v37 = vshll.u32 %v185_v16, 16  ;;  %v431_v38 = vshll.u32 %v220_v24, 16 }
  0x2e   : > { %v470_v26 = vunpack.c.l.b16 %v420_v21  ;;  %v428_v42 = vor.u32 %v427_v31, %v424_v30  ;;  %v441_v43 = vrot.slane %v439_v34, 5  ;;  %v445_v44 = vshll.u32 %v221_v29, 16 }
  0x2f   : > { %v312_v46 = vrot.slane %v310_v18, 4  ;;  %v315_v47 = vrot.slane %v313_v23, 5  ;;  %v319_v48 = vshll.u32 %v212_v32, 16  ;;  %v326_v49 = vrot.slane %v324_v27, 4 }
  0x30   : > { %v479_v41 = vpack.c.b16 %v470_v26, %v469_v22  ;;  %v442_v50 = vor.u32 %v441_v43, %v438_v33  ;;  %v338_v52 = vshrl.u32 %v186_v39, 16  ;;  %v341_v53 = vshll.u32 %v186_v39, 16  ;;  %v977_v43 = vld [vmem:[%s1114_s30 + $0x74] sm:$0xf0] }
  0x31   : > { %v347_v54 = vshll.u32 %v214_v40, 16  ;;  %v329_v56 = vrot.slane %v327_v37, 5  ;;  %v433_v57 = vrot.slane %v431_v38, 5  ;;  %v352_v58 = vshrl.u32 %v187_v45, 16  ;;  %v917_v40 = vld [vmem:[%s1114_s30 + $0x30] sm:$0xf] }
  0x32   : > { %v355_v59 = vshll.u32 %v187_v45, 16  ;;  %v429_v60 = vrot.slane %v428_v42, 4  ;;  %v447_v61 = vrot.slane %v445_v44, 5  ;;  %v340_v62 = vrot.slane %v338_v52, 4  ;;  %v933_v42 = vld [vmem:[%s1114_s30 + $0x70] sm:$0xf] }
  0x33   : > { %960 = vmatmul.msk.bf16.gmra.mxu1 %vm655_vm4, %v910_v10  ;;  %964 = vmatmul.msk.bf16.gmra.mxu2 %vm655_vm4, %v926_v13  ;;  %v343_v63 = vrot.slane %v341_v53, 5  ;;  %v443_v0 = vrot.slane %v442_v50, 4  ;;  %v354_v1 = vrot.slane %v352_v58, 4  ;;  %v361_v3 = vshll.u32 %v215_v51, 16  ;;  %v929_v10 = vld [vmem:[%s1114_s30 + $0x60] sm:$0xf] }
  0x34   : > { %v357_v2 = vrot.slane %v355_v59, 5  ;;  %v475_v4 = vpack.c.b16 %v462_v36, %v461_v35  ;;  %v333_v7 = vshll.u32 %v213_v55, 16  ;;  %v349_v9 = vrot.slane %v347_v54, 5 }
  0x35   : > { %v344_v8 = vor.u32 %v343_v63, %v340_v62  ;;  %v316_v12 = vor.u32 %v315_v47, %v312_v46  ;;  %v330_v13 = vor.u32 %v329_v56, %v326_v49  ;;  %v363_v15 = vrot.slane %v361_v3, 5 }
  0x36   : > { %v358_v14 = vor.u32 %v357_v2, %v354_v1  ;;  %v914_v17 = vor.u32 %v972_v6, %v913_v5  ;;  %v434_v18 = vsel %vm1134_vm3, %v429_v60, %v433_v57  ;;  %v448_v19 = vsel %vm1134_vm3, %v443_v0, %v447_v61 }
  0x37   : > { %901 = vmatmul.msk.bf16.gmra.mxu3 %vm505_vm2, %v479_v41  ;;  %v345_v16 = vrot.slane %v344_v8, 4  ;;  %v930_v21 = vor.u32 %v976_v11, %v929_v10  ;;  %v321_v22 = vrot.slane %v319_v48, 5  ;;  %v335_v23 = vrot.slane %v333_v7, 5  ;;  %v973_v41 = vld [vmem:[%s1114_s30 + $0x34] sm:$0xf0] }
  0x38   : > { %v359_v20 = vrot.slane %v358_v14, 4  ;;  %v317_v25 = vrot.slane %v316_v12, 4  ;;  %v331_v26 = vrot.slane %v330_v13, 4  ;;  %v471_v30 = vunpack.c.l.b16 %v434_v18  ;;  %v1233_v48 = vld [vmem:[%s1276_s2] ss:$0 sm:$0xff] }
  0x39   : > { %v350_v24 = vsel %vm1134_vm3, %v345_v16, %v349_v9  ;;  %v472_v31 = vunpack.c.l.b16 %v448_v19  ;;  %v918_v44 = vor.u32 %v973_v41, %v917_v40  ;;  %v934_v45 = vor.u32 %v977_v43, %v933_v42 }
  0x3a   : > { %v364_v27 = vsel %vm1134_vm3, %v359_v20, %v363_v15  ;;  %v465_v29 = vunpack.c.l.b16 %v350_v24  ;;  %v322_v34 = vsel %vm1134_vm3, %v317_v25, %v321_v22  ;;  %v336_v35 = vsel %vm1134_vm3, %v331_v26, %v335_v23 }
  0x3b   : > { %v466_v32 = vunpack.c.l.b16 %v364_v27  ;;  %v480_v36 = vpack.c.b16 %v472_v31, %v471_v30  ;;  %v463_v37 = vunpack.c.l.b16 %v322_v34  ;;  %v464_v38 = vunpack.c.l.b16 %v336_v35 }
  0x3d   : > { %897 = vmatmul.msk.bf16.gmra.mxu0 %vm505_vm2, %v475_v4  ;;  %v477_v33 = vpack.c.b16 %v466_v32, %v465_v29  ;;  %v476_v39 = vpack.c.b16 %v464_v38, %v463_v37 }
  0x43   : > { %961 = vmatmul.msk.bf16.gmra.mxu1 %vm655_vm4, %v914_v17  ;;  %965 = vmatmul.msk.bf16.gmra.mxu2 %vm655_vm4, %v930_v21 }
  0x47   : > { %902 = vmatmul.msk.bf16.gmra.mxu3 %vm505_vm2, %v480_v36 }
  0x4d   : > { %898 = vmatmul.msk.bf16.gmra.mxu0 %vm505_vm2, %v476_v39 }
  0x53   : > { %962 = vmatmul.msk.bf16.gmra.mxu1 %vm655_vm4, %v918_v44  ;;  %966 = vmatmul.msk.bf16.gmra.mxu2 %vm655_vm4, %v934_v45 }
  0x5d   : > { %899 = vmatmul.msk.bf16.gmra.mxu0 %vm505_vm2, %v477_v33 }
  0x9a   : > { %v539_v28 = vpop.f32.mrf.mxu0 }
  0xa0   : > { %v689_v46 = vpop.f32.mrf.mxu1 }
  0xa1   : > { %v690_v47 = vadd.f32 %v689_v46, %v539_v28 }
  0xa2   : > { %v541_v49 = vpop.f32.mrf.mxu0 }
  0xa3   : > { %v733_v50 = vadd.f32 %v1233_v48, %v690_v47 }
  0xa5   : > { %v749_v54 = vmul.f32 0.1, %v733_v50 }
  0xa6   : > { %v1236_v51 = vpop.f32.mrf.mxu2 }
  0xa7   : > { %v765_v59 = vmax.f32 %v733_v50, %v749_v54 }
  0xa8   : > { %v691_v52 = vpop.f32.mrf.mxu1 }
  0xa9   : > { %v692_v53 = vadd.f32 %v691_v52, %v541_v49 }
  0xaa   : > { %v544_v57 = vpop.f32.mrf.mxu0  ;;  %v564_v58 = vpop.f32.mrf.mxu3 }
  0xab   : > { %v734_v55 = vadd.f32 %v1233_v48, %v692_v53 }
  0xad   : > { %v750_v56 = vmul.f32 0.1, %v734_v55 }
  0xae   : > { %v1240_v61 = vpop.f32.mrf.mxu2 }
  0xaf   : > { %v766_v60 = vmax.f32 %v734_v55, %v750_v56 }
  0xb0   : > { %v694_v62 = vpop.f32.mrf.mxu1 }
  0xb1   : > { %v991_v63 = vpack.c.bf16 %v766_v60, %v765_v59  ;;  %v695_v0 = vadd.f32 %v694_v62, %v544_v57 }
  0xb2   : > { %v546_v1 = vpop.f32.mrf.mxu0  ;;  %v566_v4 = vpop.f32.mrf.mxu3 }
  0xb3   : > { %992 = vst [vmem:[%s1245_s19] sm:$0xff] %v991_v63   ;;  %v735_v2 = vadd.f32 %v1233_v48, %v695_v0 }
  0xb5   : > { %v751_v8 = vmul.f32 0.1, %v735_v2 }
  0xb6   : > { %v714_v3 = vpop.f32.mrf.mxu2 }
  0xb7   : > { %v715_v7 = vadd.f32 %v714_v3, %v564_v58  ;;  %v767_v13 = vmax.f32 %v735_v2, %v751_v8 }
  0xb8   : > { %v696_v5 = vpop.f32.mrf.mxu1 }
  0xb9   : > { %v697_v6 = vadd.f32 %v696_v5, %v546_v1  ;;  %v743_v12 = vadd.f32 %v1233_v48, %v715_v7 }
  0xba   : > { %v549_v11 = vpop.f32.mrf.mxu0  ;;  %v569_v19 = vpop.f32.mrf.mxu3 }
  0xbb   : > { %v736_v9 = vadd.f32 %v1233_v48, %v697_v6  ;;  %v759_v20 = vmul.f32 0.1, %v743_v12 }
  0xbd   : > { %v752_v10 = vmul.f32 0.1, %v736_v9  ;;  %v775_v25 = vmax.f32 %v743_v12, %v759_v20 }
  0xbe   : > { %v716_v15 = vpop.f32.mrf.mxu2 }
  0xbf   : > { %v768_v14 = vmax.f32 %v736_v9, %v752_v10  ;;  %v717_v16 = vadd.f32 %v716_v15, %v566_v4 }
  0xc0   : > { %v699_v17 = vpop.f32.mrf.mxu1 }
  0xc1   : > { %v996_v18 = vpack.c.bf16 %v768_v14, %v767_v13  ;;  %v744_v21 = vadd.f32 %v1233_v48, %v717_v16  ;;  %v700_v22 = vadd.f32 %v699_v17, %v549_v11 }
  0xc2   : > { %v551_v24 = vpop.f32.mrf.mxu0  ;;  %v571_v36 = vpop.f32.mrf.mxu3 }
  0xc3   : > { %1028 = vst [vmem:[%s1245_s19 + $0x8] sm:$0xff] %v996_v18   ;;  %v760_v23 = vmul.f32 0.1, %v744_v21  ;;  %v737_v27 = vadd.f32 %v1233_v48, %v700_v22 }
  0xc5   : > { %v776_v26 = vmax.f32 %v744_v21, %v760_v23  ;;  %v753_v34 = vmul.f32 0.1, %v737_v27 }
  0xc6   : > { %v719_v29 = vpop.f32.mrf.mxu2 }
  0xc7   : > { %v1016_v30 = vpack.c.bf16 %v776_v26, %v775_v25  ;;  %v720_v33 = vadd.f32 %v719_v29, %v569_v19  ;;  %v769_v40 = vmax.f32 %v737_v27, %v753_v34 }
  0xc8   : > { %v701_v31 = vpop.f32.mrf.mxu1 }
  0xc9   : > { %v702_v32 = vadd.f32 %v701_v31, %v551_v24  ;;  %1032 = vst [vmem:[%s1245_s19 + $0x28] sm:$0xff] %v1016_v30   ;;  %v745_v39 = vadd.f32 %v1233_v48, %v720_v33 }
  0xca   : > { %v554_v38 = vpop.f32.mrf.mxu0  ;;  %v574_v52 = vpop.f32.mrf.mxu3 }
  0xcb   : > { %v738_v35 = vadd.f32 %v1233_v48, %v702_v32  ;;  %v761_v28 = vmul.f32 0.1, %v745_v39 }
  0xcd   : > { %v754_v37 = vmul.f32 0.1, %v738_v35  ;;  %v777_v53 = vmax.f32 %v745_v39, %v761_v28 }
  0xce   : > { %v721_v42 = vpop.f32.mrf.mxu2 }
  0xcf   : > { %v770_v41 = vmax.f32 %v738_v35, %v754_v37  ;;  %v722_v43 = vadd.f32 %v721_v42, %v571_v36 }
  0xd0   : > { %v704_v44 = vpop.f32.mrf.mxu1 }
  0xd1   : > { %v1001_v45 = vpack.c.bf16 %v770_v41, %v769_v40  ;;  %v746_v46 = vadd.f32 %v1233_v48, %v722_v43  ;;  %v705_v47 = vadd.f32 %v704_v44, %v554_v38 }
  0xd2   : > { %v556_v50 = vpop.f32.mrf.mxu0  ;;  %v576_v5 = vpop.f32.mrf.mxu3 }
  0xd3   : > { %1029 = vst [vmem:[%s1245_s19 + $0x10] sm:$0xff] %v1001_v45   ;;  %v762_v49 = vmul.f32 0.1, %v746_v46  ;;  %v739_v55 = vadd.f32 %v1233_v48, %v705_v47 }
  0xd5   : > { %v778_v54 = vmax.f32 %v746_v46, %v762_v49  ;;  %v755_v62 = vmul.f32 0.1, %v739_v55 }
  0xd6   : > { %v724_v56 = vpop.f32.mrf.mxu2 }
  0xd7   : > { %v1021_v57 = vpack.c.bf16 %v778_v54, %v777_v53  ;;  %v725_v60 = vadd.f32 %v724_v56, %v574_v52  ;;  %v771_v3 = vmax.f32 %v739_v55, %v755_v62 }
  0xd8   : > { %v706_v58 = vpop.f32.mrf.mxu1 }
  0xd9   : > { %v707_v59 = vadd.f32 %v706_v58, %v556_v50  ;;  %1033 = vst [vmem:[%s1245_s19 + $0x30] sm:$0xff] %v1021_v57   ;;  %v747_v2 = vadd.f32 %v1233_v48, %v725_v60 }
  0xda   : > { %v559_v1 = vpop.f32.mrf.mxu0 }
  0xdb   : > { %v740_v63 = vadd.f32 %v1233_v48, %v707_v59  ;;  %v710_v7 = vadd.f32 %v1236_v51, %v559_v1  ;;  %v763_v10 = vmul.f32 0.1, %v747_v2 }
  0xdd   : > { %v756_v0 = vmul.f32 0.1, %v740_v63  ;;  %v741_v12 = vadd.f32 %v1233_v48, %v710_v7  ;;  %v779_v15 = vmax.f32 %v747_v2, %v763_v10 }
  0xde   : > { %v726_v6 = vpop.f32.mrf.mxu2 }
  0xdf   : > { %v772_v4 = vmax.f32 %v740_v63, %v756_v0  ;;  %v727_v8 = vadd.f32 %v726_v6, %v576_v5  ;;  %v757_v18 = vmul.f32 0.1, %v741_v12 }
  0xe1   : > { %v1006_v9 = vpack.c.bf16 %v772_v4, %v771_v3  ;;  %v748_v11 = vadd.f32 %v1233_v48, %v727_v8  ;;  %v773_v21 = vmax.f32 %v741_v12, %v757_v18 }
  0xe2   : > { %v561_v14 = vpop.f32.mrf.mxu0 }
  0xe3   : > { %1030 = vst [vmem:[%s1245_s19 + $0x18] sm:$0xff] %v1006_v9   ;;  %v764_v13 = vmul.f32 0.1, %v748_v11  ;;  %v712_v17 = vadd.f32 %v1240_v61, %v561_v14 }
  0xe5   : > { %v780_v16 = vmax.f32 %v748_v11, %v764_v13  ;;  %v742_v20 = vadd.f32 %v1233_v48, %v712_v17 }
  0xe7   : > { %v1026_v19 = vpack.c.bf16 %v780_v16, %v779_v15  ;;  %v758_v51 = vmul.f32 0.1, %v742_v20 }
  0xe9   : > { %1034 = vst [vmem:[%s1245_s19 + $0x38] sm:$0xff] %v1026_v19   ;;  %v774_v22 = vmax.f32 %v742_v20, %v758_v51 }
  0xeb   : > { %v1011_v23 = vpack.c.bf16 %v774_v22, %v773_v21 }
  0xed   : > { %1031 = vst [vmem:[%s1245_s19 + $0x20] sm:$0xff] %v1011_v23  }
  0xee PF: > { %s13_s12 = sadd.s32 1, %s1060_s12  }
  0xef   : > { %p10_p4 = scmp.ge.s32.totalorder %s13_s12, 4  }
  0xf1   :  { %12 = sbr.rel (!%p10_p4) target bundleno = 1 (0x1), region = 62 }

// kernel: discriminator_p_forward.9
= control target key start
LH: loop header
LB: loop body
LE: loop exit
PB: predicated region body
PF: predicated region fallthrough
CT: control target
= control target key end

     0   :  { %s1789_s12 = smov 0   ;;  %s2176_s0 = inlined_call_operand.vmem [shape: bf16[32,9,384], index: 0, kind: input, shape index: {}]   ;;  %s2177_s1 = inlined_call_operand.vmem [shape: bf16[640,128], index: 1, kind: input, shape index: {}]   ;;  %s2178_s2 = inlined_call_operand.vmem [shape: f32[1,128], index: 2, kind: input, shape index: {}]   ;;  %s2179_s3 = inlined_call_operand.vmem [shape: bf16[32,8,128], index: 3, kind: output, shape index: {}]  }
   0x1 LB: > { %s1349_s13 = sadd.s32 4294967295, %s1767_s12   ;;  %p1353_p0 = scmp.ge.s32.totalorder %s1767_s12, 1  ;;  %s1767_s12 = sphi %s1789_s12, %s13_s12  }
   0x2   : > { %p139_p1 = scmp.lt.s32.totalorder %s1767_s12, 3 }
   0x4   : > { %p140_p2 = pnand %p1353_p0, %p139_p1 }
   0x5   : > { %s1354_s16 = sshll.u32 (!%p140_p2), %s1349_s13, 4 }
   0x6   : > { %143 = sbr.rel (%p140_p2) target bundleno = 344 (0x158), region = 32  ;;  %p165_p3 = scmp.lt.s32.totalorder (!%p140_p2), %s1354_s16, 31 }
   0xb   : > { %v1671_v0 = vld [vmem:[%s2177_s1 + $0xf8] sm:$0xff]  ;;  %v1670_v1 = vld [vmem:[%s2177_s1 + $0xf0] sm:$0xff]  ;;  %s2183_s16 = smov (!%p165_p3, %s1354_s16), 31  ;;  %v1669_v2 = vld [vmem:[%s2177_s1 + $0xe8] sm:$0xff]  ;;  %vm273_vm0 = vsmask.f32 3328 }
   0xc   : > { %1727 = vmatpush.bf16.msra.mxu1 %v1671_v0  ;;  %1728 = vmatpush.bf16.msra.mxu2 %v1671_v0  ;;  %s1751_s19 = smul.u32 24, %s2183_s16  ;;  %v1668_v3 = vld [vmem:[%s2177_s1 + $0xe0] sm:$0xff]  ;;  %vm274_vm1 = vsmask.f32 7440  ;;  %v1667_v31 = vld [vmem:[%s2177_s1 + $0xd8] sm:$0xff]  ;;  %v1666_v52 = vld [vmem:[%s2177_s1 + $0xd0] sm:$0xff] }
   0xd   : > { %1729 = vmatpush.bf16.msra.mxu3 %v1671_v0  ;;  %692 = vmatpush.bf16.msra.mxu0 %v1671_v0  ;;  %vm1831_vm2 = vmor %vm273_vm0, %vm274_vm1  ;;  %v1640_v32 = vld [vmem:[%s2177_s1] sm:$0xff]  ;;  %s1357_s28 = sshll.u32 %s2183_s16, 2 }
   0xe   : > { %s1812_s24 = scalar_lea.vmem %s2176_s0, %s1751_s19  ;;  %s2137_s4 = scalar_lea.vmem %s2179_s3, %s1357_s28 }
   0xf   : > { %v185_v4 = vld [vmem:[%s1812_s24 + $0x60] sm:$0xff]  ;;  %v187_v5 = vld [vmem:[%s1812_s24 + $0x78] sm:$0xff]  ;;  %v261_v6 = vld [vmem:[%s1812_s24 + $0x6c] sm:$0x11] }
  0x10   : > { %1730 = vmatpush.bf16.msra.mxu1 %v1670_v1  ;;  %1731 = vmatpush.bf16.msra.mxu2 %v1670_v1  ;;  %v262_v7 = vld [vmem:[%s1812_s24 + $0x84] sm:$0x11]  ;;  %v333_v8 = vshrl.u32 %v185_v4, 16  ;;  %v336_v9 = vshll.u32 %v185_v4, 16  ;;  %v342_v10 = vshll.u32 %v261_v6, 16  ;;  %v347_v11 = vshrl.u32 %v187_v5, 16 }
  0x11   : > { %1732 = vmatpush.bf16.msra.mxu3 %v1670_v1  ;;  %693 = vmatpush.bf16.msra.mxu0 %v1670_v1  ;;  %v350_v12 = vshll.u32 %v187_v5, 16  ;;  %v356_v13 = vshll.u32 %v262_v7, 16  ;;  %v193_v14 = vld [vmem:[%s1812_s24 + $0xc0] sm:$0xff]  ;;  %v195_v15 = vld [vmem:[%s1812_s24 + $0xd8] sm:$0xff]  ;;  %v265_v16 = vld [vmem:[%s1812_s24 + $0xcc] sm:$0x11] }
  0x12   : > { %v335_v17 = vrot.slane %v333_v8, 4  ;;  %v338_v18 = vrot.slane %v336_v9, 5  ;;  %v344_v19 = vrot.slane %v342_v10, 5  ;;  %v349_v20 = vrot.slane %v347_v11, 4  ;;  %v266_v21 = vld [vmem:[%s1812_s24 + $0xe4] sm:$0x11] }
  0x13   : > { %v352_v22 = vrot.slane %v350_v12, 5  ;;  %v358_v23 = vrot.slane %v356_v13, 5  ;;  %v389_v24 = vshrl.u32 %v193_v14, 16  ;;  %v392_v25 = vshll.u32 %v193_v14, 16  ;;  %v201_v30 = vld [vmem:[%s1812_s24 + $0x120] sm:$0xff]  ;;  %v203_v48 = vld [vmem:[%s1812_s24 + $0x138] sm:$0xff] }
  0x14   : > { %1733 = vmatpush.bf16.msra.mxu1 %v1669_v2  ;;  %1734 = vmatpush.bf16.msra.mxu2 %v1669_v2  ;;  %v339_v26 = vor.u32 %v338_v18, %v335_v17  ;;  %v398_v27 = vshll.u32 %v265_v16, 16  ;;  %v403_v28 = vshrl.u32 %v195_v15, 16  ;;  %v406_v29 = vshll.u32 %v195_v15, 16  ;;  %v269_v37 = vld [vmem:[%s1812_s24 + $0x12c] sm:$0x11]  ;;  %v177_v1 = vld [vmem:[%s1812_s24] sm:$0xff] }
  0x15   : > { %1735 = vmatpush.bf16.msra.mxu3 %v1669_v2  ;;  %694 = vmatpush.bf16.msra.mxu0 %v1669_v2  ;;  %v353_v33 = vor.u32 %v352_v22, %v349_v20  ;;  %v391_v34 = vrot.slane %v389_v24, 4  ;;  %v394_v35 = vrot.slane %v392_v25, 5  ;;  %v412_v36 = vshll.u32 %v266_v21, 16  ;;  %v270_v49 = vld [vmem:[%s1812_s24 + $0x144] sm:$0x11]  ;;  %v179_v7 = vld [vmem:[%s1812_s24 + $0x18] sm:$0xff] }
  0x16   : > { %v340_v38 = vrot.slane %v339_v26, 4  ;;  %v400_v39 = vrot.slane %v398_v27, 5  ;;  %v405_v40 = vrot.slane %v403_v28, 4  ;;  %v408_v41 = vrot.slane %v406_v29, 5  ;;  %v257_v2 = vld [vmem:[%s1812_s24 + $0xc] sm:$0x11] }
  0x17   : > { %v354_v42 = vrot.slane %v353_v33, 4  ;;  %v395_v43 = vor.u32 %v394_v35, %v391_v34  ;;  %v414_v44 = vrot.slane %v412_v36, 5  ;;  %v445_v45 = vshrl.u32 %v201_v30, 16  ;;  %v1665_v8 = vld [vmem:[%s2177_s1 + $0xc8] sm:$0xff]  ;;  %v189_v22 = vld [vmem:[%s1812_s24 + $0x90] sm:$0xff]  ;;  %v1664_v29 = vld [vmem:[%s2177_s1 + $0xc0] sm:$0xff] }
  0x18   : > { %1736 = vmatpush.bf16.msra.mxu1 %v1668_v3  ;;  %1737 = vmatpush.bf16.msra.mxu2 %v1668_v3  ;;  %v1838_v46 = vsel %vm1831_vm2, %v340_v38, %v344_v19  ;;  %v409_v47 = vor.u32 %v408_v41, %v405_v40  ;;  %v448_v50 = vshll.u32 %v201_v30, 16  ;;  %v454_v51 = vshll.u32 %v269_v37, 16  ;;  %v258_v19 = vld [vmem:[%s1812_s24 + $0x24] sm:$0x11]  ;;  %v263_v28 = vld [vmem:[%s1812_s24 + $0x9c] sm:$0x11] }
  0x19   : > { %1738 = vmatpush.bf16.msra.mxu3 %v1668_v3  ;;  %695 = vmatpush.bf16.msra.mxu0 %v1668_v3  ;;  %v1847_v53 = vsel %vm1831_vm2, %v354_v42, %v358_v23  ;;  %v540_v54 = vunpack.c.l.b16 %v1838_v46  ;;  %v396_v55 = vrot.slane %v395_v43, 4  ;;  %v447_v56 = vrot.slane %v445_v45, 4  ;;  %v191_v27 = vld [vmem:[%s1812_s24 + $0xa8] sm:$0xff]  ;;  %v1647_v40 = vld [vmem:[%s2177_s1 + $0x38] sm:$0xff] }
  0x1a   : > { %v542_v57 = vunpack.c.l.b16 %v1847_v53  ;;  %v410_v58 = vrot.slane %v409_v47, 4  ;;  %v450_v59 = vrot.slane %v448_v50, 5  ;;  %v456_v60 = vrot.slane %v454_v51, 5  ;;  %v1679_v41 = vld [vmem:[%s2177_s1 + $0x138] sm:$0xff] }
  0x1b   : > { %v1853_v61 = vsel %vm1831_vm2, %v396_v55, %v400_v39  ;;  %v459_v62 = vshrl.u32 %v203_v48, 16  ;;  %v462_v63 = vshll.u32 %v203_v48, 16  ;;  %v468_v0 = vshll.u32 %v270_v49, 16  ;;  %v264_v43 = vld [vmem:[%s1812_s24 + $0xb4] sm:$0x11] }
  0x1c   : > { %1739 = vmatpush.bf16.msra.mxu1 %v1667_v31  ;;  %1740 = vmatpush.bf16.msra.mxu2 %v1667_v31  ;;  %v1857_v3 = vpack.c.b16 %v542_v57, %v540_v54  ;;  %v1861_v4 = vsel %vm1831_vm2, %v410_v58, %v414_v44  ;;  %v548_v5 = vunpack.c.l.b16 %v1853_v61  ;;  %v451_v6 = vor.u32 %v450_v59, %v447_v56  ;;  %v1655_v57 = vld [vmem:[%s2177_s1 + $0x78] sm:$0xff] }
  0x1d   : > { %1741 = vmatpush.bf16.msra.mxu3 %v1667_v31  ;;  %696 = vmatpush.bf16.msra.mxu0 %v1667_v31  ;;  %v550_v9 = vunpack.c.l.b16 %v1861_v4  ;;  %v461_v10 = vrot.slane %v459_v62, 4  ;;  %v464_v11 = vrot.slane %v462_v63, 5  ;;  %v470_v12 = vrot.slane %v468_v0, 5  ;;  %v197_v62 = vld [vmem:[%s1812_s24 + $0xf0] sm:$0xff]  ;;  %v267_v63 = vld [vmem:[%s1812_s24 + $0xfc] sm:$0x11] }
  0x1e   : > { %v452_v13 = vrot.slane %v451_v6, 4  ;;  %v277_v14 = vshrl.u32 %v177_v1, 16  ;;  %v280_v15 = vshll.u32 %v177_v1, 16  ;;  %v286_v16 = vshll.u32 %v257_v2, 16  ;;  %v1646_v2 = vld [vmem:[%s2177_s1 + $0x30] sm:$0xff] }
  0x1f   : > { %v572_v17 = vpack.c.b16 %v550_v9, %v548_v5  ;;  %v465_v18 = vor.u32 %v464_v11, %v461_v10  ;;  %v291_v20 = vshrl.u32 %v179_v7, 16  ;;  %v294_v21 = vshll.u32 %v179_v7, 16  ;;  %v1678_v5 = vld [vmem:[%s2177_s1 + $0x130] sm:$0xff] }
  0x20   : > { %1742 = vmatpush.bf16.msra.mxu1 %v1666_v52  ;;  %1743 = vmatpush.bf16.msra.mxu2 %v1666_v52  ;;  %v1873_v23 = vsel %vm1831_vm2, %v452_v13, %v456_v60  ;;  %v279_v24 = vrot.slane %v277_v14, 4  ;;  %v282_v25 = vrot.slane %v280_v15, 5  ;;  %v288_v26 = vrot.slane %v286_v16, 5  ;;  %v1654_v10 = vld [vmem:[%s2177_s1 + $0x70] sm:$0xff] }
  0x21   : > { %1744 = vmatpush.bf16.msra.mxu3 %v1666_v52  ;;  %697 = vmatpush.bf16.msra.mxu0 %v1666_v52  ;;  %v466_v30 = vrot.slane %v465_v18, 4  ;;  %v556_v31 = vunpack.c.l.b16 %v1873_v23  ;;  %v293_v33 = vrot.slane %v291_v20, 4  ;;  %v296_v34 = vrot.slane %v294_v21, 5  ;;  %v1663_v52 = vld [vmem:[%s2177_s1 + $0xb8] sm:$0xff]  ;;  %v1662_v13 = vld [vmem:[%s2177_s1 + $0xb0] sm:$0xff] }
  0x22   : > { %v283_v35 = vor.u32 %v282_v25, %v279_v24  ;;  %v300_v36 = vshll.u32 %v258_v19, 16  ;;  %v361_v37 = vshrl.u32 %v189_v22, 16  ;;  %v364_v38 = vshll.u32 %v189_v22, 16  ;;  %v1677_v19 = vld [vmem:[%s2177_s1 + $0x128] sm:$0xff]  ;;  %v268_v21 = vld [vmem:[%s1812_s24 + $0x114] sm:$0x11] }
  0x23   : > { %v1883_v39 = vsel %vm1831_vm2, %v466_v30, %v470_v12  ;;  %v297_v42 = vor.u32 %v296_v34, %v293_v33  ;;  %v370_v44 = vshll.u32 %v263_v28, 16  ;;  %v375_v45 = vshrl.u32 %v191_v27, 16  ;;  %v205_v25 = vld [vmem:[%s1812_s24 + $0x150] sm:$0xff]  ;;  %v207_v30 = vld [vmem:[%s1812_s24 + $0x168] sm:$0xff] }
  0x24   : > { %1745 = vmatpush.bf16.msra.mxu1 %v1665_v8  ;;  %1746 = vmatpush.bf16.msra.mxu2 %v1665_v8  ;;  %v558_v47 = vunpack.c.l.b16 %v1883_v39  ;;  %v284_v48 = vrot.slane %v283_v35, 4  ;;  %v302_v49 = vrot.slane %v300_v36, 5  ;;  %v363_v50 = vrot.slane %v361_v37, 4  ;;  %v1661_v37 = vld [vmem:[%s2177_s1 + $0xa8] sm:$0xff] }
  0x25   : > { %1747 = vmatpush.bf16.msra.mxu3 %v1665_v8  ;;  %698 = vmatpush.bf16.msra.mxu0 %v1665_v8  ;;  %v298_v51 = vrot.slane %v297_v42, 4  ;;  %v366_v54 = vrot.slane %v364_v38, 5  ;;  %v377_v55 = vrot.slane %v375_v45, 4  ;;  %v378_v59 = vshll.u32 %v191_v27, 16  ;;  %v199_v8 = vld [vmem:[%s1812_s24 + $0x108] sm:$0xff] }
  0x26   : > { %v576_v56 = vpack.c.b16 %v558_v47, %v556_v31  ;;  %v1901_v58 = vsel %vm1831_vm2, %v284_v48, %v288_v26  ;;  %v384_v60 = vshll.u32 %v264_v43, 16  ;;  %v372_v7 = vrot.slane %v370_v44, 5  ;;  %v271_v31 = vld [vmem:[%s1812_s24 + $0x15c] sm:$0x11]  ;;  %v1653_v43 = vld [vmem:[%s2177_s1 + $0x68] sm:$0xff] }
  0x27   : > { %v1907_v0 = vsel %vm1831_vm2, %v298_v51, %v302_v49  ;;  %v532_v1 = vunpack.c.l.b16 %v1901_v58  ;;  %v367_v6 = vor.u32 %v366_v54, %v363_v50  ;;  %v380_v11 = vrot.slane %v378_v59, 5  ;;  %v272_v47 = vld [vmem:[%s1812_s24 + $0x174] sm:$0x11]  ;;  %v1644_v50 = vld [vmem:[%s2177_s1 + $0x20] sm:$0xff] }
  0x28   : > { %1748 = vmatpush.bf16.msra.mxu1 %v1664_v29  ;;  %1749 = vmatpush.bf16.msra.mxu2 %v1664_v29  ;;  %v534_v9 = vunpack.c.l.b16 %v1907_v0  ;;  %v386_v12 = vrot.slane %v384_v60, 5  ;;  %v417_v15 = vshrl.u32 %v197_v62, 16  ;;  %v420_v16 = vshll.u32 %v197_v62, 16  ;;  %v1676_v51 = vld [vmem:[%s2177_s1 + $0x120] sm:$0xff] }
  0x29   : > { %1750 = vmatpush.bf16.msra.mxu3 %v1664_v29  ;;  %699 = vmatpush.bf16.msra.mxu0 %v1664_v29  ;;  %v368_v14 = vrot.slane %v367_v6, 4  ;;  %v381_v20 = vor.u32 %v380_v11, %v377_v55  ;;  %v431_v22 = vshrl.u32 %v199_v8, 16  ;;  %v434_v24 = vshll.u32 %v199_v8, 16  ;;  %v183_v8 = vld [vmem:[%s1812_s24 + $0x48] sm:$0xff] }
  0x2a   : > { %v564_v18 = vpack.c.b16 %v534_v9, %v532_v1  ;;  %v419_v27 = vrot.slane %v417_v15, 4  ;;  %v422_v28 = vrot.slane %v420_v16, 5  ;;  %v476_v42 = vshll.u32 %v205_v25, 16  ;;  %v1660_v1 = vld [vmem:[%s2177_s1 + $0xa0] sm:$0xff] }
  0x2b   : > { %710 = vmatmul.bf16.vlgmr.msra.gmra.mxu1 %v1857_v3  ;;  %720 = vmatmul.bf16.vlgmr.msra.gmra.mxu2 %v572_v17  ;;  %v1645_v3 = vld [vmem:[%s2177_s1 + $0x28] sm:$0xff]  ;;  %v426_v17 = vshll.u32 %v267_v63, 16  ;;  %v1935_v26 = vsel %vm1831_vm2, %v368_v14, %v372_v7  ;;  %v382_v33 = vrot.slane %v381_v20, 4  ;;  %v433_v35 = vrot.slane %v431_v22, 4  ;;  %v259_v9 = vld [vmem:[%s1812_s24 + $0x3c] sm:$0x11] }
  0x2c   : > { %1062 = vmatpush.bf16.msrb.mxu2 %v1647_v40  ;;  %741 = vmatpush.bf16.msrb.mxu1 %v1679_v41  ;;  %v544_v34 = vunpack.c.l.b16 %v1935_v26  ;;  %v436_v36 = vrot.slane %v434_v24, 5  ;;  %v423_v38 = vor.u32 %v422_v28, %v419_v27  ;;  %v440_v40 = vshll.u32 %v268_v21, 16 }
  0x2d   : > { %730 = vmatmul.bf16.vlgmr.msra.gmra.mxu3 %v576_v56  ;;  %1160 = vmatpush.bf16.msrb.mxu0 %v1663_v52  ;;  %v428_v29 = vrot.slane %v426_v17, 5  ;;  %v473_v41 = vshrl.u32 %v205_v25, 16  ;;  %v1948_v44 = vsel %vm1831_vm2, %v382_v33, %v386_v12  ;;  %v482_v48 = vshll.u32 %v271_v31, 16  ;;  %v1659_v31 = vld [vmem:[%s2177_s1 + $0x98] sm:$0xff] }
  0x2e   : > { %1111 = vmatpush.bf16.msrb.mxu3 %v1655_v57  ;;  %700 = vmatmul.bf16.vlgmr.msra.gmra.mxu0 %v564_v18  ;;  %v437_v45 = vor.u32 %v436_v36, %v433_v35  ;;  %v487_v49 = vshrl.u32 %v207_v30, 16  ;;  %v546_v52 = vunpack.c.l.b16 %v1948_v44  ;;  %v424_v54 = vrot.slane %v423_v38, 4  ;;  %v181_v57 = vld [vmem:[%s1812_s24 + $0x30] sm:$0xff]  ;;  %v1675_v18 = vld [vmem:[%s2177_s1 + $0x118] sm:$0xff] }
  0x2f   : > { %v442_v55 = vrot.slane %v440_v40, 5  ;;  %v475_v56 = vrot.slane %v473_v41, 4  ;;  %v478_v60 = vrot.slane %v476_v42, 5  ;;  %v484_v62 = vrot.slane %v482_v48, 5  ;;  %v1642_v42 = vld [vmem:[%s2177_s1 + $0x10] sm:$0xff] }
  0x30   : > { %1063 = vmatpush.bf16.msrb.mxu2 %v1646_v2  ;;  %742 = vmatpush.bf16.msrb.mxu1 %v1678_v5  ;;  %v438_v59 = vrot.slane %v437_v45, 4  ;;  %v489_v63 = vrot.slane %v487_v49, 4  ;;  %v570_v2 = vpack.c.b16 %v546_v52, %v544_v34  ;;  %v1964_v5 = vsel %vm1831_vm2, %v424_v54, %v428_v29  ;;  %v1651_v34 = vld [vmem:[%s2177_s1 + $0x58] sm:$0xff] }
  0x31   : > { %1161 = vmatpush.bf16.msrb.mxu0 %v1662_v13  ;;  %v490_v6 = vshll.u32 %v207_v30, 16  ;;  %v496_v7 = vshll.u32 %v272_v47, 16  ;;  %v552_v12 = vunpack.c.l.b16 %v1964_v5  ;;  %v479_v13 = vor.u32 %v478_v60, %v475_v56  ;;  %v1650_v56 = vld [vmem:[%s2177_s1 + $0x50] sm:$0xff] }
  0x32   : > { %1112 = vmatpush.bf16.msrb.mxu3 %v1654_v10  ;;  %v1652_v10 = vld [vmem:[%s2177_s1 + $0x60] sm:$0xff]  ;;  %v1973_v11 = vsel %vm1831_vm2, %v438_v59, %v442_v55  ;;  %v305_v14 = vshrl.u32 %v181_v57, 16  ;;  %v308_v20 = vshll.u32 %v181_v57, 16  ;;  %v314_v24 = vshll.u32 %v259_v9, 16  ;;  %v1641_v57 = vld [vmem:[%s2177_s1 + $0x8] sm:$0xff] }
  0x33   : > { %v554_v15 = vunpack.c.l.b16 %v1973_v11  ;;  %v492_v16 = vrot.slane %v490_v6, 5  ;;  %v498_v17 = vrot.slane %v496_v7, 5  ;;  %v480_v21 = vrot.slane %v479_v13, 4  ;;  %v1649_v6 = vld [vmem:[%s2177_s1 + $0x48] sm:$0xff]  ;;  %v1424_v13 = vld [vmem:[%s1812_s24] sm:$0xf] }
  0x34   : > { %1064 = vmatpush.bf16.msrb.mxu2 %v1645_v3  ;;  %743 = vmatpush.bf16.msrb.mxu1 %v1677_v19  ;;  %v1643_v3 = vld [vmem:[%s2177_s1 + $0x18] sm:$0xff]  ;;  %v307_v22 = vrot.slane %v305_v14, 4  ;;  %v319_v25 = vshrl.u32 %v183_v8, 16  ;;  %v310_v29 = vrot.slane %v308_v20, 5  ;;  %v322_v30 = vshll.u32 %v183_v8, 16  ;;  %v1648_v14 = vld [vmem:[%s2177_s1 + $0x40] sm:$0xff] }
  0x35   : > { %1162 = vmatpush.bf16.msrb.mxu0 %v1661_v37  ;;  %v260_v19 = vld [vmem:[%s1812_s24 + $0x54] sm:$0x11]  ;;  %v574_v27 = vpack.c.b16 %v554_v15, %v552_v12  ;;  %v493_v28 = vor.u32 %v492_v16, %v489_v63  ;;  %v1989_v33 = vsel %vm1831_vm2, %v480_v21, %v484_v62  ;;  %v316_v40 = vrot.slane %v314_v24, 5  ;;  %v1673_v62 = vld [vmem:[%s2177_s1 + $0x108] sm:$0xff]  ;;  %v1656_v12 = vld [vmem:[%s2177_s1 + $0x80] sm:$0xff] }
  0x36   : > { %1113 = vmatpush.bf16.msrb.mxu3 %v1653_v43  ;;  %v321_v35 = vrot.slane %v319_v25, 4  ;;  %v328_v36 = vshll.u32 %v260_v19, 16  ;;  %v311_v38 = vor.u32 %v310_v29, %v307_v22  ;;  %v324_v41 = vrot.slane %v322_v30, 5  ;;  %v1674_v43 = vld [vmem:[%s2177_s1 + $0x110] sm:$0xff]  ;;  %v1432_v19 = vld [vmem:[%s1812_s24 + $0x8] sm:$0xf] }
  0x37   : > { %v494_v37 = vrot.slane %v493_v28, 4  ;;  %v560_v45 = vunpack.c.l.b16 %v1989_v33  ;;  %v533_v7 = vunpack.c.h.b16 %v1901_v58  ;;  %v535_v8 = vunpack.c.h.b16 %v1907_v0  ;;  %v1618_v20 = vld [vmem:[%s1812_s24 + $0x1c] sm:$0xf0]  ;;  %v1436_v25 = vld [vmem:[%s1812_s24 + $0x30] sm:$0xf] }
  0x38   : > { %1065 = vmatpush.bf16.msrb.mxu2 %v1644_v50  ;;  %744 = vmatpush.bf16.msrb.mxu1 %v1676_v51  ;;  %v312_v48 = vrot.slane %v311_v38, 4  ;;  %v325_v49 = vor.u32 %v324_v41, %v321_v35  ;;  %v330_v50 = vrot.slane %v328_v36, 5  ;;  %v1658_v51 = vld [vmem:[%s2177_s1 + $0x90] sm:$0xff]  ;;  %v541_v58 = vunpack.c.h.b16 %v1838_v46  ;;  %v1426_v46 = vld [vmem:[%s1812_s24 + $0x18] sm:$0xf0] }
  0x39   : > { %1163 = vmatpush.bf16.msrb.mxu0 %v1660_v1  ;;  %v2003_v47 = vsel %vm1831_vm2, %v494_v37, %v498_v17  ;;  %v1657_v1 = vld [vmem:[%s2177_s1 + $0x88] sm:$0xff]  ;;  %v543_v0 = vunpack.c.h.b16 %v1847_v53  ;;  %v565_v15 = vpack.c.b16 %v535_v8, %v533_v7  ;;  %v1433_v21 = vor.u32 %v1618_v20, %v1432_v19  ;;  %v1619_v35 = vld [vmem:[%s1812_s24 + $0x34] sm:$0xf]  ;;  %v1444_v38 = vld [vmem:[%s1812_s24 + $0x38] sm:$0xf] }
  0x3a   : > { %1114 = vmatpush.bf16.msrb.mxu3 %v1652_v10  ;;  %v562_v52 = vunpack.c.l.b16 %v2003_v47  ;;  %v317_v54 = vsel %vm1831_vm2, %v312_v48, %v316_v40  ;;  %v326_v55 = vrot.slane %v325_v49, 4  ;;  %v1672_v10 = vld [vmem:[%s2177_s1 + $0x100] sm:$0xff]  ;;  %v545_v28 = vunpack.c.h.b16 %v1935_v26  ;;  %v1438_v36 = vld [vmem:[%s1812_s24 + $0x48] sm:$0xf0]  ;;  %v1621_v40 = vld [vmem:[%s1812_s24 + $0x4c] sm:$0xf0] }
  0x3b   : > { %715 = vmatmul.bf16.gmra.mxu1 %v570_v2  ;;  %725 = vmatmul.bf16.gmra.mxu2 %v574_v27  ;;  %v536_v60 = vunpack.c.l.b16 %v317_v54  ;;  %v569_v17 = vpack.c.b16 %v543_v0, %v541_v58  ;;  %v537_v22 = vunpack.c.h.b16 %v317_v54  ;;  %v1620_v27 = vld [vmem:[%s1812_s24 + $0x44] sm:$0xf0]  ;;  %v547_v29 = vunpack.c.h.b16 %v1948_v44  ;;  %v1448_v41 = vld [vmem:[%s1812_s24 + $0x60] sm:$0xf]  ;;  %v1623_v44 = vld [vmem:[%s1812_s24 + $0x74] sm:$0xf0] }
  0x3c   : > { %1066 = vmatpush.bf16.msrb.mxu2 %v1643_v3  ;;  %745 = vmatpush.bf16.msrb.mxu1 %v1675_v18  ;;  %v578_v59 = vpack.c.b16 %v562_v52, %v560_v45  ;;  %v331_v63 = vsel %vm1831_vm2, %v326_v55, %v330_v50  ;;  %v1617_v3 = vld [vmem:[%s1812_s24 + $0x14] sm:$0xf0]  ;;  %v1616_v18 = vld [vmem:[%s1812_s24 + $0x4] sm:$0xf]  ;;  %v1441_v37 = vor.u32 %v1619_v35, %v1438_v36  ;;  %v1450_v45 = vld [vmem:[%s1812_s24 + $0x78] sm:$0xf0]  ;;  %v553_v55 = vunpack.c.h.b16 %v1964_v5 }
  0x3d   : > { %1164 = vmatpush.bf16.msrb.mxu0 %v1659_v31  ;;  %v538_v2 = vunpack.c.l.b16 %v331_v63  ;;  %v1425_v16 = vor.u32 %v1617_v3, %v1424_v13  ;;  %v1429_v53 = vor.u32 %v1616_v18, %v1426_v46  ;;  %v539_v24 = vunpack.c.h.b16 %v331_v63  ;;  %v1456_v49 = vld [vmem:[%s1812_s24 + $0x68] sm:$0xf]  ;;  %v1624_v50 = vld [vmem:[%s1812_s24 + $0x7c] sm:$0xf0]  ;;  %v1460_v52 = vld [vmem:[%s1812_s24 + $0x90] sm:$0xf] }
  0x3e   : > { %1115 = vmatpush.bf16.msrb.mxu3 %v1651_v34  ;;  %v1437_v31 = vor.u32 %v1620_v27, %v1436_v25  ;;  %v571_v34 = vpack.c.b16 %v547_v29, %v545_v28  ;;  %v1445_v26 = vor.u32 %v1621_v40, %v1444_v38  ;;  %v1626_v54 = vld [vmem:[%s1812_s24 + $0xa4] sm:$0xf0]  ;;  %v549_v5 = vunpack.c.h.b16 %v1853_v61  ;;  %v1629_v7 = vld [vmem:[%s1812_s24 + $0xd4] sm:$0xf0]  ;;  %v1630_v61 = vld [vmem:[%s1812_s24 + $0xdc] sm:$0xf0] }
  0x3f   : > { %735 = vmatmul.bf16.gmra.mxu3 %v578_v59  ;;  %v566_v9 = vpack.c.b16 %v538_v2, %v536_v60  ;;  %v567_v30 = vpack.c.b16 %v539_v24, %v537_v22  ;;  %v1625_v60 = vld [vmem:[%s1812_s24 + $0x94] sm:$0xf]  ;;  %v1627_v2 = vld [vmem:[%s1812_s24 + $0xac] sm:$0xf0]  ;;  %v1480_v3 = vld [vmem:[%s1812_s24 + $0xc8] sm:$0xf]  ;;  %v557_v19 = vunpack.c.h.b16 %v1873_v23  ;;  %v559_v20 = vunpack.c.h.b16 %v1883_v39 }
  0x40   : > { %1067 = vmatpush.bf16.msrb.mxu2 %v1642_v42  ;;  %746 = vmatpush.bf16.msrb.mxu1 %v1674_v43  ;;  %v1449_v42 = vor.u32 %v1623_v44, %v1448_v41  ;;  %v1622_v43 = vld [vmem:[%s1812_s24 + $0x64] sm:$0xf]  ;;  %v1481_v58 = vor.u32 %v1630_v61, %v1480_v3  ;;  %v1632_v0 = vld [vmem:[%s1812_s24 + $0x104] sm:$0xf0]  ;;  %v1492_v18 = vld [vmem:[%s1812_s24 + $0xf8] sm:$0xf]  ;;  %v561_v38 = vunpack.c.h.b16 %v1989_v33  ;;  %v563_v40 = vunpack.c.h.b16 %v2003_v47 }
  0x41   : > { %1165 = vmatpush.bf16.msrb.mxu0 %v1658_v51  ;;  %v1453_v48 = vor.u32 %v1622_v43, %v1450_v45  ;;  %v1457_v51 = vor.u32 %v1624_v50, %v1456_v49  ;;  %v1633_v46 = vld [vmem:[%s1812_s24 + $0x10c] sm:$0xf0]  ;;  %v1635_v22 = vld [vmem:[%s1812_s24 + $0x134] sm:$0xf0]  ;;  %v577_v24 = vpack.c.b16 %v559_v20, %v557_v19  ;;  %v1634_v28 = vld [vmem:[%s1812_s24 + $0x124] sm:$0xf] }
  0x42   : > { %1116 = vmatpush.bf16.msrb.mxu3 %v1650_v56  ;;  %705 = vmatmul.bf16.gmra.mxu0 %v566_v9  ;;  %v555_v56 = vunpack.c.h.b16 %v1973_v11  ;;  %v551_v11 = vunpack.c.h.b16 %v1861_v4  ;;  %v1484_v4 = vld [vmem:[%s1812_s24 + $0xf0] sm:$0xf]  ;;  %v1498_v29 = vld [vmem:[%s1812_s24 + $0x138] sm:$0xf0]  ;;  %v1636_v35 = vld [vmem:[%s1812_s24 + $0x13c] sm:$0xf0] }
  0x43   : > { %v1638_v41 = vld [vmem:[%s1812_s24 + $0x164] sm:$0xf0]  ;;  %v1637_v50 = vld [vmem:[%s1812_s24 + $0x154] sm:$0xf]  ;;  %v1639_v47 = vld [vmem:[%s1812_s24 + $0x16c] sm:$0xf0] }
  0x44   : > { %1068 = vmatpush.bf16.msrb.mxu2 %v1641_v57  ;;  %747 = vmatpush.bf16.msrb.mxu1 %v1673_v62  ;;  %v1461_v57 = vor.u32 %v1626_v54, %v1460_v52  ;;  %v575_v59 = vpack.c.b16 %v555_v56, %v553_v55  ;;  %v1462_v62 = vld [vmem:[%s1812_s24 + $0xa8] sm:$0xf0]  ;;  %v573_v8 = vpack.c.b16 %v551_v11, %v549_v5  ;;  %v1516_v52 = vld [vmem:[%s1812_s24 + $0x158] sm:$0xf]  ;;  %v2129_v3 = vld [vmem:[%s2178_s2] ss:$0 sm:$0xff] }
  0x45   : > { %1166 = vmatpush.bf16.msrb.mxu0 %v1657_v1  ;;  %v1465_v63 = vor.u32 %v1625_v60, %v1462_v62  ;;  %v1468_v1 = vld [vmem:[%s1812_s24 + $0x98] sm:$0xf]  ;;  %v1517_v56 = vor.u32 %v1639_v47, %v1516_v52 }
  0x46   : > { %1117 = vmatpush.bf16.msrb.mxu3 %v1649_v6  ;;  %v1469_v6 = vor.u32 %v1627_v2, %v1468_v1 }
  0x48   : > { %1069 = vmatpush.bf16.msrb.mxu2 %v1640_v32  ;;  %748 = vmatpush.bf16.msrb.mxu1 %v1672_v10  ;;  %v1472_v32 = vld [vmem:[%s1812_s24 + $0xc0] sm:$0xf]  ;;  %v1628_v10 = vld [vmem:[%s1812_s24 + $0xc4] sm:$0xf] }
  0x49   : > { %1167 = vmatpush.bf16.msrb.mxu0 %v1656_v12  ;;  %v1473_v9 = vor.u32 %v1629_v7, %v1472_v32  ;;  %v1474_v12 = vld [vmem:[%s1812_s24 + $0xd8] sm:$0xf0] }
  0x4a   : > { %1118 = vmatpush.bf16.msrb.mxu3 %v1648_v14  ;;  %v1477_v13 = vor.u32 %v1628_v10, %v1474_v12  ;;  %v1485_v14 = vor.u32 %v1632_v0, %v1484_v4 }
  0x4b   : > { %749 = vmatmul.bf16.vlgmr.msrb.gmra.mxu1 %v565_v15  ;;  %1070 = vmatmul.bf16.vlgmr.msrb.gmra.mxu2 %v1425_v16  ;;  %v1631_v15 = vld [vmem:[%s1812_s24 + $0xf4] sm:$0xf]  ;;  %v1486_v16 = vld [vmem:[%s1812_s24 + $0x108] sm:$0xf0] }
  0x4f   : > { %1119 = vmatmul.bf16.vlgmr.msrb.gmra.mxu3 %v1429_v53  ;;  %v1493_v53 = vor.u32 %v1633_v46, %v1492_v18 }
  0x52   : > { %1168 = vmatmul.bf16.vlgmr.msrb.gmra.mxu0 %v1433_v21  ;;  %v1496_v21 = vld [vmem:[%s1812_s24 + $0x120] sm:$0xf] }
  0x53   : > { %v1497_v25 = vor.u32 %v1635_v22, %v1496_v21 }
  0x5b   : > { %754 = vmatmul.bf16.gmra.mxu1 %v567_v30  ;;  %1075 = vmatmul.bf16.gmra.mxu2 %v1437_v31  ;;  %v1501_v30 = vor.u32 %v1634_v28, %v1498_v29 }
  0x5f   : > { %1124 = vmatmul.bf16.gmra.mxu3 %v1441_v37 }
  0x62   : > { %1173 = vmatmul.bf16.gmra.mxu0 %v1445_v26  ;;  %v1508_v26 = vld [vmem:[%s1812_s24 + $0x150] sm:$0xf] }
  0x63   : > { %v1509_v43 = vor.u32 %v1638_v41, %v1508_v26 }
  0x6b   : > { %759 = vmatmul.bf16.gmra.mxu1 %v569_v17  ;;  %1080 = vmatmul.bf16.gmra.mxu2 %v1449_v42  ;;  %v1489_v17 = vor.u32 %v1631_v15, %v1486_v16  ;;  %v579_v42 = vpack.c.b16 %v563_v40, %v561_v38 }
  0x6f   : > { %1129 = vmatmul.bf16.gmra.mxu3 %v1453_v48 }
  0x72   : > { %1178 = vmatmul.bf16.gmra.mxu0 %v1457_v51  ;;  %v1510_v51 = vld [vmem:[%s1812_s24 + $0x168] sm:$0xf0] }
  0x73   : > { %v1513_v33 = vor.u32 %v1637_v50, %v1510_v51 }
  0x7b   : > { %764 = vmatmul.bf16.gmra.mxu1 %v571_v34  ;;  %1085 = vmatmul.bf16.gmra.mxu2 %v1461_v57  ;;  %v1504_v34 = vld [vmem:[%s1812_s24 + $0x128] sm:$0xf] }
  0x7c   : > { %v1505_v37 = vor.u32 %v1636_v35, %v1504_v34 }
  0x7f   : > { %1134 = vmatmul.bf16.gmra.mxu3 %v1465_v63 }
  0x82   : > { %1183 = vmatmul.bf16.gmra.mxu0 %v1469_v6 }
  0x8b   : > { %769 = vmatmul.bf16.gmra.mxu1 %v573_v8  ;;  %1090 = vmatmul.bf16.gmra.mxu2 %v1473_v9 }
  0x8f   : > { %1139 = vmatmul.bf16.gmra.mxu3 %v1477_v13 }
  0x92   : > { %1188 = vmatmul.bf16.gmra.mxu0 %v1481_v58 }
  0x9b   : > { %774 = vmatmul.bf16.gmra.mxu1 %v575_v59  ;;  %1095 = vmatmul.bf16.gmra.mxu2 %v1485_v14 }
  0x9f   : > { %1144 = vmatmul.bf16.gmra.mxu3 %v1489_v17 }
  0xa2   : > { %1193 = vmatmul.bf16.gmra.mxu0 %v1493_v53 }
  0xa8   : > { %v2090_v27 = vpop.f32.mrf.mxu1 }
  0xab   : > { %779 = vmatmul.bf16.gmra.mxu1 %v577_v24  ;;  %1100 = vmatmul.bf16.gmra.mxu2 %v1497_v25  ;;  %v701_v31 = vpop.f32.mrf.mxu0 }
  0xae   : > { %v2096_v23 = vpop.f32.mrf.mxu2 }
  0xaf   : > { %1149 = vmatmul.bf16.gmra.mxu3 %v1501_v30 }
  0xb0   : > { %v2098_v39 = vpop.f32.mrf.mxu3  ;;  %v2100_v36 = vpop.f32.mrf.mxu1 }
  0xb2   : > { %1198 = vmatmul.bf16.gmra.mxu0 %v1505_v37 }
  0xb3   : > { %v703_v45 = vpop.f32.mrf.mxu0 }
  0xb6   : > { %v2106_v44 = vpop.f32.mrf.mxu2 }
  0xb8   : > { %v2108_v48 = vpop.f32.mrf.mxu1  ;;  %v2110_v49 = vpop.f32.mrf.mxu3 }
  0xbb   : > { %784 = vmatmul.bf16.gmra.mxu1 %v579_v42  ;;  %1105 = vmatmul.bf16.gmra.mxu2 %v1509_v43 }
  0xbe   : > { %v2116_v54 = vpop.f32.mrf.mxu2 }
  0xbf   : > { %1154 = vmatmul.bf16.gmra.mxu3 %v1513_v33  ;;  %v706_v57 = vpop.f32.mrf.mxu0 }
  0xc0   : > { %v2118_v55 = vpop.f32.mrf.mxu1 }
  0xc2   : > { %v2120_v59 = vpop.f32.mrf.mxu3  ;;  %1203 = vmatmul.bf16.gmra.mxu0 %v1517_v56 }
  0xc6   : > { %v2122_v60 = vpop.f32.mrf.mxu2 }
  0xc7   : > { %v708_v63 = vpop.f32.mrf.mxu0 }
  0xc8   : > { %v750_v62 = vpop.f32.mrf.mxu1 }
  0xc9   : > { %v751_v6 = vadd.f32 %v750_v62, %v701_v31 }
  0xca   : > { %v2124_v1 = vpop.f32.mrf.mxu3 }
  0xce   : > { %v1071_v2 = vpop.f32.mrf.mxu2 }
  0xcf   : > { %v1072_v11 = vadd.f32 %v1071_v2, %v751_v6  ;;  %v1169_v32 = vpop.f32.mrf.mxu0 }
  0xd0   : > { %v752_v5 = vpop.f32.mrf.mxu1 }
  0xd1   : > { %v753_v10 = vadd.f32 %v752_v5, %v703_v45 }
  0xd2   : > { %v1120_v7 = vpop.f32.mrf.mxu3 }
  0xd3   : > { %v1121_v8 = vadd.f32 %v1120_v7, %v1072_v11 }
  0xd5   : > { %v1170_v13 = vadd.f32 %v1169_v32, %v1121_v8 }
  0xd6   : > { %v1073_v9 = vpop.f32.mrf.mxu2 }
  0xd7   : > { %v1074_v61 = vadd.f32 %v1073_v9, %v753_v10  ;;  %v1171_v58 = vpop.f32.mrf.mxu0  ;;  %v1213_v0 = vadd.f32 %v2129_v3, %v1170_v13 }
  0xd8   : > { %v755_v12 = vpop.f32.mrf.mxu1 }
  0xd9   : > { %v756_v17 = vadd.f32 %v755_v12, %v706_v57  ;;  %v1229_v46 = vmul.f32 0.1, %v1213_v0 }
  0xda   : > { %v1122_v4 = vpop.f32.mrf.mxu3 }
  0xdb   : > { %v1123_v14 = vadd.f32 %v1122_v4, %v1074_v61  ;;  %v1245_v24 = vmax.f32 %v1213_v0, %v1229_v46 }
  0xdd   : > { %v1172_v16 = vadd.f32 %v1171_v58, %v1123_v14 }
  0xde   : > { %v1076_v15 = vpop.f32.mrf.mxu2 }
  0xdf   : > { %v1214_v53 = vadd.f32 %v2129_v3, %v1172_v16  ;;  %v1077_v19 = vadd.f32 %v1076_v15, %v756_v17  ;;  %v1174_v20 = vpop.f32.mrf.mxu0 }
  0xe0   : > { %v757_v18 = vpop.f32.mrf.mxu1 }
  0xe1   : > { %v1230_v21 = vmul.f32 0.1, %v1214_v53  ;;  %v758_v31 = vadd.f32 %v757_v18, %v708_v63 }
  0xe2   : > { %v1125_v22 = vpop.f32.mrf.mxu3 }
  0xe3   : > { %v1246_v25 = vmax.f32 %v1214_v53, %v1230_v21  ;;  %v1126_v28 = vadd.f32 %v1125_v22, %v1077_v19 }
  0xe5   : > { %v1683_v30 = vpack.c.bf16 %v1246_v25, %v1245_v24  ;;  %v1175_v35 = vadd.f32 %v1174_v20, %v1126_v28 }
  0xe6   : > { %v1078_v29 = vpop.f32.mrf.mxu2 }
  0xe7   : > { %1684 = vst [vmem:[%s2137_s4] sm:$0xff] %v1683_v30   ;;  %v1079_v37 = vadd.f32 %v1078_v29, %v758_v31  ;;  %v1176_v38 = vpop.f32.mrf.mxu0  ;;  %v1215_v26 = vadd.f32 %v2129_v3, %v1175_v35 }
  0xe8   : > { %v760_v34 = vpop.f32.mrf.mxu1 }
  0xe9   : > { %v761_v45 = vadd.f32 %v760_v34, %v2090_v27  ;;  %v1231_v51 = vmul.f32 0.1, %v1215_v26 }
  0xea   : > { %v1127_v40 = vpop.f32.mrf.mxu3 }
  0xeb   : > { %v1128_v41 = vadd.f32 %v1127_v40, %v1079_v37  ;;  %v1247_v62 = vmax.f32 %v1215_v26, %v1231_v51 }
  0xed   : > { %v1177_v43 = vadd.f32 %v1176_v38, %v1128_v41 }
  0xee   : > { %v1081_v42 = vpop.f32.mrf.mxu2 }
  0xef   : > { %v1216_v33 = vadd.f32 %v2129_v3, %v1177_v43  ;;  %v1082_v52 = vadd.f32 %v1081_v42, %v761_v45  ;;  %v1179_v47 = vpop.f32.mrf.mxu0 }
  0xf0   : > { %v762_v50 = vpop.f32.mrf.mxu1 }
  0xf1   : > { %v1232_v56 = vmul.f32 0.1, %v1216_v33  ;;  %v763_v11 = vadd.f32 %v762_v50, %v2100_v36 }
  0xf2   : > { %v1130_v57 = vpop.f32.mrf.mxu3 }
  0xf3   : > { %v1248_v63 = vmax.f32 %v1216_v33, %v1232_v56  ;;  %v1131_v2 = vadd.f32 %v1130_v57, %v1082_v52 }
  0xf5   : > { %v1688_v5 = vpack.c.bf16 %v1248_v63, %v1247_v62  ;;  %v1180_v7 = vadd.f32 %v1179_v47, %v1131_v2 }
  0xf6   : > { %v1083_v6 = vpop.f32.mrf.mxu2 }
  0xf7   : > { %1720 = vst [vmem:[%s2137_s4 + $0x8] sm:$0xff] %v1688_v5   ;;  %v1084_v8 = vadd.f32 %v1083_v6, %v763_v11  ;;  %v1181_v27 = vpop.f32.mrf.mxu0  ;;  %v1217_v10 = vadd.f32 %v2129_v3, %v1180_v7 }
  0xf8   : > { %v765_v32 = vpop.f32.mrf.mxu1 }
  0xf9   : > { %v766_v58 = vadd.f32 %v765_v32, %v2108_v48  ;;  %v1233_v0 = vmul.f32 0.1, %v1217_v10 }
  0xfa   : > { %v1132_v9 = vpop.f32.mrf.mxu3 }
  0xfb   : > { %v1133_v12 = vadd.f32 %v1132_v9, %v1084_v8  ;;  %v1249_v18 = vmax.f32 %v1217_v10, %v1233_v0 }
  0xfd   : > { %v1182_v61 = vadd.f32 %v1181_v27, %v1133_v12 }
  0xfe   : > { %v1086_v13 = vpop.f32.mrf.mxu2 }
  0xff   : > { %v1218_v14 = vadd.f32 %v2129_v3, %v1182_v61  ;;  %v1087_v15 = vadd.f32 %v1086_v13, %v766_v58  ;;  %v1184_v36 = vpop.f32.mrf.mxu0 }
 0x100   : > { %v767_v4 = vpop.f32.mrf.mxu1 }
 0x101   : > { %v1234_v16 = vmul.f32 0.1, %v1218_v14  ;;  %v768_v21 = vadd.f32 %v767_v4, %v2118_v55 }
 0x102   : > { %v1135_v17 = vpop.f32.mrf.mxu3 }
 0x103   : > { %v1250_v46 = vmax.f32 %v1218_v14, %v1234_v16  ;;  %v1136_v53 = vadd.f32 %v1135_v17, %v1087_v15 }
 0x105   : > { %v1693_v20 = vpack.c.bf16 %v1250_v46, %v1249_v18  ;;  %v1185_v24 = vadd.f32 %v1184_v36, %v1136_v53 }
 0x106   : > { %v1088_v19 = vpop.f32.mrf.mxu2 }
 0x107   : > { %1721 = vst [vmem:[%s2137_s4 + $0x10] sm:$0xff] %v1693_v20   ;;  %v1089_v25 = vadd.f32 %v1088_v19, %v768_v21  ;;  %v1186_v48 = vpop.f32.mrf.mxu0  ;;  %v1219_v29 = vadd.f32 %v2129_v3, %v1185_v24 }
 0x108   : > { %v770_v22 = vpop.f32.mrf.mxu1 }
 0x109   : > { %v771_v35 = vadd.f32 %v770_v22, %v2096_v23  ;;  %v1235_v38 = vmul.f32 0.1, %v1219_v29 }
 0x10a   : > { %v1137_v28 = vpop.f32.mrf.mxu3 }
 0x10b   : > { %v1138_v30 = vadd.f32 %v1137_v28, %v1089_v25  ;;  %v1251_v43 = vmax.f32 %v1219_v29, %v1235_v38 }
 0x10d   : > { %v1187_v34 = vadd.f32 %v1186_v48, %v1138_v30 }
 0x10e   : > { %v1091_v31 = vpop.f32.mrf.mxu2 }
 0x10f   : > { %v1220_v40 = vadd.f32 %v2129_v3, %v1187_v34  ;;  %v1092_v26 = vadd.f32 %v1091_v31, %v771_v35  ;;  %v1189_v55 = vpop.f32.mrf.mxu0 }
 0x110   : > { %v772_v37 = vpop.f32.mrf.mxu1 }
 0x111   : > { %v1236_v41 = vmul.f32 0.1, %v1220_v40  ;;  %v773_v52 = vadd.f32 %v772_v37, %v2106_v44 }
 0x112   : > { %v1140_v42 = vpop.f32.mrf.mxu3 }
 0x113   : > { %v1252_v45 = vmax.f32 %v1220_v40, %v1236_v41  ;;  %v1141_v50 = vadd.f32 %v1140_v42, %v1092_v26 }
 0x115   : > { %v1698_v33 = vpack.c.bf16 %v1252_v45, %v1251_v43  ;;  %v1190_v56 = vadd.f32 %v1189_v55, %v1141_v50 }
 0x116   : > { %v1093_v51 = vpop.f32.mrf.mxu2 }
 0x117   : > { %1722 = vst [vmem:[%s2137_s4 + $0x18] sm:$0xff] %v1698_v33   ;;  %v1094_v57 = vadd.f32 %v1093_v51, %v773_v52  ;;  %v1191_v23 = vpop.f32.mrf.mxu0  ;;  %v1221_v63 = vadd.f32 %v2129_v3, %v1190_v56 }
 0x118   : > { %v775_v47 = vpop.f32.mrf.mxu1 }
 0x119   : > { %v776_v11 = vadd.f32 %v775_v47, %v2116_v54  ;;  %v1237_v7 = vmul.f32 0.1, %v1221_v63 }
 0x11a   : > { %v1142_v62 = vpop.f32.mrf.mxu3 }
 0x11b   : > { %v1143_v2 = vadd.f32 %v1142_v62, %v1094_v57  ;;  %v1253_v12 = vmax.f32 %v1221_v63, %v1237_v7 }
 0x11d   : > { %v1192_v5 = vadd.f32 %v1191_v23, %v1143_v2 }
 0x11e   : > { %v1096_v6 = vpop.f32.mrf.mxu2 }
 0x11f   : > { %v1222_v8 = vadd.f32 %v2129_v3, %v1192_v5  ;;  %v1097_v27 = vadd.f32 %v1096_v6, %v776_v11  ;;  %v1194_v44 = vpop.f32.mrf.mxu0 }
 0x120   : > { %v777_v32 = vpop.f32.mrf.mxu1 }
 0x121   : > { %v1238_v9 = vmul.f32 0.1, %v1222_v8  ;;  %v778_v0 = vadd.f32 %v777_v32, %v2122_v60 }
 0x122   : > { %v1145_v10 = vpop.f32.mrf.mxu3 }
 0x123   : > { %v1254_v13 = vmax.f32 %v1222_v8, %v1238_v9  ;;  %v1146_v61 = vadd.f32 %v1145_v10, %v1097_v27 }
 0x125   : > { %v1703_v4 = vpack.c.bf16 %v1254_v13, %v1253_v12  ;;  %v1195_v15 = vadd.f32 %v1194_v44, %v1146_v61 }
 0x126   : > { %v1098_v58 = vpop.f32.mrf.mxu2 }
 0x127   : > { %1723 = vst [vmem:[%s2137_s4 + $0x20] sm:$0xff] %v1703_v4   ;;  %v1099_v36 = vadd.f32 %v1098_v58, %v778_v0  ;;  %v1196_v54 = vpop.f32.mrf.mxu0  ;;  %v1223_v17 = vadd.f32 %v2129_v3, %v1195_v15 }
 0x128   : > { %v780_v14 = vpop.f32.mrf.mxu1 }
 0x129   : > { %v781_v19 = vadd.f32 %v780_v14, %v2098_v39  ;;  %v1239_v21 = vmul.f32 0.1, %v1223_v17 }
 0x12a   : > { %v1147_v16 = vpop.f32.mrf.mxu3 }
 0x12b   : > { %v1148_v18 = vadd.f32 %v1147_v16, %v1099_v36  ;;  %v1255_v28 = vmax.f32 %v1223_v17, %v1239_v21 }
 0x12d   : > { %v1197_v53 = vadd.f32 %v1196_v54, %v1148_v18 }
 0x12e   : > { %v1101_v46 = vpop.f32.mrf.mxu2 }
 0x12f   : > { %v1224_v22 = vadd.f32 %v2129_v3, %v1197_v53  ;;  %v1102_v24 = vadd.f32 %v1101_v46, %v781_v19  ;;  %v1199_v60 = vpop.f32.mrf.mxu0 }
 0x130   : > { %v782_v20 = vpop.f32.mrf.mxu1 }
 0x131   : > { %v1240_v25 = vmul.f32 0.1, %v1224_v22  ;;  %v783_v35 = vadd.f32 %v782_v20, %v2110_v49 }
 0x132   : > { %v1150_v48 = vpop.f32.mrf.mxu3 }
 0x133   : > { %v1256_v29 = vmax.f32 %v1224_v22, %v1240_v25  ;;  %v1151_v30 = vadd.f32 %v1150_v48, %v1102_v24 }
 0x135   : > { %v1708_v34 = vpack.c.bf16 %v1256_v29, %v1255_v28  ;;  %v1200_v37 = vadd.f32 %v1199_v60, %v1151_v30 }
 0x136   : > { %v1103_v31 = vpop.f32.mrf.mxu2 }
 0x137   : > { %1724 = vst [vmem:[%s2137_s4 + $0x28] sm:$0xff] %v1708_v34   ;;  %v1104_v38 = vadd.f32 %v1103_v31, %v783_v35  ;;  %v1201_v39 = vpop.f32.mrf.mxu0  ;;  %v1225_v55 = vadd.f32 %v2129_v3, %v1200_v37 }
 0x138   : > { %v785_v40 = vpop.f32.mrf.mxu1 }
 0x139   : > { %v786_v45 = vadd.f32 %v785_v40, %v2120_v59  ;;  %v1241_v50 = vmul.f32 0.1, %v1225_v55 }
 0x13a   : > { %v1152_v26 = vpop.f32.mrf.mxu3 }
 0x13b   : > { %v1153_v41 = vadd.f32 %v1152_v26, %v1104_v38  ;;  %v1257_v57 = vmax.f32 %v1225_v55, %v1241_v50 }
 0x13d   : > { %v1202_v43 = vadd.f32 %v1201_v39, %v1153_v41 }
 0x13e   : > { %v1106_v42 = vpop.f32.mrf.mxu2 }
 0x13f   : > { %v1226_v51 = vadd.f32 %v2129_v3, %v1202_v43  ;;  %v1107_v33 = vadd.f32 %v1106_v42, %v786_v45  ;;  %v1204_v47 = vpop.f32.mrf.mxu0 }
 0x140   : > { %v787_v49 = vpop.f32.mrf.mxu1 }
 0x141   : > { %v1242_v52 = vmul.f32 0.1, %v1226_v51  ;;  %v788_v6 = vadd.f32 %v787_v49, %v2124_v1 }
 0x142   : > { %v1155_v56 = vpop.f32.mrf.mxu3 }
 0x143   : > { %v1258_v23 = vmax.f32 %v1226_v51, %v1242_v52  ;;  %v1156_v62 = vadd.f32 %v1155_v56, %v1107_v33 }
 0x145   : > { %v1713_v2 = vpack.c.bf16 %v1258_v23, %v1257_v57  ;;  %v1205_v5 = vadd.f32 %v1204_v47, %v1156_v62 }
 0x146   : > { %v1108_v63 = vpop.f32.mrf.mxu2 }
 0x147   : > { %1725 = vst [vmem:[%s2137_s4 + $0x30] sm:$0xff] %v1713_v2   ;;  %v1109_v11 = vadd.f32 %v1108_v63, %v788_v6  ;;  %v1227_v32 = vadd.f32 %v2129_v3, %v1205_v5  ;;  %v1206_v8 = vpop.f32.mrf.mxu0 }
 0x149   : > { %v1243_v44 = vmul.f32 0.1, %v1227_v32 }
 0x14a   : > { %v1157_v59 = vpop.f32.mrf.mxu3 }
 0x14b   : > { %v1158_v7 = vadd.f32 %v1157_v59, %v1109_v11  ;;  %v1259_v12 = vmax.f32 %v1227_v32, %v1243_v44 }
 0x14d   : > { %v1207_v27 = vadd.f32 %v1206_v8, %v1158_v7 }
 0x14f   : > { %v1228_v9 = vadd.f32 %v2129_v3, %v1207_v27 }
 0x151   : > { %v1244_v10 = vmul.f32 0.1, %v1228_v9 }
 0x153   : > { %v1260_v13 = vmax.f32 %v1228_v9, %v1244_v10 }
 0x155   : > { %v1718_v61 = vpack.c.bf16 %v1260_v13, %v1259_v12 }
 0x157   : > { %1726 = vst [vmem:[%s2137_s4 + $0x38] sm:$0xff] %v1718_v61  }
 0x158 PF: > { %s13_s12 = sadd.s32 1, %s1767_s12  }
 0x159   : > { %p10_p4 = scmp.ge.s32.totalorder %s13_s12, 4  }
 0x15b   :  { %12 = sbr.rel (!%p10_p4) target bundleno = 1 (0x1), region = 62 }

// kernel: discriminator_p_forward.11
= control target key start
LH: loop header
LB: loop body
LE: loop exit
PB: predicated region body
PF: predicated region fallthrough
CT: control target
= control target key end

     0   :  { %s577_s9 = smov 0   ;;  %s798_s0 = inlined_call_operand.vmem [shape: f32[32,3,128], index: 0, kind: input, shape index: {}]   ;;  %s799_s1 = inlined_call_operand.vmem [shape: f32[3,128], index: 1, kind: input, shape index: {}]   ;;  %s800_s2 = inlined_call_operand.vmem [shape: f32[32,1], index: 2, kind: output, shape index: {}]  }
   0x1 LB: > { %s535_s10 = sadd.s32 4294967295, %s560_s9   ;;  %p539_p0 = scmp.ge.s32.totalorder %s560_s9, 1  ;;  %s560_s9 = sphi %s577_s9, %s12_s9  }
   0x2   : > { %p113_p1 = scmp.lt.s32.totalorder %s560_s9, 3 }
   0x4   : > { %p114_p2 = pnand %p539_p0, %p113_p1 }
   0x5   : > { %s540_s11 = sshll.u32 (!%p114_p2), %s535_s10, 4  ;;  %s542_s22 = sshll.u32 (!%p114_p2), %s535_s10, 1 }
   0x6   : > { %117 = sbr.rel (%p114_p2) target bundleno = 262 (0x106), region = 28  ;;  %p136_p3 = scmp.lt.s32.totalorder (!%p114_p2), %s540_s11, 31 }
   0x7   : > { %p142_p4 = scmp.lt.s32.totalorder (!%p114_p2), %s542_s22, 3 }
   0xb   : > { %s802_s11 = smov (!%p136_p3, %s540_s11), 31  ;;  %v590_v0 = vld [vmem:[%s799_s1] sm:$0x1]  ;;  %vm180_vm0 = vcmask 1040384   ;;  %v645_v46 = vld [vmem:[%s799_s1 + $0x1] sm:$0x1] }
   0xc   : > { %s541_s12 = sshll.u32 %s802_s11, 2  ;;  %vm440_vm1 = vcmask 1041409   ;;  %vm443_vm2 = vcmask 1042434   ;;  %vm446_vm3 = vcmask 1043459   ;;  %vm449_vm4 = vcmask 1044484   ;;  %s804_s22 = smov (!%p142_p4, %s542_s22), 3 }
   0xd   : > { %s595_s17 = scalar_lea.vmem %s798_s0, %s541_s12  ;;  %vm452_vm5 = vcmask 1045509   ;;  %vm455_vm6 = vcmask 1046534   ;;  %s543_s23 = sshll.u32 %s804_s22, 3  ;;  %vm458_vm7 = vcmask 1047559   ;;  %vm476_vm8 = vcmask 7168  }
   0xe   : > { %v151_v1 = vld [vmem:[%s595_s17 + $0x10] sm:$0x1]  ;;  %v149_v2 = vld [vmem:[%s595_s17 + $0x8] sm:$0x1]  ;;  %v147_v3 = vld [vmem:[%s595_s17] sm:$0x1]  ;;  %s145_s26 = scalar_lea.vmem %s800_s2, %s543_s23 }
   0xf   : > { %v168_v4 = vmul.f32 %v590_v0, %v151_v1  ;;  %v166_v5 = vmul.f32 %v590_v0, %v149_v2  ;;  %v164_v6 = vmul.f32 %v590_v0, %v147_v3  ;;  %v152_v7 = vld [vmem:[%s595_s17 + $0x14] sm:$0x1]  ;;  %v150_v8 = vld [vmem:[%s595_s17 + $0xc] sm:$0x1]  ;;  %v148_v12 = vld [vmem:[%s595_s17 + $0x4] sm:$0x1] }
  0x10   : > { %v169_v13 = vmul.f32 %v590_v0, %v152_v7  ;;  %v167_v14 = vmul.f32 %v590_v0, %v150_v8  ;;  %v165_v15 = vmul.f32 %v590_v0, %v148_v12  ;;  %v155_v19 = vld [vmem:[%s595_s17 + $0x20] sm:$0x1]  ;;  %v154_v20 = vld [vmem:[%s595_s17 + $0x1c] sm:$0x1]  ;;  %v153_v21 = vld [vmem:[%s595_s17 + $0x18] sm:$0x1] }
  0x11   : > { %v193_v9 = vsel %vm180_vm0, %v168_v4, 0.0  ;;  %v187_v10 = vsel %vm180_vm0, %v166_v5, 0.0  ;;  %v181_v11 = vsel %vm180_vm0, %v164_v6, 0.0  ;;  %v172_v22 = vmul.f32 %v590_v0, %v155_v19  ;;  %v158_v28 = vld [vmem:[%s595_s17 + $0x2c] sm:$0x1] }
  0x12   : > { %194 = vadd.xlane.f32.xlu2 %v193_v9  ;;  %188 = vadd.xlane.f32.xlu1 %v187_v10  ;;  %v196_v16 = vsel %vm180_vm0, %v169_v13, 0.0  ;;  %v190_v17 = vsel %vm180_vm0, %v167_v14, 0.0  ;;  %v184_v18 = vsel %vm180_vm0, %v165_v15, 0.0  ;;  %v171_v23 = vmul.f32 %v590_v0, %v154_v20  ;;  %v157_v29 = vld [vmem:[%s595_s17 + $0x28] sm:$0x1] }
  0x13   : > { %182 = vadd.xlane.f32.xlu0 %v181_v11  ;;  %v170_v24 = vmul.f32 %v590_v0, %v153_v21  ;;  %v205_v25 = vsel %vm180_vm0, %v172_v22, 0.0  ;;  %v156_v30 = vld [vmem:[%s595_s17 + $0x24] sm:$0x1]  ;;  %v175_v31 = vmul.f32 %v590_v0, %v158_v28  ;;  %v174_v32 = vmul.f32 %v590_v0, %v157_v29  ;;  %v161_v37 = vld [vmem:[%s595_s17 + $0x38] sm:$0x1] }
  0x14   : > { %v202_v26 = vsel %vm180_vm0, %v171_v23, 0.0  ;;  %v173_v33 = vmul.f32 %v590_v0, %v156_v30  ;;  %v160_v38 = vld [vmem:[%s595_s17 + $0x34] sm:$0x1]  ;;  %v159_v39 = vld [vmem:[%s595_s17 + $0x30] sm:$0x1]  ;;  %v178_v40 = vmul.f32 %v590_v0, %v161_v37 }
  0x15   : > { %v199_v27 = vsel %vm180_vm0, %v170_v24, 0.0  ;;  %v214_v34 = vsel %vm180_vm0, %v175_v31, 0.0  ;;  %v211_v35 = vsel %vm180_vm0, %v174_v32, 0.0  ;;  %v177_v41 = vmul.f32 %v590_v0, %v160_v38  ;;  %v230_v45 = vld [vmem:[%s595_s17 + $0x5] sm:$0x1] }
  0x16   : > { %v208_v36 = vsel %vm180_vm0, %v173_v33, 0.0  ;;  %v176_v42 = vmul.f32 %v590_v0, %v159_v39  ;;  %v223_v43 = vsel %vm180_vm0, %v178_v40, 0.0  ;;  %v229_v48 = vld [vmem:[%s595_s17 + $0x1] sm:$0x1]  ;;  %v162_v49 = vld [vmem:[%s595_s17 + $0x3c] sm:$0x1]  ;;  %v247_v50 = vmul.f32 %v645_v46, %v230_v45 }
  0x17   : > { %v220_v44 = vsel %vm180_vm0, %v177_v41, 0.0  ;;  %v246_v51 = vmul.f32 %v645_v46, %v229_v48  ;;  %v179_v52 = vmul.f32 %v590_v0, %v162_v49  ;;  %v233_v56 = vld [vmem:[%s595_s17 + $0x11] sm:$0x1]  ;;  %v232_v57 = vld [vmem:[%s595_s17 + $0xd] sm:$0x1] }
  0x18   : > { %v217_v47 = vsel %vm180_vm0, %v176_v42, 0.0  ;;  %v265_v53 = vsel %vm180_vm0, %v247_v50, 0.0  ;;  %v231_v58 = vld [vmem:[%s595_s17 + $0x9] sm:$0x1]  ;;  %v250_v59 = vmul.f32 %v645_v46, %v233_v56  ;;  %v249_v60 = vmul.f32 %v645_v46, %v232_v57  ;;  %v236_v1 = vld [vmem:[%s595_s17 + $0x1d] sm:$0x1] }
  0x19   : > { %v262_v54 = vsel %vm180_vm0, %v246_v51, 0.0  ;;  %v226_v55 = vsel %vm180_vm0, %v179_v52, 0.0  ;;  %v248_v61 = vmul.f32 %v645_v46, %v231_v58  ;;  %v235_v2 = vld [vmem:[%s595_s17 + $0x19] sm:$0x1]  ;;  %v234_v3 = vld [vmem:[%s595_s17 + $0x15] sm:$0x1]  ;;  %v253_v4 = vmul.f32 %v645_v46, %v236_v1 }
  0x1a   : > { %197 = vadd.xlane.f32.xlu2 %v196_v16  ;;  %191 = vadd.xlane.f32.xlu1 %v190_v17  ;;  %v274_v62 = vsel %vm180_vm0, %v250_v59, 0.0  ;;  %v271_v63 = vsel %vm180_vm0, %v249_v60, 0.0  ;;  %v252_v5 = vmul.f32 %v645_v46, %v235_v2  ;;  %v251_v6 = vmul.f32 %v645_v46, %v234_v3  ;;  %v239_v10 = vld [vmem:[%s595_s17 + $0x29] sm:$0x1]  ;;  %v238_v11 = vld [vmem:[%s595_s17 + $0x25] sm:$0x1] }
  0x1b   : > { %185 = vadd.xlane.f32.xlu0 %v184_v18  ;;  %v268_v0 = vsel %vm180_vm0, %v248_v61, 0.0  ;;  %v283_v7 = vsel %vm180_vm0, %v253_v4, 0.0  ;;  %v237_v12 = vld [vmem:[%s595_s17 + $0x21] sm:$0x1]  ;;  %v256_v13 = vmul.f32 %v645_v46, %v239_v10  ;;  %v255_v14 = vmul.f32 %v645_v46, %v238_v11  ;;  %v242_v19 = vld [vmem:[%s595_s17 + $0x35] sm:$0x1] }
  0x1c   : > { %v280_v8 = vsel %vm180_vm0, %v252_v5, 0.0  ;;  %v277_v9 = vsel %vm180_vm0, %v251_v6, 0.0  ;;  %v254_v15 = vmul.f32 %v645_v46, %v237_v12  ;;  %v241_v20 = vld [vmem:[%s595_s17 + $0x31] sm:$0x1]  ;;  %v240_v21 = vld [vmem:[%s595_s17 + $0x2d] sm:$0x1]  ;;  %v259_v22 = vmul.f32 %v645_v46, %v242_v19 }
  0x1d   : > { %v292_v16 = vsel %vm180_vm0, %v256_v13, 0.0  ;;  %v289_v17 = vsel %vm180_vm0, %v255_v14, 0.0  ;;  %v258_v23 = vmul.f32 %v645_v46, %v241_v20  ;;  %v257_v24 = vmul.f32 %v645_v46, %v240_v21  ;;  %v328_v28 = vld [vmem:[%s595_s17 + $0xa] sm:$0x1]  ;;  %v696_v29 = vld [vmem:[%s799_s1 + $0x2] sm:$0x1] }
  0x1e   : > { %v286_v18 = vsel %vm180_vm0, %v254_v15, 0.0  ;;  %v327_v30 = vld [vmem:[%s595_s17 + $0x6] sm:$0x1]  ;;  %v243_v31 = vld [vmem:[%s595_s17 + $0x39] sm:$0x1]  ;;  %v345_v32 = vmul.f32 %v696_v29, %v328_v28 }
  0x1f   : > { %v344_v33 = vmul.f32 %v696_v29, %v327_v30  ;;  %v329_v38 = vld [vmem:[%s595_s17 + $0xe] sm:$0x1]  ;;  %v326_v39 = vld [vmem:[%s595_s17 + $0x2] sm:$0x1]  ;;  %v335_v40 = vld [vmem:[%s595_s17 + $0x26] sm:$0x1] }
  0x20   : > { %v346_v41 = vmul.f32 %v696_v29, %v329_v38  ;;  %v343_v42 = vmul.f32 %v696_v29, %v326_v39  ;;  %v334_v48 = vld [vmem:[%s595_s17 + $0x22] sm:$0x1]  ;;  %v330_v49 = vld [vmem:[%s595_s17 + $0x12] sm:$0x1]  ;;  %v336_v50 = vld [vmem:[%s595_s17 + $0x2a] sm:$0x1] }
  0x21   : > { %v351_v51 = vmul.f32 %v696_v29, %v334_v48  ;;  %v347_v52 = vmul.f32 %v696_v29, %v330_v49  ;;  %v338_v57 = vld [vmem:[%s595_s17 + $0x32] sm:$0x1]  ;;  %v331_v58 = vld [vmem:[%s595_s17 + $0x16] sm:$0x1]  ;;  %v337_v59 = vld [vmem:[%s595_s17 + $0x2e] sm:$0x1] }
  0x22   : > { %206 = vadd.xlane.f32.xlu2 %v205_v25  ;;  %203 = vadd.xlane.f32.xlu1 %v202_v26  ;;  %v301_v25 = vsel %vm180_vm0, %v259_v22, 0.0  ;;  %v298_v26 = vsel %vm180_vm0, %v258_v23, 0.0  ;;  %v359_v45 = vsel %vm180_vm0, %v343_v42, 0.0  ;;  %v355_v60 = vmul.f32 %v696_v29, %v338_v57  ;;  %v339_v2 = vld [vmem:[%s595_s17 + $0x36] sm:$0x1] }
  0x23   : > { %200 = vadd.xlane.f32.xlu0 %v199_v27  ;;  %v295_v27 = vsel %vm180_vm0, %v257_v24, 0.0  ;;  %v348_v61 = vmul.f32 %v696_v29, %v331_v58  ;;  %v332_v3 = vld [vmem:[%s595_s17 + $0x1a] sm:$0x1]  ;;  %v244_v4 = vld [vmem:[%s595_s17 + $0x3d] sm:$0x1]  ;;  %v356_v5 = vmul.f32 %v696_v29, %v339_v2 }
  0x24   : > { %v349_v6 = vmul.f32 %v696_v29, %v332_v3  ;;  %v341_v11 = vld [vmem:[%s595_s17 + $0x3e] sm:$0x1]  ;;  %v340_v12 = vld [vmem:[%s595_s17 + $0x3a] sm:$0x1] }
  0x25   : > { %v333_v13 = vld [vmem:[%s595_s17 + $0x1e] sm:$0x1]  ;;  %v358_v14 = vmul.f32 %v696_v29, %v341_v11  ;;  %v357_v15 = vmul.f32 %v696_v29, %v340_v12 }
  0x27   : > { %v404_v19 = vsel %vm180_vm0, %v358_v14, 0.0  ;;  %v401_v20 = vsel %vm180_vm0, %v357_v15, 0.0 }
  0x2a   : > { %215 = vadd.xlane.f32.xlu2 %v214_v34  ;;  %212 = vadd.xlane.f32.xlu1 %v211_v35  ;;  %v260_v34 = vmul.f32 %v645_v46, %v243_v31  ;;  %v365_v35 = vsel %vm180_vm0, %v345_v32, 0.0 }
  0x2b   : > { %209 = vadd.xlane.f32.xlu0 %v208_v36  ;;  %v362_v36 = vsel %vm180_vm0, %v344_v33, 0.0 }
  0x2c   : > { %v304_v37 = vsel %vm180_vm0, %v260_v34, 0.0 }
  0x32   : > { %224 = vadd.xlane.f32.xlu2 %v223_v43  ;;  %221 = vadd.xlane.f32.xlu1 %v220_v44  ;;  %v352_v43 = vmul.f32 %v696_v29, %v335_v40  ;;  %v368_v44 = vsel %vm180_vm0, %v346_v41, 0.0 }
  0x33   : > { %218 = vadd.xlane.f32.xlu0 %v217_v47 }
  0x34   : > { %v386_v47 = vsel %vm180_vm0, %v352_v43, 0.0 }
  0x3a   : > { %266 = vadd.xlane.f32.xlu2 %v265_v53  ;;  %263 = vadd.xlane.f32.xlu1 %v262_v54  ;;  %v353_v53 = vmul.f32 %v696_v29, %v336_v50  ;;  %v383_v54 = vsel %vm180_vm0, %v351_v51, 0.0 }
  0x3b   : > { %227 = vadd.xlane.f32.xlu0 %v226_v55  ;;  %v371_v55 = vsel %vm180_vm0, %v347_v52, 0.0 }
  0x3c   : > { %v389_v56 = vsel %vm180_vm0, %v353_v53, 0.0 }
  0x42   : > { %275 = vadd.xlane.f32.xlu2 %v274_v62  ;;  %272 = vadd.xlane.f32.xlu1 %v271_v63  ;;  %v354_v62 = vmul.f32 %v696_v29, %v337_v59  ;;  %v395_v63 = vsel %vm180_vm0, %v355_v60, 0.0 }
  0x43   : > { %269 = vadd.xlane.f32.xlu0 %v268_v0  ;;  %v374_v0 = vsel %vm180_vm0, %v348_v61, 0.0 }
  0x44   : > { %v392_v1 = vsel %vm180_vm0, %v354_v62, 0.0 }
  0x4a   : > { %284 = vadd.xlane.f32.xlu2 %v283_v7  ;;  %281 = vadd.xlane.f32.xlu1 %v280_v8  ;;  %v261_v7 = vmul.f32 %v645_v46, %v244_v4  ;;  %v398_v8 = vsel %vm180_vm0, %v356_v5, 0.0 }
  0x4b   : > { %278 = vadd.xlane.f32.xlu0 %v277_v9  ;;  %v377_v9 = vsel %vm180_vm0, %v349_v6, 0.0 }
  0x4c   : > { %v307_v10 = vsel %vm180_vm0, %v261_v7, 0.0 }
  0x52   : > { %293 = vadd.xlane.f32.xlu2 %v292_v16  ;;  %290 = vadd.xlane.f32.xlu1 %v289_v17  ;;  %v350_v16 = vmul.f32 %v696_v29, %v333_v13 }
  0x53   : > { %287 = vadd.xlane.f32.xlu0 %v286_v18 }
  0x54   : > { %v380_v21 = vsel %vm180_vm0, %v350_v16, 0.0 }
  0x5a   : > { %302 = vadd.xlane.f32.xlu2 %v301_v25  ;;  %299 = vadd.xlane.f32.xlu1 %v298_v26 }
  0x5b   : > { %296 = vadd.xlane.f32.xlu0 %v295_v27 }
  0x62   : > { %366 = vadd.xlane.f32.xlu2 %v365_v35  ;;  %363 = vadd.xlane.f32.xlu1 %v362_v36 }
  0x63   : > { %305 = vadd.xlane.f32.xlu0 %v304_v37 }
  0x6a   : > { %369 = vadd.xlane.f32.xlu2 %v368_v44  ;;  %360 = vadd.xlane.f32.xlu1 %v359_v45 }
  0x6b   : > { %387 = vadd.xlane.f32.xlu0 %v386_v47 }
  0x72   : > { %384 = vadd.xlane.f32.xlu2 %v383_v54  ;;  %372 = vadd.xlane.f32.xlu1 %v371_v55 }
  0x73   : > { %390 = vadd.xlane.f32.xlu0 %v389_v56 }
  0x7a   : > { %396 = vadd.xlane.f32.xlu2 %v395_v63  ;;  %375 = vadd.xlane.f32.xlu1 %v374_v0 }
  0x7b   : > { %393 = vadd.xlane.f32.xlu0 %v392_v1 }
  0x82   : > { %399 = vadd.xlane.f32.xlu2 %v398_v8  ;;  %378 = vadd.xlane.f32.xlu1 %v377_v9 }
  0x83   : > { %308 = vadd.xlane.f32.xlu0 %v307_v10 }
  0x85   : > { %v195_v17 = vpop.xlane.xlu2 %194  ;;  %v189_v46 = vpop.xlane.xlu1 %188 }
  0x86   : > { %v183_v18 = vpop.xlane.xlu0 %182 }
  0x8a   : > { %405 = vadd.xlane.f32.xlu2 %v404_v19  ;;  %402 = vadd.xlane.f32.xlu1 %v401_v20 }
  0x8b   : > { %381 = vadd.xlane.f32.xlu0 %v380_v21 }
  0x8d   : > { %v751_v22 = vpop.xlane.xlu2 %197  ;;  %v192_v23 = vpop.xlane.xlu1 %191 }
  0x8e   : > { %v186_v24 = vpop.xlane.xlu0 %185 }
  0x95   : > { %v207_v25 = vpop.xlane.xlu2 %206  ;;  %v753_v26 = vpop.xlane.xlu1 %203 }
  0x96   : > { %v755_v27 = vpop.xlane.xlu0 %200 }
  0x9d   : > { %v757_v28 = vpop.xlane.xlu2 %215  ;;  %v213_v29 = vpop.xlane.xlu1 %212 }
  0x9e   : > { %v210_v30 = vpop.xlane.xlu0 %209 }
  0xa5   : > { %v759_v31 = vpop.xlane.xlu2 %224  ;;  %v761_v32 = vpop.xlane.xlu1 %221 }
  0xa6   : > { %v219_v33 = vpop.xlane.xlu0 %218 }
  0xad   : > { %v267_v34 = vpop.xlane.xlu2 %266  ;;  %v264_v35 = vpop.xlane.xlu1 %263 }
  0xae   : > { %v311_v36 = vadd.f32 %v267_v34, %v186_v24  ;;  %v310_v37 = vadd.f32 %v264_v35, %v183_v18  ;;  %v763_v38 = vpop.xlane.xlu0 %227 }
  0xb5   : > { %v276_v39 = vpop.xlane.xlu2 %275  ;;  %v273_v40 = vpop.xlane.xlu1 %272 }
  0xb6   : > { %v314_v41 = vadd.f32 %v276_v39, %v195_v17  ;;  %v313_v42 = vadd.f32 %v273_v40, %v192_v23  ;;  %v270_v43 = vpop.xlane.xlu0 %269 }
  0xb7   : > { %v312_v44 = vadd.f32 %v270_v43, %v189_v46 }
  0xbd   : > { %v765_v45 = vpop.xlane.xlu2 %284  ;;  %v282_v47 = vpop.xlane.xlu1 %281 }
  0xbe   : > { %v279_v48 = vpop.xlane.xlu0 %278 }
  0xbf   : > { %v315_v23 = vadd.f32 %v279_v48, %v751_v22  ;;  %v316_v22 = vadd.f32 %v282_v47, %v755_v27  ;;  %v317_v47 = vadd.f32 %v765_v45, %v753_v26 }
  0xc5   : > { %v294_v49 = vpop.xlane.xlu2 %293  ;;  %v291_v50 = vpop.xlane.xlu1 %290 }
  0xc6   : > { %v288_v51 = vpop.xlane.xlu0 %287  ;;  %v319_v3 = vadd.f32 %v291_v50, %v210_v30  ;;  %v320_v10 = vadd.f32 %v294_v49, %v213_v29 }
  0xc7   : > { %v318_v9 = vadd.f32 %v288_v51, %v207_v25 }
  0xcd   : > { %v303_v52 = vpop.xlane.xlu2 %302  ;;  %v300_v53 = vpop.xlane.xlu1 %299 }
  0xce   : > { %v297_v54 = vpop.xlane.xlu0 %296  ;;  %v322_v24 = vadd.f32 %v300_v53, %v219_v33 }
  0xcf   : > { %v321_v25 = vadd.f32 %v297_v54, %v757_v28  ;;  %v323_v28 = vadd.f32 %v303_v52, %v761_v32 }
  0xd5   : > { %v367_v55 = vpop.xlane.xlu2 %366  ;;  %v364_v56 = vpop.xlane.xlu1 %363 }
  0xd6   : > { %v767_v57 = vpop.xlane.xlu0 %305  ;;  %v408_v58 = vadd.f32 %v364_v56, %v311_v36  ;;  %v409_v59 = vadd.f32 %v367_v55, %v312_v44 }
  0xd7   : > { %v324_v27 = vadd.f32 %v767_v57, %v759_v31 }
  0xd8   : > { %v439_v62 = vrot.slane %v408_v58, 7  ;;  %v442_v2 = vrot.slane %v409_v59, 6 }
  0xdd   : > { %v370_v60 = vpop.xlane.xlu2 %369  ;;  %v361_v61 = vpop.xlane.xlu1 %360 }
  0xde   : > { %v410_v63 = vadd.f32 %v370_v60, %v313_v42  ;;  %v407_v0 = vadd.f32 %v361_v61, %v310_v37  ;;  %v388_v1 = vpop.xlane.xlu0 %387 }
  0xdf   : > { %v416_v7 = vadd.f32 %v388_v1, %v319_v3 }
  0xe0   : > { %v445_v4 = vrot.slane %v410_v63, 5  ;;  %v441_v5 = vsel %vm440_vm1, %v439_v62, %v407_v0 }
  0xe1   : > { %v444_v6 = vsel %vm443_vm2, %v442_v2, %v441_v5  ;;  %v460_v13 = vrot.slane %v416_v7, 7 }
  0xe2   : > { %v447_v8 = vsel %vm446_vm3, %v445_v4, %v444_v6 }
  0xe5   : > { %v385_v11 = vpop.xlane.xlu2 %384  ;;  %v373_v12 = vpop.xlane.xlu1 %372 }
  0xe6   : > { %v415_v14 = vadd.f32 %v385_v11, %v318_v9  ;;  %v411_v15 = vadd.f32 %v373_v12, %v314_v41  ;;  %v391_v16 = vpop.xlane.xlu0 %390 }
  0xe7   : > { %v417_v17 = vadd.f32 %v391_v16, %v320_v10 }
  0xe8   : > { %v461_v46 = vsel %vm440_vm1, %v460_v13, %v415_v14  ;;  %v448_v18 = vrot.slane %v411_v15, 4 }
  0xe9   : > { %v462_v19 = vrot.slane %v417_v17, 6 }
  0xea   : > { %v450_v20 = vsel %vm449_vm4, %v448_v18, %v447_v8 }
  0xeb   : > { %v463_v21 = vsel %vm443_vm2, %v462_v19, %v461_v46 }
  0xed   : > { %v397_v29 = vpop.xlane.xlu2 %396  ;;  %v376_v30 = vpop.xlane.xlu1 %375 }
  0xee   : > { %v419_v34 = vadd.f32 %v397_v29, %v322_v24  ;;  %v412_v35 = vadd.f32 %v376_v30, %v315_v23  ;;  %v394_v36 = vpop.xlane.xlu0 %393 }
  0xef   : > { %v418_v37 = vadd.f32 %v394_v36, %v321_v25 }
  0xf0   : > { %v466_v39 = vrot.slane %v419_v34, 4  ;;  %v451_v40 = vrot.slane %v412_v35, 3 }
  0xf1   : > { %v464_v41 = vrot.slane %v418_v37, 5 }
  0xf2   : > { %v453_v42 = vsel %vm452_vm5, %v451_v40, %v450_v20 }
  0xf3   : > { %v465_v43 = vsel %vm446_vm3, %v464_v41, %v463_v21 }
  0xf4   : > { %v467_v33 = vsel %vm449_vm4, %v466_v39, %v465_v43 }
  0xf5   : > { %v400_v44 = vpop.xlane.xlu2 %399  ;;  %v379_v48 = vpop.xlane.xlu1 %378 }
  0xf6   : > { %v420_v49 = vadd.f32 %v400_v44, %v323_v28  ;;  %v413_v50 = vadd.f32 %v379_v48, %v316_v22  ;;  %v309_v51 = vpop.xlane.xlu0 %308 }
  0xf7   : > { %v325_v32 = vadd.f32 %v309_v51, %v763_v38 }
  0xf8   : > { %v468_v53 = vrot.slane %v420_v49, 3  ;;  %v454_v54 = vrot.slane %v413_v50, 2 }
  0xfa   : > { %v469_v55 = vsel %vm452_vm5, %v468_v53, %v467_v33  ;;  %v456_v56 = vsel %vm455_vm6, %v454_v54, %v453_v42 }
  0xfd   : > { %v406_v52 = vpop.xlane.xlu2 %405  ;;  %v403_v58 = vpop.xlane.xlu1 %402 }
  0xfe   : > { %v422_v59 = vadd.f32 %v406_v52, %v325_v32  ;;  %v421_v60 = vadd.f32 %v403_v58, %v324_v27  ;;  %v382_v61 = vpop.xlane.xlu0 %381 }
  0xff   : > { %v414_v62 = vadd.f32 %v382_v61, %v317_v47 }
 0x100   : > { %v472_v63 = vrot.slane %v422_v59, 1  ;;  %v470_v0 = vrot.slane %v421_v60, 2 }
 0x101   : > { %v457_v31 = vrot.slane %v414_v62, 1 }
 0x102   : > { %v471_v38 = vsel %vm455_vm6, %v470_v0, %v469_v55 }
 0x103   : > { %v473_v57 = vsel %vm458_vm7, %v472_v63, %v471_v38  ;;  %v459_v26 = vsel %vm458_vm7, %v457_v31, %v456_v56 }
 0x104   : > { %477 = vst.msk [vmem:[%s145_s26] sm:$0xff] %vm476_vm8, %v459_v26 }
 0x105   : > { %478 = vst.msk [vmem:[%s145_s26 + $0x8] sm:$0xff] %vm476_vm8, %v473_v57 }
 0x106 PF: > { %s12_s9 = sadd.s32 1, %s560_s9  }
 0x107   : > { %p9_p5 = scmp.ge.s32.totalorder %s12_s9, 4  }
 0x109   :  { %11 = sbr.rel (!%p9_p5) target bundleno = 1 (0x1), region = 58 }

// kernel: discriminator_p_forward.10
= control target key start
LH: loop header
LB: loop body
LE: loop exit
PB: predicated region body
PF: predicated region fallthrough
CT: control target
= control target key end

     0   :  { %s2301_s12 = smov 0   ;;  %s2916_s0 = inlined_call_operand.vmem [shape: bf16[32,12,128], index: 0, kind: input, shape index: {}]   ;;  %s2917_s1 = inlined_call_operand.vmem [shape: bf16[640,128], index: 1, kind: input, shape index: {}]   ;;  %s2918_s2 = inlined_call_operand.vmem [shape: f32[1,128], index: 2, kind: input, shape index: {}]   ;;  %s2919_s3 = inlined_call_operand.vmem [shape: bf16[32,8,128], index: 3, kind: output, shape index: {}]  }
   0x1 LB: > { %s1902_s13 = sadd.s32 4294967295, %s2279_s12   ;;  %p1906_p0 = scmp.ge.s32.totalorder %s2279_s12, 1  ;;  %s2279_s12 = sphi %s2301_s12, %s13_s12  }
   0x2   : > { %p139_p1 = scmp.lt.s32.totalorder %s2279_s12, 3 }
   0x4   : > { %p140_p2 = pnand %p1906_p0, %p139_p1 }
   0x5   : > { %s1907_s16 = sshll.u32 (!%p140_p2), %s1902_s13, 4 }
   0x6   : > { %143 = sbr.rel (%p140_p2) target bundleno = 342 (0x156), region = 32  ;;  %p165_p3 = scmp.lt.s32.totalorder (!%p140_p2), %s1907_s16, 31 }
   0xb   : > { %v2162_v0 = vld [vmem:[%s2917_s1 + $0x78] sm:$0xff]  ;;  %v2161_v1 = vld [vmem:[%s2917_s1 + $0x70] sm:$0xff]  ;;  %s2929_s16 = smov (!%p165_p3, %s1907_s16), 31  ;;  %v2160_v2 = vld [vmem:[%s2917_s1 + $0x68] sm:$0xff]  ;;  %vm225_vm0 = vsmask.f32 3328 }
   0xc   : > { %2234 = vmatpush.bf16.msra.mxu1 %v2162_v0  ;;  %2235 = vmatpush.bf16.msra.mxu2 %v2162_v0  ;;  %s2138_s19 = sshll.u32 %s2929_s16, 3  ;;  %vm226_vm1 = vsmask.f32 7440  ;;  %v2159_v6 = vld [vmem:[%s2917_s1 + $0x60] sm:$0xff]  ;;  %v2158_v31 = vld [vmem:[%s2917_s1 + $0x58] sm:$0xff]  ;;  %v2157_v56 = vld [vmem:[%s2917_s1 + $0x50] sm:$0xff] }
   0xd   : > { %2236 = vmatpush.bf16.msra.mxu3 %v2162_v0  ;;  %548 = vmatpush.bf16.msra.mxu0 %v2162_v0  ;;  %s2324_s24 = scalar_lea.vmem %s2916_s0, %s2138_s19  ;;  %vm2349_vm2 = vmor %vm225_vm0, %vm226_vm1  ;;  %vm790_vm3 = vcmask 1042432   ;;  %vm791_vm4 = vcmask 1046532   ;;  %vm1034_vm6 = vsmask.f32 2304  ;;  %vm1035_vm7 = vsmask.f32 6416 }
   0xe   : > { %v181_v3 = vld [vmem:[%s2324_s24 + $0x20] sm:$0xf]  ;;  %v182_v4 = vld [vmem:[%s2324_s24 + $0x28] sm:$0xf]  ;;  %v2329_v5 = vld [vmem:[%s2324_s24 + $0x24] sm:$0x1] }
   0xf   : > { %v2335_v7 = vld [vmem:[%s2324_s24 + $0x2c] sm:$0x1]  ;;  %v285_v8 = vshrl.u32 %v181_v3, 16  ;;  %v288_v9 = vshll.u32 %v181_v3, 16  ;;  %v294_v10 = vshll.u32 %v2329_v5, 16  ;;  %v299_v11 = vshrl.u32 %v182_v4, 16  ;;  %vm2535_vm5 = vmor %vm790_vm3, %vm791_vm4 }
  0x10   : > { %2237 = vmatpush.bf16.msra.mxu1 %v2161_v1  ;;  %2238 = vmatpush.bf16.msra.mxu2 %v2161_v1  ;;  %v302_v12 = vshll.u32 %v182_v4, 16  ;;  %v308_v13 = vshll.u32 %v2335_v7, 16  ;;  %v185_v14 = vld [vmem:[%s2324_s24 + $0x40] sm:$0xf]  ;;  %v186_v15 = vld [vmem:[%s2324_s24 + $0x48] sm:$0xf]  ;;  %vm2591_vm9 = vmor %vm1034_vm6, %vm1035_vm7 }
  0x11   : > { %2239 = vmatpush.bf16.msra.mxu3 %v2161_v1  ;;  %549 = vmatpush.bf16.msra.mxu0 %v2161_v1  ;;  %v287_v16 = vrot.slane %v285_v8, 4  ;;  %v290_v17 = vrot.slane %v288_v9, 5  ;;  %v296_v18 = vrot.slane %v294_v10, 5  ;;  %v301_v19 = vrot.slane %v299_v11, 4  ;;  %v217_v20 = vld [vmem:[%s2324_s24 + $0x44] sm:$0x1] }
  0x12   : > { %v304_v21 = vrot.slane %v302_v12, 5  ;;  %v310_v22 = vrot.slane %v308_v13, 5  ;;  %v218_v23 = vld [vmem:[%s2324_s24 + $0x4c] sm:$0x1]  ;;  %v341_v24 = vshrl.u32 %v185_v14, 16  ;;  %v344_v25 = vshll.u32 %v185_v14, 16 }
  0x13   : > { %v291_v26 = vor.u32 %v290_v17, %v287_v16  ;;  %v350_v27 = vshll.u32 %v217_v20, 16  ;;  %v355_v28 = vshrl.u32 %v186_v15, 16  ;;  %v358_v29 = vshll.u32 %v186_v15, 16  ;;  %v189_v30 = vld [vmem:[%s2324_s24 + $0x60] sm:$0xf]  ;;  %v2156_v10 = vld [vmem:[%s2917_s1 + $0x48] sm:$0xff] }
  0x14   : > { %2240 = vmatpush.bf16.msra.mxu1 %v2160_v2  ;;  %2241 = vmatpush.bf16.msra.mxu2 %v2160_v2  ;;  %v305_v33 = vor.u32 %v304_v21, %v301_v19  ;;  %v343_v34 = vrot.slane %v341_v24, 4  ;;  %v346_v35 = vrot.slane %v344_v25, 5  ;;  %v364_v36 = vshll.u32 %v218_v23, 16  ;;  %v221_v41 = vld [vmem:[%s2324_s24 + $0x64] sm:$0x1]  ;;  %s1911_s28 = sshll.u32 %s2929_s16, 2 }
  0x15   : > { %2242 = vmatpush.bf16.msra.mxu3 %v2160_v2  ;;  %550 = vmatpush.bf16.msra.mxu0 %v2160_v2  ;;  %v292_v37 = vrot.slane %v291_v26, 4  ;;  %v352_v38 = vrot.slane %v350_v27, 5  ;;  %v357_v39 = vrot.slane %v355_v28, 4  ;;  %v360_v40 = vrot.slane %v358_v29, 5  ;;  %v190_v48 = vld [vmem:[%s2324_s24 + $0x68] sm:$0xf]  ;;  %s2877_s4 = scalar_lea.vmem %s2919_s3, %s1911_s28 }
  0x16   : > { %v306_v42 = vrot.slane %v305_v33, 4  ;;  %v347_v43 = vor.u32 %v346_v35, %v343_v34  ;;  %v366_v44 = vrot.slane %v364_v36, 5  ;;  %v397_v45 = vshrl.u32 %v189_v30, 16  ;;  %v222_v49 = vld [vmem:[%s2324_s24 + $0x6c] sm:$0x1]  ;;  %v2155_v36 = vld [vmem:[%s2917_s1 + $0x40] sm:$0xff] }
  0x17   : > { %v297_v46 = vsel %vm2349_vm2, %v292_v37, %v296_v18  ;;  %v361_v47 = vor.u32 %v360_v40, %v357_v39  ;;  %v400_v50 = vshll.u32 %v189_v30, 16  ;;  %v406_v51 = vshll.u32 %v221_v41, 16  ;;  %v177_v61 = vld [vmem:[%s2324_s24] sm:$0xf]  ;;  %v2371_v2 = vld [vmem:[%s2324_s24 + $0x4] sm:$0x1] }
  0x18   : > { %2243 = vmatpush.bf16.msra.mxu1 %v2159_v6  ;;  %2244 = vmatpush.bf16.msra.mxu2 %v2159_v6  ;;  %v311_v52 = vsel %vm2349_vm2, %v306_v42, %v310_v22  ;;  %v2360_v53 = vunpack.c.l.b16 %v297_v46  ;;  %v348_v54 = vrot.slane %v347_v43, 4  ;;  %v399_v55 = vrot.slane %v397_v45, 4  ;;  %v178_v9 = vld [vmem:[%s2324_s24 + $0x8] sm:$0xf]  ;;  %v2386_v16 = vld [vmem:[%s2324_s24 + $0xc] sm:$0x1] }
  0x19   : > { %2245 = vmatpush.bf16.msra.mxu3 %v2159_v6  ;;  %551 = vmatpush.bf16.msra.mxu0 %v2159_v6  ;;  %v2365_v57 = vunpack.c.l.b16 %v311_v52  ;;  %v362_v58 = vrot.slane %v361_v47, 4  ;;  %v402_v59 = vrot.slane %v400_v50, 5  ;;  %v408_v60 = vrot.slane %v406_v51, 5  ;;  %v183_v24 = vld [vmem:[%s2324_s24 + $0x30] sm:$0xf]  ;;  %v2170_v42 = vld [vmem:[%s2917_s1 + $0xb8] sm:$0xff] }
  0x1a   : > { %v353_v62 = vsel %vm2349_vm2, %v348_v54, %v352_v38  ;;  %v411_v63 = vshrl.u32 %v190_v48, 16  ;;  %v414_v0 = vshll.u32 %v190_v48, 16  ;;  %v420_v1 = vshll.u32 %v222_v49, 16  ;;  %v184_v25 = vld [vmem:[%s2324_s24 + $0x38] sm:$0xf] }
  0x1b   : > { %v486_v3 = vpack.c.b16 %v2365_v57, %v2360_v53  ;;  %v367_v4 = vsel %vm2349_vm2, %v362_v58, %v366_v44  ;;  %v2377_v6 = vunpack.c.l.b16 %v353_v62  ;;  %v403_v8 = vor.u32 %v402_v59, %v399_v55  ;;  %v2396_v30 = vld [vmem:[%s2324_s24 + $0x34] sm:$0x1]  ;;  %v2408_v44 = vld [vmem:[%s2324_s24 + $0x3c] sm:$0x1]  ;;  %v187_v52 = vld [vmem:[%s2324_s24 + $0x50] sm:$0xf] }
  0x1c   : > { %2246 = vmatpush.bf16.msra.mxu1 %v2158_v31  ;;  %2247 = vmatpush.bf16.msra.mxu2 %v2158_v31  ;;  %v2383_v11 = vunpack.c.l.b16 %v367_v4  ;;  %v413_v12 = vrot.slane %v411_v63, 4  ;;  %v416_v13 = vrot.slane %v414_v0, 5  ;;  %v422_v14 = vrot.slane %v420_v1, 5  ;;  %v2154_v48 = vld [vmem:[%s2917_s1 + $0x38] sm:$0xff]  ;;  %v2425_v1 = vld [vmem:[%s2324_s24 + $0x54] sm:$0x1] }
  0x1d   : > { %2248 = vmatpush.bf16.msra.mxu3 %v2158_v31  ;;  %552 = vmatpush.bf16.msra.mxu0 %v2158_v31  ;;  %v404_v15 = vrot.slane %v403_v8, 4  ;;  %v229_v17 = vshrl.u32 %v177_v61, 16  ;;  %v232_v18 = vshll.u32 %v177_v61, 16  ;;  %v238_v19 = vshll.u32 %v2371_v2, 16  ;;  %v2186_v55 = vld [vmem:[%s2917_s1 + $0x138] sm:$0xff] }
  0x1e   : > { %v488_v20 = vpack.c.b16 %v2383_v11, %v2377_v6  ;;  %v417_v21 = vor.u32 %v416_v13, %v413_v12  ;;  %v243_v22 = vshrl.u32 %v178_v9, 16  ;;  %v246_v23 = vshll.u32 %v178_v9, 16  ;;  %v188_v0 = vld [vmem:[%s2324_s24 + $0x58] sm:$0xf] }
  0x1f   : > { %v409_v26 = vsel %vm2349_vm2, %v404_v15, %v408_v60  ;;  %v231_v27 = vrot.slane %v229_v17, 4  ;;  %v234_v28 = vrot.slane %v232_v18, 5  ;;  %v240_v29 = vrot.slane %v238_v19, 5  ;;  %v2178_v4 = vld [vmem:[%s2917_s1 + $0xf8] sm:$0xff] }
  0x20   : > { %2249 = vmatpush.bf16.msra.mxu1 %v2157_v56  ;;  %2250 = vmatpush.bf16.msra.mxu2 %v2157_v56  ;;  %v418_v31 = vrot.slane %v417_v21, 4  ;;  %v480_v33 = vunpack.c.l.b16 %v409_v26  ;;  %v245_v34 = vrot.slane %v243_v22, 4  ;;  %v248_v35 = vrot.slane %v246_v23, 5  ;;  %v2436_v18 = vld [vmem:[%s2324_s24 + $0x5c] sm:$0x1]  ;;  %v2153_v21 = vld [vmem:[%s2917_s1 + $0x30] sm:$0xff] }
  0x21   : > { %2251 = vmatpush.bf16.msra.mxu3 %v2157_v56  ;;  %553 = vmatpush.bf16.msra.mxu0 %v2157_v56  ;;  %v235_v37 = vor.u32 %v234_v28, %v231_v27  ;;  %v252_v38 = vshll.u32 %v2386_v16, 16  ;;  %v313_v39 = vshrl.u32 %v183_v24, 16  ;;  %v316_v40 = vshll.u32 %v183_v24, 16  ;;  %v2185_v22 = vld [vmem:[%s2917_s1 + $0x130] sm:$0xff] }
  0x22   : > { %v423_v41 = vsel %vm2349_vm2, %v418_v31, %v422_v14  ;;  %v249_v43 = vor.u32 %v248_v35, %v245_v34  ;;  %v322_v45 = vshll.u32 %v2396_v30, 16  ;;  %v327_v46 = vshrl.u32 %v184_v25, 16  ;;  %v2169_v14 = vld [vmem:[%s2917_s1 + $0xb0] sm:$0xff]  ;;  %v2168_v34 = vld [vmem:[%s2917_s1 + $0xa8] sm:$0xff] }
  0x23   : > { %v481_v47 = vunpack.c.l.b16 %v423_v41  ;;  %v236_v49 = vrot.slane %v235_v37, 4  ;;  %v254_v50 = vrot.slane %v252_v38, 5  ;;  %v315_v51 = vrot.slane %v313_v39, 4  ;;  %v223_v26 = vld [vmem:[%s2324_s24 + $0x74] sm:$0x1]  ;;  %v2152_v39 = vld [vmem:[%s2917_s1 + $0x28] sm:$0xff] }
  0x24   : > { %2252 = vmatpush.bf16.msra.mxu1 %v2156_v10  ;;  %2253 = vmatpush.bf16.msra.mxu2 %v2156_v10  ;;  %v250_v54 = vrot.slane %v249_v43, 4  ;;  %v318_v56 = vrot.slane %v316_v40, 5  ;;  %v2418_v58 = vrot.slane %v322_v45, 5  ;;  %v329_v59 = vrot.slane %v327_v46, 4  ;;  %v2177_v27 = vld [vmem:[%s2917_s1 + $0xf0] sm:$0xff]  ;;  %v2184_v45 = vld [vmem:[%s2917_s1 + $0x128] sm:$0xff] }
  0x25   : > { %2254 = vmatpush.bf16.msra.mxu3 %v2156_v10  ;;  %554 = vmatpush.bf16.msra.mxu0 %v2156_v10  ;;  %v490_v60 = vpack.c.b16 %v481_v47, %v480_v33  ;;  %v241_v61 = vsel %vm2349_vm2, %v236_v49, %v240_v29  ;;  %v330_v62 = vshll.u32 %v184_v25, 16  ;;  %v336_v63 = vshll.u32 %v2408_v44, 16  ;;  %v192_v33 = vld [vmem:[%s2324_s24 + $0x78] sm:$0xf]  ;;  %v224_v49 = vld [vmem:[%s2324_s24 + $0x7c] sm:$0x1] }
  0x26   : > { %v255_v8 = vsel %vm2349_vm2, %v250_v54, %v254_v50  ;;  %v468_v9 = vunpack.c.l.b16 %v241_v61  ;;  %v319_v10 = vor.u32 %v318_v56, %v315_v51  ;;  %v369_v12 = vshrl.u32 %v187_v52, 16  ;;  %v2176_v51 = vld [vmem:[%s2917_s1 + $0xe8] sm:$0xff] }
  0x27   : > { %v469_v13 = vunpack.c.l.b16 %v255_v8  ;;  %v332_v15 = vrot.slane %v330_v62, 5  ;;  %v338_v17 = vrot.slane %v336_v63, 5  ;;  %v372_v19 = vshll.u32 %v187_v52, 16 }
  0x28   : > { %2255 = vmatpush.bf16.msra.mxu1 %v2155_v36  ;;  %2256 = vmatpush.bf16.msra.mxu2 %v2155_v36  ;;  %v320_v23 = vrot.slane %v319_v10, 4  ;;  %v371_v24 = vrot.slane %v369_v12, 4  ;;  %v378_v25 = vshll.u32 %v2425_v1, 16  ;;  %v383_v53 = vshrl.u32 %v188_v0, 16 }
  0x29   : > { %2257 = vmatpush.bf16.msra.mxu3 %v2155_v36  ;;  %555 = vmatpush.bf16.msra.mxu0 %v2155_v36  ;;  %v484_v57 = vpack.c.b16 %v469_v13, %v468_v9  ;;  %v374_v6 = vrot.slane %v372_v19, 5  ;;  %v386_v11 = vshll.u32 %v188_v0, 16  ;;  %v392_v31 = vshll.u32 %v2436_v18, 16  ;;  %v2487_v0 = vld [vmem:[%s2324_s24 + $0x14] sm:$0x1] }
  0x2a   : > { %v325_v28 = vsel %vm2349_vm2, %v320_v23, %v2418_v58  ;;  %v385_v29 = vrot.slane %v383_v53, 4  ;;  %v380_v37 = vrot.slane %v378_v25, 5  ;;  %v434_v43 = vshll.u32 %v223_v26, 16  ;;  %v179_v58 = vld [vmem:[%s2324_s24 + $0x10] sm:$0xf] }
  0x2b   : > { %566 = vmatmul.bf16.vlgmr.msra.gmra.mxu1 %v486_v3  ;;  %576 = vmatmul.bf16.vlgmr.msra.gmra.mxu2 %v488_v20  ;;  %v333_v3 = vor.u32 %v332_v15, %v329_v59  ;;  %v191_v20 = vld [vmem:[%s2324_s24 + $0x70] sm:$0xf]  ;;  %v375_v36 = vor.u32 %v374_v6, %v371_v24  ;;  %v388_v38 = vrot.slane %v386_v11, 5  ;;  %v394_v40 = vrot.slane %v392_v31, 5  ;;  %v2167_v59 = vld [vmem:[%s2917_s1 + $0xa0] sm:$0xff]  ;;  %v2150_v31 = vld [vmem:[%s2917_s1 + $0x18] sm:$0xff] }
  0x2c   : > { %953 = vmatpush.bf16.msrb.mxu2 %v2170_v42  ;;  %693 = vmatpush.bf16.msrb.mxu1 %v2154_v48  ;;  %v425_v41 = vshrl.u32 %v191_v20, 16  ;;  %v428_v42 = vshll.u32 %v191_v20, 16  ;;  %v439_v50 = vshrl.u32 %v192_v33, 16  ;;  %v2476_v52 = vunpack.c.l.b16 %v325_v28  ;;  %v180_v13 = vld [vmem:[%s2324_s24 + $0x18] sm:$0xf] }
  0x2d   : > { %586 = vmatmul.bf16.vlgmr.msra.gmra.mxu3 %v490_v60  ;;  %1697 = vmatpush.bf16.msrb.mxu0 %v2186_v55  ;;  %v334_v35 = vrot.slane %v333_v3, 4  ;;  %v376_v47 = vrot.slane %v375_v36, 4  ;;  %v389_v48 = vor.u32 %v388_v38, %v385_v29  ;;  %v442_v63 = vshll.u32 %v192_v33, 16  ;;  %v2166_v3 = vld [vmem:[%s2917_s1 + $0x98] sm:$0xff] }
  0x2e   : > { %1421 = vmatpush.bf16.msrb.mxu3 %v2178_v4  ;;  %556 = vmatmul.bf16.vlgmr.msra.gmra.mxu0 %v484_v57  ;;  %v427_v55 = vrot.slane %v425_v41, 4  ;;  %v430_v56 = vrot.slane %v428_v42, 5  ;;  %v441_v62 = vrot.slane %v439_v50, 4  ;;  %v2151_v4 = vld [vmem:[%s2917_s1 + $0x20] sm:$0xff]  ;;  %v436_v10 = vrot.slane %v434_v43, 5  ;;  %v2174_v42 = vld [vmem:[%s2917_s1 + $0xd8] sm:$0xff] }
  0x2f   : > { %v339_v46 = vsel %vm2349_vm2, %v334_v35, %v338_v17  ;;  %v381_v60 = vsel %vm2349_vm2, %v376_v47, %v380_v37  ;;  %v390_v61 = vrot.slane %v389_v48, 4  ;;  %v448_v12 = vshll.u32 %v224_v49, 16  ;;  %v2506_v6 = vld [vmem:[%s2324_s24 + $0x1c] sm:$0x1]  ;;  %v2165_v49 = vld [vmem:[%s2917_s1 + $0x90] sm:$0xff] }
  0x30   : > { %954 = vmatpush.bf16.msrb.mxu2 %v2169_v14  ;;  %694 = vmatpush.bf16.msrb.mxu1 %v2153_v21  ;;  %v2478_v54 = vunpack.c.l.b16 %v339_v46  ;;  %v478_v8 = vunpack.c.l.b16 %v381_v60  ;;  %v431_v9 = vor.u32 %v430_v56, %v427_v55  ;;  %v2183_v14 = vld [vmem:[%s2917_s1 + $0x120] sm:$0xff]  ;;  %v444_v17 = vrot.slane %v442_v63, 5  ;;  %v743_v55 = vld [vmem:[%s2324_s24 + $0x8] sm:$0xe]  ;;  %v2149_v60 = vld [vmem:[%s2917_s1 + $0x10] sm:$0xff] }
  0x31   : > { %1698 = vmatpush.bf16.msrb.mxu0 %v2185_v22  ;;  %v395_v15 = vsel %vm2349_vm2, %v390_v61, %v394_v40  ;;  %v257_v19 = vshrl.u32 %v179_v58, 16  ;;  %v260_v21 = vshll.u32 %v179_v58, 16  ;;  %v2175_v22 = vld [vmem:[%s2917_s1 + $0xe0] sm:$0xff]  ;;  %v450_v25 = vrot.slane %v448_v12, 5  ;;  %v2522_v40 = vld [vmem:[%s2324_s24 + $0x4] sm:$0xf0] }
  0x32   : > { %1422 = vmatpush.bf16.msrb.mxu3 %v2177_v27  ;;  %v479_v23 = vunpack.c.l.b16 %v395_v15  ;;  %v432_v24 = vrot.slane %v431_v9, 4  ;;  %v266_v53 = vshll.u32 %v2487_v0, 16  ;;  %v445_v57 = vor.u32 %v444_v17, %v441_v62  ;;  %v742_v46 = vld [vmem:[%s2324_s24] sm:$0xe]  ;;  %v2181_v61 = vld [vmem:[%s2917_s1 + $0x110] sm:$0xff] }
  0x33   : > { %v259_v11 = vrot.slane %v257_v19, 4  ;;  %v262_v20 = vrot.slane %v260_v21, 5  ;;  %v271_v26 = vshrl.u32 %v180_v13, 16  ;;  %v487_v27 = vpack.c.b16 %v2478_v54, %v2476_v52  ;;  %v1019_v21 = vld [vmem:[%s2324_s24 + $0xc] sm:$0x3] }
  0x34   : > { %955 = vmatpush.bf16.msrb.mxu2 %v2168_v34  ;;  %695 = vmatpush.bf16.msrb.mxu1 %v2152_v39  ;;  %v489_v28 = vpack.c.b16 %v479_v23, %v478_v8  ;;  %v437_v29 = vsel %vm2349_vm2, %v432_v24, %v436_v10  ;;  %v274_v33 = vshll.u32 %v180_v13, 16  ;;  %v2516_v34 = vld [vmem:[%s2324_s24] sm:$0xf]  ;;  %v446_v35 = vrot.slane %v445_v57, 4  ;;  %v2182_v39 = vld [vmem:[%s2917_s1 + $0x118] sm:$0xff]  ;;  %v2173_v10 = vld [vmem:[%s2917_s1 + $0xd0] sm:$0xff] }
  0x35   : > { %1699 = vmatpush.bf16.msrb.mxu0 %v2184_v45  ;;  %v263_v36 = vor.u32 %v262_v20, %v259_v11  ;;  %v268_v37 = vrot.slane %v266_v53, 5  ;;  %v273_v38 = vrot.slane %v271_v26, 4  ;;  %v482_v41 = vunpack.c.l.b16 %v437_v29  ;;  %v2172_v53 = vld [vmem:[%s2917_s1 + $0xc8] sm:$0xff]  ;;  %v1486_v29 = vld [vmem:[%s2324_s24] sm:$0xc] }
  0x36   : > { %1423 = vmatpush.bf16.msrb.mxu3 %v2176_v51  ;;  %v276_v43 = vrot.slane %v274_v33, 5  ;;  %v280_v45 = vshll.u32 %v2506_v6, 16  ;;  %v451_v47 = vsel %vm2349_vm2, %v446_v35, %v450_v25  ;;  %v2008_v50 = vrot.slane %v742_v46, 9  ;;  %v2148_v25 = vld [vmem:[%s2917_s1 + $0x8] sm:$0xff]  ;;  %v2163_v33 = vld [vmem:[%s2917_s1 + $0x80] sm:$0xff] }
  0x37   : > { %v264_v48 = vrot.slane %v263_v36, 4  ;;  %v483_v51 = vunpack.c.l.b16 %v451_v47  ;;  %v795_v58 = vrot.slane %v2371_v2, 5  ;;  %v1947_v62 = vor.u32 %v2522_v40, %v2516_v34  ;;  %v2552_v2 = vld [vmem:[%s2324_s24 + $0x4] sm:$0x3]  ;;  %v2180_v11 = vld [vmem:[%s2917_s1 + $0x108] sm:$0xff] }
  0x38   : > { %956 = vmatpush.bf16.msrb.mxu2 %v2167_v59  ;;  %696 = vmatpush.bf16.msrb.mxu1 %v2151_v4  ;;  %v277_v52 = vor.u32 %v276_v43, %v273_v38  ;;  %v282_v54 = vrot.slane %v280_v45, 5  ;;  %v2009_v63 = vrot.slane %v743_v55, 9  ;;  %v799_v4 = vrot.slane %v2386_v16, 5  ;;  %v2164_v16 = vld [vmem:[%s2917_s1 + $0x88] sm:$0xff]  ;;  %v2147_v43 = vld [vmem:[%s2917_s1] sm:$0xff] }
  0x39   : > { %1700 = vmatpush.bf16.msrb.mxu0 %v2183_v14  ;;  %v269_v59 = vsel %vm2349_vm2, %v264_v48, %v268_v37  ;;  %v491_v8 = vpack.c.b16 %v483_v51, %v482_v41  ;;  %v796_v12 = vsel %vm2535_vm5, %v2008_v50, %v795_v58  ;;  %v1038_v17 = vshrl.u32 %v742_v46, 16  ;;  %v2171_v45 = vld [vmem:[%s2917_s1 + $0xc0] sm:$0xff] }
  0x3a   : > { %1424 = vmatpush.bf16.msrb.mxu3 %v2175_v22  ;;  %v278_v9 = vrot.slane %v277_v52, 4  ;;  %v470_v13 = vunpack.c.l.b16 %v269_v59  ;;  %v800_v14 = vsel %vm2535_vm5, %v2009_v63, %v799_v4  ;;  %v873_v15 = vunpack.c.l.b16 %v796_v12  ;;  %v2179_v50 = vld [vmem:[%s2917_s1 + $0x100] sm:$0xff]  ;;  %v744_v59 = vld [vmem:[%s2324_s24 + $0x10] sm:$0xe] }
  0x3b   : > { %571 = vmatmul.bf16.gmra.mxu1 %v487_v27  ;;  %581 = vmatmul.bf16.gmra.mxu2 %v489_v28  ;;  %v1041_v22 = vshll.u32 %v742_v46, 16  ;;  %v1047_v23 = vshrl.u32 %v2552_v2, 16  ;;  %v1040_v57 = vrot.slane %v1038_v17, 5  ;;  %v1050_v32 = vshll.u32 %v2552_v2, 16 }
  0x3c   : > { %957 = vmatpush.bf16.msrb.mxu2 %v2166_v3  ;;  %697 = vmatpush.bf16.msrb.mxu1 %v2150_v31  ;;  %v283_v19 = vsel %vm2349_vm2, %v278_v9, %v282_v54  ;;  %v1056_v3 = vshrl.u32 %v743_v55, 16  ;;  %v874_v20 = vunpack.c.l.b16 %v800_v14  ;;  %v1059_v28 = vshll.u32 %v743_v55, 16 }
  0x3d   : > { %1701 = vmatpush.bf16.msrb.mxu0 %v2182_v39  ;;  %591 = vmatmul.bf16.gmra.mxu3 %v491_v8  ;;  %v471_v24 = vunpack.c.l.b16 %v283_v19  ;;  %v1043_v26 = vrot.slane %v1041_v22, 6  ;;  %v1049_v27 = vrot.slane %v1047_v23, 5  ;;  %v1052_v35 = vrot.slane %v1050_v32, 6 }
  0x3e   : > { %1425 = vmatpush.bf16.msrb.mxu3 %v2174_v42  ;;  %v1058_v36 = vrot.slane %v1056_v3, 5  ;;  %v1065_v37 = vshrl.u32 %v1019_v21, 16  ;;  %v1061_v39 = vrot.slane %v1059_v28, 6  ;;  %v1068_v41 = vshll.u32 %v1019_v21, 16  ;;  %v1487_v42 = vld [vmem:[%s2324_s24 + $0x8] sm:$0xc] }
  0x3f   : > { %v485_v31 = vpack.c.b16 %v471_v24, %v470_v13  ;;  %v1044_v38 = vor.u32 %v1043_v26, %v1040_v57  ;;  %vm1534_vm8 = vcmask 1041408   ;;  %v1053_v47 = vor.u32 %v1052_v35, %v1049_v27  ;;  %v1021_v57 = vld [vmem:[%s2324_s24 + $0x1c] sm:$0x3] }
  0x40   : > { %958 = vmatpush.bf16.msrb.mxu2 %v2165_v49  ;;  %698 = vmatpush.bf16.msrb.mxu1 %v2149_v60  ;;  %v1067_v48 = vrot.slane %v1065_v37, 5  ;;  %vm1535_vm10 = vcmask 1045508   ;;  %v2088_v49 = vrot.slane %v1486_v29, 10  ;;  %v1062_v52 = vor.u32 %v1061_v39, %v1058_v36  ;;  %v1489_v39 = vld [vmem:[%s2324_s24 + $0x18] sm:$0xc] }
  0x41   : > { %1702 = vmatpush.bf16.msrb.mxu0 %v2181_v61  ;;  %v1045_v51 = vrot.slane %v1044_v38, 4  ;;  %v1070_v54 = vrot.slane %v1068_v41, 6  ;;  %vm2599_vm11 = vmor %vm1534_vm8, %vm1535_vm10  ;;  %v1539_v58 = vrot.slane %v2552_v2, 6  ;;  %v889_v60 = vpack.c.b16 %v874_v20, %v873_v15  ;;  %v1020_v15 = vld [vmem:[%s2324_s24 + $0x14] sm:$0x3] }
  0x42   : > { %1426 = vmatpush.bf16.msrb.mxu3 %v2173_v10  ;;  %561 = vmatmul.bf16.gmra.mxu0 %v485_v31  ;;  %v2089_v61 = vrot.slane %v1487_v42, 10  ;;  %v1543_v63 = vrot.slane %v1019_v21, 6  ;;  %v2010_v4 = vrot.slane %v744_v59, 9  ;;  %v1063_v9 = vrot.slane %v1062_v52, 4 }
  0x43   : > { %v1054_v8 = vsel %vm2591_vm9, %v1045_v51, %v1053_v47  ;;  %v1071_v10 = vor.u32 %v1070_v54, %v1067_v48  ;;  %v1540_v12 = vsel %vm2599_vm11, %v2088_v49, %v1539_v58  ;;  %v803_v14 = vrot.slane %v2487_v0, 5  ;;  %v1950_v47 = vld [vmem:[%s2324_s24 + $0x10] sm:$0xf]  ;;  %v2140_v48 = vld [vmem:[%s2324_s24 + $0x14] sm:$0xf0] }
  0x44   : > { %959 = vmatpush.bf16.msrb.mxu2 %v2164_v16  ;;  %699 = vmatpush.bf16.msrb.mxu1 %v2148_v25  ;;  %v1341_v13 = vunpack.c.l.b16 %v1054_v8  ;;  %v1544_v2 = vsel %vm2599_vm11, %v2089_v61, %v1543_v63  ;;  %v745_v16 = vld [vmem:[%s2324_s24 + $0x18] sm:$0xe]  ;;  %v1617_v19 = vunpack.c.l.b16 %v1540_v12  ;;  %v807_v22 = vrot.slane %v2506_v6, 5 }
  0x45   : > { %1703 = vmatpush.bf16.msrb.mxu0 %v2180_v11  ;;  %v1072_v17 = vsel %vm2591_vm9, %v1063_v9, %v1071_v10  ;;  %v2011_v21 = vrot.slane %v745_v16, 9  ;;  %v1618_v24 = vunpack.c.l.b16 %v1544_v2  ;;  %v1074_v25 = vshrl.u32 %v744_v59, 16 }
  0x46   : > { %1427 = vmatpush.bf16.msrb.mxu3 %v2172_v53  ;;  %v1342_v23 = vunpack.c.l.b16 %v1072_v17  ;;  %v1077_v53 = vshll.u32 %v744_v59, 16  ;;  %v804_v0 = vsel %vm2535_vm5, %v2010_v4, %v803_v14  ;;  %v1083_v32 = vshrl.u32 %v1020_v15, 16  ;;  %v2633_v4 = vld [vmem:[%s2324_s24 + $0x24] sm:$0x3] }
  0x47   : > { %v808_v11 = vsel %vm2535_vm5, %v2011_v21, %v807_v22  ;;  %v1076_v6 = vrot.slane %v1074_v25, 5  ;;  %v1086_v27 = vshll.u32 %v1020_v15, 16  ;;  %v1092_v28 = vshrl.u32 %v745_v16, 16 }
  0x48   : > { %960 = vmatpush.bf16.msrb.mxu2 %v2163_v33  ;;  %700 = vmatpush.bf16.msrb.mxu1 %v2147_v43  ;;  %v1357_v3 = vpack.c.b16 %v1342_v23, %v1341_v13  ;;  %v1079_v20 = vrot.slane %v1077_v53, 6  ;;  %v1085_v26 = vrot.slane %v1083_v32, 5  ;;  %v1095_v29 = vshll.u32 %v745_v16, 16  ;;  %v1488_v33 = vld [vmem:[%s2324_s24 + $0x10] sm:$0xc] }
  0x49   : > { %1704 = vmatpush.bf16.msrb.mxu0 %v2179_v50  ;;  %v1633_v34 = vpack.c.b16 %v1618_v24, %v1617_v19  ;;  %v1104_v31 = vshll.u32 %v1021_v57, 16  ;;  %v875_v35 = vunpack.c.l.b16 %v804_v0  ;;  %v1088_v36 = vrot.slane %v1086_v27, 6  ;;  %v2643_v19 = vld [vmem:[%s2324_s24 + $0x2c] sm:$0x3] }
  0x4a   : > { %1428 = vmatpush.bf16.msrb.mxu3 %v2171_v45  ;;  %v1080_v40 = vor.u32 %v1079_v20, %v1076_v6  ;;  %v1094_v37 = vrot.slane %v1092_v28, 5  ;;  %v1097_v38 = vrot.slane %v1095_v29, 6  ;;  %v876_v41 = vunpack.c.l.b16 %v808_v11 }
  0x4b   : > { %701 = vmatmul.bf16.vlgmr.msrb.gmra.mxu1 %v1947_v62  ;;  %961 = vmatmul.bf16.vlgmr.msrb.gmra.mxu2 %v889_v60  ;;  %v1101_v62 = vshrl.u32 %v1021_v57, 16  ;;  %v1106_v45 = vrot.slane %v1104_v31, 6  ;;  %v1089_v49 = vor.u32 %v1088_v36, %v1085_v26  ;;  %v2090_v51 = vrot.slane %v1488_v33, 10  ;;  %v746_v60 = vld [vmem:[%s2324_s24 + $0x20] sm:$0xe] }
  0x4c   : > { %v1081_v42 = vrot.slane %v1080_v40, 4  ;;  %v1098_v50 = vor.u32 %v1097_v38, %v1094_v37  ;;  %v1547_v52 = vrot.slane %v1020_v15, 6  ;;  %v2091_v58 = vrot.slane %v1489_v39, 10  ;;  %v747_v15 = vld [vmem:[%s2324_s24 + $0x28] sm:$0xe] }
  0x4d   : > { %1429 = vmatmul.bf16.vlgmr.msrb.gmra.mxu3 %v1357_v3  ;;  %v1103_v43 = vrot.slane %v1101_v62, 5  ;;  %v1551_v59 = vrot.slane %v1021_v57, 6  ;;  %v1951_v8 = vor.u32 %v2140_v48, %v1950_v47  ;;  %v890_v9 = vpack.c.b16 %v876_v41, %v875_v35  ;;  %v748_v35 = vld [vmem:[%s2324_s24 + $0x30] sm:$0xe] }
  0x4e   : > { %v1090_v61 = vsel %vm2591_vm9, %v1081_v42, %v1089_v49  ;;  %v1099_v63 = vrot.slane %v1098_v50, 4  ;;  %v1548_v12 = vsel %vm2599_vm11, %v2090_v51, %v1547_v52  ;;  %v1110_v13 = vshrl.u32 %v746_v60, 16  ;;  %v749_v49 = vld [vmem:[%s2324_s24 + $0x38] sm:$0xe]  ;;  %v2141_v51 = vld [vmem:[%s2324_s24 + $0x24] sm:$0xf0] }
  0x4f   : > { %v1107_v54 = vor.u32 %v1106_v45, %v1103_v43  ;;  %v1113_v2 = vshll.u32 %v746_v60, 16  ;;  %v1343_v16 = vunpack.c.l.b16 %v1090_v61  ;;  %v1552_v14 = vsel %vm2599_vm11, %v2091_v58, %v1551_v59  ;;  %v1954_v43 = vld [vmem:[%s2324_s24 + $0x20] sm:$0xf] }
  0x50   : > { %v2012_v17 = vrot.slane %v746_v60, 9  ;;  %v1119_v21 = vshrl.u32 %v2633_v4, 16  ;;  %v811_v23 = vrot.slane %v2329_v5, 5  ;;  %v1112_v24 = vrot.slane %v1110_v13, 5  ;;  %v1490_v52 = vld [vmem:[%s2324_s24 + $0x20] sm:$0xc] }
  0x51   : > { %v1108_v10 = vsel %vm2591_vm9, %v1099_v63, %v1107_v54  ;;  %v1115_v25 = vrot.slane %v1113_v2, 6  ;;  %v2013_v53 = vrot.slane %v747_v15, 9  ;;  %v815_v0 = vrot.slane %v2335_v7, 5  ;;  %v1491_v60 = vld [vmem:[%s2324_s24 + $0x28] sm:$0xc] }
  0x52   : > { %1705 = vmatmul.bf16.vlgmr.msrb.gmra.mxu0 %v1633_v34  ;;  %v1344_v22 = vunpack.c.l.b16 %v1108_v10  ;;  %v1121_v57 = vrot.slane %v1119_v21, 5  ;;  %v1122_v32 = vshll.u32 %v2633_v4, 16  ;;  %v1128_v11 = vshrl.u32 %v747_v15, 16 }
  0x53   : > { %v1116_v3 = vor.u32 %v1115_v25, %v1112_v24  ;;  %v1131_v6 = vshll.u32 %v747_v15, 16  ;;  %v1137_v20 = vshrl.u32 %v2643_v19, 16  ;;  %v1619_v26 = vunpack.c.l.b16 %v1548_v12 }
  0x54   : > { %v1124_v27 = vrot.slane %v1122_v32, 6  ;;  %v1140_v28 = vshll.u32 %v2643_v19, 16  ;;  %v1358_v5 = vpack.c.b16 %v1344_v22, %v1343_v16  ;;  %v1130_v29 = vrot.slane %v1128_v11, 5 }
  0x55   : > { %v1133_v34 = vrot.slane %v1131_v6, 6  ;;  %v1139_v7 = vrot.slane %v1137_v20, 5  ;;  %v1620_v40 = vunpack.c.l.b16 %v1552_v14  ;;  %v812_v62 = vsel %vm2535_vm5, %v2012_v17, %v811_v23  ;;  %v2672_v14 = vld [vmem:[%s2324_s24 + $0x34] sm:$0x3]  ;;  %v2676_v17 = vld [vmem:[%s2324_s24 + $0x3c] sm:$0x3] }
  0x56   : > { %v816_v31 = vsel %vm2535_vm5, %v2013_v53, %v815_v0  ;;  %v1142_v33 = vrot.slane %v1140_v28, 6  ;;  %v1117_v36 = vrot.slane %v1116_v3, 4  ;;  %v1125_v37 = vor.u32 %v1124_v27, %v1121_v57 }
  0x57   : > { %v1134_v38 = vor.u32 %v1133_v34, %v1130_v29  ;;  %v2014_v39 = vrot.slane %v748_v35, 9  ;;  %v819_v42 = vrot.slane %v2396_v30, 5  ;;  %v877_v45 = vunpack.c.l.b16 %v812_v62 }
  0x58   : > { %v1143_v41 = vor.u32 %v1142_v33, %v1139_v7  ;;  %v878_v47 = vunpack.c.l.b16 %v816_v31  ;;  %v1634_v50 = vpack.c.b16 %v1620_v40, %v1619_v26  ;;  %v2015_v58 = vrot.slane %v749_v49, 9 }
  0x59   : > { %v1135_v48 = vrot.slane %v1134_v38, 4  ;;  %v820_v54 = vsel %vm2535_vm5, %v2014_v39, %v819_v42  ;;  %v823_v59 = vrot.slane %v2408_v44, 5  ;;  %v1126_v30 = vsel %vm2591_vm9, %v1117_v36, %v1125_v37  ;;  %v750_v36 = vld [vmem:[%s2324_s24 + $0x40] sm:$0xe]  ;;  %v1492_v42 = vld [vmem:[%s2324_s24 + $0x30] sm:$0xc] }
  0x5a   : > { %v879_v61 = vunpack.c.l.b16 %v820_v54  ;;  %v1149_v10 = vshll.u32 %v748_v35, 16  ;;  %v1955_v12 = vor.u32 %v2141_v51, %v1954_v43  ;;  %v891_v13 = vpack.c.b16 %v878_v47, %v877_v45  ;;  %v1493_v43 = vld [vmem:[%s2324_s24 + $0x38] sm:$0xc]  ;;  %v1958_v47 = vld [vmem:[%s2324_s24 + $0x30] sm:$0xf] }
  0x5b   : > { %706 = vmatmul.bf16.gmra.mxu1 %v1951_v8  ;;  %966 = vmatmul.bf16.gmra.mxu2 %v890_v9  ;;  %v1144_v63 = vsel %vm2591_vm9, %v1135_v48, %v1143_v41  ;;  %v824_v8 = vsel %vm2535_vm5, %v2015_v58, %v823_v59  ;;  %v1146_v9 = vshrl.u32 %v748_v35, 16  ;;  %v2092_v2 = vrot.slane %v1490_v52, 10  ;;  %v751_v41 = vld [vmem:[%s2324_s24 + $0x48] sm:$0xe]  ;;  %v2142_v48 = vld [vmem:[%s2324_s24 + $0x34] sm:$0xf0] }
  0x5c   : > { %v880_v16 = vunpack.c.l.b16 %v824_v8  ;;  %v1555_v44 = vrot.slane %v2633_v4, 6  ;;  %v2093_v15 = vrot.slane %v1491_v60, 10  ;;  %v1164_v21 = vshrl.u32 %v749_v49, 16  ;;  %v2700_v52 = vld [vmem:[%s2324_s24 + $0x44] sm:$0x3] }
  0x5d   : > { %1434 = vmatmul.bf16.gmra.mxu3 %v1358_v5  ;;  %v1167_v22 = vshll.u32 %v749_v49, 16  ;;  %v1345_v23 = vunpack.c.l.b16 %v1126_v30  ;;  %v1346_v24 = vunpack.c.l.b16 %v1144_v63  ;;  %v1559_v25 = vrot.slane %v2643_v19, 6  ;;  %v2705_v63 = vld [vmem:[%s2324_s24 + $0x4c] sm:$0x3] }
  0x5e   : > { %v2679_v53 = vpack.c.b16 %v880_v16, %v879_v61  ;;  %v1148_v0 = vrot.slane %v1146_v9, 5  ;;  %v1151_v57 = vrot.slane %v1149_v10, 6  ;;  %v1155_v32 = vshrl.u32 %v2672_v14, 16 }
  0x5f   : > { %v1158_v3 = vshll.u32 %v2672_v14, 16  ;;  %v1166_v11 = vrot.slane %v1164_v21, 5  ;;  %v1169_v6 = vrot.slane %v1167_v22, 6  ;;  %v1173_v4 = vshrl.u32 %v2676_v17, 16 }
  0x60   : > { %v1176_v20 = vshll.u32 %v2676_v17, 16  ;;  %v1556_v26 = vsel %vm2599_vm11, %v2092_v2, %v1555_v44  ;;  %v1560_v19 = vsel %vm2599_vm11, %v2093_v15, %v1559_v25  ;;  %v1152_v27 = vor.u32 %v1151_v57, %v1148_v0  ;;  %v2268_v57 = vld [vmem:[%s2324_s24 + $0x4c] sm:$0x1] }
  0x61   : > { %v1157_v28 = vrot.slane %v1155_v32, 5  ;;  %v1160_v5 = vrot.slane %v1158_v3, 6  ;;  %v1359_v29 = vpack.c.b16 %v1346_v24, %v1345_v23  ;;  %v1170_v34 = vor.u32 %v1169_v6, %v1166_v11  ;;  %v2267_v24 = vld [vmem:[%s2324_s24 + $0x44] sm:$0x1] }
  0x62   : > { %1710 = vmatmul.bf16.gmra.mxu0 %v1634_v50  ;;  %v1175_v7 = vrot.slane %v1173_v4, 5  ;;  %v1178_v40 = vrot.slane %v1176_v20, 6  ;;  %v1621_v62 = vunpack.c.l.b16 %v1556_v26  ;;  %v1622_v31 = vunpack.c.l.b16 %v1560_v19 }
  0x63   : > { %v1153_v33 = vrot.slane %v1152_v27, 4  ;;  %v1161_v35 = vor.u32 %v1160_v5, %v1157_v28  ;;  %v1171_v37 = vrot.slane %v1170_v34, 4  ;;  %v1182_v45 = vshrl.u32 %v750_v36, 16 }
  0x64   : > { %v1179_v38 = vor.u32 %v1178_v40, %v1175_v7  ;;  %v1635_v39 = vpack.c.b16 %v1622_v31, %v1621_v62  ;;  %v1185_v50 = vshll.u32 %v750_v36, 16  ;;  %v1200_v54 = vshrl.u32 %v751_v41, 16  ;;  %v752_v62 = vld [vmem:[%s2324_s24 + $0x50] sm:$0xe] }
  0x65   : > { %v1162_v49 = vsel %vm2591_vm9, %v1153_v33, %v1161_v35  ;;  %v1203_v58 = vshll.u32 %v751_v41, 16  ;;  %v2094_v59 = vrot.slane %v1492_v42, 10  ;;  %v1563_v30 = vrot.slane %v2672_v14, 6  ;;  %v1495_v42 = vld [vmem:[%s2324_s24 + $0x48] sm:$0xc] }
  0x66   : > { %v1180_v51 = vsel %vm2591_vm9, %v1171_v37, %v1179_v38  ;;  %v2095_v60 = vrot.slane %v1493_v43, 10  ;;  %v1567_v61 = vrot.slane %v2676_v17, 6  ;;  %v1959_v8 = vor.u32 %v2142_v48, %v1958_v47  ;;  %v1962_v37 = vld [vmem:[%s2324_s24 + $0x40] sm:$0xf]  ;;  %v2143_v38 = vld [vmem:[%s2324_s24 + $0x44] sm:$0xf0] }
  0x67   : > { %v1347_v9 = vunpack.c.l.b16 %v1162_v49  ;;  %v1184_v10 = vrot.slane %v1182_v45, 5  ;;  %v1191_v2 = vshrl.u32 %v2700_v52, 16  ;;  %v1194_v16 = vshll.u32 %v2700_v52, 16  ;;  %v2731_v43 = vld [vmem:[%s2324_s24 + $0x54] sm:$0x3] }
  0x68   : > { %v1202_v44 = vrot.slane %v1200_v54, 5  ;;  %v1205_v15 = vrot.slane %v1203_v58, 6  ;;  %v1209_v14 = vshrl.u32 %v2705_v63, 16  ;;  %v1212_v21 = vshll.u32 %v2705_v63, 16 }
  0x69   : > { %v1564_v17 = vsel %vm2599_vm11, %v2094_v59, %v1563_v30  ;;  %v1568_v22 = vsel %vm2599_vm11, %v2095_v60, %v1567_v61  ;;  %v2016_v23 = vrot.slane %v750_v36, 9  ;;  %v827_v25 = vrot.slane %v2267_v24, 5  ;;  %v753_v36 = vld [vmem:[%s2324_s24 + $0x58] sm:$0xe]  ;;  %v2737_v30 = vld [vmem:[%s2324_s24 + $0x5c] sm:$0x3] }
  0x6a   : > { %v2017_v0 = vrot.slane %v751_v41, 9  ;;  %v831_v32 = vrot.slane %v2268_v57, 5  ;;  %v1193_v11 = vrot.slane %v1191_v2, 5  ;;  %v1196_v6 = vrot.slane %v1194_v16, 6 }
  0x6b   : > { %711 = vmatmul.bf16.gmra.mxu1 %v1955_v12  ;;  %971 = vmatmul.bf16.gmra.mxu2 %v891_v13  ;;  %v1348_v12 = vunpack.c.l.b16 %v1180_v51  ;;  %v1187_v13 = vrot.slane %v1185_v50, 6  ;;  %v1206_v20 = vor.u32 %v1205_v15, %v1202_v44  ;;  %v1211_v26 = vrot.slane %v1209_v14, 5 }
  0x6c   : > { %v1214_v19 = vrot.slane %v1212_v21, 6  ;;  %v1623_v27 = vunpack.c.l.b16 %v1564_v17  ;;  %v1624_v28 = vunpack.c.l.b16 %v1568_v22  ;;  %v828_v5 = vsel %vm2535_vm5, %v2016_v23, %v827_v25 }
  0x6d   : > { %1439 = vmatmul.bf16.gmra.mxu3 %v1359_v29  ;;  %v1188_v3 = vor.u32 %v1187_v13, %v1184_v10  ;;  %v1360_v4 = vpack.c.b16 %v1348_v12, %v1347_v9  ;;  %v832_v29 = vsel %vm2535_vm5, %v2017_v0, %v831_v32  ;;  %v1207_v7 = vrot.slane %v1206_v20, 4  ;;  %v2751_v20 = vld [vmem:[%s2324_s24 + $0x60] sm:$0xe] }
  0x6e   : > { %v1215_v40 = vor.u32 %v1214_v19, %v1211_v26  ;;  %v1636_v31 = vpack.c.b16 %v1624_v28, %v1623_v27  ;;  %v881_v33 = vunpack.c.l.b16 %v828_v5  ;;  %v882_v35 = vunpack.c.l.b16 %v832_v29  ;;  %v2754_v19 = vld [vmem:[%s2324_s24 + $0x68] sm:$0xe]  ;;  %v1496_v29 = vld [vmem:[%s2324_s24 + $0x50] sm:$0xc] }
  0x6f   : > { %v1189_v34 = vrot.slane %v1188_v3, 4  ;;  %v1218_v45 = vshrl.u32 %v752_v62, 16  ;;  %v1221_v47 = vshll.u32 %v752_v62, 16  ;;  %v1236_v49 = vshrl.u32 %v753_v36, 16 }
  0x70   : > { %v1216_v48 = vsel %vm2591_vm9, %v1207_v7, %v1215_v40  ;;  %v1239_v50 = vshll.u32 %v753_v36, 16  ;;  %v1963_v51 = vor.u32 %v2143_v38, %v1962_v37  ;;  %v893_v54 = vpack.c.b16 %v882_v35, %v881_v33  ;;  %v2764_v40 = vld [vmem:[%s2324_s24 + $0x64] sm:$0x3]  ;;  %v1497_v35 = vld [vmem:[%s2324_s24 + $0x58] sm:$0xc] }
  0x71   : > { %v1571_v59 = vrot.slane %v2700_v52, 6  ;;  %v2097_v61 = vrot.slane %v1495_v42, 10  ;;  %v1227_v9 = vshrl.u32 %v2731_v43, 16  ;;  %v1350_v10 = vunpack.c.l.b16 %v1216_v48  ;;  %v1966_v37 = vld [vmem:[%s2324_s24 + $0x50] sm:$0xf] }
  0x72   : > { %1715 = vmatmul.bf16.gmra.mxu0 %v1635_v39  ;;  %v1494_v39 = vld [vmem:[%s2324_s24 + $0x40] sm:$0xc]  ;;  %v1220_v12 = vrot.slane %v1218_v45, 5  ;;  %v1223_v13 = vrot.slane %v1221_v47, 6  ;;  %v1230_v2 = vshll.u32 %v2731_v43, 16  ;;  %v1238_v16 = vrot.slane %v1236_v49, 5 }
  0x73   : > { %v2096_v58 = vrot.slane %v1494_v39, 10  ;;  %v1241_v44 = vrot.slane %v1239_v50, 6  ;;  %v1245_v15 = vshrl.u32 %v2737_v30, 16  ;;  %v1248_v14 = vshll.u32 %v2737_v30, 16  ;;  %v2776_v45 = vld [vmem:[%s2324_s24 + $0x6c] sm:$0x3] }
  0x74   : > { %v2018_v22 = vrot.slane %v752_v62, 9  ;;  %v835_v23 = vrot.slane %v2425_v1, 5  ;;  %v1232_v24 = vrot.slane %v1230_v2, 6  ;;  %v1224_v25 = vor.u32 %v1223_v13, %v1220_v12  ;;  %v2144_v47 = vld [vmem:[%s2324_s24 + $0x54] sm:$0xf0] }
  0x75   : > { %v1572_v52 = vsel %vm2599_vm11, %v2096_v58, %v1571_v59  ;;  %v1242_v0 = vor.u32 %v1241_v44, %v1238_v16  ;;  %v1247_v57 = vrot.slane %v1245_v15, 5  ;;  %v1250_v32 = vrot.slane %v1248_v14, 6  ;;  %v2269_v14 = vld [vmem:[%s2324_s24 + $0x64] sm:$0x1] }
  0x76   : > { %v1625_v3 = vunpack.c.l.b16 %v1572_v52  ;;  %v836_v1 = vsel %vm2535_vm5, %v2018_v22, %v835_v23  ;;  %v1225_v27 = vrot.slane %v1224_v25, 4  ;;  %v1257_v7 = vshll.u32 %v2751_v20, 16 }
  0x77   : > { %v1243_v28 = vrot.slane %v1242_v0, 4  ;;  %v1251_v5 = vor.u32 %v1250_v32, %v1247_v57  ;;  %v1272_v62 = vshrl.u32 %v2754_v19, 16  ;;  %v883_v33 = vunpack.c.l.b16 %v836_v1  ;;  %v756_v1 = vld [vmem:[%s2324_s24 + $0x70] sm:$0xe] }
  0x78   : > { %v1579_v42 = vrot.slane %v2731_v43, 6  ;;  %v1259_v49 = vrot.slane %v1257_v7, 6  ;;  %v1263_v50 = vshrl.u32 %v2764_v40, 16  ;;  %v1583_v58 = vrot.slane %v2737_v30, 6 }
  0x79   : > { %v1274_v59 = vrot.slane %v1272_v62, 5  ;;  %v1284_v43 = vshll.u32 %v2776_v45, 16  ;;  %v2020_v15 = vrot.slane %v2751_v20, 9  ;;  %v843_v52 = vrot.slane %v2269_v14, 5 }
  0x7a   : > { %v1265_v16 = vrot.slane %v1263_v50, 5  ;;  %v1587_v62 = vrot.slane %v2764_v40, 6 }
  0x7b   : > { %716 = vmatmul.bf16.gmra.mxu1 %v1959_v8  ;;  %976 = vmatmul.bf16.gmra.mxu2 %v2679_v53  ;;  %v1197_v53 = vor.u32 %v1196_v6, %v1193_v11  ;;  %v1575_v8 = vrot.slane %v2705_v63, 6  ;;  %v1229_v63 = vrot.slane %v1227_v9, 5  ;;  %v2019_v6 = vrot.slane %v753_v36, 9 }
  0x7c   : > { %v2098_v36 = vrot.slane %v1496_v29, 10 }
  0x7d   : > { %1444 = vmatmul.bf16.gmra.mxu3 %v1360_v4  ;;  %v1198_v41 = vsel %vm2591_vm9, %v1189_v34, %v1197_v53  ;;  %v1576_v21 = vsel %vm2599_vm11, %v2097_v61, %v1575_v8  ;;  %v839_v4 = vrot.slane %v2436_v18, 5  ;;  %v1233_v26 = vor.u32 %v1232_v24, %v1229_v63 }
  0x7e   : > { %v1349_v60 = vunpack.c.l.b16 %v1198_v41  ;;  %v1626_v11 = vunpack.c.l.b16 %v1576_v21  ;;  %v1254_v53 = vshrl.u32 %v2751_v20, 16  ;;  %v1252_v41 = vsel %vm2591_vm9, %v1243_v28, %v1251_v5  ;;  %v1970_v28 = vld [vmem:[%s2324_s24 + $0x60] sm:$0xf] }
  0x7f   : > { %v840_v18 = vsel %vm2535_vm5, %v2019_v6, %v839_v4  ;;  %v1234_v39 = vsel %vm2591_vm9, %v1225_v27, %v1233_v26  ;;  %v1281_v61 = vshrl.u32 %v2776_v45, 16  ;;  %v1967_v8 = vor.u32 %v2144_v47, %v1966_v37  ;;  %v1498_v6 = vld [vmem:[%s2324_s24 + $0x60] sm:$0xc] }
  0x80   : > { %v1361_v17 = vpack.c.b16 %v1350_v10, %v1349_v60  ;;  %v1637_v34 = vpack.c.b16 %v1626_v11, %v1625_v3  ;;  %v884_v38 = vunpack.c.l.b16 %v840_v18  ;;  %v1256_v48 = vrot.slane %v1254_v53, 5  ;;  %v757_v18 = vld [vmem:[%s2324_s24 + $0x78] sm:$0xe]  ;;  %v2145_v53 = vld [vmem:[%s2324_s24 + $0x64] sm:$0xf0] }
  0x81   : > { %v1351_v10 = vunpack.c.l.b16 %v1234_v39  ;;  %v1352_v12 = vunpack.c.l.b16 %v1252_v41  ;;  %v1580_v13 = vsel %vm2599_vm11, %v2098_v36, %v1579_v42  ;;  %v2021_v63 = vrot.slane %v2754_v19, 9 }
  0x82   : > { %1720 = vmatmul.bf16.gmra.mxu0 %v1636_v31  ;;  %v1275_v31 = vshll.u32 %v2754_v19, 16  ;;  %v894_v9 = vpack.c.b16 %v884_v38, %v883_v33  ;;  %v1260_v2 = vor.u32 %v1259_v49, %v1256_v48  ;;  %v1283_v23 = vrot.slane %v1281_v61, 5  ;;  %v1499_v19 = vld [vmem:[%s2324_s24 + $0x68] sm:$0xc]  ;;  %v2809_v38 = vld [vmem:[%s2324_s24 + $0x74] sm:$0x3] }
  0x83   : > { %v1286_v24 = vrot.slane %v1284_v43, 6  ;;  %v1362_v25 = vpack.c.b16 %v1352_v12, %v1351_v10  ;;  %v1627_v0 = vunpack.c.l.b16 %v1580_v13  ;;  %v844_v11 = vsel %vm2535_vm5, %v2020_v15, %v843_v52  ;;  %v2812_v48 = vld [vmem:[%s2324_s24 + $0x7c] sm:$0x3] }
  0x84   : > { %v1277_v60 = vrot.slane %v1275_v31, 6  ;;  %v1261_v32 = vrot.slane %v1260_v2, 4  ;;  %v885_v5 = vunpack.c.l.b16 %v844_v11  ;;  %v2101_v31 = vrot.slane %v1499_v19, 10  ;;  %v1500_v19 = vld [vmem:[%s2324_s24 + $0x70] sm:$0xc] }
  0x85   : > { %v1287_v26 = vor.u32 %v1286_v24, %v1283_v23  ;;  %v1591_v33 = vrot.slane %v2776_v45, 6  ;;  %v1290_v36 = vshrl.u32 %v756_v1, 16  ;;  %v1293_v37 = vshll.u32 %v756_v1, 16 }
  0x86   : > { %v1278_v21 = vor.u32 %v1277_v60, %v1274_v59  ;;  %v1308_v39 = vshrl.u32 %v757_v18, 16  ;;  %v1311_v41 = vshll.u32 %v757_v18, 16  ;;  %v1971_v42 = vor.u32 %v2145_v53, %v1970_v28 }
  0x87   : > { %v1592_v45 = vsel %vm2599_vm11, %v2101_v31, %v1591_v33  ;;  %v1302_v59 = vshll.u32 %v2809_v38, 16  ;;  %v1317_v43 = vshrl.u32 %v2812_v48, 16  ;;  %v2022_v52 = vrot.slane %v756_v1, 9  ;;  %v1501_v1 = vld [vmem:[%s2324_s24 + $0x78] sm:$0xc] }
  0x88   : > { %v1279_v20 = vrot.slane %v1278_v21, 4  ;;  %v1310_v60 = vrot.slane %v1308_v39, 5  ;;  %v1313_v61 = vrot.slane %v1311_v41, 6  ;;  %v1630_v13 = vunpack.c.l.b16 %v1592_v45  ;;  %v2271_v21 = vld [vmem:[%s2324_s24 + $0x74] sm:$0x1] }
  0x89   : > { %v1319_v15 = vrot.slane %v1317_v43, 5  ;;  %v2102_v53 = vrot.slane %v1500_v19, 10  ;;  %v2103_v56 = vrot.slane %v1501_v1, 10 }
  0x8b   : > { %721 = vmatmul.bf16.gmra.mxu1 %v1963_v51  ;;  %981 = vmatmul.bf16.gmra.mxu2 %v893_v54  ;;  %v1266_v51 = vshll.u32 %v2764_v40, 16  ;;  %v2099_v54 = vrot.slane %v1497_v35, 10  ;;  %v1288_v35 = vsel %vm2591_vm9, %v1279_v20, %v1287_v26 }
  0x8c   : > { %v1354_v50 = vunpack.c.l.b16 %v1288_v35 }
  0x8d   : > { %1449 = vmatmul.bf16.gmra.mxu3 %v1361_v17  ;;  %v1268_v44 = vrot.slane %v1266_v51, 6  ;;  %v1584_v30 = vsel %vm2599_vm11, %v2099_v54, %v1583_v58  ;;  %v2270_v17 = vld [vmem:[%s2324_s24 + $0x6c] sm:$0x1]  ;;  %v1292_v51 = vrot.slane %v1290_v36, 5  ;;  %v1295_v54 = vrot.slane %v1293_v37, 6 }
  0x8e   : > { %v847_v22 = vrot.slane %v2270_v17, 5  ;;  %v1628_v57 = vunpack.c.l.b16 %v1584_v30  ;;  %v1299_v58 = vshrl.u32 %v2809_v38, 16  ;;  %v1314_v30 = vor.u32 %v1313_v61, %v1310_v60 }
  0x8f   : > { %v1269_v3 = vor.u32 %v1268_v44, %v1265_v16  ;;  %v1296_v2 = vor.u32 %v1295_v54, %v1292_v51  ;;  %v1304_v44 = vrot.slane %v1302_v59, 6  ;;  %v2023_v17 = vrot.slane %v757_v18, 9 }
  0x90   : > { %v848_v4 = vsel %vm2535_vm5, %v2021_v63, %v847_v22  ;;  %v1638_v27 = vpack.c.b16 %v1628_v57, %v1627_v0  ;;  %v1301_v16 = vrot.slane %v1299_v58, 5  ;;  %v851_v63 = vrot.slane %v2271_v21, 5  ;;  %v2272_v22 = vld [vmem:[%s2324_s24 + $0x7c] sm:$0x1] }
  0x91   : > { %v1270_v29 = vsel %vm2591_vm9, %v1261_v32, %v1269_v3  ;;  %v886_v7 = vunpack.c.l.b16 %v848_v4  ;;  %v855_v23 = vrot.slane %v2272_v22, 5  ;;  %v1297_v32 = vrot.slane %v1296_v2, 4 }
  0x92   : > { %1725 = vmatmul.bf16.gmra.mxu0 %v1637_v34  ;;  %v2100_v34 = vrot.slane %v1498_v6, 10  ;;  %v1353_v47 = vunpack.c.l.b16 %v1270_v29  ;;  %v1305_v3 = vor.u32 %v1304_v44, %v1301_v16  ;;  %v852_v6 = vsel %vm2535_vm5, %v2022_v52, %v851_v63  ;;  %v2146_v29 = vld [vmem:[%s2324_s24 + $0x74] sm:$0xf0] }
  0x93   : > { %v895_v49 = vpack.c.b16 %v886_v7, %v885_v5  ;;  %v856_v4 = vsel %vm2535_vm5, %v2023_v17, %v855_v23  ;;  %v1315_v20 = vrot.slane %v1314_v30, 4  ;;  %v1974_v5 = vld [vmem:[%s2324_s24 + $0x70] sm:$0xf]  ;;  %v1595_v7 = vrot.slane %v2809_v38, 6 }
  0x94   : > { %v1588_v40 = vsel %vm2599_vm11, %v2100_v34, %v1587_v62  ;;  %v1363_v12 = vpack.c.b16 %v1354_v50, %v1353_v47  ;;  %v888_v28 = vunpack.c.l.b16 %v856_v4  ;;  %v1306_v34 = vsel %vm2591_vm9, %v1297_v32, %v1305_v3 }
  0x95   : > { %v1629_v10 = vunpack.c.l.b16 %v1588_v40  ;;  %v1599_v62 = vrot.slane %v2812_v48, 6  ;;  %v1975_v35 = vor.u32 %v2146_v29, %v1974_v5  ;;  %v1355_v37 = vunpack.c.l.b16 %v1306_v34 }
  0x96   : > { %v1596_v46 = vsel %vm2599_vm11, %v2102_v53, %v1595_v7 }
  0x97   : > { %v1639_v0 = vpack.c.b16 %v1630_v13, %v1629_v10  ;;  %v1600_v38 = vsel %vm2599_vm11, %v2103_v56, %v1599_v62 }
  0x9b   : > { %726 = vmatmul.bf16.gmra.mxu1 %v1967_v8  ;;  %986 = vmatmul.bf16.gmra.mxu2 %v894_v9  ;;  %v1320_v8 = vshll.u32 %v2812_v48, 16  ;;  %v1631_v48 = vunpack.c.l.b16 %v1596_v46 }
  0x9d   : > { %1454 = vmatmul.bf16.gmra.mxu3 %v1362_v25  ;;  %v1322_v14 = vrot.slane %v1320_v8, 6 }
  0x9f   : > { %v1323_v26 = vor.u32 %v1322_v14, %v1319_v15  ;;  %v2869_v15 = vld [vmem:[%s2918_s2] ss:$0 sm:$0xff] }
  0xa1   : > { %v1324_v18 = vsel %vm2591_vm9, %v1315_v20, %v1323_v26 }
  0xa2   : > { %1730 = vmatmul.bf16.gmra.mxu0 %v1638_v27  ;;  %v887_v27 = vunpack.c.l.b16 %v852_v6  ;;  %v1356_v39 = vunpack.c.l.b16 %v1324_v18 }
  0xa4   : > { %v896_v36 = vpack.c.b16 %v888_v28, %v887_v27  ;;  %v1364_v47 = vpack.c.b16 %v1356_v39, %v1355_v37 }
  0xa8   : > { %v2822_v9 = vpop.f32.mrf.mxu1 }
  0xab   : > { %731 = vmatmul.bf16.gmra.mxu1 %v1971_v42  ;;  %991 = vmatmul.bf16.gmra.mxu2 %v895_v49  ;;  %v557_v24 = vpop.f32.mrf.mxu0  ;;  %v1632_v49 = vunpack.c.l.b16 %v1600_v38 }
  0xad   : > { %1459 = vmatmul.bf16.gmra.mxu3 %v1363_v12  ;;  %v1640_v40 = vpack.c.b16 %v1632_v49, %v1631_v48 }
  0xae   : > { %v2826_v25 = vpop.f32.mrf.mxu2 }
  0xb0   : > { %v2828_v57 = vpop.f32.mrf.mxu3  ;;  %v2830_v11 = vpop.f32.mrf.mxu1 }
  0xb2   : > { %1735 = vmatmul.bf16.gmra.mxu0 %v1639_v0 }
  0xb3   : > { %v559_v33 = vpop.f32.mrf.mxu0 }
  0xb6   : > { %v2846_v31 = vpop.f32.mrf.mxu2 }
  0xb8   : > { %v2848_v41 = vpop.f32.mrf.mxu3  ;;  %v2850_v42 = vpop.f32.mrf.mxu1 }
  0xbb   : > { %736 = vmatmul.bf16.gmra.mxu1 %v1975_v35  ;;  %996 = vmatmul.bf16.gmra.mxu2 %v896_v36 }
  0xbd   : > { %1464 = vmatmul.bf16.gmra.mxu3 %v1364_v47 }
  0xbe   : > { %v2856_v50 = vpop.f32.mrf.mxu2 }
  0xbf   : > { %v562_v51 = vpop.f32.mrf.mxu0 }
  0xc0   : > { %v2858_v45 = vpop.f32.mrf.mxu1  ;;  %v2860_v54 = vpop.f32.mrf.mxu3 }
  0xc2   : > { %1740 = vmatmul.bf16.gmra.mxu0 %v1640_v40 }
  0xc6   : > { %v2862_v58 = vpop.f32.mrf.mxu2 }
  0xc7   : > { %v564_v55 = vpop.f32.mrf.mxu0 }
  0xc8   : > { %v702_v59 = vpop.f32.mrf.mxu1  ;;  %v2864_v60 = vpop.f32.mrf.mxu3 }
  0xc9   : > { %v703_v61 = vadd.f32 %v702_v59, %v557_v24 }
  0xce   : > { %v962_v43 = vpop.f32.mrf.mxu2 }
  0xcf   : > { %v1002_v8 = vadd.f32 %v962_v43, %v703_v61  ;;  %v1706_v12 = vpop.f32.mrf.mxu0 }
  0xd0   : > { %v704_v10 = vpop.f32.mrf.mxu1  ;;  %v1430_v13 = vpop.f32.mrf.mxu3 }
  0xd1   : > { %v1470_v2 = vadd.f32 %v1430_v13, %v1002_v8  ;;  %v705_v16 = vadd.f32 %v704_v10, %v559_v33 }
  0xd3   : > { %v1746_v30 = vadd.f32 %v1706_v12, %v1470_v2 }
  0xd5   : > { %v1766_v17 = vadd.f32 %v2869_v15, %v1746_v30 }
  0xd6   : > { %v964_v44 = vpop.f32.mrf.mxu2 }
  0xd7   : > { %v1003_v14 = vadd.f32 %v964_v44, %v705_v16  ;;  %v1708_v21 = vpop.f32.mrf.mxu0  ;;  %v1782_v32 = vmul.f32 0.1, %v1766_v17 }
  0xd8   : > { %v707_v52 = vpop.f32.mrf.mxu1  ;;  %v1432_v63 = vpop.f32.mrf.mxu3 }
  0xd9   : > { %v1471_v22 = vadd.f32 %v1432_v63, %v1003_v14  ;;  %v708_v24 = vadd.f32 %v707_v52, %v562_v51  ;;  %v1798_v1 = vmax.f32 %v1766_v17, %v1782_v32 }
  0xdb   : > { %v1747_v23 = vadd.f32 %v1708_v21, %v1471_v22 }
  0xdd   : > { %v1767_v3 = vadd.f32 %v2869_v15, %v1747_v23 }
  0xde   : > { %v967_v0 = vpop.f32.mrf.mxu2 }
  0xdf   : > { %v1004_v6 = vadd.f32 %v967_v0, %v708_v24  ;;  %v1783_v20 = vmul.f32 0.1, %v1767_v3  ;;  %v1711_v26 = vpop.f32.mrf.mxu0 }
  0xe0   : > { %v709_v4 = vpop.f32.mrf.mxu1  ;;  %v1435_v19 = vpop.f32.mrf.mxu3 }
  0xe1   : > { %v1799_v27 = vmax.f32 %v1767_v3, %v1783_v20  ;;  %v1472_v28 = vadd.f32 %v1435_v19, %v1004_v6  ;;  %v710_v29 = vadd.f32 %v709_v4, %v564_v55 }
  0xe3   : > { %v2190_v5 = vpack.c.bf16 %v1799_v27, %v1798_v1  ;;  %v1748_v18 = vadd.f32 %v1711_v26, %v1472_v28 }
  0xe5   : > { %2191 = vst [vmem:[%s2877_s4] sm:$0xff] %v2190_v5   ;;  %v1768_v33 = vadd.f32 %v2869_v15, %v1748_v18 }
  0xe6   : > { %v969_v34 = vpop.f32.mrf.mxu2 }
  0xe7   : > { %v1005_v53 = vadd.f32 %v969_v34, %v710_v29  ;;  %v1713_v56 = vpop.f32.mrf.mxu0  ;;  %v1784_v46 = vmul.f32 0.1, %v1768_v33 }
  0xe8   : > { %v712_v7 = vpop.f32.mrf.mxu1  ;;  %v1437_v62 = vpop.f32.mrf.mxu3 }
  0xe9   : > { %v1473_v35 = vadd.f32 %v1437_v62, %v1005_v53  ;;  %v713_v37 = vadd.f32 %v712_v7, %v2822_v9  ;;  %v1800_v59 = vmax.f32 %v1768_v33, %v1784_v46 }
  0xeb   : > { %v1749_v36 = vadd.f32 %v1713_v56, %v1473_v35 }
  0xed   : > { %v1769_v38 = vadd.f32 %v2869_v15, %v1749_v36 }
  0xee   : > { %v972_v39 = vpop.f32.mrf.mxu2 }
  0xef   : > { %v1006_v47 = vadd.f32 %v972_v39, %v713_v37  ;;  %v1785_v49 = vmul.f32 0.1, %v1769_v38  ;;  %v1716_v40 = vpop.f32.mrf.mxu0 }
  0xf0   : > { %v714_v48 = vpop.f32.mrf.mxu1  ;;  %v1440_v51 = vpop.f32.mrf.mxu3 }
  0xf1   : > { %v1801_v55 = vmax.f32 %v1769_v38, %v1785_v49  ;;  %v1474_v61 = vadd.f32 %v1440_v51, %v1006_v47  ;;  %v715_v8 = vadd.f32 %v714_v48, %v2830_v11 }
  0xf3   : > { %v2195_v43 = vpack.c.bf16 %v1801_v55, %v1800_v59  ;;  %v1750_v12 = vadd.f32 %v1716_v40, %v1474_v61 }
  0xf5   : > { %2227 = vst [vmem:[%s2877_s4 + $0x8] sm:$0xff] %v2195_v43   ;;  %v1770_v44 = vadd.f32 %v2869_v15, %v1750_v12 }
  0xf6   : > { %v974_v10 = vpop.f32.mrf.mxu2 }
  0xf7   : > { %v1007_v13 = vadd.f32 %v974_v10, %v715_v8  ;;  %v1718_v2 = vpop.f32.mrf.mxu0  ;;  %v1786_v63 = vmul.f32 0.1, %v1770_v44 }
  0xf8   : > { %v717_v9 = vpop.f32.mrf.mxu1  ;;  %v1442_v16 = vpop.f32.mrf.mxu3 }
  0xf9   : > { %v1475_v30 = vadd.f32 %v1442_v16, %v1007_v13  ;;  %v718_v52 = vadd.f32 %v717_v9, %v2850_v42  ;;  %v1802_v32 = vmax.f32 %v1770_v44, %v1786_v63 }
  0xfb   : > { %v1751_v14 = vadd.f32 %v1718_v2, %v1475_v30 }
  0xfd   : > { %v1771_v17 = vadd.f32 %v2869_v15, %v1751_v14 }
  0xfe   : > { %v977_v21 = vpop.f32.mrf.mxu2 }
  0xff   : > { %v1008_v22 = vadd.f32 %v977_v21, %v718_v52  ;;  %v1787_v23 = vmul.f32 0.1, %v1771_v17  ;;  %v1721_v24 = vpop.f32.mrf.mxu0 }
 0x100   : > { %v719_v11 = vpop.f32.mrf.mxu1  ;;  %v1445_v0 = vpop.f32.mrf.mxu3 }
 0x101   : > { %v1803_v3 = vmax.f32 %v1771_v17, %v1787_v23  ;;  %v1476_v6 = vadd.f32 %v1445_v0, %v1008_v22  ;;  %v720_v20 = vadd.f32 %v719_v11, %v2858_v45 }
 0x103   : > { %v2200_v4 = vpack.c.bf16 %v1803_v3, %v1802_v32  ;;  %v1752_v19 = vadd.f32 %v1721_v24, %v1476_v6 }
 0x105   : > { %2228 = vst [vmem:[%s2877_s4 + $0x10] sm:$0xff] %v2200_v4   ;;  %v1772_v5 = vadd.f32 %v2869_v15, %v1752_v19 }
 0x106   : > { %v979_v26 = vpop.f32.mrf.mxu2 }
 0x107   : > { %v1009_v1 = vadd.f32 %v979_v26, %v720_v20  ;;  %v1723_v27 = vpop.f32.mrf.mxu0  ;;  %v1788_v7 = vmul.f32 0.1, %v1772_v5 }
 0x108   : > { %v722_v42 = vpop.f32.mrf.mxu1  ;;  %v1447_v28 = vpop.f32.mrf.mxu3 }
 0x109   : > { %v1477_v29 = vadd.f32 %v1447_v28, %v1009_v1  ;;  %v723_v18 = vadd.f32 %v722_v42, %v2826_v25  ;;  %v1804_v37 = vmax.f32 %v1772_v5, %v1788_v7 }
 0x10b   : > { %v1753_v34 = vadd.f32 %v1723_v27, %v1477_v29 }
 0x10d   : > { %v1773_v56 = vadd.f32 %v2869_v15, %v1753_v34 }
 0x10e   : > { %v982_v53 = vpop.f32.mrf.mxu2 }
 0x10f   : > { %v1010_v62 = vadd.f32 %v982_v53, %v723_v18  ;;  %v1789_v33 = vmul.f32 0.1, %v1773_v56  ;;  %v1726_v35 = vpop.f32.mrf.mxu0 }
 0x110   : > { %v724_v45 = vpop.f32.mrf.mxu1  ;;  %v1450_v36 = vpop.f32.mrf.mxu3 }
 0x111   : > { %v1805_v39 = vmax.f32 %v1773_v56, %v1789_v33  ;;  %v1478_v46 = vadd.f32 %v1450_v36, %v1010_v62  ;;  %v725_v47 = vadd.f32 %v724_v45, %v2846_v31 }
 0x113   : > { %v2205_v38 = vpack.c.bf16 %v1805_v39, %v1804_v37  ;;  %v1754_v49 = vadd.f32 %v1726_v35, %v1478_v46 }
 0x115   : > { %2229 = vst [vmem:[%s2877_s4 + $0x18] sm:$0xff] %v2205_v38   ;;  %v1774_v55 = vadd.f32 %v2869_v15, %v1754_v49 }
 0x116   : > { %v984_v48 = vpop.f32.mrf.mxu2 }
 0x117   : > { %v1011_v40 = vadd.f32 %v984_v48, %v725_v47  ;;  %v1728_v51 = vpop.f32.mrf.mxu0  ;;  %v1790_v12 = vmul.f32 0.1, %v1774_v55 }
 0x118   : > { %v727_v25 = vpop.f32.mrf.mxu1  ;;  %v1452_v59 = vpop.f32.mrf.mxu3 }
 0x119   : > { %v1479_v61 = vadd.f32 %v1452_v59, %v1011_v40  ;;  %v728_v8 = vadd.f32 %v727_v25, %v2856_v50  ;;  %v1806_v30 = vmax.f32 %v1774_v55, %v1790_v12 }
 0x11b   : > { %v1755_v43 = vadd.f32 %v1728_v51, %v1479_v61 }
 0x11d   : > { %v1775_v13 = vadd.f32 %v2869_v15, %v1755_v43 }
 0x11e   : > { %v987_v10 = vpop.f32.mrf.mxu2 }
 0x11f   : > { %v1012_v9 = vadd.f32 %v987_v10, %v728_v8  ;;  %v1791_v2 = vmul.f32 0.1, %v1775_v13  ;;  %v1731_v16 = vpop.f32.mrf.mxu0 }
 0x120   : > { %v729_v31 = vpop.f32.mrf.mxu1  ;;  %v1455_v44 = vpop.f32.mrf.mxu3 }
 0x121   : > { %v1807_v14 = vmax.f32 %v1775_v13, %v1791_v2  ;;  %v1480_v52 = vadd.f32 %v1455_v44, %v1012_v9  ;;  %v730_v63 = vadd.f32 %v729_v31, %v2862_v58 }
 0x123   : > { %v2210_v21 = vpack.c.bf16 %v1807_v14, %v1806_v30  ;;  %v1756_v22 = vadd.f32 %v1731_v16, %v1480_v52 }
 0x125   : > { %2230 = vst [vmem:[%s2877_s4 + $0x20] sm:$0xff] %v2210_v21   ;;  %v1776_v0 = vadd.f32 %v2869_v15, %v1756_v22 }
 0x126   : > { %v989_v17 = vpop.f32.mrf.mxu2 }
 0x127   : > { %v1013_v11 = vadd.f32 %v989_v17, %v730_v63  ;;  %v1733_v23 = vpop.f32.mrf.mxu0  ;;  %v1792_v20 = vmul.f32 0.1, %v1776_v0 }
 0x128   : > { %v732_v50 = vpop.f32.mrf.mxu1  ;;  %v1457_v24 = vpop.f32.mrf.mxu3 }
 0x129   : > { %v1481_v32 = vadd.f32 %v1457_v24, %v1013_v11  ;;  %v733_v6 = vadd.f32 %v732_v50, %v2828_v57  ;;  %v1808_v28 = vmax.f32 %v1776_v0, %v1792_v20 }
 0x12b   : > { %v1757_v3 = vadd.f32 %v1733_v23, %v1481_v32 }
 0x12d   : > { %v1777_v26 = vadd.f32 %v2869_v15, %v1757_v3 }
 0x12e   : > { %v992_v4 = vpop.f32.mrf.mxu2 }
 0x12f   : > { %v1014_v19 = vadd.f32 %v992_v4, %v733_v6  ;;  %v1793_v1 = vmul.f32 0.1, %v1777_v26  ;;  %v1736_v42 = vpop.f32.mrf.mxu0 }
 0x130   : > { %v734_v58 = vpop.f32.mrf.mxu1  ;;  %v1460_v27 = vpop.f32.mrf.mxu3 }
 0x131   : > { %v1809_v5 = vmax.f32 %v1777_v26, %v1793_v1  ;;  %v1482_v29 = vadd.f32 %v1460_v27, %v1014_v19  ;;  %v735_v18 = vadd.f32 %v734_v58, %v2848_v41 }
 0x133   : > { %v2215_v34 = vpack.c.bf16 %v1809_v5, %v1808_v28  ;;  %v1758_v7 = vadd.f32 %v1736_v42, %v1482_v29 }
 0x135   : > { %2231 = vst [vmem:[%s2877_s4 + $0x28] sm:$0xff] %v2215_v34   ;;  %v1778_v33 = vadd.f32 %v2869_v15, %v1758_v7 }
 0x136   : > { %v994_v53 = vpop.f32.mrf.mxu2 }
 0x137   : > { %v1015_v56 = vadd.f32 %v994_v53, %v735_v18  ;;  %v1738_v62 = vpop.f32.mrf.mxu0  ;;  %v1794_v46 = vmul.f32 0.1, %v1778_v33 }
 0x138   : > { %v737_v57 = vpop.f32.mrf.mxu1  ;;  %v1462_v45 = vpop.f32.mrf.mxu3 }
 0x139   : > { %v1483_v35 = vadd.f32 %v1462_v45, %v1015_v56  ;;  %v738_v37 = vadd.f32 %v737_v57, %v2860_v54  ;;  %v1810_v25 = vmax.f32 %v1778_v33, %v1794_v46 }
 0x13b   : > { %v1759_v36 = vadd.f32 %v1738_v62, %v1483_v35 }
 0x13d   : > { %v1779_v38 = vadd.f32 %v2869_v15, %v1759_v36 }
 0x13e   : > { %v997_v39 = vpop.f32.mrf.mxu2 }
 0x13f   : > { %v1016_v47 = vadd.f32 %v997_v39, %v738_v37  ;;  %v1795_v41 = vmul.f32 0.1, %v1779_v38  ;;  %v1741_v49 = vpop.f32.mrf.mxu0 }
 0x140   : > { %v739_v48 = vpop.f32.mrf.mxu1  ;;  %v1465_v40 = vpop.f32.mrf.mxu3 }
 0x141   : > { %v1811_v51 = vmax.f32 %v1779_v38, %v1795_v41  ;;  %v1484_v59 = vadd.f32 %v1465_v40, %v1016_v47  ;;  %v740_v61 = vadd.f32 %v739_v48, %v2864_v60 }
 0x143   : > { %v2220_v55 = vpack.c.bf16 %v1811_v51, %v1810_v25  ;;  %v1760_v8 = vadd.f32 %v1741_v49, %v1484_v59 }
 0x145   : > { %2232 = vst [vmem:[%s2877_s4 + $0x30] sm:$0xff] %v2220_v55   ;;  %v1780_v12 = vadd.f32 %v2869_v15, %v1760_v8 }
 0x146   : > { %v999_v43 = vpop.f32.mrf.mxu2 }
 0x147   : > { %v1017_v54 = vadd.f32 %v999_v43, %v740_v61  ;;  %v1743_v9 = vpop.f32.mrf.mxu0  ;;  %v1796_v2 = vmul.f32 0.1, %v1780_v12 }
 0x148   : > { %v1467_v10 = vpop.f32.mrf.mxu3 }
 0x149   : > { %v1485_v13 = vadd.f32 %v1467_v10, %v1017_v54  ;;  %v1812_v30 = vmax.f32 %v1780_v12, %v1796_v2 }
 0x14b   : > { %v1761_v31 = vadd.f32 %v1743_v9, %v1485_v13 }
 0x14d   : > { %v1781_v16 = vadd.f32 %v2869_v15, %v1761_v31 }
 0x14f   : > { %v1797_v44 = vmul.f32 0.1, %v1781_v16 }
 0x151   : > { %v1813_v14 = vmax.f32 %v1781_v16, %v1797_v44 }
 0x153   : > { %v2225_v52 = vpack.c.bf16 %v1813_v14, %v1812_v30 }
 0x155   : > { %2233 = vst [vmem:[%s2877_s4 + $0x38] sm:$0xff] %v2225_v52  }
 0x156 PF: > { %s13_s12 = sadd.s32 1, %s2279_s12  }
 0x157   : > { %p10_p4 = scmp.ge.s32.totalorder %s13_s12, 4  }
 0x159   :  { %12 = sbr.rel (!%p10_p4) target bundleno = 1 (0x1), region = 62 }

</bundles_post_ra>
